<compile_context>
chip_gen: v7x
topology: tpu7x:2x2x1
jax: 0.10.0
libtpu: 0.0.40
codegen_flags: <defaults>
</compile_context>

<pallas_src>
import jax
import jax.numpy as jnp
from jax.experimental import pallas as pl
from jax.experimental.pallas import tpu as pltpu


_ROW_CHUNK = 256  # conv3 output-row chunk: (256,128) f32 dot result = 32 vregs (register-resident)


def pointnetfeat_kernel(x_ref, w1_ref, b1_ref, w2_ref, b2_ref, w3_ref,
                        out_ref, acc_ref):
    # x_ref:  (1, 3, TN)      native NCW tile: channels on sublanes, points on lanes, f32
    # w1_ref: (64, 3)   f32   b1_ref: (64, 1)  f32
    # w2_ref: (128, 64) bf16  b2_ref: (128, 1) f32
    # w3_ref: (1024, 128) bf16
    # out_ref: (1, 1, 1024, 1) f32   (conv3 bias is added in the wrapper)
    # acc_ref: (1024, 128) f32 -- lane-folded running max over point tiles
    j = pl.program_id(2)

    @pl.when(j == 0)
    def _init():
        acc_ref[...] = jnp.full_like(acc_ref, -jnp.inf)

    x = x_ref[0]            # (3, TN) f32
    w1 = w1_ref[...]        # (64, 3) f32

    # conv1 (K=3): three VPU broadcast-FMAs (column (64,1) x row (1,TN)) -- no MXU pass.
    h1 = (w1[:, 0:1] * x[0:1, :]
          + w1[:, 1:2] * x[1:2, :]
          + w1[:, 2:3] * x[2:3, :]
          + b1_ref[...])
    h1 = jnp.maximum(h1, 0.0)                                      # relu(conv1), (64, TN) f32

    # conv2: bf16 operands, f32 accumulation on the MXU; bias + relu + cast fused into one
    # value chain so only the bf16 h2 is materialized.
    h2 = jnp.dot(w2_ref[...], h1.astype(jnp.bfloat16),
                 preferred_element_type=jnp.float32)               # (128, TN) f32
    h2b = jnp.maximum(h2 + b2_ref[...], 0.0).astype(jnp.bfloat16)  # (128, TN) bf16

    # conv3 fused with the max over points: loop over 256-row chunks of the 1024 output
    # channels (outer) and 128-lane point chunks (inner).  The per-row-chunk running max
    # `m` (32 vregs) stays in registers; acc_ref is touched once per row chunk per tile.
    tn = h2b.shape[1]
    n_pt_chunks = tn // 128
    n_row_chunks = 1024 // _ROW_CHUNK
    for r in range(n_row_chunks):
        w3_r = w3_ref[r * _ROW_CHUNK:(r + 1) * _ROW_CHUNK, :]      # (256, 128) bf16
        m = None
        for i in range(n_pt_chunks):
            c = h2b[:, i * 128:(i + 1) * 128]                      # (128, 128) bf16
            d = jnp.dot(w3_r, c, preferred_element_type=jnp.float32)  # (256, 128) f32
            m = d if m is None else jnp.maximum(m, d)
        acc_ref[r * _ROW_CHUNK:(r + 1) * _ROW_CHUNK, :] = jnp.maximum(
            acc_ref[r * _ROW_CHUNK:(r + 1) * _ROW_CHUNK, :], m)

    @pl.when(j == pl.num_programs(2) - 1)
    def _finalize():
        gmax = jnp.max(acc_ref[...], axis=1, keepdims=True)        # (1024, 1): one XLU pass
        out_ref[...] = gmax.reshape(1, 1, 1024, 1).astype(out_ref.dtype)


def _pick_tile(points, requested):
    """Largest multiple of 128 that divides `points` and is <= requested."""
    t = min(requested, points)
    t = (t // 128) * 128
    while points % t != 0:
        t -= 128
    return t


def pointnetfeat_forward(x_ncw, params, *, tn=2048, n_splits=None):
    """x_ncw: (B, 3, N) float32 (PyTorch NCW layout)  ->  (B, 1024) float32."""
    B, C_in, N = x_ncw.shape
    assert C_in == 3
    # TODO(synk): ragged point counts (N not a multiple of 128) need a masked / point-replicated
    #             tail tile (zero-padding is NOT safe for the max over conv3 outputs).
    assert N % 128 == 0, "N must be a multiple of 128"

    if n_splits is None:
        # Keep both v7x TensorCores busy when the batch axis alone can't be split evenly.
        # On 1-TC chips the extra split only costs one more finalize + a tiny wrapper max.
        n_splits = 2 if (B % 2 == 1 and N % 256 == 0) else 1
    assert N % n_splits == 0
    pts_per_split = N // n_splits
    assert pts_per_split % 128 == 0

    tn = _pick_tile(pts_per_split, tn)
    j_per_split = pts_per_split // tn

    # One-time weight prep in the wrapper (transpose to (Cout, Cin), bf16 for the MXU dots,
    # biases as f32 columns). No per-call transpose of the big activation tensor.
    w1, b1, w2, b2, w3, b3 = params
    w1t = jnp.asarray(w1, jnp.float32).T                       # (64, 3)    f32 (VPU conv1)
    b1c = jnp.asarray(b1, jnp.float32).reshape(64, 1)
    w2t = jnp.asarray(w2, jnp.float32).T.astype(jnp.bfloat16)  # (128, 64)  bf16
    b2c = jnp.asarray(b2, jnp.float32).reshape(128, 1)
    w3t = jnp.asarray(w3, jnp.float32).T.astype(jnp.bfloat16)  # (1024,128) bf16
    b3r = jnp.asarray(b3, jnp.float32).reshape(1, 1024)        # added in the wrapper

    x_f32 = x_ncw.astype(jnp.float32)

    grid = (B, n_splits, j_per_split)

    out = pl.pallas_call(
        pointnetfeat_kernel,
        out_shape=jax.ShapeDtypeStruct((B, n_splits, 1024, 1), jnp.float32),
        grid_spec=pltpu.PrefetchScalarGridSpec(
            num_scalar_prefetch=0,
            grid=grid,
            in_specs=[
                # x tile in native layout: (1, 3, tn)
                pl.BlockSpec((1, 3, tn),
                             lambda b, s, j: (b, 0, s * j_per_split + j)),
                pl.BlockSpec((64, 3), lambda b, s, j: (0, 0)),       # w1^T
                pl.BlockSpec((64, 1), lambda b, s, j: (0, 0)),       # b1
                pl.BlockSpec((128, 64), lambda b, s, j: (0, 0)),     # w2^T (bf16)
                pl.BlockSpec((128, 1), lambda b, s, j: (0, 0)),      # b2
                pl.BlockSpec((1024, 128), lambda b, s, j: (0, 0)),   # w3^T (bf16)
            ],
            out_specs=pl.BlockSpec((1, 1, 1024, 1), lambda b, s, j: (b, s, 0, 0)),
            scratch_shapes=[pltpu.VMEM((1024, 128), jnp.float32)],
        ),
        compiler_params=pltpu.CompilerParams(
            dimension_semantics=("parallel", "parallel", "arbitrary")),
    )(x_f32, w1t, b1c, w2t, b2c, w3t)

    # Collapse the (tiny) split axis and add the deferred conv3 bias in the wrapper:
    # max over points of (w3 @ h2 + b3) == (max over points of w3 @ h2) + b3.
    feat = jnp.max(out.reshape(B, n_splits, 1024), axis=1) + b3r   # (B, 1024)
    return feat                                                    # == x.view(-1, 1024)


def init_params(key):
    """Deterministic init. Weights stored as (Cin, Cout) = PyTorch conv weight[:, :, 0].T"""
    ks = jax.random.split(key, 6)

    def u(k, shape, fan_in):
        bound = 1.0 / jnp.sqrt(fan_in)
        return jax.random.uniform(k, shape, jnp.float32, -bound, bound)

    w1 = u(ks[0], (3, 64), 3)
    b1 = u(ks[1], (1, 64), 3)
    w2 = u(ks[2], (64, 128), 64)
    b2 = u(ks[3], (1, 128), 64)
    w3 = u(ks[4], (128, 1024), 128)
    b3 = u(ks[5], (1, 1024), 128)
    return (w1, b1, w2, b2, w3, b3)


def reference_forward(x_ncw, params):
    w1, b1, w2, b2, w3, b3 = params
    x = jnp.transpose(x_ncw, (0, 2, 1)).astype(jnp.float32)      # (B, N, 3)
    h = jax.nn.relu(x @ w1 + b1)
    h = jax.nn.relu(h @ w2 + b2)
    h = h @ w3 + b3
    return jnp.max(h, axis=1)                                    # (B, 1024)


if __name__ == "__main__":
    key = jax.random.PRNGKey(0)
    k_x1, k_x2, k_p = jax.random.split(key, 3)
    params = init_params(k_p)

    # Case 1: even batch -> megacore shards on B, single point-split, one 1024-point tile.
    B1, N1 = 2, 1024
    x1 = jax.random.normal(k_x1, (B1, 3, N1), dtype=jnp.float32)   # PyTorch NCW layout
    out1 = jax.block_until_ready(pointnetfeat_forward(x1, params))
    ref1 = reference_forward(x1, params)
    assert out1.shape == (B1, 1024)
    assert jnp.allclose(out1, ref1, atol=2e-2, rtol=2e-2), "mismatch vs reference (case 1)"

    # Case 2: B == 1 -> auto point-axis split of 2 so both v7x cores get work.
    B2, N2 = 1, 2048
    x2 = jax.random.normal(k_x2, (B2, 3, N2), dtype=jnp.float32)
    out2 = jax.block_until_ready(pointnetfeat_forward(x2, params))
    ref2 = reference_forward(x2, params)
    assert out2.shape == (B2, 1024)
    assert jnp.allclose(out2, ref2, atol=2e-2, rtol=2e-2), "mismatch vs reference (case 2)"

    print("KERNEL_OK")
</pallas_src>

<mosaic_0001>
module attributes {stable_mosaic.version = 11 : i64} {
  func.func @pointnetfeat_kernel(%arg0: i32, %arg1: i32, %arg2: i32, %arg3: memref<1x3x1024xf32, #tpu.memory_space<vmem>>, %arg4: memref<64x3xf32, #tpu.memory_space<vmem>>, %arg5: memref<64x1xf32, #tpu.memory_space<vmem>>, %arg6: memref<128x64xbf16, #tpu.memory_space<vmem>>, %arg7: memref<128x1xf32, #tpu.memory_space<vmem>>, %arg8: memref<1024x128xbf16, #tpu.memory_space<vmem>>, %arg9: memref<1x1x1024x1xf32, #tpu.memory_space<vmem>>, %arg10: memref<1024x128xf32, #tpu.memory_space<vmem>>) attributes {dimension_semantics = [#tpu.dimension_semantics<parallel>, #tpu.dimension_semantics<parallel>, #tpu.dimension_semantics<arbitrary>], iteration_bounds = array<i64: 2, 1, 1>, scalar_prefetch = 0 : i64, scratch_operands = 1 : i64, tpu.core_type = #tpu.core_type<tc>, window_params = [{transform_indices = @transform_0, window_bounds = array<i64: 1, 3, 1024>}, {pipeline_mode = #tpu.pipeline_mode<synchronous>, transform_indices = @transform_1, window_bounds = array<i64: 64, 3>}, {pipeline_mode = #tpu.pipeline_mode<synchronous>, transform_indices = @transform_2, window_bounds = array<i64: 64, 1>}, {pipeline_mode = #tpu.pipeline_mode<synchronous>, transform_indices = @transform_3, window_bounds = array<i64: 128, 64>}, {pipeline_mode = #tpu.pipeline_mode<synchronous>, transform_indices = @transform_4, window_bounds = array<i64: 128, 1>}, {pipeline_mode = #tpu.pipeline_mode<synchronous>, transform_indices = @transform_5, window_bounds = array<i64: 1024, 128>}, {transform_indices = @transform_6, window_bounds = array<i64: 1, 1, 1024, 1>}]} {
    %c0_i32 = arith.constant 0 : i32
    %0 = arith.cmpi eq, %arg2, %c0_i32 : i32
    %1 = arith.extui %0 : i1 to i32
    %c0_i32_0 = arith.constant 0 : i32
    %2 = arith.cmpi ne, %1, %c0_i32_0 : i32
    scf.if %2 {
      %cst_68 = arith.constant 0xFF800000 : f32
      %148 = vector.broadcast %cst_68 : f32 to vector<1024x128xf32>
      %c0_69 = arith.constant 0 : index
      %c0_70 = arith.constant 0 : index
      %149 = vector.load %arg10[%c0_69, %c0_70] : memref<1024x128xf32, #tpu.memory_space<vmem>>, vector<1024x128xf32>
      tpu.vector_store %arg10[%c0_69, %c0_70], %148 {strides = array<i32>} : memref<1024x128xf32, #tpu.memory_space<vmem>>, vector<1024x128xf32>,
    } else {
    }
    %c0 = arith.constant 0 : index
    %c0_1 = arith.constant 0 : index
    %c0_2 = arith.constant 0 : index
    %3 = vector.load %arg3[%c0, %c0_1, %c0_2] : memref<1x3x1024xf32, #tpu.memory_space<vmem>>, vector<1x3x1024xf32>
    %4 = vector.shape_cast %3 : vector<1x3x1024xf32> to vector<3x1024xf32>
    %c0_3 = arith.constant 0 : index
    %c0_4 = arith.constant 0 : index
    %5 = vector.load %arg4[%c0_3, %c0_4] : memref<64x3xf32, #tpu.memory_space<vmem>>, vector<64x3xf32>
    %6 = vector.extract_strided_slice %5 {offsets = [0, 0], sizes = [64, 1], strides = [1, 1]} : vector<64x3xf32> to vector<64x1xf32>
    %7 = vector.extract_strided_slice %4 {offsets = [0, 0], sizes = [1, 1024], strides = [1, 1]} : vector<3x1024xf32> to vector<1x1024xf32>
    %8 = vector.broadcast %6 : vector<64x1xf32> to vector<64x1024xf32>
    %9 = vector.broadcast %7 : vector<1x1024xf32> to vector<64x1024xf32>
    %10 = arith.mulf %8, %9 : vector<64x1024xf32>
    %11 = vector.extract_strided_slice %5 {offsets = [0, 1], sizes = [64, 1], strides = [1, 1]} : vector<64x3xf32> to vector<64x1xf32>
    %12 = vector.extract_strided_slice %4 {offsets = [1, 0], sizes = [1, 1024], strides = [1, 1]} : vector<3x1024xf32> to vector<1x1024xf32>
    %13 = vector.broadcast %11 : vector<64x1xf32> to vector<64x1024xf32>
    %14 = vector.broadcast %12 : vector<1x1024xf32> to vector<64x1024xf32>
    %15 = arith.mulf %13, %14 : vector<64x1024xf32>
    %16 = arith.addf %10, %15 : vector<64x1024xf32>
    %17 = vector.extract_strided_slice %5 {offsets = [0, 2], sizes = [64, 1], strides = [1, 1]} : vector<64x3xf32> to vector<64x1xf32>
    %18 = vector.extract_strided_slice %4 {offsets = [2, 0], sizes = [1, 1024], strides = [1, 1]} : vector<3x1024xf32> to vector<1x1024xf32>
    %19 = vector.broadcast %17 : vector<64x1xf32> to vector<64x1024xf32>
    %20 = vector.broadcast %18 : vector<1x1024xf32> to vector<64x1024xf32>
    %21 = arith.mulf %19, %20 : vector<64x1024xf32>
    %22 = arith.addf %16, %21 : vector<64x1024xf32>
    %c0_5 = arith.constant 0 : index
    %c0_6 = arith.constant 0 : index
    %23 = vector.load %arg5[%c0_5, %c0_6] : memref<64x1xf32, #tpu.memory_space<vmem>>, vector<64x1xf32>
    %24 = vector.broadcast %23 : vector<64x1xf32> to vector<64x1024xf32>
    %25 = arith.addf %22, %24 : vector<64x1024xf32>
    %cst = arith.constant 0.000000e+00 : f32
    %26 = vector.broadcast %cst : f32 to vector<64x1024xf32>
    %27 = arith.maximumf %25, %26 : vector<64x1024xf32>
    %c0_7 = arith.constant 0 : index
    %c0_8 = arith.constant 0 : index
    %28 = vector.load %arg6[%c0_7, %c0_8] : memref<128x64xbf16, #tpu.memory_space<vmem>>, vector<128x64xbf16>
    %29 = arith.truncf %27 : vector<64x1024xf32> to vector<64x1024xbf16>
    %cst_9 = arith.constant dense<0.000000e+00> : vector<128x1024xf32>
    %30 = tpu.matmul %28, %29, %cst_9 {dimension_numbers = #tpu.dot_dimension_numbers<[1], [0], [0], [1], [0, 0, 1, 1], [], []>} : vector<128x64xbf16>, vector<64x1024xbf16>, vector<128x1024xf32> -> vector<128x1024xf32>
    %c0_10 = arith.constant 0 : index
    %c0_11 = arith.constant 0 : index
    %31 = vector.load %arg7[%c0_10, %c0_11] : memref<128x1xf32, #tpu.memory_space<vmem>>, vector<128x1xf32>
    %32 = vector.broadcast %31 : vector<128x1xf32> to vector<128x1024xf32>
    %33 = arith.addf %30, %32 : vector<128x1024xf32>
    %cst_12 = arith.constant 0.000000e+00 : f32
    %34 = vector.broadcast %cst_12 : f32 to vector<128x1024xf32>
    %35 = arith.maximumf %33, %34 : vector<128x1024xf32>
    %36 = arith.truncf %35 : vector<128x1024xf32> to vector<128x1024xbf16>
    %c0_13 = arith.constant 0 : index
    %c0_14 = arith.constant 0 : index
    %37 = vector.load %arg8[%c0_13, %c0_14] : memref<1024x128xbf16, #tpu.memory_space<vmem>>, vector<256x128xbf16>
    %38 = vector.extract_strided_slice %36 {offsets = [0, 0], sizes = [128, 128], strides = [1, 1]} : vector<128x1024xbf16> to vector<128x128xbf16>
    %cst_15 = arith.constant dense<0.000000e+00> : vector<256x128xf32>
    %39 = tpu.matmul %37, %38, %cst_15 {dimension_numbers = #tpu.dot_dimension_numbers<[1], [0], [0], [1], [0, 0, 1, 1], [], []>} : vector<256x128xbf16>, vector<128x128xbf16>, vector<256x128xf32> -> vector<256x128xf32>
    %40 = vector.extract_strided_slice %36 {offsets = [0, 128], sizes = [128, 128], strides = [1, 1]} : vector<128x1024xbf16> to vector<128x128xbf16>
    %cst_16 = arith.constant dense<0.000000e+00> : vector<256x128xf32>
    %41 = tpu.matmul %37, %40, %cst_16 {dimension_numbers = #tpu.dot_dimension_numbers<[1], [0], [0], [1], [0, 0, 1, 1], [], []>} : vector<256x128xbf16>, vector<128x128xbf16>, vector<256x128xf32> -> vector<256x128xf32>
    %42 = arith.maximumf %39, %41 : vector<256x128xf32>
    %43 = vector.extract_strided_slice %36 {offsets = [0, 256], sizes = [128, 128], strides = [1, 1]} : vector<128x1024xbf16> to vector<128x128xbf16>
    %cst_17 = arith.constant dense<0.000000e+00> : vector<256x128xf32>
    %44 = tpu.matmul %37, %43, %cst_17 {dimension_numbers = #tpu.dot_dimension_numbers<[1], [0], [0], [1], [0, 0, 1, 1], [], []>} : vector<256x128xbf16>, vector<128x128xbf16>, vector<256x128xf32> -> vector<256x128xf32>
    %45 = arith.maximumf %42, %44 : vector<256x128xf32>
    %46 = vector.extract_strided_slice %36 {offsets = [0, 384], sizes = [128, 128], strides = [1, 1]} : vector<128x1024xbf16> to vector<128x128xbf16>
    %cst_18 = arith.constant dense<0.000000e+00> : vector<256x128xf32>
    %47 = tpu.matmul %37, %46, %cst_18 {dimension_numbers = #tpu.dot_dimension_numbers<[1], [0], [0], [1], [0, 0, 1, 1], [], []>} : vector<256x128xbf16>, vector<128x128xbf16>, vector<256x128xf32> -> vector<256x128xf32>
    %48 = arith.maximumf %45, %47 : vector<256x128xf32>
    %49 = vector.extract_strided_slice %36 {offsets = [0, 512], sizes = [128, 128], strides = [1, 1]} : vector<128x1024xbf16> to vector<128x128xbf16>
    %cst_19 = arith.constant dense<0.000000e+00> : vector<256x128xf32>
    %50 = tpu.matmul %37, %49, %cst_19 {dimension_numbers = #tpu.dot_dimension_numbers<[1], [0], [0], [1], [0, 0, 1, 1], [], []>} : vector<256x128xbf16>, vector<128x128xbf16>, vector<256x128xf32> -> vector<256x128xf32>
    %51 = arith.maximumf %48, %50 : vector<256x128xf32>
    %52 = vector.extract_strided_slice %36 {offsets = [0, 640], sizes = [128, 128], strides = [1, 1]} : vector<128x1024xbf16> to vector<128x128xbf16>
    %cst_20 = arith.constant dense<0.000000e+00> : vector<256x128xf32>
    %53 = tpu.matmul %37, %52, %cst_20 {dimension_numbers = #tpu.dot_dimension_numbers<[1], [0], [0], [1], [0, 0, 1, 1], [], []>} : vector<256x128xbf16>, vector<128x128xbf16>, vector<256x128xf32> -> vector<256x128xf32>
    %54 = arith.maximumf %51, %53 : vector<256x128xf32>
    %55 = vector.extract_strided_slice %36 {offsets = [0, 768], sizes = [128, 128], strides = [1, 1]} : vector<128x1024xbf16> to vector<128x128xbf16>
    %cst_21 = arith.constant dense<0.000000e+00> : vector<256x128xf32>
    %56 = tpu.matmul %37, %55, %cst_21 {dimension_numbers = #tpu.dot_dimension_numbers<[1], [0], [0], [1], [0, 0, 1, 1], [], []>} : vector<256x128xbf16>, vector<128x128xbf16>, vector<256x128xf32> -> vector<256x128xf32>
    %57 = arith.maximumf %54, %56 : vector<256x128xf32>
    %58 = vector.extract_strided_slice %36 {offsets = [0, 896], sizes = [128, 128], strides = [1, 1]} : vector<128x1024xbf16> to vector<128x128xbf16>
    %cst_22 = arith.constant dense<0.000000e+00> : vector<256x128xf32>
    %59 = tpu.matmul %37, %58, %cst_22 {dimension_numbers = #tpu.dot_dimension_numbers<[1], [0], [0], [1], [0, 0, 1, 1], [], []>} : vector<256x128xbf16>, vector<128x128xbf16>, vector<256x128xf32> -> vector<256x128xf32>
    %60 = arith.maximumf %57, %59 : vector<256x128xf32>
    %c0_23 = arith.constant 0 : index
    %c0_24 = arith.constant 0 : index
    %61 = vector.load %arg10[%c0_23, %c0_24] : memref<1024x128xf32, #tpu.memory_space<vmem>>, vector<256x128xf32>
    %62 = arith.maximumf %61, %60 : vector<256x128xf32>
    %c0_25 = arith.constant 0 : index
    %c0_26 = arith.constant 0 : index
    %63 = vector.load %arg10[%c0_25, %c0_26] : memref<1024x128xf32, #tpu.memory_space<vmem>>, vector<256x128xf32>
    tpu.vector_store %arg10[%c0_25, %c0_26], %62 {strides = array<i32>} : memref<1024x128xf32, #tpu.memory_space<vmem>>, vector<256x128xf32>,
    %c256 = arith.constant 256 : index
    %c0_27 = arith.constant 0 : index
    %64 = vector.load %arg8[%c256, %c0_27] : memref<1024x128xbf16, #tpu.memory_space<vmem>>, vector<256x128xbf16>
    %65 = vector.extract_strided_slice %36 {offsets = [0, 0], sizes = [128, 128], strides = [1, 1]} : vector<128x1024xbf16> to vector<128x128xbf16>
    %cst_28 = arith.constant dense<0.000000e+00> : vector<256x128xf32>
    %66 = tpu.matmul %64, %65, %cst_28 {dimension_numbers = #tpu.dot_dimension_numbers<[1], [0], [0], [1], [0, 0, 1, 1], [], []>} : vector<256x128xbf16>, vector<128x128xbf16>, vector<256x128xf32> -> vector<256x128xf32>
    %67 = vector.extract_strided_slice %36 {offsets = [0, 128], sizes = [128, 128], strides = [1, 1]} : vector<128x1024xbf16> to vector<128x128xbf16>
    %cst_29 = arith.constant dense<0.000000e+00> : vector<256x128xf32>
    %68 = tpu.matmul %64, %67, %cst_29 {dimension_numbers = #tpu.dot_dimension_numbers<[1], [0], [0], [1], [0, 0, 1, 1], [], []>} : vector<256x128xbf16>, vector<128x128xbf16>, vector<256x128xf32> -> vector<256x128xf32>
    %69 = arith.maximumf %66, %68 : vector<256x128xf32>
    %70 = vector.extract_strided_slice %36 {offsets = [0, 256], sizes = [128, 128], strides = [1, 1]} : vector<128x1024xbf16> to vector<128x128xbf16>
    %cst_30 = arith.constant dense<0.000000e+00> : vector<256x128xf32>
    %71 = tpu.matmul %64, %70, %cst_30 {dimension_numbers = #tpu.dot_dimension_numbers<[1], [0], [0], [1], [0, 0, 1, 1], [], []>} : vector<256x128xbf16>, vector<128x128xbf16>, vector<256x128xf32> -> vector<256x128xf32>
    %72 = arith.maximumf %69, %71 : vector<256x128xf32>
    %73 = vector.extract_strided_slice %36 {offsets = [0, 384], sizes = [128, 128], strides = [1, 1]} : vector<128x1024xbf16> to vector<128x128xbf16>
    %cst_31 = arith.constant dense<0.000000e+00> : vector<256x128xf32>
    %74 = tpu.matmul %64, %73, %cst_31 {dimension_numbers = #tpu.dot_dimension_numbers<[1], [0], [0], [1], [0, 0, 1, 1], [], []>} : vector<256x128xbf16>, vector<128x128xbf16>, vector<256x128xf32> -> vector<256x128xf32>
    %75 = arith.maximumf %72, %74 : vector<256x128xf32>
    %76 = vector.extract_strided_slice %36 {offsets = [0, 512], sizes = [128, 128], strides = [1, 1]} : vector<128x1024xbf16> to vector<128x128xbf16>
    %cst_32 = arith.constant dense<0.000000e+00> : vector<256x128xf32>
    %77 = tpu.matmul %64, %76, %cst_32 {dimension_numbers = #tpu.dot_dimension_numbers<[1], [0], [0], [1], [0, 0, 1, 1], [], []>} : vector<256x128xbf16>, vector<128x128xbf16>, vector<256x128xf32> -> vector<256x128xf32>
    %78 = arith.maximumf %75, %77 : vector<256x128xf32>
    %79 = vector.extract_strided_slice %36 {offsets = [0, 640], sizes = [128, 128], strides = [1, 1]} : vector<128x1024xbf16> to vector<128x128xbf16>
    %cst_33 = arith.constant dense<0.000000e+00> : vector<256x128xf32>
    %80 = tpu.matmul %64, %79, %cst_33 {dimension_numbers = #tpu.dot_dimension_numbers<[1], [0], [0], [1], [0, 0, 1, 1], [], []>} : vector<256x128xbf16>, vector<128x128xbf16>, vector<256x128xf32> -> vector<256x128xf32>
    %81 = arith.maximumf %78, %80 : vector<256x128xf32>
    %82 = vector.extract_strided_slice %36 {offsets = [0, 768], sizes = [128, 128], strides = [1, 1]} : vector<128x1024xbf16> to vector<128x128xbf16>
    %cst_34 = arith.constant dense<0.000000e+00> : vector<256x128xf32>
    %83 = tpu.matmul %64, %82, %cst_34 {dimension_numbers = #tpu.dot_dimension_numbers<[1], [0], [0], [1], [0, 0, 1, 1], [], []>} : vector<256x128xbf16>, vector<128x128xbf16>, vector<256x128xf32> -> vector<256x128xf32>
    %84 = arith.maximumf %81, %83 : vector<256x128xf32>
    %85 = vector.extract_strided_slice %36 {offsets = [0, 896], sizes = [128, 128], strides = [1, 1]} : vector<128x1024xbf16> to vector<128x128xbf16>
    %cst_35 = arith.constant dense<0.000000e+00> : vector<256x128xf32>
    %86 = tpu.matmul %64, %85, %cst_35 {dimension_numbers = #tpu.dot_dimension_numbers<[1], [0], [0], [1], [0, 0, 1, 1], [], []>} : vector<256x128xbf16>, vector<128x128xbf16>, vector<256x128xf32> -> vector<256x128xf32>
    %87 = arith.maximumf %84, %86 : vector<256x128xf32>
    %c256_36 = arith.constant 256 : index
    %c0_37 = arith.constant 0 : index
    %88 = vector.load %arg10[%c256_36, %c0_37] : memref<1024x128xf32, #tpu.memory_space<vmem>>, vector<256x128xf32>
    %89 = arith.maximumf %88, %87 : vector<256x128xf32>
    %c256_38 = arith.constant 256 : index
    %c0_39 = arith.constant 0 : index
    %90 = vector.load %arg10[%c256_38, %c0_39] : memref<1024x128xf32, #tpu.memory_space<vmem>>, vector<256x128xf32>
    tpu.vector_store %arg10[%c256_38, %c0_39], %89 {strides = array<i32>} : memref<1024x128xf32, #tpu.memory_space<vmem>>, vector<256x128xf32>,
    %c512 = arith.constant 512 : index
    %c0_40 = arith.constant 0 : index
    %91 = vector.load %arg8[%c512, %c0_40] : memref<1024x128xbf16, #tpu.memory_space<vmem>>, vector<256x128xbf16>
    %92 = vector.extract_strided_slice %36 {offsets = [0, 0], sizes = [128, 128], strides = [1, 1]} : vector<128x1024xbf16> to vector<128x128xbf16>
    %cst_41 = arith.constant dense<0.000000e+00> : vector<256x128xf32>
    %93 = tpu.matmul %91, %92, %cst_41 {dimension_numbers = #tpu.dot_dimension_numbers<[1], [0], [0], [1], [0, 0, 1, 1], [], []>} : vector<256x128xbf16>, vector<128x128xbf16>, vector<256x128xf32> -> vector<256x128xf32>
    %94 = vector.extract_strided_slice %36 {offsets = [0, 128], sizes = [128, 128], strides = [1, 1]} : vector<128x1024xbf16> to vector<128x128xbf16>
    %cst_42 = arith.constant dense<0.000000e+00> : vector<256x128xf32>
    %95 = tpu.matmul %91, %94, %cst_42 {dimension_numbers = #tpu.dot_dimension_numbers<[1], [0], [0], [1], [0, 0, 1, 1], [], []>} : vector<256x128xbf16>, vector<128x128xbf16>, vector<256x128xf32> -> vector<256x128xf32>
    %96 = arith.maximumf %93, %95 : vector<256x128xf32>
    %97 = vector.extract_strided_slice %36 {offsets = [0, 256], sizes = [128, 128], strides = [1, 1]} : vector<128x1024xbf16> to vector<128x128xbf16>
    %cst_43 = arith.constant dense<0.000000e+00> : vector<256x128xf32>
    %98 = tpu.matmul %91, %97, %cst_43 {dimension_numbers = #tpu.dot_dimension_numbers<[1], [0], [0], [1], [0, 0, 1, 1], [], []>} : vector<256x128xbf16>, vector<128x128xbf16>, vector<256x128xf32> -> vector<256x128xf32>
    %99 = arith.maximumf %96, %98 : vector<256x128xf32>
    %100 = vector.extract_strided_slice %36 {offsets = [0, 384], sizes = [128, 128], strides = [1, 1]} : vector<128x1024xbf16> to vector<128x128xbf16>
    %cst_44 = arith.constant dense<0.000000e+00> : vector<256x128xf32>
    %101 = tpu.matmul %91, %100, %cst_44 {dimension_numbers = #tpu.dot_dimension_numbers<[1], [0], [0], [1], [0, 0, 1, 1], [], []>} : vector<256x128xbf16>, vector<128x128xbf16>, vector<256x128xf32> -> vector<256x128xf32>
    %102 = arith.maximumf %99, %101 : vector<256x128xf32>
    %103 = vector.extract_strided_slice %36 {offsets = [0, 512], sizes = [128, 128], strides = [1, 1]} : vector<128x1024xbf16> to vector<128x128xbf16>
    %cst_45 = arith.constant dense<0.000000e+00> : vector<256x128xf32>
    %104 = tpu.matmul %91, %103, %cst_45 {dimension_numbers = #tpu.dot_dimension_numbers<[1], [0], [0], [1], [0, 0, 1, 1], [], []>} : vector<256x128xbf16>, vector<128x128xbf16>, vector<256x128xf32> -> vector<256x128xf32>
    %105 = arith.maximumf %102, %104 : vector<256x128xf32>
    %106 = vector.extract_strided_slice %36 {offsets = [0, 640], sizes = [128, 128], strides = [1, 1]} : vector<128x1024xbf16> to vector<128x128xbf16>
    %cst_46 = arith.constant dense<0.000000e+00> : vector<256x128xf32>
    %107 = tpu.matmul %91, %106, %cst_46 {dimension_numbers = #tpu.dot_dimension_numbers<[1], [0], [0], [1], [0, 0, 1, 1], [], []>} : vector<256x128xbf16>, vector<128x128xbf16>, vector<256x128xf32> -> vector<256x128xf32>
    %108 = arith.maximumf %105, %107 : vector<256x128xf32>
    %109 = vector.extract_strided_slice %36 {offsets = [0, 768], sizes = [128, 128], strides = [1, 1]} : vector<128x1024xbf16> to vector<128x128xbf16>
    %cst_47 = arith.constant dense<0.000000e+00> : vector<256x128xf32>
    %110 = tpu.matmul %91, %109, %cst_47 {dimension_numbers = #tpu.dot_dimension_numbers<[1], [0], [0], [1], [0, 0, 1, 1], [], []>} : vector<256x128xbf16>, vector<128x128xbf16>, vector<256x128xf32> -> vector<256x128xf32>
    %111 = arith.maximumf %108, %110 : vector<256x128xf32>
    %112 = vector.extract_strided_slice %36 {offsets = [0, 896], sizes = [128, 128], strides = [1, 1]} : vector<128x1024xbf16> to vector<128x128xbf16>
    %cst_48 = arith.constant dense<0.000000e+00> : vector<256x128xf32>
    %113 = tpu.matmul %91, %112, %cst_48 {dimension_numbers = #tpu.dot_dimension_numbers<[1], [0], [0], [1], [0, 0, 1, 1], [], []>} : vector<256x128xbf16>, vector<128x128xbf16>, vector<256x128xf32> -> vector<256x128xf32>
    %114 = arith.maximumf %111, %113 : vector<256x128xf32>
    %c512_49 = arith.constant 512 : index
    %c0_50 = arith.constant 0 : index
    %115 = vector.load %arg10[%c512_49, %c0_50] : memref<1024x128xf32, #tpu.memory_space<vmem>>, vector<256x128xf32>
    %116 = arith.maximumf %115, %114 : vector<256x128xf32>
    %c512_51 = arith.constant 512 : index
    %c0_52 = arith.constant 0 : index
    %117 = vector.load %arg10[%c512_51, %c0_52] : memref<1024x128xf32, #tpu.memory_space<vmem>>, vector<256x128xf32>
    tpu.vector_store %arg10[%c512_51, %c0_52], %116 {strides = array<i32>} : memref<1024x128xf32, #tpu.memory_space<vmem>>, vector<256x128xf32>,
    %c768 = arith.constant 768 : index
    %c0_53 = arith.constant 0 : index
    %118 = vector.load %arg8[%c768, %c0_53] : memref<1024x128xbf16, #tpu.memory_space<vmem>>, vector<256x128xbf16>
    %119 = vector.extract_strided_slice %36 {offsets = [0, 0], sizes = [128, 128], strides = [1, 1]} : vector<128x1024xbf16> to vector<128x128xbf16>
    %cst_54 = arith.constant dense<0.000000e+00> : vector<256x128xf32>
    %120 = tpu.matmul %118, %119, %cst_54 {dimension_numbers = #tpu.dot_dimension_numbers<[1], [0], [0], [1], [0, 0, 1, 1], [], []>} : vector<256x128xbf16>, vector<128x128xbf16>, vector<256x128xf32> -> vector<256x128xf32>
    %121 = vector.extract_strided_slice %36 {offsets = [0, 128], sizes = [128, 128], strides = [1, 1]} : vector<128x1024xbf16> to vector<128x128xbf16>
    %cst_55 = arith.constant dense<0.000000e+00> : vector<256x128xf32>
    %122 = tpu.matmul %118, %121, %cst_55 {dimension_numbers = #tpu.dot_dimension_numbers<[1], [0], [0], [1], [0, 0, 1, 1], [], []>} : vector<256x128xbf16>, vector<128x128xbf16>, vector<256x128xf32> -> vector<256x128xf32>
    %123 = arith.maximumf %120, %122 : vector<256x128xf32>
    %124 = vector.extract_strided_slice %36 {offsets = [0, 256], sizes = [128, 128], strides = [1, 1]} : vector<128x1024xbf16> to vector<128x128xbf16>
    %cst_56 = arith.constant dense<0.000000e+00> : vector<256x128xf32>
    %125 = tpu.matmul %118, %124, %cst_56 {dimension_numbers = #tpu.dot_dimension_numbers<[1], [0], [0], [1], [0, 0, 1, 1], [], []>} : vector<256x128xbf16>, vector<128x128xbf16>, vector<256x128xf32> -> vector<256x128xf32>
    %126 = arith.maximumf %123, %125 : vector<256x128xf32>
    %127 = vector.extract_strided_slice %36 {offsets = [0, 384], sizes = [128, 128], strides = [1, 1]} : vector<128x1024xbf16> to vector<128x128xbf16>
    %cst_57 = arith.constant dense<0.000000e+00> : vector<256x128xf32>
    %128 = tpu.matmul %118, %127, %cst_57 {dimension_numbers = #tpu.dot_dimension_numbers<[1], [0], [0], [1], [0, 0, 1, 1], [], []>} : vector<256x128xbf16>, vector<128x128xbf16>, vector<256x128xf32> -> vector<256x128xf32>
    %129 = arith.maximumf %126, %128 : vector<256x128xf32>
    %130 = vector.extract_strided_slice %36 {offsets = [0, 512], sizes = [128, 128], strides = [1, 1]} : vector<128x1024xbf16> to vector<128x128xbf16>
    %cst_58 = arith.constant dense<0.000000e+00> : vector<256x128xf32>
    %131 = tpu.matmul %118, %130, %cst_58 {dimension_numbers = #tpu.dot_dimension_numbers<[1], [0], [0], [1], [0, 0, 1, 1], [], []>} : vector<256x128xbf16>, vector<128x128xbf16>, vector<256x128xf32> -> vector<256x128xf32>
    %132 = arith.maximumf %129, %131 : vector<256x128xf32>
    %133 = vector.extract_strided_slice %36 {offsets = [0, 640], sizes = [128, 128], strides = [1, 1]} : vector<128x1024xbf16> to vector<128x128xbf16>
    %cst_59 = arith.constant dense<0.000000e+00> : vector<256x128xf32>
    %134 = tpu.matmul %118, %133, %cst_59 {dimension_numbers = #tpu.dot_dimension_numbers<[1], [0], [0], [1], [0, 0, 1, 1], [], []>} : vector<256x128xbf16>, vector<128x128xbf16>, vector<256x128xf32> -> vector<256x128xf32>
    %135 = arith.maximumf %132, %134 : vector<256x128xf32>
    %136 = vector.extract_strided_slice %36 {offsets = [0, 768], sizes = [128, 128], strides = [1, 1]} : vector<128x1024xbf16> to vector<128x128xbf16>
    %cst_60 = arith.constant dense<0.000000e+00> : vector<256x128xf32>
    %137 = tpu.matmul %118, %136, %cst_60 {dimension_numbers = #tpu.dot_dimension_numbers<[1], [0], [0], [1], [0, 0, 1, 1], [], []>} : vector<256x128xbf16>, vector<128x128xbf16>, vector<256x128xf32> -> vector<256x128xf32>
    %138 = arith.maximumf %135, %137 : vector<256x128xf32>
    %139 = vector.extract_strided_slice %36 {offsets = [0, 896], sizes = [128, 128], strides = [1, 1]} : vector<128x1024xbf16> to vector<128x128xbf16>
    %cst_61 = arith.constant dense<0.000000e+00> : vector<256x128xf32>
    %140 = tpu.matmul %118, %139, %cst_61 {dimension_numbers = #tpu.dot_dimension_numbers<[1], [0], [0], [1], [0, 0, 1, 1], [], []>} : vector<256x128xbf16>, vector<128x128xbf16>, vector<256x128xf32> -> vector<256x128xf32>
    %141 = arith.maximumf %138, %140 : vector<256x128xf32>
    %c768_62 = arith.constant 768 : index
    %c0_63 = arith.constant 0 : index
    %142 = vector.load %arg10[%c768_62, %c0_63] : memref<1024x128xf32, #tpu.memory_space<vmem>>, vector<256x128xf32>
    %143 = arith.maximumf %142, %141 : vector<256x128xf32>
    %c768_64 = arith.constant 768 : index
    %c0_65 = arith.constant 0 : index
    %144 = vector.load %arg10[%c768_64, %c0_65] : memref<1024x128xf32, #tpu.memory_space<vmem>>, vector<256x128xf32>
    tpu.vector_store %arg10[%c768_64, %c0_65], %143 {strides = array<i32>} : memref<1024x128xf32, #tpu.memory_space<vmem>>, vector<256x128xf32>,
    %c0_i32_66 = arith.constant 0 : i32
    %145 = arith.cmpi eq, %arg2, %c0_i32_66 : i32
    %146 = arith.extui %145 : i1 to i32
    %c0_i32_67 = arith.constant 0 : i32
    %147 = arith.cmpi ne, %146, %c0_i32_67 : i32
    scf.if %147 {
      %c0_68 = arith.constant 0 : index
      %c0_69 = arith.constant 0 : index
      %148 = vector.load %arg10[%c0_68, %c0_69] : memref<1024x128xf32, #tpu.memory_space<vmem>>, vector<1024x128xf32>
      %cst_70 = arith.constant dense<0xFF800000> : vector<1024xf32>
      %149 = vector.multi_reduction <maximumf>, %148, %cst_70 [1] : vector<1024x128xf32> to vector<1024xf32>
      %150 = vector.shape_cast %149 : vector<1024xf32> to vector<1024x1xf32>
      %151 = vector.shape_cast %150 : vector<1024x1xf32> to vector<1x1x1024x1xf32>
      %c0_71 = arith.constant 0 : index
      %c0_72 = arith.constant 0 : index
      %c0_73 = arith.constant 0 : index
      %c0_74 = arith.constant 0 : index
      %152 = vector.load %arg9[%c0_71, %c0_72, %c0_73, %c0_74] : memref<1x1x1024x1xf32, #tpu.memory_space<vmem>>, vector<1x1x1024x1xf32>
      tpu.vector_store %arg9[%c0_71, %c0_72, %c0_73, %c0_74], %151 {strides = array<i32>} : memref<1x1x1024x1xf32, #tpu.memory_space<vmem>>, vector<1x1x1024x1xf32>,
    } else {
    }
    return
  }
  func.func @transform_0(%arg0: i32, %arg1: i32, %arg2: i32) -> (i32, i32, i32) {
    %c1_i32 = arith.constant 1 : i32
    %0 = arith.muli %arg1, %c1_i32 : i32
    %1 = arith.addi %0, %arg2 : i32
    %c0_i32 = arith.constant 0 : i32
    %c0_i32_0 = arith.constant 0 : i32
    return %arg0, %c0_i32, %1 : i32, i32, i32
  }
  func.func @transform_1(%arg0: i32, %arg1: i32, %arg2: i32) -> (i32, i32) {
    %c0_i32 = arith.constant 0 : i32
    %c0_i32_0 = arith.constant 0 : i32
    %c0_i32_1 = arith.constant 0 : i32
    return %c0_i32, %c0_i32_0 : i32, i32
  }
  func.func @transform_2(%arg0: i32, %arg1: i32, %arg2: i32) -> (i32, i32) {
    %c0_i32 = arith.constant 0 : i32
    %c0_i32_0 = arith.constant 0 : i32
    %c0_i32_1 = arith.constant 0 : i32
    return %c0_i32, %c0_i32_0 : i32, i32
  }
  func.func @transform_3(%arg0: i32, %arg1: i32, %arg2: i32) -> (i32, i32) {
    %c0_i32 = arith.constant 0 : i32
    %c0_i32_0 = arith.constant 0 : i32
    %c0_i32_1 = arith.constant 0 : i32
    return %c0_i32, %c0_i32_0 : i32, i32
  }
  func.func @transform_4(%arg0: i32, %arg1: i32, %arg2: i32) -> (i32, i32) {
    %c0_i32 = arith.constant 0 : i32
    %c0_i32_0 = arith.constant 0 : i32
    %c0_i32_1 = arith.constant 0 : i32
    return %c0_i32, %c0_i32_0 : i32, i32
  }
  func.func @transform_5(%arg0: i32, %arg1: i32, %arg2: i32) -> (i32, i32) {
    %c0_i32 = arith.constant 0 : i32
    %c0_i32_0 = arith.constant 0 : i32
    %c0_i32_1 = arith.constant 0 : i32
    return %c0_i32, %c0_i32_0 : i32, i32
  }
  func.func @transform_6(%arg0: i32, %arg1: i32, %arg2: i32) -> (i32, i32, i32, i32) {
    %c0_i32 = arith.constant 0 : i32
    %c0_i32_0 = arith.constant 0 : i32
    %c0_i32_1 = arith.constant 0 : i32
    return %arg0, %arg1, %c0_i32, %c0_i32_0 : i32, i32, i32, i32
  }
}

</mosaic_0001>

<bundles_post_ra>
// kernel: tpu_custom_call.1
= control target key start
LH: loop header
LB: loop body
LE: loop exit
PB: predicated region body
PF: predicated region fallthrough
CT: control target
= control target key end

     0   :  { %11 = vsyncpa [#allocation4], 0  ;;  %s12398_s21 = smov 0   ;;  %s12400_s22 = smov 0   ;;  %s18513_s0 = inlined_call_operand.vmem [shape: f32[2,3,1024], index: 0, kind: input, shape index: {}]   ;;  %s18514_s1 = inlined_call_operand.vmem [shape: f32[64,3], index: 1, kind: input, shape index: {}]   ;;  %s18515_s2 = inlined_call_operand.vmem [shape: f32[64,1], index: 2, kind: input, shape index: {}]   ;;  %s18516_s3 = inlined_call_operand.vmem [shape: bf16[128,64], index: 3, kind: input, shape index: {}]   ;;  %s18517_s4 = inlined_call_operand.vmem [shape: f32[128,1], index: 4, kind: input, shape index: {}]   ;;  %s18518_s5 = inlined_call_operand.hbm [shape: bf16[1024,128], index: 5, kind: input, shape index: {}]   ;;  %s18519_s6 = inlined_call_operand.vmem [shape: f32[2,1,1024,1], index: 6, kind: output, shape index: {}]  }
   0x1   :  { %s12402_s23 = smov 0  }
   0x2 LB: > { %s9702_s24 = sadd.s32 4294967295, %s12355_s23   ;;  %s36_s25 = sadd.s32 1, %s12351_s22  ;;  %s12355_s23 = sphi %s12402_s23, %s17_s23   ;;  %s12351_s22 = sphi %s12400_s22, %s20392_s22   ;;  %s12347_s21 = sphi %s12398_s21, %s20391_s21  }
   0x3   : > { %p38_p0 = scmp.ge.s32.totalorder %s36_s25, 2  ;;  %p9704_p1 = scmp.ge.s32.totalorder %s12355_s23, 1 }
   0x4   : > { %p204_p2 = scmp.lt.s32.totalorder %s12355_s23, 3  ;;  %p12423_p4 = scmp.eq.s32.totalorder %s9702_s24, 0 }
   0x5   : > { %s20394_s25 = smov (%p38_p0, %s36_s25), 0  ;;  %s12357_s28 = smov [#allocation3]  }
   0x6   : > { %p12419_p3 = pnand %p9704_p1, %p204_p2  ;;  %s228_s29 = sshll.u32 %s12357_s28, 4  ;;  %s229_s29 = int_to_ptr.vmem [resolvable:$true] %s228_s29 }
   0x7   : > { %s19117_s27 = scalar_select %p12423_p4, 1, 0 }
   0x8   : > { %s19116_s26 = scalar_select %p12419_p3, 1, 0 }
   0x9   : > { %p12129_p5 = pneg %p12419_p3  ;;  %s12301_s9 = scalar_lea.hbm %s18518_s5, 8192 }
   0xa   : > { %p12302_p7 = scmp.ne.s32.totalorder %s18518_s5, %s12301_s9  ;;  %p12308_p11 = scmp.lt.u32.totalorder %s12301_s9, %s18518_s5 }
   0xb   : > { %p12431_p6 = pnand %p12423_p4, %p12129_p5 }
   0xd   : > { %p12303_p8 = pneg %p12431_p6 }
   0xf   : > { %p12304_p9 = pnand %p12303_p8, %p12302_p7 }
  0x11   : > { %p12305_p10 = pneg %p12304_p9 }
  0x13   : > { %p12310_p12 = pnand %p12308_p11, %p12305_p10 }
  0x15   : > { %12313 = shalt.err (!%p12310_p12)
}
  0x16   : > { %s12314_s14 = scalar_lea.vmem %s229_s29, 8192  ;;  %p12322_p2 = scmp.lt.s32.totalorder %s229_s29, %s229_s29 }
  0x17   : > { %p12315_p13 = scmp.ne.s32.totalorder %s229_s29, %s12314_s14  ;;  %p12323_p5 = scmp.lt.s32.totalorder %s12314_s14, %s12314_s14 }
  0x19   : > { %p12317_p0 = pnand %p12315_p13, %p12303_p8  ;;  %p12324_p4 = por %p12323_p5, %p12322_p2 }
  0x1b   : > { %p12318_p1 = pneg %p12317_p0 }
  0x1d   : > { %p12325_p3 = pnand %p12324_p4, %p12318_p1 }
  0x1f   : > { %12328 = shalt.err (!%p12325_p3)
}
  0x20   : > { %s12358_s15 = smov 64   ;;  %s12359_s16 = smov 4  }
  0x21   : > { %12132 = dma.hbm_to_vmem [thread:$0]  (!%p12431_p6), %s18518_s5, 8192, %s229_s29, [#allocation4], %s12358_s15, %s12358_s15, %s12359_s16  }
  0x22   : > { %p19119_p7 = scmp.ne.s32.totalorder %s19116_s26, 0 }
  0x24   : > { %259 = sbr.rel (%p19119_p7) target bundleno = 1942 (0x796), region = 44 }
  0x2b   : > { %p19120_p9 = scmp.ne.s32.totalorder %s19117_s27, 0 }
  0x2d   : > { %12342 = dma.done.wait (%p19120_p9), [#allocation4], 8192  }
  0x2e   : > { %12344 = vsyncadd (%p19120_p9), [#allocation4], 4294959104  ;;  %v12360_v0 = vmov 2   ;;  %v12361_v1 = vmov 1   ;;  %v18523_v2 = vmov 0   ;;  %v456_v3 = vld [vmem:[%s18514_s1] sm:$0xff]  ;;  %v508_v31 = vlaneseq }
  0x2f   : > { %12166 = vset.pattern.permute.xlu0 %v12360_v0  ;;  %12165 = vset.pattern.permute.xlu1 %v12361_v1  ;;  %v458_v4 = vld [vmem:[%s18514_s1 + $0x10] sm:$0xff]  ;;  %v457_v5 = vld [vmem:[%s18514_s1 + $0x8] sm:$0xff]  ;;  %v460_v7 = vld [vmem:[%s18514_s1 + $0x20] sm:$0xff]  ;;  %p300_p3 = scmp.lt.s32.totalorder %s12347_s21, 1  ;;  %vm1468_vm0 = vcmask 523264   ;;  %vm9468_vm1 = vcmask 7168  }
  0x30   : > { %1525 = vmatprep.mubr.bf16.mxu0 %v18523_v2  ;;  %1638 = vmatprep.mubr.bf16.mxu1 %v18523_v2  ;;  %v461_v6 = vld [vmem:[%s18514_s1 + $0x28] sm:$0xff]  ;;  %v463_v8 = vld [vmem:[%s18514_s1 + $0x38] sm:$0xff]  ;;  %v1108_v10 = vld [vmem:[%s18515_s2] sm:$0xff]  ;;  %v509_v33 = vshrl.u32 %v508_v31, 7 }
  0x31   : > { %877 = vperm.xlu0 %12166, %v456_v3   ;;  %645 = vperm.xlu1 %12165, %v456_v3   ;;  %v459_v9 = vld [vmem:[%s18514_s1 + $0x18] sm:$0xff]  ;;  %v1109_v11 = vld [vmem:[%s18515_s2 + $0x8] sm:$0xff]  ;;  %v462_v12 = vld [vmem:[%s18514_s1 + $0x30] sm:$0xff]  ;;  %s20396_s21 = smov (!%p300_p3, %s12347_s21), 1 }
  0x32   : > { %v1112_v13 = vld [vmem:[%s18515_s2 + $0x20] sm:$0xff]  ;;  %v1115_v14 = vld [vmem:[%s18515_s2 + $0x38] sm:$0xff]  ;;  %v1333_v15 = vld [vmem:[%s18517_s4 + $0x8] sm:$0xff]  ;;  %s9819_s17 = sshll.u32 %s20396_s21, 5  ;;  %v514_v35 = vsub.s32 4, %v509_v33  ;;  %v682_v36 = vsub.s32 5, %v509_v33 }
  0x33   : > { %v1335_v16 = vld [vmem:[%s18517_s4 + $0x18] sm:$0xff]  ;;  %v1110_v17 = vld [vmem:[%s18515_s2 + $0x10] sm:$0xff]  ;;  %v1337_v18 = vld [vmem:[%s18517_s4 + $0x28] sm:$0xff]  ;;  %s307_s26 = scalar_lea.vmem %s18513_s0, %s9819_s17  ;;  %v914_v37 = vsub.s32 6, %v509_v33  ;;  %v510_v40 = vsub.s32 0, %v509_v33  ;;  %v678_v41 = vsub.s32 1, %v509_v33 }
  0x34   : > { %v1111_v19 = vld [vmem:[%s18515_s2 + $0x18] sm:$0xff]  ;;  %v1341_v21 = vld [vmem:[%s18517_s4 + $0x48] sm:$0xff]  ;;  %v1114_v26 = vld [vmem:[%s18515_s2 + $0x30] sm:$0xff]  ;;  %v910_v51 = vsub.s32 2, %v509_v33  ;;  %s9820_s27 = sshll.u32 %s20396_s21, 10 }
  0x35   : > { %885 = vperm.xlu0 %12166, %v458_v4   ;;  %649 = vperm.xlu1 %12165, %v457_v5   ;;  %v1339_v20 = vld [vmem:[%s18517_s4 + $0x38] sm:$0xff]  ;;  %v1345_v23 = vld [vmem:[%s18517_s4 + $0x68] sm:$0xff]  ;;  %v1332_v27 = vld [vmem:[%s18517_s4] sm:$0xff]  ;;  %s15516_s30 = scalar_lea.vmem %s18519_s6, %s9820_s27 }
  0x36   : > { %v1343_v22 = vld [vmem:[%s18517_s4 + $0x58] sm:$0xff]  ;;  %v1113_v25 = vld [vmem:[%s18515_s2 + $0x28] sm:$0xff]  ;;  %v1334_v28 = vld [vmem:[%s18517_s4 + $0x10] sm:$0xff] }
  0x37   : > { %v1347_v24 = vld [vmem:[%s18517_s4 + $0x78] sm:$0xff]  ;;  %v1336_v29 = vld [vmem:[%s18517_s4 + $0x20] sm:$0xff]  ;;  %v1338_v30 = vld [vmem:[%s18517_s4 + $0x30] sm:$0xff] }
  0x38   : > { %v1340_v32 = vld [vmem:[%s18517_s4 + $0x40] sm:$0xff]  ;;  %v1342_v34 = vld [vmem:[%s18517_s4 + $0x50] sm:$0xff]  ;;  %v453_v42 = vld [vmem:[%s307_s26 + $0x8] sm:$0x77] }
  0x39   : > { %897 = vperm.xlu0 %12166, %v461_v6   ;;  %12167 = vset.pattern.permute.xlu1 %v12360_v0  ;;  %v1344_v38 = vld [vmem:[%s18517_s4 + $0x60] sm:$0xff]  ;;  %v1346_v46 = vld [vmem:[%s18517_s4 + $0x70] sm:$0xff]  ;;  %v523_v47 = vrot.slane %v453_v42, %v514_v35  ;;  %v691_v48 = vrot.slane %v453_v42, %v682_v36  ;;  %v923_v49 = vrot.slane %v453_v42, %v914_v37  ;;  %v455_v57 = vld [vmem:[%s307_s26 + $0x18] sm:$0x77] }
  0x3a   : > { %881 = vperm.xlu1 %12167, %v457_v5   ;;  %v452_v39 = vld [vmem:[%s307_s26] sm:$0x77]  ;;  %v454_v56 = vld [vmem:[%s307_s26 + $0x10] sm:$0x77] }
  0x3b   : > { %v515_v43 = vrot.slane %v452_v39, %v514_v35  ;;  %v683_v44 = vrot.slane %v452_v39, %v682_v36  ;;  %v915_v45 = vrot.slane %v452_v39, %v914_v37  ;;  %v511_v50 = vrot.slane %v452_v39, %v510_v40 }
  0x3c   : > { %v679_v52 = vrot.slane %v452_v39, %v678_v41  ;;  %v12584_v58 = vrot.slane %v523_v47, %v510_v40  ;;  %v12586_v59 = vrot.slane %v691_v48, %v678_v41  ;;  %v12588_v60 = vrot.slane %v923_v49, %v910_v51 }
  0x3d   : > { %12174 = vset.pattern.permute.xlu0 %v12361_v1  ;;  %v12578_v53 = vrot.slane %v515_v43, %v510_v40  ;;  %v12580_v54 = vrot.slane %v683_v44, %v678_v41  ;;  %v12582_v55 = vrot.slane %v915_v45, %v910_v51  ;;  %v12590_v61 = vrot.slane %v511_v50, %v510_v40 }
  0x3e   : > { %661 = vperm.xlu0 %12174, %v460_v7   ;;  %12168 = vset.pattern.permute.xlu1 %v18523_v2  ;;  %v12592_v62 = vrot.slane %v679_v52, %v678_v41  ;;  %v911_v63 = vrot.slane %v452_v39, %v910_v51 }
  0x3f   : > { %476 = vperm.xlu1 %12168, %v458_v4  }
  0x42   : > { %673 = vperm.xlu0 %12174, %v463_v8  }
  0x43   : > { %12169 = vset.pattern.permute.xlu1 %v12361_v1 }
  0x44   : > { %653 = vperm.xlu1 %12169, %v458_v4   ;;  %v531_v4 = vrot.slane %v454_v56, %v514_v35 }
  0x46   : > { %12177 = vset.pattern.permute.xlu0 %v18523_v2 }
  0x47   : > { %466 = vperm.xlu0 %12177, %v456_v3   ;;  %v919_v3 = vrot.slane %v453_v42, %v910_v51 }
  0x48   : > { %657 = vperm.xlu1 %12169, %v459_v9  }
  0x4b   : > { %471 = vperm.xlu0 %12177, %v457_v5   ;;  %v699_v5 = vrot.slane %v454_v56, %v682_v36 }
  0x4c   : > { %12170 = vset.pattern.permute.xlu1 %v12360_v0 }
  0x4d   : > { %889 = vperm.xlu1 %12170, %v459_v9  }
  0x4f   : > { %481 = vperm.xlu0 %12177, %v459_v9   ;;  %v695_v9 = vrot.slane %v454_v56, %v678_v41 }
  0x51   : > { %12171 = vset.pattern.permute.xlu1 %v18523_v2 }
  0x52   : > { %1118 = vperm.xlu1 %12171, %v1108_v10   ;;  %v703_v10 = vrot.slane %v455_v57, %v678_v41 }
  0x53   : > { %1123 = vperm.xlu0 %12177, %v1109_v11   ;;  %v539_v11 = vrot.slane %v455_v57, %v514_v35 }
  0x56   : > { %486 = vperm.xlu1 %12171, %v460_v7  }
  0x57   : > { %496 = vperm.xlu0 %12177, %v462_v12  }
  0x5a   : > { %491 = vperm.xlu1 %12171, %v461_v6  }
  0x5b   : > { %1138 = vperm.xlu0 %12177, %v1112_v13   ;;  %v927_v13 = vrot.slane %v454_v56, %v910_v51 }
  0x5d   : > { %v12620_v31 = vrot.slane %v927_v13, %v910_v51 }
  0x5e   : > { %12172 = vset.pattern.permute.xlu1 %v12361_v1 }
  0x5f   : > { %1153 = vperm.xlu0 %12177, %v1115_v14   ;;  %665 = vperm.xlu1 %12172, %v461_v6   ;;  %v707_v6 = vrot.slane %v455_v57, %v682_v36  ;;  %v935_v14 = vrot.slane %v455_v57, %v910_v51  ;;  %19129 = vst [vmem:[#allocation14_spill] sm:$0xff] %v12620_v31 }
  0x63   : > { %1355 = vperm.xlu0 %12177, %v1333_v15   ;;  %12173 = vset.pattern.permute.xlu1 %v12360_v0  ;;  %v12594_v15 = vrot.slane %v911_v63, %v910_v51 }
  0x64   : > { %893 = vperm.xlu1 %12173, %v460_v7   ;;  %v931_v7 = vrot.slane %v454_v56, %v914_v37 }
  0x67   : > { %1365 = vperm.xlu0 %12177, %v1335_v16  }
  0x68   : > { %12175 = vset.pattern.permute.xlu1 %v18523_v2 }
  0x69   : > { %1128 = vperm.xlu1 %12175, %v1110_v17  }
  0x6b   : > { %1375 = vperm.xlu0 %12177, %v1337_v18   ;;  %v535_v18 = vrot.slane %v455_v57, %v510_v40 }
  0x6d   : > { %1133 = vperm.xlu1 %12175, %v1111_v19   ;;  %v12600_v19 = vrot.slane %v919_v3, %v910_v51  ;;  %v12633_v36 = vrot.slane %v535_v18, %v510_v40 }
  0x6f   : > { %1385 = vperm.xlu0 %12177, %v1339_v20   ;;  %v12602_v20 = vrot.slane %v531_v4, %v510_v40  ;;  %19131 = vst [vmem:[#allocation16_spill] sm:$0xff] %v12633_v36 }
  0x71   : > { %501 = vperm.xlu1 %12175, %v463_v8  }
  0x73   : > { %1395 = vperm.xlu0 %12177, %v1341_v21   ;;  %v12604_v21 = vrot.slane %v699_v5, %v678_v41 }
  0x75   : > { %12176 = vset.pattern.permute.xlu1 %v12361_v1  ;;  %v687_v1 = vrot.slane %v453_v42, %v678_v41  ;;  %19121 = vst [vmem:[#allocation6_spill] sm:$0xff] %v12604_v21 }
  0x76   : > { %669 = vperm.xlu1 %12176, %v462_v12  }
  0x77   : > { %1405 = vperm.xlu0 %12177, %v1343_v22   ;;  %v12598_v17 = vrot.slane %v687_v1, %v678_v41  ;;  %v12606_v22 = vrot.slane %v707_v6, %v678_v41 }
  0x79   : > { %19122 = vst [vmem:[#allocation7_spill] sm:$0xff] %v12606_v22 }
  0x7a   : > { %12178 = vset.pattern.permute.xlu1 %v12360_v0  ;;  %v519_v0 = vrot.slane %v453_v42, %v510_v40 }
  0x7b   : > { %1415 = vperm.xlu0 %12177, %v1345_v23   ;;  %901 = vperm.xlu1 %12178, %v462_v12   ;;  %v527_v12 = vrot.slane %v454_v56, %v510_v40 }
  0x7c   : > { %v12596_v16 = vrot.slane %v519_v0, %v510_v40 }
  0x7f   : > { %1425 = vperm.xlu0 %12177, %v1347_v24   ;;  %905 = vperm.xlu1 %12178, %v463_v8   ;;  %v939_v8 = vrot.slane %v455_v57, %v914_v37 }
  0x83   : > { %12179 = vset.pattern.permute.xlu1 %v18523_v2 }
  0x84   : > { %1143 = vperm.xlu1 %12179, %v1113_v25   ;;  %v12608_v25 = vrot.slane %v931_v7, %v910_v51 }
  0x86   : > { %19123 = vst [vmem:[#allocation8_spill] sm:$0xff] %v12608_v25 }
  0x88   : > { %1148 = vperm.xlu1 %12179, %v1114_v26   ;;  %v12610_v26 = vrot.slane %v939_v8, %v910_v51 }
  0x8a   : > { %19124 = vst [vmem:[#allocation9_spill] sm:$0xff] %v12610_v26 }
  0x8c   : > { %1350 = vperm.xlu1 %12179, %v1332_v27   ;;  %v12612_v27 = vrot.slane %v695_v9, %v678_v41 }
  0x8e   : > { %19125 = vst [vmem:[#allocation10_spill] sm:$0xff] %v12612_v27 }
  0x90   : > { %1360 = vperm.xlu1 %12179, %v1334_v28   ;;  %v12614_v28 = vrot.slane %v703_v10, %v678_v41 }
  0x92   : > { %19126 = vst [vmem:[#allocation11_spill] sm:$0xff] %v12614_v28 }
  0x94   : > { %1370 = vperm.xlu1 %12179, %v1336_v29   ;;  %v12616_v29 = vrot.slane %v539_v11, %v510_v40 }
  0x96   : > { %19127 = vst [vmem:[#allocation12_spill] sm:$0xff] %v12616_v29 }
  0x98   : > { %1380 = vperm.xlu1 %12179, %v1338_v30   ;;  %v12618_v30 = vrot.slane %v527_v12, %v510_v40 }
  0x9a   : > { %19128 = vst [vmem:[#allocation13_spill] sm:$0xff] %v12618_v30 }
  0x9c   : > { %1390 = vperm.xlu1 %12179, %v1340_v32   ;;  %v12622_v32 = vrot.slane %v935_v14, %v910_v51 }
  0x9e   : > { %19130 = vst [vmem:[#allocation15_spill] sm:$0xff] %v12622_v32 }
  0xa0   : > { %1400 = vperm.xlu1 %12179, %v1342_v34  }
  0xa4   : > { %1410 = vperm.xlu1 %12179, %v1344_v38  }
  0xa8   : > { %1420 = vperm.xlu1 %12179, %v1346_v46  }
  0xb0   : > { %v646_v23 = vpop.permute.xlu1 %645  ;;  %v878_v24 = vpop.permute.xlu0 %877 }
  0xb1   : > { %v12625_v33 = vmul.f32 %v12580_v54, %v646_v23  ;;  %v12628_v34 = vmul.f32 %v12582_v55, %v878_v24  ;;  %v12631_v35 = vmul.f32 %v12586_v59, %v646_v23  ;;  %v12636_v37 = vmul.f32 %v12588_v60, %v878_v24 }
  0xb2   : > { %v12639_v38 = vmul.f32 %v12592_v62, %v646_v23  ;;  %v12642_v39 = vmul.f32 %v12594_v15, %v878_v24  ;;  %v12645_v41 = vmul.f32 %v12598_v17, %v646_v23  ;;  %v12648_v44 = vmul.f32 %v12600_v19, %v878_v24 }
  0xb3   : > { %v12651_v40 = vmul.f32 %v12604_v21, %v646_v23  ;;  %v12654_v45 = vmul.f32 %v12608_v25, %v878_v24  ;;  %v12657_v46 = vmul.f32 %v12606_v22, %v646_v23  ;;  %v12660_v47 = vmul.f32 %v12610_v26, %v878_v24 }
  0xb4   : > { %v650_v42 = vpop.permute.xlu1 %649  ;;  %v886_v43 = vpop.permute.xlu0 %885  ;;  %v12663_v48 = vmul.f32 %v12612_v27, %v646_v23  ;;  %v12666_v49 = vmul.f32 %v12620_v31, %v878_v24  ;;  %v12669_v50 = vmul.f32 %v12614_v28, %v646_v23  ;;  %v12681_v57 = vmul.f32 %v12622_v32, %v878_v24 }
  0xb5   : > { %19132 = vst [vmem:[#allocation17_spill] sm:$0xff] %v12654_v45  ;;  %19133 = vst [vmem:[#allocation18_spill] sm:$0xff] %v12657_v46  ;;  %v12672_v51 = vmul.f32 %v12580_v54, %v650_v42  ;;  %v12675_v52 = vmul.f32 %v12586_v59, %v650_v42  ;;  %v12678_v56 = vmul.f32 %v12592_v62, %v650_v42 }
  0xb6   : > { %19134 = vst [vmem:[#allocation19_spill] sm:$0xff] %v12660_v47  ;;  %19135 = vst [vmem:[#allocation20_spill] sm:$0xff] %v12663_v48  ;;  %v12684_v63 = vmul.f32 %v12598_v17, %v650_v42  ;;  %v12687_v0 = vmul.f32 %v12582_v55, %v886_v43  ;;  %v12690_v1 = vmul.f32 %v12588_v60, %v886_v43 }
  0xb7   : > { %19136 = vst [vmem:[#allocation21_spill] sm:$0xff] %v12666_v49  ;;  %19137 = vst [vmem:[#allocation22_spill] sm:$0xff] %v12669_v50  ;;  %v12693_v3 = vmul.f32 %v12594_v15, %v886_v43  ;;  %v12696_v5 = vmul.f32 %v12600_v19, %v886_v43  ;;  %v12699_v6 = vmul.f32 %v12604_v21, %v650_v42 }
  0xb8   : > { %19138 = vst [vmem:[#allocation23_spill] sm:$0xff] %v12681_v57  ;;  %v898_v4 = vpop.permute.xlu0 %897  ;;  %v12702_v7 = vmul.f32 %v12606_v22, %v650_v42  ;;  %v12705_v8 = vmul.f32 %v12612_v27, %v650_v42  ;;  %v12708_v10 = vmul.f32 %v12614_v28, %v650_v42  ;;  %v12711_v11 = vmul.f32 %v12608_v25, %v886_v43 }
  0xb9   : > { %v882_v9 = vpop.permute.xlu1 %881  ;;  %v12714_v12 = vmul.f32 %v12610_v26, %v886_v43  ;;  %v12717_v13 = vmul.f32 %v12620_v31, %v886_v43  ;;  %v12720_v14 = vmul.f32 %v12582_v55, %v898_v4  ;;  %v12723_v18 = vmul.f32 %v12588_v60, %v898_v4 }
  0xba   : > { %19139 = vst [vmem:[#allocation24_spill] sm:$0xff] %v12702_v7  ;;  %19140 = vst [vmem:[#allocation25_spill] sm:$0xff] %v12705_v8  ;;  %v12726_v23 = vmul.f32 %v12594_v15, %v898_v4  ;;  %v12729_v24 = vmul.f32 %v12622_v32, %v886_v43  ;;  %v12732_v42 = vmul.f32 %v12582_v55, %v882_v9 }
  0xbb   : > { %19141 = vst [vmem:[#allocation26_spill] sm:$0xff] %v12708_v10  ;;  %19142 = vst [vmem:[#allocation27_spill] sm:$0xff] %v12711_v11  ;;  %v12735_v2 = vmul.f32 %v12588_v60, %v882_v9  ;;  %v12744_v11 = vmul.f32 %v12600_v19, %v882_v9  ;;  %v12747_v57 = vmul.f32 %v12608_v25, %v882_v9 }
  0xbc   : > { %19143 = vst [vmem:[#allocation28_spill] sm:$0xff] %v12714_v12  ;;  %19144 = vst [vmem:[#allocation29_spill] sm:$0xff] %v12717_v13  ;;  %v12738_v13 = vmul.f32 %v12594_v15, %v882_v9  ;;  %v12741_v12 = vmul.f32 %v12600_v19, %v898_v4  ;;  %v12750_v43 = vmul.f32 %v12610_v26, %v882_v9 }
  0xbd   : > { %19145 = vst [vmem:[#allocation30_spill] sm:$0xff] %v12720_v14  ;;  %19146 = vst [vmem:[#allocation31_spill] sm:$0xff] %v12723_v18  ;;  %v662_v10 = vpop.permute.xlu0 %661  ;;  %v12756_v50 = vmul.f32 %v12622_v32, %v882_v9  ;;  %v12759_v49 = vmul.f32 %v12608_v25, %v898_v4  ;;  %v12762_v8 = vmul.f32 %v12610_v26, %v898_v4 }
  0xbe   : > { %19147 = vst [vmem:[#allocation32_spill] sm:$0xff] %v12726_v23  ;;  %19148 = vst [vmem:[#allocation33_spill] sm:$0xff] %v12729_v24  ;;  %v12753_v24 = vmul.f32 %v12620_v31, %v882_v9  ;;  %v12765_v48 = vmul.f32 %v12620_v31, %v898_v4  ;;  %v12768_v23 = vmul.f32 %v12580_v54, %v662_v10 }
  0xbf   : > { %19149 = vst [vmem:[#allocation34_spill] sm:$0xff] %v12741_v12  ;;  %19150 = vst [vmem:[#allocation35_spill] sm:$0xff] %v12747_v57  ;;  %v477_v12 = vpop.permute.xlu1 %476  ;;  %v12777_v9 = vmul.f32 %v12622_v32, %v898_v4  ;;  %v12799_v18 = vmul.f32 %v12604_v21, %v662_v10  ;;  %v12802_v14 = vmul.f32 %v12606_v22, %v662_v10 }
  0xc0   : > { %19151 = vst [vmem:[#allocation36_spill] sm:$0xff] %v12750_v43  ;;  %19152 = vst [vmem:[#allocation37_spill] sm:$0xff] %v12753_v24  ;;  %v12771_v43 = vmul.f32 %v12586_v59, %v662_v10  ;;  %v12774_v24 = vmul.f32 %v12592_v62, %v662_v10  ;;  %v596_v31 = vmul.f32 %v12590_v61, %v477_v12 }
  0xc1   : > { %19153 = vst [vmem:[#allocation38_spill] sm:$0xff] %v12756_v50  ;;  %19154 = vst [vmem:[#allocation39_spill] sm:$0xff] %v12759_v49  ;;  %v597_v49 = vmul.f32 %v12578_v53, %v477_v12  ;;  %v598_v26 = vmul.f32 %v12596_v16, %v477_v12  ;;  %v12787_v25 = vmul.f32 %v12602_v20, %v477_v12 }
  0xc2   : > { %19155 = vst [vmem:[#allocation40_spill] sm:$0xff] %v12762_v8  ;;  %19156 = vst [vmem:[#allocation41_spill] sm:$0xff] %v12765_v48  ;;  %v599_v8 = vmul.f32 %v12584_v58, %v477_v12  ;;  %v12783_v48 = vmul.f32 %v12598_v17, %v662_v10  ;;  %v12790_v50 = vmul.f32 %v12616_v29, %v477_v12 }
  0xc3   : > { %19157 = vst [vmem:[#allocation42_spill] sm:$0xff] %v12777_v9  ;;  %19158 = vst [vmem:[#allocation43_spill] sm:$0xff] %v12787_v25  ;;  %v12793_v4 = vmul.f32 %v12618_v30, %v477_v12  ;;  %v674_v9 = vpop.permute.xlu0 %673  ;;  %v12796_v32 = vmul.f32 %v12633_v36, %v477_v12  ;;  %v12805_v47 = vmul.f32 %v12612_v27, %v662_v10 }
  0xc4   : > { %19159 = vst [vmem:[#allocation44_spill] sm:$0xff] %v12790_v50  ;;  %19162 = vst [vmem:[#allocation47_spill] sm:$0xff] %v12799_v18  ;;  %v12808_v25 = vmul.f32 %v12580_v54, %v674_v9  ;;  %v12811_v50 = vmul.f32 %v12586_v59, %v674_v9  ;;  %v12817_v12 = vmul.f32 %v12614_v28, %v662_v10 }
  0xc5   : > { %19160 = vst [vmem:[#allocation45_spill] sm:$0xff] %v12793_v4  ;;  %19161 = vst [vmem:[#allocation46_spill] sm:$0xff] %v12796_v32  ;;  %v12814_v4 = vmul.f32 %v12592_v62, %v674_v9  ;;  %v654_v32 = vpop.permute.xlu1 %653  ;;  %v12820_v18 = vmul.f32 %v12598_v17, %v674_v9 }
  0xc6   : > { %19163 = vst [vmem:[#allocation48_spill] sm:$0xff] %v12802_v14  ;;  %19164 = vst [vmem:[#allocation49_spill] sm:$0xff] %v12805_v47  ;;  %v12823_v14 = vmul.f32 %v12604_v21, %v674_v9  ;;  %v12826_v47 = vmul.f32 %v12606_v22, %v674_v9  ;;  %v764_v10 = vmul.f32 %v12592_v62, %v654_v32 }
  0xc7   : > { %19165 = vst [vmem:[#allocation50_spill] sm:$0xff] %v12808_v25  ;;  %19166 = vst [vmem:[#allocation51_spill] sm:$0xff] %v12811_v50  ;;  %v12829_v25 = vmul.f32 %v12612_v27, %v674_v9  ;;  %v765_v50 = vmul.f32 %v12580_v54, %v654_v32  ;;  %v12836_v7 = vmul.f32 %v12604_v21, %v654_v32 }
  0xc8   : > { %19167 = vst [vmem:[#allocation52_spill] sm:$0xff] %v12814_v4  ;;  %19168 = vst [vmem:[#allocation53_spill] sm:$0xff] %v12817_v12  ;;  %v767_v4 = vmul.f32 %v12586_v59, %v654_v32  ;;  %v766_v12 = vmul.f32 %v12598_v17, %v654_v32  ;;  %v828_v45 = vadd.f32 %v764_v10, %v596_v31 }
  0xc9   : > { %19169 = vst [vmem:[#allocation54_spill] sm:$0xff] %v12820_v18  ;;  %19170 = vst [vmem:[#allocation55_spill] sm:$0xff] %v12823_v14  ;;  %v12839_v18 = vmul.f32 %v12606_v22, %v654_v32  ;;  %v12842_v14 = vmul.f32 %v12612_v27, %v654_v32  ;;  %v829_v46 = vadd.f32 %v765_v50, %v597_v49  ;;  %v12849_v30 = vpop.permute.xlu1 %657 }
  0xca   : > { %19171 = vst [vmem:[#allocation56_spill] sm:$0xff] %v12826_v47  ;;  %19172 = vst [vmem:[#allocation57_spill] sm:$0xff] %v12829_v25  ;;  %v12845_v47 = vmul.f32 %v12614_v28, %v674_v9  ;;  %v12847_v25 = vpop.permute.xlu0 %466  ;;  %v831_v57 = vadd.f32 %v767_v4, %v599_v8  ;;  %v830_v36 = vadd.f32 %v766_v12, %v598_v26 }
  0xcb   : > { %19173 = vst [vmem:[#allocation58_spill] sm:$0xff] %v12836_v7  ;;  %19174 = vst [vmem:[#allocation59_spill] sm:$0xff] %v12839_v18  ;;  %v581_v7 = vmul.f32 %v12578_v53, %v12847_v25  ;;  %v583_v18 = vmul.f32 %v12584_v58, %v12847_v25  ;;  %v582_v9 = vmul.f32 %v12596_v16, %v12847_v25 }
  0xcc   : > { %19175 = vst [vmem:[#allocation60_spill] sm:$0xff] %v12842_v14  ;;  %19176 = vst [vmem:[#allocation61_spill] sm:$0xff] %v12845_v47  ;;  %v580_v14 = vmul.f32 %v12590_v61, %v12847_v25  ;;  %v773_v49 = vmul.f32 %v12580_v54, %v12849_v30  ;;  %v12862_v31 = vadd.f32 %v12687_v0, %v829_v46 }
  0xcd   : > { %19177 = vst [vmem:[#allocation62_spill] sm:$0xff] %v12849_v30  ;;  %v775_v26 = vmul.f32 %v12586_v59, %v12849_v30  ;;  %v12867_v50 = vmul.f32 %v12614_v28, %v654_v32  ;;  %v813_v8 = vadd.f32 %v12625_v33, %v581_v7  ;;  %v815_v4 = vadd.f32 %v12631_v35, %v583_v18 }
  0xce   : > { %v812_v12 = vadd.f32 %v12639_v38, %v580_v14  ;;  %v814_v10 = vadd.f32 %v12645_v41, %v582_v9  ;;  %v12873_v47 = vpop.permute.xlu0 %471  ;;  %v12876_v27 = vadd.f32 %v12690_v1, %v831_v57  ;;  %v772_v46 = vmul.f32 %v12592_v62, %v12849_v30  ;;  %v12893_v57 = vpop.permute.xlu1 %889 }
  0xcf   : > { %19178 = vst [vmem:[#allocation63_spill] sm:$0xff] %v12867_v50  ;;  %v12881_v0 = vadd.f32 %v12693_v3, %v828_v45  ;;  %v774_v32 = vmul.f32 %v12598_v17, %v12849_v30  ;;  %v589_v33 = vmul.f32 %v12578_v53, %v12873_v47  ;;  %v1045_v35 = vadd.f32 %v12628_v34, %v813_v8 }
  0xd0   : > { %v591_v38 = vmul.f32 %v12584_v58, %v12873_v47  ;;  %v12891_v41 = vadd.f32 %v12696_v5, %v830_v36  ;;  %19179 = vst [vmem:[#allocation64_spill] sm:$0xff] %v12893_v57  ;;  %v1047_v1 = vadd.f32 %v12636_v37, %v815_v4  ;;  %v588_v45 = vmul.f32 %v12590_v61, %v12873_v47 }
  0xd1   : > { %v1044_v3 = vadd.f32 %v12642_v39, %v812_v12  ;;  %v590_v7 = vmul.f32 %v12596_v16, %v12873_v47  ;;  %v821_v34 = vadd.f32 %v12672_v51, %v589_v33  ;;  %v1046_v18 = vadd.f32 %v12648_v44, %v814_v10 }
  0xd2   : > { %v823_v14 = vadd.f32 %v12675_v52, %v591_v38  ;;  %v1005_v36 = vmul.f32 %v12582_v55, %v12893_v57  ;;  %v12906_v5 = vpop.permute.xlu0 %481  ;;  %v820_v37 = vadd.f32 %v12678_v56, %v588_v45  ;;  %v1007_v39 = vmul.f32 %v12588_v60, %v12893_v57  ;;  %v12926_v33 = vpop.permute.xlu1 %1118 }
  0xd3   : > { %v822_v9 = vadd.f32 %v12684_v63, %v590_v7  ;;  %v1004_v8 = vmul.f32 %v12594_v15, %v12893_v57  ;;  %v1053_v51 = vadd.f32 %v12732_v42, %v821_v34  ;;  %v605_v44 = vmul.f32 %v12578_v53, %v12906_v5 }
  0xd4   : > { %v607_v52 = vmul.f32 %v12584_v58, %v12906_v5  ;;  %v1006_v4 = vmul.f32 %v12600_v19, %v12893_v57  ;;  %v1055_v56 = vadd.f32 %v12735_v2, %v823_v14  ;;  %v1052_v63 = vadd.f32 %v12738_v13, %v820_v37 }
  0xd5   : > { %v1054_v12 = vadd.f32 %v12744_v11, %v822_v9  ;;  %v604_v10 = vmul.f32 %v12590_v61, %v12906_v5  ;;  %v837_v42 = vadd.f32 %v773_v49, %v605_v44  ;;  %v606_v45 = vmul.f32 %v12596_v16, %v12906_v5 }
  0xd6   : > { %v839_v38 = vadd.f32 %v775_v26, %v607_v52  ;;  %v585_v7 = vmul.f32 %v12602_v20, %v12847_v25  ;;  %v12932_v34 = vpop.permute.xlu0 %1123  ;;  %v1157_v2 = vadd.f32 %v12926_v33, %v1045_v35  ;;  %v1159_v13 = vadd.f32 %v12926_v33, %v1047_v1  ;;  %v12942_v22 = vpop.permute.xlu1 %486 }
  0xd7   : > { %v1156_v11 = vadd.f32 %v12926_v33, %v1044_v3  ;;  %v1158_v14 = vadd.f32 %v12926_v33, %v1046_v18  ;;  %v1165_v37 = vadd.f32 %v12932_v34, %v1053_v51  ;;  %v1167_v49 = vadd.f32 %v12932_v34, %v1055_v56  ;;  %19180 = vst [vmem:[#allocation65_spill] sm:$0xff] %v12942_v22 }
  0xd8   : > { %v1164_v26 = vadd.f32 %v12932_v34, %v1052_v63  ;;  %v1166_v9 = vadd.f32 %v12932_v34, %v1054_v12  ;;  %v1221_v44 = vmax.f32 %v1157_v2, 0.0  ;;  %v1223_v52 = vmax.f32 %v1159_v13, 0.0 }
  0xd9   : > { %v1220_v50 = vmax.f32 %v1156_v11, 0.0  ;;  %v1222_v28 = vmax.f32 %v1158_v14, 0.0  ;;  %v1229_v35 = vmax.f32 %v1165_v37, 0.0  ;;  %v1231_v1 = vmax.f32 %v1167_v49, 0.0 }
  0xda   : > { %v1228_v57 = vmax.f32 %v1164_v26, 0.0  ;;  %v1230_v3 = vmax.f32 %v1166_v9, 0.0  ;;  %v12944_v21 = vadd.f32 %v1005_v36, %v837_v42  ;;  %v836_v18 = vadd.f32 %v772_v46, %v604_v10  ;;  %v12956_v42 = vpop.permute.xlu0 %496  ;;  %v12958_v46 = vpop.permute.xlu1 %491 }
  0xdb   : > { %v838_v51 = vadd.f32 %v774_v32, %v606_v45  ;;  %v593_v56 = vmul.f32 %v12602_v20, %v12873_v47  ;;  %v1301_v63 = vpack.c.bf16 %v1229_v35, %v1221_v44  ;;  %v1303_v30 = vpack.c.bf16 %v1231_v1, %v1223_v52  ;;  %19181 = vst [vmem:[#allocation66_spill] sm:$0xff] %v12956_v42  ;;  %v19186_v52 = vld [vmem:[#allocation13_spill] sm:$0xff] }
  0xdc   : > { %v1300_v12 = vpack.c.bf16 %v1228_v57, %v1220_v50  ;;  %v1302_v2 = vpack.c.bf16 %v1230_v3, %v1222_v28  ;;  %v12948_v13 = vadd.f32 %v1007_v39, %v839_v38  ;;  %v12950_v11 = vadd.f32 %v1004_v8, %v836_v18  ;;  %19182 = vst [vmem:[#allocation67_spill] sm:$0xff] %v12958_v46 }
  0xdd   : > { %v613_v14 = vmul.f32 %v12578_v53, %v12942_v22  ;;  %v615_v36 = vmul.f32 %v12584_v58, %v12942_v22  ;;  %1493 = vmatprep.subr.bf16.mxu0 %v1301_v63  ;;  %1606 = vmatprep.subr.bf16.mxu1 %v1303_v30  ;;  %v12960_v32 = vadd.f32 %v1006_v4, %v838_v51 }
  0xde   : > { %v612_v28 = vmul.f32 %v12590_v61, %v12942_v22  ;;  %v614_v50 = vmul.f32 %v12596_v16, %v12942_v22  ;;  %1494 = vmatpush1.bf16.msra.mxu0 %v1300_v12  ;;  %1607 = vmatpush1.bf16.msra.mxu1 %v1302_v2  ;;  %v621_v57 = vmul.f32 %v12578_v53, %v12958_v46  ;;  %v12996_v44 = vpop.permute.xlu1 %665  ;;  %v19189_v12 = vld [vmem:[#allocation35_spill] sm:$0xff] }
  0xdf   : > { %v845_v39 = vadd.f32 %v12768_v23, %v613_v14  ;;  %v12971_v8 = vmul.f32 %v12578_v53, %v12956_v42  ;;  %v623_v30 = vmul.f32 %v12584_v58, %v12958_v46  ;;  %v847_v4 = vadd.f32 %v12771_v43, %v615_v36  ;;  %19184 = vst [vmem:[#allocation69_spill] sm:$0xff] %v12996_v44  ;;  %v19190_v14 = vld [vmem:[#allocation18_spill] sm:$0xff] }
  0xe0   : > { %v620_v10 = vmul.f32 %v12590_v61, %v12958_v46  ;;  %v844_v38 = vadd.f32 %v12774_v24, %v612_v28  ;;  %v622_v45 = vmul.f32 %v12596_v16, %v12958_v46  ;;  %v846_v37 = vadd.f32 %v12783_v48, %v614_v50  ;;  %v19191_v28 = vld [vmem:[#allocation24_spill] sm:$0xff] }
  0xe1   : > { %v12984_v23 = vmul.f32 %v12584_v58, %v12956_v42  ;;  %v12988_v49 = vmul.f32 %v12590_v61, %v12956_v42  ;;  %v817_v43 = vadd.f32 %v12651_v40, %v585_v7  ;;  %v825_v26 = vadd.f32 %v12699_v6, %v593_v56  ;;  %v19187_v6 = vld [vmem:[#allocation16_spill] sm:$0xff]  ;;  %v19188_v56 = vld [vmem:[#allocation17_spill] sm:$0xff] }
  0xe2   : > { %v587_v24 = vmul.f32 %v12616_v29, %v12847_v25  ;;  %v595_v9 = vmul.f32 %v12616_v29, %v12873_v47  ;;  %v13000_v48 = vmul.f32 %v12596_v16, %v12956_v42  ;;  %v584_v35 = vmul.f32 %v19186_v52, %v12847_v25 }
  0xe3   : > { %19183 = vst [vmem:[#allocation68_spill] sm:$0xff] %v12988_v49  ;;  %v592_v40 = vmul.f32 %v19186_v52, %v12873_v47  ;;  %v586_v7 = vmul.f32 %v19187_v6, %v12847_v25  ;;  %v789_v1 = vmul.f32 %v12580_v54, %v12996_v44  ;;  %v791_v3 = vmul.f32 %v12586_v59, %v12996_v44 }
  0xe4   : > { %19185 = vst [vmem:[#allocation70_spill] sm:$0xff] %v13000_v48  ;;  %v788_v18 = vmul.f32 %v12592_v62, %v12996_v44  ;;  %v790_v51 = vmul.f32 %v12598_v17, %v12996_v44  ;;  %v1049_v63 = vadd.f32 %v19188_v56, %v817_v43  ;;  %v1057_v2 = vadd.f32 %v19189_v12, %v825_v26  ;;  %v19192_v44 = vld [vmem:[#allocation19_spill] sm:$0xff]  ;;  %v13025_v43 = vpop.permute.xlu1 %893  ;;  %v19193_v26 = vld [vmem:[#allocation30_spill] sm:$0xff] }
  0xe5   : > { %v819_v36 = vadd.f32 %v19190_v14, %v587_v24  ;;  %v827_v25 = vadd.f32 %v19191_v28, %v595_v9  ;;  %v853_v50 = vadd.f32 %v789_v1, %v621_v57  ;;  %v855_v42 = vadd.f32 %v791_v3, %v623_v30  ;;  %v19194_v24 = vld [vmem:[#allocation31_spill] sm:$0xff]  ;;  %v19195_v57 = vld [vmem:[#allocation32_spill] sm:$0xff]  ;;  %v19198_v28 = vld [vmem:[#allocation34_spill] sm:$0xff] }
  0xe6   : > { %v852_v46 = vadd.f32 %v788_v18, %v620_v10  ;;  %v594_v22 = vmul.f32 %v19187_v6, %v12873_v47  ;;  %v854_v52 = vadd.f32 %v790_v51, %v622_v45  ;;  %v1161_v29 = vadd.f32 %v12926_v33, %v1049_v63  ;;  %v19196_v10 = vld [vmem:[#allocation36_spill] sm:$0xff] }
  0xe7   : > { %v1169_v48 = vadd.f32 %v12932_v34, %v1057_v2  ;;  %v1051_v49 = vadd.f32 %v19192_v44, %v819_v36  ;;  %v13028_v56 = vadd.f32 %v19193_v26, %v853_v50  ;;  %v13031_v9 = vadd.f32 %v19194_v24, %v855_v42  ;;  %v13047_v36 = vpop.permute.xlu0 %1138 }
  0xe8   : > { %v13034_v30 = vadd.f32 %v19195_v57, %v852_v46  ;;  %v1059_v47 = vadd.f32 %v19196_v10, %v827_v25  ;;  %v1013_v45 = vmul.f32 %v12582_v55, %v13025_v43  ;;  %v1015_v1 = vmul.f32 %v12588_v60, %v13025_v43  ;;  %19197 = vst [vmem:[#allocation16_spill] sm:$0xff] %v13047_v36  ;;  %v13054_v57 = vpop.permute.xlu1 %1128 }
  0xe9   : > { %v1012_v44 = vmul.f32 %v12594_v15, %v13025_v43  ;;  %v1014_v3 = vmul.f32 %v12600_v19, %v13025_v43  ;;  %v1225_v18 = vmax.f32 %v1161_v29, 0.0  ;;  %v1233_v42 = vmax.f32 %v1169_v48, 0.0 }
  0xea   : > { %v1163_v51 = vadd.f32 %v12926_v33, %v1051_v49  ;;  %v1171_v46 = vadd.f32 %v12932_v34, %v1059_v47  ;;  %v1077_v63 = vadd.f32 %v1013_v45, %v845_v39  ;;  %v1079_v12 = vadd.f32 %v1015_v1, %v847_v4  ;;  %v19199_v4 = vld [vmem:[#allocation20_spill] sm:$0xff] }
  0xeb   : > { %v1076_v2 = vadd.f32 %v1012_v44, %v844_v38  ;;  %v1078_v14 = vadd.f32 %v1014_v3, %v846_v37  ;;  %v13050_v25 = vadd.f32 %v19198_v28, %v854_v52  ;;  %v13052_v50 = vpack.c.bf16 %v1233_v42, %v1225_v18 }
  0xec   : > { %v1227_v26 = vmax.f32 %v1163_v51, 0.0  ;;  %v1235_v24 = vmax.f32 %v1171_v46, 0.0  ;;  %v13057_v29 = vadd.f32 %v13047_v36, %v1077_v63  ;;  %v13060_v49 = vadd.f32 %v13047_v36, %v1079_v12  ;;  %v19202_v63 = vld [vmem:[#allocation22_spill] sm:$0xff] }
  0xed   : > { %v13063_v39 = vadd.f32 %v13047_v36, %v1076_v2  ;;  %v816_v38 = vadd.f32 %v19199_v4, %v584_v35  ;;  %v1173_v37 = vadd.f32 %v13054_v57, %v12862_v31  ;;  %v1175_v48 = vadd.f32 %v13054_v57, %v12876_v27  ;;  %v13080_v27 = vpop.permute.xlu1 %1133 }
  0xee   : > { %v1172_v52 = vadd.f32 %v13054_v57, %v12881_v0  ;;  %v1174_v10 = vadd.f32 %v13054_v57, %v12891_v41  ;;  %v13078_v35 = vadd.f32 %v13047_v36, %v1078_v14  ;;  %v13082_v42 = vpack.c.bf16 %v1235_v24, %v1227_v26  ;;  %v19200_v0 = vld [vmem:[#allocation25_spill] sm:$0xff] }
  0xef   : > { %v1237_v44 = vmax.f32 %v1173_v37, 0.0  ;;  %v1239_v31 = vmax.f32 %v1175_v48, 0.0  ;;  %v824_v51 = vadd.f32 %v19200_v0, %v592_v40  ;;  %v19201_v41 = vld [vmem:[#allocation21_spill] sm:$0xff]  ;;  %v818_v12 = vadd.f32 %v19202_v63, %v586_v7  ;;  %v19204_v37 = vld [vmem:[#allocation26_spill] sm:$0xff]  ;;  %v19205_v48 = vld [vmem:[#allocation23_spill] sm:$0xff] }
  0xf0   : > { %v1236_v3 = vmax.f32 %v1172_v52, 0.0  ;;  %v1238_v18 = vmax.f32 %v1174_v10, 0.0  ;;  %v1048_v46 = vadd.f32 %v19201_v41, %v816_v38  ;;  %v1181_v2 = vadd.f32 %v13080_v27, %v12944_v21  ;;  %v19203_v26 = vld [vmem:[#allocation37_spill] sm:$0xff]  ;;  %v19207_v63 = vld [vmem:[#allocation38_spill] sm:$0xff] }
  0xf1   : > { %v1183_v14 = vadd.f32 %v13080_v27, %v12948_v13  ;;  %v1180_v28 = vadd.f32 %v13080_v27, %v12950_v11  ;;  %v1182_v4 = vadd.f32 %v13080_v27, %v12960_v32  ;;  %v1056_v24 = vadd.f32 %v19203_v26, %v824_v51  ;;  %v13099_v41 = vpop.permute.xlu1 %501 }
  0xf2   : > { %v1160_v40 = vadd.f32 %v12926_v33, %v1048_v46  ;;  %v826_v38 = vadd.f32 %v19204_v37, %v594_v22  ;;  %v1050_v7 = vadd.f32 %v19205_v48, %v818_v12  ;;  %v1245_v52 = vmax.f32 %v1181_v2, 0.0  ;;  %19206 = vst [vmem:[#allocation17_spill] sm:$0xff] %v13099_v41  ;;  %v19214_v48 = vld [vmem:[#allocation6_spill] sm:$0xff] }
  0xf3   : > { %v1247_v10 = vmax.f32 %v1183_v14, 0.0  ;;  %v1244_v21 = vmax.f32 %v1180_v28, 0.0  ;;  %v1246_v0 = vmax.f32 %v1182_v4, 0.0  ;;  %v1168_v13 = vadd.f32 %v12932_v34, %v1056_v24  ;;  %v19210_v4 = vld [vmem:[#allocation52_spill] sm:$0xff] }
  0xf4   : > { %v1224_v11 = vmax.f32 %v1160_v40, 0.0  ;;  %v1058_v1 = vadd.f32 %v19207_v63, %v826_v38  ;;  %v1162_v32 = vadd.f32 %v12926_v33, %v1050_v7  ;;  %v1309_v51 = vpack.c.bf16 %v1245_v52, %v1237_v44  ;;  %v19212_v40 = vld [vmem:[#allocation54_spill] sm:$0xff] }
  0xf5   : > { %v1311_v26 = vpack.c.bf16 %v1247_v10, %v1239_v31  ;;  %v1308_v46 = vpack.c.bf16 %v1244_v21, %v1236_v3  ;;  %v1310_v45 = vpack.c.bf16 %v1246_v0, %v1238_v18  ;;  %v637_v22 = vmul.f32 %v12578_v53, %v13099_v41  ;;  %v19209_v18 = vld [vmem:[#allocation51_spill] sm:$0xff] }
  0xf6   : > { %v639_v12 = vmul.f32 %v12584_v58, %v13099_v41  ;;  %v636_v2 = vmul.f32 %v12590_v61, %v13099_v41  ;;  %v638_v14 = vmul.f32 %v12596_v16, %v13099_v41  ;;  %1495 = vmatprep.subr.bf16.mxu0 %v1309_v51  ;;  %v1232_v28 = vmax.f32 %v1168_v13, 0.0  ;;  %v19208_v58 = vld [vmem:[#allocation50_spill] sm:$0xff]  ;;  %v13119_v16 = vpop.permute.xlu1 %669  ;;  %v19216_v13 = vld [vmem:[#allocation43_spill] sm:$0xff]  ;;  %v19218_v51 = vld [vmem:[#allocation64_spill] sm:$0xff] }
  0xf7   : > { %1608 = vmatprep.subr.bf16.mxu1 %v1311_v26  ;;  %v1170_v33 = vadd.f32 %v12932_v34, %v1058_v1  ;;  %v1226_v44 = vmax.f32 %v1162_v32, 0.0  ;;  %v609_v31 = vmul.f32 %v12602_v20, %v12906_v5  ;;  %1496 = vmatpush1.bf16.msra.mxu0 %v1308_v46  ;;  %v869_v3 = vadd.f32 %v19208_v58, %v637_v22  ;;  %v19213_v1 = vld [vmem:[#allocation62_spill] sm:$0xff]  ;;  %v19219_v26 = vld [vmem:[#allocation8_spill] sm:$0xff]  ;;  %v19224_v58 = vld [vmem:[#allocation7_spill] sm:$0xff] }
  0xf8   : > { %1609 = vmatpush1.bf16.msra.mxu1 %v1310_v45  ;;  %v871_v61 = vadd.f32 %v19209_v18, %v639_v12  ;;  %v868_v24 = vadd.f32 %v19210_v4, %v636_v2  ;;  %19211 = vst [vmem:[#allocation35_spill] sm:$0xff] %v13119_v16  ;;  %v870_v37 = vadd.f32 %v19212_v40, %v638_v14  ;;  %v19221_v2 = vld [vmem:[#allocation70_spill] sm:$0xff]  ;;  %v19222_v14 = vld [vmem:[#allocation27_spill] sm:$0xff]  ;;  %v19226_v4 = vld [vmem:[#allocation44_spill] sm:$0xff] }
  0xf9   : > { %v13122_v38 = vpack.c.bf16 %v1232_v28, %v1224_v11  ;;  %v1234_v34 = vmax.f32 %v1170_v33, 0.0  ;;  %v777_v7 = vmul.f32 %v19214_v48, %v19213_v1  ;;  %v797_v45 = vmul.f32 %v12580_v54, %v13119_v16  ;;  %v19217_v11 = vld [vmem:[#allocation58_spill] sm:$0xff]  ;;  %v19223_v33 = vld [vmem:[#allocation12_spill] sm:$0xff]  ;;  %v19227_v40 = vld [vmem:[#allocation59_spill] sm:$0xff] }
  0xfa   : > { %v799_v52 = vmul.f32 %v12586_v59, %v13119_v16  ;;  %v796_v10 = vmul.f32 %v12592_v62, %v13119_v16  ;;  %v798_v21 = vmul.f32 %v12598_v17, %v13119_v16  ;;  %v833_v63 = vadd.f32 %v19217_v11, %v19216_v13  ;;  %v19220_v59 = vld [vmem:[#allocation68_spill] sm:$0xff]  ;;  %v13149_v18 = vpop.permute.xlu1 %901 }
  0xfb   : > { %v13134_v0 = vpack.c.bf16 %v1234_v34, %v1226_v44  ;;  %v841_v32 = vadd.f32 %v777_v7, %v609_v31  ;;  %v1009_v46 = vmul.f32 %v19219_v26, %v19218_v51  ;;  %v861_v54 = vadd.f32 %v797_v45, %v12971_v8  ;;  %19225 = vst [vmem:[#allocation24_spill] sm:$0xff] %v13149_v18  ;;  %v19229_v7 = vld [vmem:[#allocation13_spill] sm:$0xff] }
  0xfc   : > { %v863_v22 = vadd.f32 %v799_v52, %v12984_v23  ;;  %v860_v12 = vadd.f32 %v796_v10, %v19220_v59  ;;  %v862_v62 = vadd.f32 %v798_v21, %v19221_v2  ;;  %v1065_v28 = vadd.f32 %v19222_v14, %v833_v63  ;;  %v19228_v23 = vld [vmem:[#allocation9_spill] sm:$0xff]  ;;  %v19230_v52 = vld [vmem:[#allocation10_spill] sm:$0xff]  ;;  %v19231_v2 = vld [vmem:[#allocation28_spill] sm:$0xff] }
  0xfd   : > { %19215 = vst [vmem:[#allocation18_spill] sm:$0xff] %v13134_v0  ;;  %v1073_v17 = vadd.f32 %v1009_v46, %v841_v32  ;;  %v611_v44 = vmul.f32 %v19223_v33, %v12906_v5  ;;  %v779_v31 = vmul.f32 %v19224_v58, %v19213_v1  ;;  %v835_v8 = vadd.f32 %v19227_v40, %v19226_v4 }
  0xfe   : > { %v1011_v34 = vmul.f32 %v19228_v23, %v19218_v51  ;;  %v608_v45 = vmul.f32 %v19229_v7, %v12906_v5  ;;  %v776_v10 = vmul.f32 %v19230_v52, %v19213_v1  ;;  %v1029_v21 = vmul.f32 %v12582_v55, %v13149_v18  ;;  %v13170_v16 = vpop.permute.xlu1 %905 }
  0xff   : > { %v1031_v13 = vmul.f32 %v12588_v60, %v13149_v18  ;;  %v1028_v11 = vmul.f32 %v12594_v15, %v13149_v18  ;;  %v1030_v63 = vmul.f32 %v12600_v19, %v13149_v18  ;;  %v1177_v32 = vadd.f32 %v13054_v57, %v1065_v28 }
 0x100   : > { %v1185_v46 = vadd.f32 %v13080_v27, %v1073_v17  ;;  %v843_v59 = vadd.f32 %v779_v31, %v611_v44  ;;  %v1067_v14 = vadd.f32 %v19231_v2, %v835_v8  ;;  %v1093_v4 = vadd.f32 %v1029_v21, %v861_v54  ;;  %v19232_v44 = vld [vmem:[#allocation45_spill] sm:$0xff]  ;;  %v19233_v31 = vld [vmem:[#allocation60_spill] sm:$0xff] }
 0x101   : > { %v1095_v40 = vadd.f32 %v1031_v13, %v863_v22  ;;  %v1092_v53 = vadd.f32 %v1028_v11, %v860_v12  ;;  %v1094_v47 = vadd.f32 %v1030_v63, %v862_v62  ;;  %v1241_v41 = vmax.f32 %v1177_v32, 0.0  ;;  %v13186_v11 = vpop.permute.xlu0 %1153 }
 0x102   : > { %v1249_v52 = vmax.f32 %v1185_v46, 0.0  ;;  %v1075_v36 = vadd.f32 %v1011_v34, %v843_v59  ;;  %v1179_v0 = vadd.f32 %v13054_v57, %v1067_v14  ;;  %v1037_v18 = vmul.f32 %v12582_v55, %v13170_v16 }
 0x103   : > { %v1039_v28 = vmul.f32 %v12588_v60, %v13170_v16  ;;  %v1036_v17 = vmul.f32 %v12594_v15, %v13170_v16  ;;  %v1038_v54 = vmul.f32 %v12600_v19, %v13170_v16  ;;  %v832_v8 = vadd.f32 %v19233_v31, %v19232_v44  ;;  %v19234_v15 = vld [vmem:[#allocation14_spill] sm:$0xff]  ;;  %v19235_v19 = vld [vmem:[#allocation29_spill] sm:$0xff] }
 0x104   : > { %v13181_v22 = vpack.c.bf16 %v1249_v52, %v1241_v41  ;;  %v1187_v12 = vadd.f32 %v13080_v27, %v1075_v36  ;;  %v1243_v62 = vmax.f32 %v1179_v0, 0.0  ;;  %v1101_v34 = vadd.f32 %v1037_v18, %v869_v3  ;;  %v13191_v52 = vpop.permute.xlu1 %1143 }
 0x105   : > { %v1103_v21 = vadd.f32 %v1039_v28, %v871_v61  ;;  %v1100_v55 = vadd.f32 %v1036_v17, %v868_v24  ;;  %v1102_v13 = vadd.f32 %v1038_v54, %v870_v37  ;;  %v840_v63 = vadd.f32 %v776_v10, %v608_v45 }
 0x106   : > { %v1251_v60 = vmax.f32 %v1187_v12, 0.0  ;;  %v1008_v32 = vmul.f32 %v19234_v15, %v19218_v51  ;;  %v1064_v41 = vadd.f32 %v19235_v19, %v832_v8  ;;  %v1213_v36 = vadd.f32 %v13186_v11, %v1101_v34 }
 0x107   : > { %v1215_v0 = vadd.f32 %v13186_v11, %v1103_v21  ;;  %v1212_v3 = vadd.f32 %v13186_v11, %v1100_v55  ;;  %v1214_v61 = vadd.f32 %v13186_v11, %v1102_v13  ;;  %v1197_v24 = vadd.f32 %v13191_v52, %v13028_v56 }
 0x108   : > { %v1199_v37 = vadd.f32 %v13191_v52, %v13031_v9  ;;  %v1196_v18 = vadd.f32 %v13191_v52, %v13034_v30  ;;  %v1198_v45 = vadd.f32 %v13191_v52, %v13050_v25  ;;  %v1277_v10 = vmax.f32 %v1213_v36, 0.0  ;;  %v13205_v12 = vpop.permute.xlu1 %1148  ;;  %v19242_v36 = vld [vmem:[#allocation63_spill] sm:$0xff] }
 0x109   : > { %v1279_v46 = vmax.f32 %v1215_v0, 0.0  ;;  %v1276_v59 = vmax.f32 %v1212_v3, 0.0  ;;  %v1278_v2 = vmax.f32 %v1214_v61, 0.0  ;;  %v1261_v14 = vmax.f32 %v1197_v24, 0.0 }
 0x10a   : > { %v1263_v28 = vmax.f32 %v1199_v37, 0.0  ;;  %v1260_v17 = vmax.f32 %v1196_v18, 0.0  ;;  %v1262_v54 = vmax.f32 %v1198_v45, 0.0  ;;  %v13207_v56 = vpack.c.bf16 %v1251_v60, %v1243_v62  ;;  %v19244_v37 = vld [vmem:[#allocation33_spill] sm:$0xff] }
 0x10b   : > { %v1072_v44 = vadd.f32 %v1008_v32, %v840_v63  ;;  %v1176_v9 = vadd.f32 %v13054_v57, %v1064_v41  ;;  %v610_v30 = vmul.f32 %v19187_v6, %v12906_v5  ;;  %v19236_v25 = vmax.f32 %v13057_v29, 0.0  ;;  %v19240_v32 = vld [vmem:[#allocation11_spill] sm:$0xff]  ;;  %v19241_v41 = vld [vmem:[#allocation46_spill] sm:$0xff] }
 0x10c   : > { %v19237_v8 = vmax.f32 %v13060_v49, 0.0  ;;  %v19238_v21 = vmax.f32 %v13063_v39, 0.0  ;;  %v19239_v13 = vmax.f32 %v13078_v35, 0.0  ;;  %v1205_v62 = vadd.f32 %v13205_v12, %v1093_v4 }
 0x10d   : > { %v1317_v31 = vpack.c.bf16 %v1261_v14, %v19236_v25  ;;  %v1207_v60 = vadd.f32 %v13205_v12, %v1095_v40  ;;  %v1204_v63 = vadd.f32 %v13205_v12, %v1092_v53  ;;  %v1206_v5 = vadd.f32 %v13205_v12, %v1094_v47  ;;  %v19243_v47 = vld [vmem:[#allocation15_spill] sm:$0xff] }
 0x10e   : > { %v1319_v34 = vpack.c.bf16 %v1263_v28, %v19237_v8  ;;  %v1316_v55 = vpack.c.bf16 %v1260_v17, %v19238_v21  ;;  %v1318_v19 = vpack.c.bf16 %v1262_v54, %v19239_v13  ;;  %v1184_v29 = vadd.f32 %v13080_v27, %v1072_v44 }
 0x10f   : > { %1497 = vmatprep.subr.bf16.mxu0 %v1317_v31  ;;  %v1240_v49 = vmax.f32 %v1176_v9, 0.0  ;;  %v778_v39 = vmul.f32 %v19240_v32, %v19213_v1  ;;  %v834_v35 = vadd.f32 %v19242_v36, %v19241_v41  ;;  %v1269_v4 = vmax.f32 %v1205_v62, 0.0  ;;  %v19245_v9 = vld [vmem:[#allocation65_spill] sm:$0xff]  ;;  %v19248_v31 = vld [vmem:[#allocation47_spill] sm:$0xff]  ;;  %v19252_v36 = vld [vmem:[#allocation16_spill] sm:$0xff] }
 0x110   : > { %1610 = vmatprep.subr.bf16.mxu1 %v1319_v34  ;;  %1498 = vmatpush1.bf16.msra.mxu0 %v1316_v55  ;;  %v1271_v0 = vmax.f32 %v1207_v60, 0.0  ;;  %v1268_v40 = vmax.f32 %v1204_v63, 0.0  ;;  %v1270_v3 = vmax.f32 %v1206_v5, 0.0  ;;  %v1248_v53 = vmax.f32 %v1184_v29, 0.0 }
 0x111   : > { %1611 = vmatpush1.bf16.msra.mxu1 %v1318_v19  ;;  %v842_v61 = vadd.f32 %v778_v39, %v610_v30  ;;  %v1010_v24 = vmul.f32 %v19243_v47, %v19218_v51  ;;  %v1066_v18 = vadd.f32 %v19244_v37, %v834_v35  ;;  %v1325_v45 = vpack.c.bf16 %v1277_v10, %v1269_v4  ;;  %v13238_v30 = vld [vmem:[%s18516_s3] sm:$0xff]   ;;  %v19246_v51 = vld [vmem:[#allocation67_spill] sm:$0xff] }
 0x112   : > { %v1327_v14 = vpack.c.bf16 %v1279_v46, %v1271_v0  ;;  %v1324_v28 = vpack.c.bf16 %v1276_v59, %v1268_v40  ;;  %v1326_v1 = vpack.c.bf16 %v1278_v2, %v1270_v3  ;;  %v1312_v17 = vpack.c.bf16 %v1248_v53, %v1240_v49  ;;  %v19247_v46 = vld [vmem:[#allocation69_spill] sm:$0xff]  ;;  %v19251_v39 = vld [vmem:[#allocation18_spill] sm:$0xff]  ;;  %v19253_v40 = vld [vmem:[#allocation40_spill] sm:$0xff] }
 0x113   : > { %v1074_v54 = vadd.f32 %v1010_v24, %v842_v61  ;;  %v1178_v44 = vadd.f32 %v13054_v57, %v1066_v18  ;;  %v617_v25 = vmul.f32 %v12602_v20, %v19245_v9  ;;  %1499 = vmatprep.subr.bf16.mxu0 %v1325_v45  ;;  %v625_v10 = vmul.f32 %v12602_v20, %v19246_v51  ;;  %v19255_v37 = vld [vmem:[#allocation10_spill] sm:$0xff] }
 0x114   : > { %1612 = vmatprep.subr.bf16.mxu1 %v1327_v14  ;;  %v793_v59 = vmul.f32 %v19214_v48, %v19247_v46  ;;  %v1017_v2 = vmul.f32 %v19219_v26, %v13025_v43  ;;  %1500 = vmatpush1.bf16.msra.mxu0 %v1324_v28  ;;  %v619_v34 = vmul.f32 %v19223_v33, %v19245_v9  ;;  %v19254_v24 = vmov 0   ;;  %v13285_v28 = vld [vmem:[%s18516_s3 + $0x8] sm:$0xff]  }
 0x115   : > { %1613 = vmatpush1.bf16.msra.mxu1 %v1326_v1  ;;  %v1186_v57 = vadd.f32 %v13080_v27, %v1074_v54  ;;  %v849_v8 = vadd.f32 %v19248_v31, %v617_v25  ;;  %1719 = vmatprep.subr.bf16.mxu0 %v13052_v50  ;;  %v1242_v21 = vmax.f32 %v1178_v44, 0.0  ;;  %v627_v13 = vmul.f32 %v19223_v33, %v19246_v51  ;;  %v19249_v27 = vld [vmem:[#allocation48_spill] sm:$0xff]  ;;  %v19250_v50 = vld [vmem:[#allocation39_spill] sm:$0xff] }
 0x116   : > { %1832 = vmatprep.subr.bf16.mxu1 %v13082_v42  ;;  %v857_v55 = vadd.f32 %v793_v59, %v625_v10  ;;  %v795_v19 = vmul.f32 %v19224_v58, %v19247_v46  ;;  %v851_v63 = vadd.f32 %v19249_v27, %v619_v34  ;;  %v1019_v5 = vmul.f32 %v19228_v23, %v13025_v43 }
 0x117   : > { %v1250_v62 = vmax.f32 %v1186_v57, 0.0  ;;  %v1081_v60 = vadd.f32 %v1017_v2, %v849_v8  ;;  %9721 = vmatmul.mubr.msk.bf16.vlgmr.msra.gmra.mrb[0].mxu0 %vm1468_vm0, %v13238_v30  ;;  %v616_v49 = vmul.f32 %v19229_v7, %v19245_v9  ;;  %v624_v53 = vmul.f32 %v19229_v7, %v19246_v51  ;;  %v19257_v8 = vld [vmem:[#allocation53_spill] sm:$0xff] }
 0x118   : > { %9729 = vmatmul.mubr.msk.bf16.vlgmr.msra.gmra.mrb[0].mxu1 %vm1468_vm0, %v13238_v30  ;;  %v1089_v42 = vadd.f32 %v19250_v50, %v857_v55  ;;  %v859_v29 = vadd.f32 %v795_v19, %v627_v13  ;;  %1720 = vmatpush1.bf16.msra.mxu0 %v13122_v38  ;;  %v1083_v4 = vadd.f32 %v1019_v5, %v851_v63  ;;  %v19262_v50 = vld [vmem:[#allocation35_spill] sm:$0xff] }
 0x119   : > { %1833 = vmatpush1.bf16.msra.mxu1 %v19251_v39  ;;  %v1314_v41 = vpack.c.bf16 %v1250_v62, %v1242_v21  ;;  %v1193_v35 = vadd.f32 %v19252_v36, %v1081_v60  ;;  %1721 = vmatprep.subr.bf16.mxu0 %v13181_v22  ;;  %v792_v18 = vmul.f32 %v19255_v37, %v19247_v46  ;;  %v19256_v22 = vld [vmem:[#allocation49_spill] sm:$0xff] }
 0x11a   : > { %1834 = vmatprep.subr.bf16.mxu1 %v13207_v56  ;;  %v1201_v0 = vadd.f32 %v13191_v52, %v1089_v42  ;;  %v1091_v3 = vadd.f32 %v19253_v40, %v859_v29  ;;  %v1195_v38 = vadd.f32 %v19252_v36, %v1083_v4  ;;  %1535 = vmatprep.mubr.bf16.mxu0 %v19254_v24  ;;  %v19258_v21 = vld [vmem:[#allocation41_spill] sm:$0xff] }
 0x11b   : > { %v1257_v61 = vmax.f32 %v1193_v35, 0.0  ;;  %1648 = vmatprep.mubr.bf16.mxu1 %v19254_v24  ;;  %v848_v45 = vadd.f32 %v19256_v22, %v616_v49  ;;  %v1016_v1 = vmul.f32 %v19234_v15, %v13025_v43  ;;  %v618_v54 = vmul.f32 %v19187_v6, %v19245_v9  ;;  %v19259_v9 = vld [vmem:[#allocation66_spill] sm:$0xff]  ;;  %v19263_v49 = vld [vmem:[#allocation55_spill] sm:$0xff] }
 0x11c   : > { %v1265_v56 = vmax.f32 %v1201_v0, 0.0  ;;  %v1203_v14 = vadd.f32 %v13191_v52, %v1091_v3  ;;  %1722 = vmatpush1.bf16.msra.mxu0 %v1312_v17  ;;  %v1259_v44 = vmax.f32 %v1195_v38, 0.0  ;;  %v856_v25 = vadd.f32 %v792_v18, %v624_v53  ;;  %v13330_v38 = vld [vmem:[%s18516_s3 + $0x10] sm:$0xff]  }
 0x11d   : > { %1835 = vmatpush1.bf16.msra.mxu1 %v1314_v41  ;;  %v626_v10 = vmul.f32 %v19187_v6, %v19246_v51  ;;  %v794_v59 = vmul.f32 %v19240_v32, %v19247_v46  ;;  %v1080_v31 = vadd.f32 %v1016_v1, %v848_v45  ;;  %v850_v34 = vadd.f32 %v19257_v8, %v618_v54  ;;  %v19260_v46 = vld [vmem:[#allocation17_spill] sm:$0xff]  ;;  %v19264_v41 = vld [vmem:[#allocation24_spill] sm:$0xff] }
 0x11e   : > { %v1321_v2 = vpack.c.bf16 %v1265_v56, %v1257_v61  ;;  %v1267_v57 = vmax.f32 %v1203_v14, 0.0  ;;  %v1088_v55 = vadd.f32 %v19258_v21, %v856_v25  ;;  %v1018_v17 = vmul.f32 %v19243_v47, %v13025_v43  ;;  %v19261_v43 = vld [vmem:[#allocation42_spill] sm:$0xff]  ;;  %v19265_v14 = vld [vmem:[#allocation56_spill] sm:$0xff] }
 0x11f   : > { %v858_v13 = vadd.f32 %v794_v59, %v626_v10  ;;  %v633_v19 = vmul.f32 %v12602_v20, %v19259_v9  ;;  %9722 = vmatmul.mubr.msk.bf16.gmra.mrb[4].mxu0 %vm1468_vm0, %v13285_v28  ;;  %v1192_v51 = vadd.f32 %v19252_v36, %v1080_v31  ;;  %v641_v60 = vmul.f32 %v12602_v20, %v19260_v46 }
 0x120   : > { %1723 = vmatprep.subr.bf16.mxu0 %v1321_v2  ;;  %v1323_v62 = vpack.c.bf16 %v1267_v57, %v1259_v44  ;;  %9730 = vmatmul.mubr.msk.bf16.gmra.mrb[4].mxu1 %vm1468_vm0, %v13285_v28  ;;  %v1200_v27 = vadd.f32 %v13191_v52, %v1088_v55  ;;  %v1082_v63 = vadd.f32 %v1018_v17, %v850_v34  ;;  %v19266_v55 = vld [vmem:[#allocation57_spill] sm:$0xff] }
 0x121   : > { %v1090_v5 = vadd.f32 %v19261_v43, %v858_v13  ;;  %v801_v42 = vmul.f32 %v19214_v48, %v19262_v50  ;;  %v1256_v29 = vmax.f32 %v1192_v51, 0.0  ;;  %v873_v39 = vadd.f32 %v19263_v49, %v641_v60  ;;  %1545 = vmatprep.mubr.bf16.mxu0 %v19254_v24  ;;  %1658 = vmatprep.mubr.bf16.mxu1 %v19254_v24 }
 0x122   : > { %1836 = vmatprep.subr.bf16.mxu1 %v1323_v62  ;;  %v1033_v35 = vmul.f32 %v19219_v26, %v19264_v41  ;;  %v1041_v20 = vmul.f32 %v19219_v26, %v13170_v16  ;;  %v1264_v4 = vmax.f32 %v1200_v27, 0.0  ;;  %v1194_v0 = vadd.f32 %v19252_v36, %v1082_v63  ;;  %v12183_v63 = vld [vmem:[%s18516_s3 + $0x18] sm:$0xff]  }
 0x123   : > { %v1202_v40 = vadd.f32 %v13191_v52, %v1090_v5  ;;  %v865_v3 = vadd.f32 %v801_v42, %v633_v19  ;;  %v635_v53 = vmul.f32 %v19223_v33, %v19259_v9  ;;  %v643_v61 = vmul.f32 %v19223_v33, %v19260_v46  ;;  %v19267_v42 = vld [vmem:[#allocation61_spill] sm:$0xff] }
 0x124   : > { %v1105_v48 = vadd.f32 %v1041_v20, %v873_v39  ;;  %v803_v26 = vmul.f32 %v19224_v58, %v19262_v50  ;;  %v1320_v36 = vpack.c.bf16 %v1264_v4, %v1256_v29  ;;  %v1258_v52 = vmax.f32 %v1194_v0, 0.0 }
 0x125   : > { %v1266_v18 = vmax.f32 %v1202_v40, 0.0  ;;  %v1097_v22 = vadd.f32 %v1033_v35, %v865_v3  ;;  %v875_v1 = vadd.f32 %v19265_v14, %v643_v61  ;;  %v1035_v33 = vmul.f32 %v19228_v23, %v19264_v41  ;;  %v12184_v40 = vld [vmem:[%s18516_s3 + $0x20] sm:$0xff]  }
 0x126   : > { %v1217_v45 = vadd.f32 %v13186_v11, %v1105_v48  ;;  %v867_v56 = vadd.f32 %v803_v26, %v635_v53  ;;  %1724 = vmatpush1.bf16.msra.mxu0 %v1320_v36  ;;  %v1043_v44 = vmul.f32 %v19228_v23, %v13170_v16  ;;  %v632_v25 = vmul.f32 %v19229_v7, %v19259_v9  ;;  %v12187_v48 = vld [vmem:[%s18516_s3 + $0x38] sm:$0xff]   ;;  %v13446_v53 = vpop.permute.xlu1 %1350 }
 0x127   : > { %v1322_v54 = vpack.c.bf16 %v1266_v18, %v1258_v52  ;;  %v1209_v58 = vadd.f32 %v13205_v12, %v1097_v22  ;;  %v640_v2 = vmul.f32 %v19229_v7, %v19260_v46  ;;  %v800_v57 = vmul.f32 %v19255_v37, %v19262_v50  ;;  %9723 = vmatmul.mubr.msk.bf16.gmra.mrb[8].mxu0 %vm1468_vm0, %v13330_v38 }
 0x128   : > { %v1281_v10 = vmax.f32 %v1217_v45, 0.0  ;;  %v1099_v59 = vadd.f32 %v1035_v33, %v867_v56  ;;  %v1107_v8 = vadd.f32 %v1043_v44, %v875_v1  ;;  %v1032_v23 = vmul.f32 %v19234_v15, %v19264_v41  ;;  %1555 = vmatprep.mubr.bf16.mxu0 %v19254_v24  ;;  %9731 = vmatmul.mubr.msk.bf16.gmra.mrb[8].mxu1 %vm1468_vm0, %v13330_v38 }
 0x129   : > { %1837 = vmatpush1.bf16.msra.mxu1 %v1322_v54  ;;  %v1273_v31 = vmax.f32 %v1209_v58, 0.0  ;;  %v1040_v34 = vmul.f32 %v19234_v15, %v13170_v16  ;;  %v864_v7 = vadd.f32 %v800_v57, %v632_v25  ;;  %v872_v13 = vadd.f32 %v19266_v55, %v640_v2  ;;  %1668 = vmatprep.mubr.bf16.mxu1 %v19254_v24 }
 0x12a   : > { %v1211_v21 = vadd.f32 %v13205_v12, %v1099_v59  ;;  %v634_v37 = vmul.f32 %v19187_v6, %v19259_v9  ;;  %v1219_v19 = vadd.f32 %v13186_v11, %v1107_v8  ;;  %v642_v62 = vmul.f32 %v19187_v6, %v19260_v46  ;;  %v13462_v55 = vpop.permute.xlu1 %1360 }
 0x12b   : > { %v1329_v17 = vpack.c.bf16 %v1281_v10, %v1273_v31  ;;  %v802_v15 = vmul.f32 %v19240_v32, %v19262_v50  ;;  %v1096_v60 = vadd.f32 %v1032_v23, %v864_v7  ;;  %v1104_v27 = vadd.f32 %v1040_v34, %v872_v13 }
 0x12c   : > { %v1275_v51 = vmax.f32 %v1211_v21, 0.0  ;;  %v1034_v9 = vmul.f32 %v19243_v47, %v19264_v41  ;;  %v1283_v43 = vmax.f32 %v1219_v19, 0.0  ;;  %v874_v6 = vadd.f32 %v19267_v42, %v642_v62 }
 0x12d   : > { %1725 = vmatprep.subr.bf16.mxu0 %v1329_v17  ;;  %v866_v5 = vadd.f32 %v802_v15, %v634_v37  ;;  %v1042_v32 = vmul.f32 %v19243_v47, %v13170_v16  ;;  %v1208_v46 = vadd.f32 %v13205_v12, %v1096_v60  ;;  %v1216_v50 = vadd.f32 %v13186_v11, %v1104_v27 }
 0x12e   : > { %v1331_v29 = vpack.c.bf16 %v1283_v43, %v1275_v51 }
 0x12f   : > { %v1098_v49 = vadd.f32 %v1034_v9, %v866_v5  ;;  %v1106_v39 = vadd.f32 %v1042_v32, %v874_v6  ;;  %v1272_v41 = vmax.f32 %v1208_v46, 0.0  ;;  %v1280_v35 = vmax.f32 %v1216_v50, 0.0  ;;  %9724 = vmatmul.mubr.msk.bf16.gmra.mrb[12].mxu0 %vm1468_vm0, %v12183_v63 }
 0x130   : > { %1838 = vmatprep.subr.bf16.mxu1 %v1331_v29  ;;  %1565 = vmatprep.mubr.bf16.mxu0 %v19254_v24 }
 0x131   : > { %v1210_v20 = vadd.f32 %v13205_v12, %v1098_v49  ;;  %v1218_v4 = vadd.f32 %v13186_v11, %v1106_v39  ;;  %v1328_v0 = vpack.c.bf16 %v1280_v35, %v1272_v41  ;;  %9732 = vmatmul.mubr.msk.bf16.gmra.mrb[12].mxu1 %vm1468_vm0, %v12183_v63  ;;  %v12185_v11 = vld [vmem:[%s18516_s3 + $0x28] sm:$0xff]   ;;  %v12186_v12 = vld [vmem:[%s18516_s3 + $0x30] sm:$0xff]  }
 0x132   : > { %1678 = vmatprep.mubr.bf16.mxu1 %v19254_v24 }
 0x133   : > { %v1274_v16 = vmax.f32 %v1210_v20, 0.0  ;;  %v1282_v47 = vmax.f32 %v1218_v4, 0.0  ;;  %1726 = vmatpush1.bf16.msra.mxu0 %v1328_v0 }
 0x135   : > { %v1330_v3 = vpack.c.bf16 %v1282_v47, %v1274_v16  ;;  %v13482_v47 = vpop.permute.xlu1 %1370 }
 0x137   : > { %1839 = vmatpush1.bf16.msra.mxu1 %v1330_v3  ;;  %9725 = vmatmul.mubr.msk.bf16.gmra.mrb[16].mxu0 %vm1468_vm0, %v12184_v40 }
 0x138   : > { %1575 = vmatprep.mubr.bf16.mxu0 %v19254_v24 }
 0x139   : > { %9733 = vmatmul.mubr.msk.bf16.gmra.mrb[16].mxu1 %vm1468_vm0, %v12184_v40 }
 0x13a   : > { %1688 = vmatprep.mubr.bf16.mxu1 %v19254_v24 }
 0x13f   : > { %9726 = vmatmul.mubr.msk.bf16.gmra.mrb[20].mxu0 %vm1468_vm0, %v12185_v11 }
 0x140   : > { %1585 = vmatprep.mubr.bf16.mxu0 %v19254_v24 }
 0x141   : > { %9734 = vmatmul.mubr.msk.bf16.gmra.mrb[20].mxu1 %vm1468_vm0, %v12185_v11 }
 0x142   : > { %1698 = vmatprep.mubr.bf16.mxu1 %v19254_v24 }
 0x147   : > { %9727 = vmatmul.mubr.msk.bf16.gmra.mrb[24].mxu0 %vm1468_vm0, %v12186_v12 }
 0x148   : > { %1595 = vmatprep.mubr.bf16.mxu0 %v19254_v24 }
 0x149   : > { %9735 = vmatmul.mubr.msk.bf16.gmra.mrb[24].mxu1 %vm1468_vm0, %v12186_v12 }
 0x14a   : > { %1708 = vmatprep.mubr.bf16.mxu1 %v19254_v24 }
 0x14f   : > { %9728 = vmatmul.mubr.msk.bf16.gmra.mrb[28].mxu0 %vm1468_vm0, %v12187_v48 }
 0x150   : > { %1751 = vmatprep.mubr.bf16.mxu0 %v19254_v24 }
 0x151   : > { %9736 = vmatmul.mubr.msk.bf16.gmra.mrb[28].mxu1 %vm1468_vm0, %v12187_v48 }
 0x152   : > { %1864 = vmatprep.mubr.bf16.mxu1 %v19254_v24 }
 0x157   : > { %9737 = vmatmul.mubr.msk.bf16.vlgmr.msra.gmra.mrb[32].mxu0 %vm1468_vm0, %v13238_v30 }
 0x158   : > { %1761 = vmatprep.mubr.bf16.mxu0 %v19254_v24 }
 0x159   : > { %9745 = vmatmul.mubr.msk.bf16.vlgmr.msra.gmra.mrb[32].mxu1 %vm1468_vm0, %v13238_v30  ;;  %v12188_v30 = vld [vmem:[#allocation3] sm:$0xff]  }
 0x15a   : > { %1874 = vmatprep.mubr.bf16.mxu1 %v19254_v24 }
 0x15f   : > { %9738 = vmatmul.mubr.msk.bf16.gmra.mrb[36].mxu0 %vm1468_vm0, %v13285_v28 }
 0x160   : > { %1771 = vmatprep.mubr.bf16.mxu0 %v19254_v24 }
 0x161   : > { %9746 = vmatmul.mubr.msk.bf16.gmra.mrb[36].mxu1 %vm1468_vm0, %v13285_v28  ;;  %v13444_v28 = vpop.permute.xlu0 %1355 }
 0x162   : > { %1884 = vmatprep.mubr.bf16.mxu1 %v19254_v24 }
 0x165   : > { %v13456_v34 = vpop.permute.xlu0 %1365 }
 0x167   : > { %9739 = vmatmul.mubr.msk.bf16.gmra.mrb[40].mxu0 %vm1468_vm0, %v13330_v38 }
 0x168   : > { %1781 = vmatprep.mubr.bf16.mxu0 %v19254_v24 }
 0x169   : > { %9747 = vmatmul.mubr.msk.bf16.gmra.mrb[40].mxu1 %vm1468_vm0, %v13330_v38 }
 0x16a   : > { %1894 = vmatprep.mubr.bf16.mxu1 %v19254_v24 }
 0x16f   : > { %9740 = vmatmul.mubr.msk.bf16.gmra.mrb[44].mxu0 %vm1468_vm0, %v12183_v63 }
 0x170   : > { %1791 = vmatprep.mubr.bf16.mxu0 %v19254_v24 }
 0x171   : > { %9748 = vmatmul.mubr.msk.bf16.gmra.mrb[44].mxu1 %vm1468_vm0, %v12183_v63 }
 0x172   : > { %1904 = vmatprep.mubr.bf16.mxu1 %v19254_v24 }
 0x177   : > { %9741 = vmatmul.mubr.msk.bf16.gmra.mrb[48].mxu0 %vm1468_vm0, %v12184_v40 }
 0x178   : > { %1801 = vmatprep.mubr.bf16.mxu0 %v19254_v24 }
 0x179   : > { %9749 = vmatmul.mubr.msk.bf16.gmra.mrb[48].mxu1 %vm1468_vm0, %v12184_v40 }
 0x17a   : > { %1914 = vmatprep.mubr.bf16.mxu1 %v19254_v24 }
 0x17f   : > { %9742 = vmatmul.mubr.msk.bf16.gmra.mrb[52].mxu0 %vm1468_vm0, %v12185_v11 }
 0x180   : > { %1811 = vmatprep.mubr.bf16.mxu0 %v19254_v24 }
 0x181   : > { %9750 = vmatmul.mubr.msk.bf16.gmra.mrb[52].mxu1 %vm1468_vm0, %v12185_v11 }
 0x182   : > { %1924 = vmatprep.mubr.bf16.mxu1 %v19254_v24 }
 0x187   : > { %9743 = vmatmul.mubr.msk.bf16.gmra.mrb[56].mxu0 %vm1468_vm0, %v12186_v12 }
 0x188   : > { %1821 = vmatprep.mubr.bf16.mxu0 %v19254_v24 }
 0x189   : > { %9751 = vmatmul.mubr.msk.bf16.gmra.mrb[56].mxu1 %vm1468_vm0, %v12186_v12  ;;  %v13488_v12 = vpop.permute.xlu0 %1375 }
 0x18a   : > { %1934 = vmatprep.mubr.bf16.mxu1 %v19254_v24 }
 0x18f   : > { %9744 = vmatmul.mubr.msk.bf16.gmra.mrb[60].mxu0 %vm1468_vm0, %v12187_v48 }
 0x190   : > { %10605 = vmatprep.mubr.bf16.mxu0 %v12188_v30 }
 0x191   : > { %9752 = vmatmul.mubr.msk.bf16.gmra.mrb[60].mxu1 %vm1468_vm0, %v12187_v48 }
 0x192   : > { %10653 = vmatprep.mubr.bf16.mxu1 %v12188_v30 }
 0x1ea   : > { %v1527_v61 = vpop.f32.mrb[0].mxu0 }
 0x1eb   : > { %v1640_v26 = vpop.f32.mrb[0].mxu1  ;;  %v1528_v38 = vadd.f32 %v1527_v61, %v13446_v53  ;;  %v1529_v52 = vpop.f32.mrb[1].mxu0 }
 0x1ec   : > { %v1641_v36 = vadd.f32 %v1640_v26, %v13446_v53  ;;  %v1642_v18 = vpop.f32.mrb[1].mxu1  ;;  %v1530_v24 = vadd.f32 %v1529_v52, %v13446_v53  ;;  %v1531_v45 = vpop.f32.mrb[2].mxu0 }
 0x1ed   : > { %v1643_v22 = vadd.f32 %v1642_v18, %v13446_v53  ;;  %v1644_v56 = vpop.f32.mrb[2].mxu1  ;;  %v1532_v14 = vadd.f32 %v1531_v45, %v13444_v28  ;;  %v1533_v33 = vpop.f32.mrb[3].mxu0  ;;  %v1945_v25 = vmax.f32 %v1528_v38, 0.0 }
 0x1ee   : > { %v1645_v1 = vadd.f32 %v1644_v56, %v13444_v28  ;;  %v1646_v54 = vpop.f32.mrb[3].mxu1  ;;  %v1534_v58 = vadd.f32 %v1533_v33, %v13444_v28  ;;  %v1947_v10 = vmax.f32 %v1641_v36, 0.0  ;;  %v1946_v57 = vmax.f32 %v1530_v24, 0.0 }
 0x1ef   : > { %v1647_v44 = vadd.f32 %v1646_v54, %v13444_v28  ;;  %v1953_v59 = vmax.f32 %v1532_v14, 0.0  ;;  %v1948_v31 = vmax.f32 %v1643_v22, 0.0 }
 0x1f0   : > { %v1955_v2 = vmax.f32 %v1645_v1, 0.0  ;;  %v1954_v8 = vmax.f32 %v1534_v58, 0.0 }
 0x1f1   : > { %v1956_v23 = vmax.f32 %v1647_v44, 0.0  ;;  %v13458_v21 = vpack.c.bf16 %v1953_v59, %v1945_v25 }
 0x1f2   : > { %v13460_v7 = vpack.c.bf16 %v1955_v2, %v1947_v10  ;;  %v13464_v13 = vpack.c.bf16 %v1954_v8, %v1946_v57  ;;  %v1537_v17 = vpop.f32.mrb[4].mxu0 }
 0x1f3   : > { %19268 = vst [vmem:[#allocation19_spill] sm:$0xff] %v13458_v21  ;;  %v13466_v37 = vpack.c.bf16 %v1956_v23, %v1948_v31  ;;  %v1538_v19 = vadd.f32 %v1537_v17, %v13462_v55  ;;  %v1650_v62 = vpop.f32.mrb[4].mxu1  ;;  %v1539_v15 = vpop.f32.mrb[5].mxu0  ;;  %10589 = vmatprep.subr.bf16.mxu0 %v13458_v21 }
 0x1f4   : > { %19269 = vst [vmem:[#allocation30_spill] sm:$0xff] %v13460_v7  ;;  %19270 = vst [vmem:[#allocation31_spill] sm:$0xff] %v13464_v13  ;;  %v1651_v51 = vadd.f32 %v1650_v62, %v13462_v55  ;;  %v1540_v60 = vadd.f32 %v1539_v15, %v13462_v55  ;;  %v1652_v27 = vpop.f32.mrb[5].mxu1  ;;  %v1541_v9 = vpop.f32.mrb[6].mxu0  ;;  %10590 = vmatpush3.bf16.msra.mxu0 %v13458_v21  ;;  %10637 = vmatprep.subr.bf16.mxu1 %v13464_v13 }
 0x1f5   : > { %19271 = vst [vmem:[#allocation32_spill] sm:$0xff] %v13466_v37  ;;  %v1653_v63 = vadd.f32 %v1652_v27, %v13462_v55  ;;  %v1542_v43 = vadd.f32 %v1541_v9, %v13456_v34  ;;  %v1654_v5 = vpop.f32.mrb[6].mxu1  ;;  %v1543_v42 = vpop.f32.mrb[7].mxu0  ;;  %10638 = vmatpush3.bf16.msra.mxu1 %v13464_v13  ;;  %v1961_v50 = vmax.f32 %v1538_v19, 0.0 }
 0x1f6   : > { %v1655_v6 = vadd.f32 %v1654_v5, %v13456_v34  ;;  %v1544_v32 = vadd.f32 %v1543_v42, %v13456_v34  ;;  %v1656_v46 = vpop.f32.mrb[7].mxu1  ;;  %v1963_v39 = vmax.f32 %v1651_v51, 0.0  ;;  %v1962_v41 = vmax.f32 %v1540_v60, 0.0  ;;  %v13506_v31 = vpop.permute.xlu1 %1380 }
 0x1f7   : > { %v1969_v29 = vmax.f32 %v1542_v43, 0.0  ;;  %v1657_v49 = vadd.f32 %v1656_v46, %v13456_v34  ;;  %v1964_v4 = vmax.f32 %v1653_v63, 0.0  ;;  %v13510_v62 = vpop.permute.xlu0 %1385 }
 0x1f8   : > { %v1971_v35 = vmax.f32 %v1655_v6, 0.0  ;;  %v1970_v20 = vmax.f32 %v1544_v32, 0.0 }
 0x1f9   : > { %v13480_v0 = vpack.c.bf16 %v1969_v29, %v1961_v50  ;;  %v1972_v16 = vmax.f32 %v1657_v49, 0.0 }
 0x1fa   : > { %v13484_v40 = vpack.c.bf16 %v1971_v35, %v1963_v39  ;;  %v13486_v3 = vpack.c.bf16 %v1970_v20, %v1962_v41  ;;  %v1547_v11 = vpop.f32.mrb[8].mxu0 }
 0x1fb   : > { %19272 = vst [vmem:[#allocation36_spill] sm:$0xff] %v13480_v0  ;;  %v13490_v48 = vpack.c.bf16 %v1972_v16, %v1964_v4  ;;  %v1548_v30 = vadd.f32 %v1547_v11, %v13482_v47  ;;  %v1549_v61 = vpop.f32.mrb[9].mxu0  ;;  %10591 = vmatprep.subr.bf16.mxu0 %v13480_v0  ;;  %v1660_v26 = vpop.f32.mrb[8].mxu1 }
 0x1fc   : > { %19273 = vst [vmem:[#allocation34_spill] sm:$0xff] %v13484_v40  ;;  %19274 = vst [vmem:[#allocation20_spill] sm:$0xff] %v13486_v3  ;;  %v1550_v38 = vadd.f32 %v1549_v61, %v13482_v47  ;;  %v1551_v36 = vpop.f32.mrb[10].mxu0  ;;  %10592 = vmatpush3.bf16.msra.mxu0 %v13480_v0  ;;  %10639 = vmatprep.subr.bf16.mxu1 %v13486_v3  ;;  %v1661_v52 = vadd.f32 %v1660_v26, %v13482_v47  ;;  %v1662_v18 = vpop.f32.mrb[9].mxu1 }
 0x1fd   : > { %19275 = vst [vmem:[#allocation25_spill] sm:$0xff] %v13490_v48  ;;  %v1552_v24 = vadd.f32 %v1551_v36, %v13488_v12  ;;  %v1553_v22 = vpop.f32.mrb[11].mxu0  ;;  %10640 = vmatpush3.bf16.msra.mxu1 %v13486_v3  ;;  %v1663_v45 = vadd.f32 %v1662_v18, %v13482_v47  ;;  %v1664_v56 = vpop.f32.mrb[10].mxu1  ;;  %v1977_v1 = vmax.f32 %v1548_v30, 0.0 }
 0x1fe   : > { %v1554_v14 = vadd.f32 %v1553_v22, %v13488_v12  ;;  %v1665_v54 = vadd.f32 %v1664_v56, %v13488_v12  ;;  %v1666_v58 = vpop.f32.mrb[11].mxu1  ;;  %v1978_v44 = vmax.f32 %v1550_v38, 0.0  ;;  %v1979_v59 = vmax.f32 %v1661_v52, 0.0  ;;  %v13530_v26 = vpop.permute.xlu1 %1390 }
 0x1ff   : > { %v1985_v33 = vmax.f32 %v1552_v24, 0.0  ;;  %v1667_v10 = vadd.f32 %v1666_v58, %v13488_v12  ;;  %v1980_v8 = vmax.f32 %v1663_v45, 0.0  ;;  %v13534_v24 = vpop.permute.xlu0 %1395 }
 0x200   : > { %v1986_v25 = vmax.f32 %v1554_v14, 0.0  ;;  %v1987_v57 = vmax.f32 %v1665_v54, 0.0 }
 0x201   : > { %v13504_v2 = vpack.c.bf16 %v1985_v33, %v1977_v1  ;;  %v1988_v17 = vmax.f32 %v1667_v10, 0.0 }
 0x202   : > { %v13508_v23 = vpack.c.bf16 %v1986_v25, %v1978_v44  ;;  %v1557_v19 = vpop.f32.mrb[12].mxu0  ;;  %v13512_v15 = vpack.c.bf16 %v1987_v57, %v1979_v59 }
 0x203   : > { %19276 = vst [vmem:[#allocation21_spill] sm:$0xff] %v13504_v2  ;;  %v1558_v51 = vadd.f32 %v1557_v19, %v13506_v31  ;;  %v1559_v60 = vpop.f32.mrb[13].mxu0  ;;  %10593 = vmatprep.subr.bf16.mxu0 %v13504_v2  ;;  %v13516_v27 = vpack.c.bf16 %v1988_v17, %v1980_v8 }
 0x204   : > { %19277 = vst [vmem:[#allocation22_spill] sm:$0xff] %v13508_v23  ;;  %19278 = vst [vmem:[#allocation37_spill] sm:$0xff] %v13512_v15  ;;  %v1670_v9 = vpop.f32.mrb[12].mxu1  ;;  %v1560_v63 = vadd.f32 %v1559_v60, %v13506_v31  ;;  %v1561_v43 = vpop.f32.mrb[14].mxu0  ;;  %10594 = vmatpush3.bf16.msra.mxu0 %v13504_v2  ;;  %10641 = vmatprep.subr.bf16.mxu1 %v13508_v23 }
 0x205   : > { %19279 = vst [vmem:[#allocation26_spill] sm:$0xff] %v13516_v27  ;;  %v1671_v5 = vadd.f32 %v1670_v9, %v13506_v31  ;;  %v1672_v42 = vpop.f32.mrb[13].mxu1  ;;  %v1562_v6 = vadd.f32 %v1561_v43, %v13510_v62  ;;  %v1563_v32 = vpop.f32.mrb[15].mxu0  ;;  %10642 = vmatpush3.bf16.msra.mxu1 %v13508_v23  ;;  %v1993_v49 = vmax.f32 %v1558_v51, 0.0 }
 0x206   : > { %v1673_v46 = vadd.f32 %v1672_v42, %v13506_v31  ;;  %v1674_v50 = vpop.f32.mrb[14].mxu1  ;;  %v1564_v29 = vadd.f32 %v1563_v32, %v13510_v62  ;;  %v1994_v20 = vmax.f32 %v1560_v63, 0.0  ;;  %v13554_v32 = vpop.permute.xlu1 %1400 }
 0x207   : > { %v2001_v39 = vmax.f32 %v1562_v6, 0.0  ;;  %v1675_v41 = vadd.f32 %v1674_v50, %v13510_v62  ;;  %v1676_v35 = vpop.f32.mrb[15].mxu1  ;;  %v1995_v11 = vmax.f32 %v1671_v5, 0.0 }
 0x208   : > { %v2002_v4 = vmax.f32 %v1564_v29, 0.0  ;;  %v1677_v16 = vadd.f32 %v1676_v35, %v13510_v62  ;;  %v1996_v38 = vmax.f32 %v1673_v46, 0.0 }
 0x209   : > { %v13528_v30 = vpack.c.bf16 %v2001_v39, %v1993_v49  ;;  %v2003_v61 = vmax.f32 %v1675_v41, 0.0  ;;  %v13558_v39 = vpop.permute.xlu0 %1405 }
 0x20a   : > { %v13532_v36 = vpack.c.bf16 %v2002_v4, %v1994_v20  ;;  %v2004_v52 = vmax.f32 %v1677_v16, 0.0  ;;  %v1567_v18 = vpop.f32.mrb[16].mxu0 }
 0x20b   : > { %19280 = vst [vmem:[#allocation23_spill] sm:$0xff] %v13528_v30  ;;  %v13536_v22 = vpack.c.bf16 %v2003_v61, %v1995_v11  ;;  %v1568_v45 = vadd.f32 %v1567_v18, %v13530_v26  ;;  %v1569_v56 = vpop.f32.mrb[17].mxu0  ;;  %10595 = vmatprep.subr.bf16.mxu0 %v13528_v30 }
 0x20c   : > { %19281 = vst [vmem:[#allocation38_spill] sm:$0xff] %v13532_v36  ;;  %v13540_v14 = vpack.c.bf16 %v2004_v52, %v1996_v38  ;;  %v1680_v1 = vpop.f32.mrb[16].mxu1  ;;  %v1570_v33 = vadd.f32 %v1569_v56, %v13530_v26  ;;  %v1571_v54 = vpop.f32.mrb[18].mxu0  ;;  %10596 = vmatpush3.bf16.msra.mxu0 %v13528_v30  ;;  %10643 = vmatprep.subr.bf16.mxu1 %v13532_v36 }
 0x20d   : > { %19282 = vst [vmem:[#allocation50_spill] sm:$0xff] %v13536_v22  ;;  %v1681_v58 = vadd.f32 %v1680_v1, %v13530_v26  ;;  %v1682_v44 = vpop.f32.mrb[17].mxu1  ;;  %v1572_v25 = vadd.f32 %v1571_v54, %v13534_v24  ;;  %v1573_v10 = vpop.f32.mrb[19].mxu0  ;;  %10644 = vmatpush3.bf16.msra.mxu1 %v13532_v36  ;;  %v2009_v17 = vmax.f32 %v1568_v45, 0.0 }
 0x20e   : > { %19283 = vst [vmem:[#allocation51_spill] sm:$0xff] %v13540_v14  ;;  %v1683_v59 = vadd.f32 %v1682_v44, %v13530_v26  ;;  %v1684_v57 = vpop.f32.mrb[18].mxu1  ;;  %v1574_v8 = vadd.f32 %v1573_v10, %v13534_v24  ;;  %v2010_v9 = vmax.f32 %v1570_v33, 0.0 }
 0x20f   : > { %v2017_v19 = vmax.f32 %v1572_v25, 0.0  ;;  %v1685_v51 = vadd.f32 %v1684_v57, %v13534_v24  ;;  %v1686_v60 = vpop.f32.mrb[19].mxu1  ;;  %v2011_v5 = vmax.f32 %v1681_v58, 0.0 }
 0x210   : > { %v2018_v63 = vmax.f32 %v1574_v8, 0.0  ;;  %v1687_v43 = vadd.f32 %v1686_v60, %v13534_v24  ;;  %v2012_v46 = vmax.f32 %v1683_v59, 0.0 }
 0x211   : > { %v13552_v42 = vpack.c.bf16 %v2017_v19, %v2009_v17  ;;  %v2019_v6 = vmax.f32 %v1685_v51, 0.0  ;;  %v13578_v51 = vpop.permute.xlu1 %1410 }
 0x212   : > { %v13556_v50 = vpack.c.bf16 %v2018_v63, %v2010_v9  ;;  %v2020_v29 = vmax.f32 %v1687_v43, 0.0  ;;  %v1577_v49 = vpop.f32.mrb[20].mxu0 }
 0x213   : > { %19284 = vst [vmem:[#allocation52_spill] sm:$0xff] %v13552_v42  ;;  %v13560_v41 = vpack.c.bf16 %v2019_v6, %v2011_v5  ;;  %v1578_v35 = vadd.f32 %v1577_v49, %v13554_v32  ;;  %v1579_v20 = vpop.f32.mrb[21].mxu0  ;;  %10597 = vmatprep.subr.bf16.mxu0 %v13552_v42  ;;  %v13582_v5 = vpop.permute.xlu0 %1415 }
 0x214   : > { %19285 = vst [vmem:[#allocation54_spill] sm:$0xff] %v13556_v50  ;;  %v13564_v4 = vpack.c.bf16 %v2020_v29, %v2012_v46  ;;  %v1690_v16 = vpop.f32.mrb[20].mxu1  ;;  %v1580_v11 = vadd.f32 %v1579_v20, %v13554_v32  ;;  %v1581_v61 = vpop.f32.mrb[22].mxu0  ;;  %10598 = vmatpush3.bf16.msra.mxu0 %v13552_v42  ;;  %10645 = vmatprep.subr.bf16.mxu1 %v13556_v50 }
 0x215   : > { %19286 = vst [vmem:[#allocation62_spill] sm:$0xff] %v13560_v41  ;;  %v1691_v38 = vadd.f32 %v1690_v16, %v13554_v32  ;;  %v1692_v52 = vpop.f32.mrb[21].mxu1  ;;  %v1582_v18 = vadd.f32 %v1581_v61, %v13558_v39  ;;  %v1583_v45 = vpop.f32.mrb[23].mxu0  ;;  %10646 = vmatpush3.bf16.msra.mxu1 %v13556_v50  ;;  %v2025_v54 = vmax.f32 %v1578_v35, 0.0 }
 0x216   : > { %19287 = vst [vmem:[#allocation6_spill] sm:$0xff] %v13564_v4  ;;  %v1693_v56 = vadd.f32 %v1692_v52, %v13554_v32  ;;  %v1694_v1 = vpop.f32.mrb[22].mxu1  ;;  %v1584_v33 = vadd.f32 %v1583_v45, %v13558_v39  ;;  %v2026_v10 = vmax.f32 %v1580_v11, 0.0 }
 0x217   : > { %v2033_v58 = vmax.f32 %v1582_v18, 0.0  ;;  %v1695_v44 = vadd.f32 %v1694_v1, %v13558_v39  ;;  %v1696_v25 = vpop.f32.mrb[23].mxu1  ;;  %v2027_v8 = vmax.f32 %v1691_v38, 0.0 }
 0x218   : > { %v2034_v59 = vmax.f32 %v1584_v33, 0.0  ;;  %v1697_v57 = vadd.f32 %v1696_v25, %v13558_v39  ;;  %v2028_v60 = vmax.f32 %v1693_v56, 0.0 }
 0x219   : > { %v13576_v17 = vpack.c.bf16 %v2033_v58, %v2025_v54  ;;  %v2035_v19 = vmax.f32 %v1695_v44, 0.0 }
 0x21a   : > { %v13580_v9 = vpack.c.bf16 %v2034_v59, %v2026_v10  ;;  %v2036_v63 = vmax.f32 %v1697_v57, 0.0  ;;  %v1587_v43 = vpop.f32.mrb[24].mxu0 }
 0x21b   : > { %19288 = vst [vmem:[#allocation43_spill] sm:$0xff] %v13576_v17  ;;  %v13584_v6 = vpack.c.bf16 %v2035_v19, %v2027_v8  ;;  %v1588_v46 = vadd.f32 %v1587_v43, %v13578_v51  ;;  %v1589_v29 = vpop.f32.mrb[25].mxu0  ;;  %10599 = vmatprep.subr.bf16.mxu0 %v13576_v17  ;;  %v13602_v19 = vpop.permute.xlu1 %1420 }
 0x21c   : > { %19289 = vst [vmem:[#allocation58_spill] sm:$0xff] %v13580_v9  ;;  %v13588_v49 = vpack.c.bf16 %v2036_v63, %v2028_v60  ;;  %v1700_v35 = vpop.f32.mrb[24].mxu1  ;;  %v1590_v20 = vadd.f32 %v1589_v29, %v13578_v51  ;;  %v1591_v16 = vpop.f32.mrb[26].mxu0  ;;  %10600 = vmatpush3.bf16.msra.mxu0 %v13576_v17  ;;  %10647 = vmatprep.subr.bf16.mxu1 %v13580_v9 }
 0x21d   : > { %19290 = vst [vmem:[#allocation64_spill] sm:$0xff] %v13584_v6  ;;  %v1701_v11 = vadd.f32 %v1700_v35, %v13578_v51  ;;  %v1702_v61 = vpop.f32.mrb[25].mxu1  ;;  %v1592_v38 = vadd.f32 %v1591_v16, %v13582_v5  ;;  %v1593_v52 = vpop.f32.mrb[27].mxu0  ;;  %10648 = vmatpush3.bf16.msra.mxu1 %v13580_v9  ;;  %v2041_v1 = vmax.f32 %v1588_v46, 0.0 }
 0x21e   : > { %19291 = vst [vmem:[#allocation8_spill] sm:$0xff] %v13588_v49  ;;  %v1703_v18 = vadd.f32 %v1702_v61, %v13578_v51  ;;  %v1704_v45 = vpop.f32.mrb[26].mxu1  ;;  %v1594_v56 = vadd.f32 %v1593_v52, %v13582_v5  ;;  %v2042_v44 = vmax.f32 %v1590_v20, 0.0  ;;  %v13606_v46 = vpop.permute.xlu0 %1425 }
 0x21f   : > { %v2049_v33 = vmax.f32 %v1592_v38, 0.0  ;;  %v1705_v54 = vadd.f32 %v1704_v45, %v13582_v5  ;;  %v1706_v58 = vpop.f32.mrb[27].mxu1  ;;  %v2043_v59 = vmax.f32 %v1701_v11, 0.0 }
 0x220   : > { %v2050_v25 = vmax.f32 %v1594_v56, 0.0  ;;  %v1707_v10 = vadd.f32 %v1706_v58, %v13582_v5  ;;  %v2044_v60 = vmax.f32 %v1703_v18, 0.0 }
 0x221   : > { %v13600_v57 = vpack.c.bf16 %v2049_v33, %v2041_v1  ;;  %v2051_v8 = vmax.f32 %v1705_v54, 0.0 }
 0x222   : > { %v13604_v63 = vpack.c.bf16 %v2050_v25, %v2042_v44  ;;  %v2052_v43 = vmax.f32 %v1707_v10, 0.0  ;;  %v1597_v29 = vpop.f32.mrb[28].mxu0 }
 0x223   : > { %19292 = vst [vmem:[#allocation68_spill] sm:$0xff] %v13600_v57  ;;  %v13608_v35 = vpack.c.bf16 %v2051_v8, %v2043_v59  ;;  %v1598_v20 = vadd.f32 %v1597_v29, %v13602_v19  ;;  %v1599_v16 = vpop.f32.mrb[29].mxu0  ;;  %10601 = vmatprep.subr.bf16.mxu0 %v13600_v57 }
 0x224   : > { %19293 = vst [vmem:[#allocation70_spill] sm:$0xff] %v13604_v63  ;;  %v13612_v11 = vpack.c.bf16 %v2052_v43, %v2044_v60  ;;  %v1710_v61 = vpop.f32.mrb[28].mxu1  ;;  %v1600_v38 = vadd.f32 %v1599_v16, %v13602_v19  ;;  %v1601_v52 = vpop.f32.mrb[30].mxu0  ;;  %10602 = vmatpush3.bf16.msra.mxu0 %v13600_v57  ;;  %10649 = vmatprep.subr.bf16.mxu1 %v13604_v63 }
 0x225   : > { %19294 = vst [vmem:[#allocation27_spill] sm:$0xff] %v13608_v35  ;;  %v1711_v18 = vadd.f32 %v1710_v61, %v13602_v19  ;;  %v1712_v45 = vpop.f32.mrb[29].mxu1  ;;  %v1602_v56 = vadd.f32 %v1601_v52, %v13606_v46  ;;  %v1603_v1 = vpop.f32.mrb[31].mxu0  ;;  %10650 = vmatpush3.bf16.msra.mxu1 %v13604_v63  ;;  %v2057_v44 = vmax.f32 %v1598_v20, 0.0 }
 0x226   : > { %19295 = vst [vmem:[#allocation12_spill] sm:$0xff] %v13612_v11  ;;  %v1713_v33 = vadd.f32 %v1712_v45, %v13602_v19  ;;  %v1714_v54 = vpop.f32.mrb[30].mxu1  ;;  %v1604_v58 = vadd.f32 %v1603_v1, %v13606_v46  ;;  %v2058_v8 = vmax.f32 %v1600_v38, 0.0  ;;  %v13632_v38 = vld [vmem:[#allocation3 + $0x8] sm:$0xff]  }
 0x227   : > { %v2065_v25 = vmax.f32 %v1602_v56, 0.0  ;;  %v1715_v10 = vadd.f32 %v1714_v54, %v13606_v46  ;;  %v1716_v59 = vpop.f32.mrb[31].mxu1  ;;  %v2059_v29 = vmax.f32 %v1711_v18, 0.0 }
 0x228   : > { %v2066_v60 = vmax.f32 %v1604_v58, 0.0  ;;  %v1717_v43 = vadd.f32 %v1716_v59, %v13606_v46  ;;  %v2060_v52 = vmax.f32 %v1713_v33, 0.0 }
 0x229   : > { %v13624_v16 = vpack.c.bf16 %v2065_v25, %v2057_v44  ;;  %v2067_v61 = vmax.f32 %v1715_v10, 0.0 }
 0x22a   : > { %v13626_v63 = vpack.c.bf16 %v2066_v60, %v2058_v8  ;;  %v2068_v45 = vmax.f32 %v1717_v43, 0.0  ;;  %v1753_v57 = vpop.f32.mrb[32].mxu0  ;;  %v13646_v60 = vld [vmem:[#allocation3 + $0x10] sm:$0xff]  }
 0x22b   : > { %19296 = vst [vmem:[#allocation7_spill] sm:$0xff] %v13624_v16  ;;  %v13628_v9 = vpack.c.bf16 %v2067_v61, %v2059_v29  ;;  %v1754_v20 = vadd.f32 %v1753_v57, %v13446_v53  ;;  %v1755_v56 = vpop.f32.mrb[33].mxu0  ;;  %10603 = vmatprep.subr.bf16.mxu0 %v13624_v16 }
 0x22c   : > { %19297 = vst [vmem:[#allocation44_spill] sm:$0xff] %v13626_v63  ;;  %v13634_v1 = vpack.c.bf16 %v2068_v45, %v2060_v52  ;;  %v1866_v18 = vpop.f32.mrb[32].mxu1  ;;  %v1756_v54 = vadd.f32 %v1755_v56, %v13446_v53  ;;  %v1757_v58 = vpop.f32.mrb[34].mxu0  ;;  %10604 = vmatpush3.bf16.msra.mxu0 %v13624_v16  ;;  %10651 = vmatprep.subr.bf16.mxu1 %v13626_v63 }
 0x22d   : > { %19298 = vst [vmem:[#allocation59_spill] sm:$0xff] %v13628_v9  ;;  %v1867_v33 = vadd.f32 %v1866_v18, %v13446_v53  ;;  %v1868_v44 = vpop.f32.mrb[33].mxu1  ;;  %v1758_v57 = vadd.f32 %v1757_v58, %v13444_v28  ;;  %v1759_v25 = vpop.f32.mrb[35].mxu0  ;;  %10652 = vmatpush3.bf16.msra.mxu1 %v13626_v63  ;;  %10685 = vmatprep.subr.bf16.mxu0 %v13460_v7  ;;  %v1949_v43 = vmax.f32 %v1754_v20, 0.0 }
 0x22e   : > { %19299 = vst [vmem:[#allocation9_spill] sm:$0xff] %v13634_v1  ;;  %v1869_v10 = vadd.f32 %v1868_v44, %v13446_v53  ;;  %v1870_v59 = vpop.f32.mrb[34].mxu1  ;;  %v1760_v8 = vadd.f32 %v1759_v25, %v13444_v28  ;;  %10733 = vmatprep.subr.bf16.mxu1 %v13466_v37  ;;  %v1950_v45 = vmax.f32 %v1756_v54, 0.0 }
 0x22f   : > { %v1957_v29 = vmax.f32 %v1758_v57, 0.0  ;;  %v1871_v61 = vadd.f32 %v1870_v59, %v13444_v28  ;;  %v1872_v52 = vpop.f32.mrb[35].mxu1  ;;  %10606 = vmatmul.mubr.bf16.vlgmr.msra.gmra.mrb[64].mxu0 %v13632_v38  ;;  %v1951_v53 = vmax.f32 %v1867_v33, 0.0 }
 0x230   : > { %v1958_v56 = vmax.f32 %v1760_v8, 0.0  ;;  %v1873_v18 = vadd.f32 %v1872_v52, %v13444_v28  ;;  %10654 = vmatmul.mubr.bf16.vlgmr.msra.gmra.mrb[64].mxu1 %v13632_v38  ;;  %10686 = vmatpush3.bf16.msra.mxu0 %v13460_v7  ;;  %v1952_v20 = vmax.f32 %v1869_v10, 0.0  ;;  %v13664_v8 = vld [vmem:[#allocation3 + $0x18] sm:$0xff]  }
 0x231   : > { %v13653_v58 = vpack.c.bf16 %v1957_v29, %v1949_v43  ;;  %v1959_v44 = vmax.f32 %v1871_v61, 0.0  ;;  %10687 = vmatprep.subr.bf16.mxu0 %v13484_v40  ;;  %10734 = vmatpush3.bf16.msra.mxu1 %v13466_v37 }
 0x232   : > { %v13657_v57 = vpack.c.bf16 %v1958_v56, %v1950_v45  ;;  %v1960_v25 = vmax.f32 %v1873_v18, 0.0  ;;  %v1763_v54 = vpop.f32.mrb[36].mxu0  ;;  %10735 = vmatprep.subr.bf16.mxu1 %v13490_v48  ;;  %10609 = vmatprep.mubr.bf16.mxu0 %v13646_v60 }
 0x233   : > { %19300 = vst [vmem:[#allocation13_spill] sm:$0xff] %v13653_v58  ;;  %v13661_v28 = vpack.c.bf16 %v1959_v44, %v1951_v53  ;;  %v1764_v33 = vadd.f32 %v1763_v54, %v13462_v55  ;;  %v1765_v59 = vpop.f32.mrb[37].mxu0  ;;  %10657 = vmatprep.mubr.bf16.mxu1 %v13646_v60 }
 0x234   : > { %19301 = vst [vmem:[#allocation28_spill] sm:$0xff] %v13657_v57  ;;  %v13667_v43 = vpack.c.bf16 %v1960_v25, %v1952_v20  ;;  %v1876_v10 = vpop.f32.mrb[36].mxu1  ;;  %v1766_v29 = vadd.f32 %v1765_v59, %v13462_v55  ;;  %v1767_v61 = vpop.f32.mrb[38].mxu0  ;;  %10688 = vmatpush3.bf16.msra.mxu0 %v13484_v40  ;;  %v13678_v25 = vld [vmem:[#allocation3 + $0x20] sm:$0xff]  }
 0x235   : > { %19302 = vst [vmem:[#allocation45_spill] sm:$0xff] %v13661_v28  ;;  %v1877_v52 = vadd.f32 %v1876_v10, %v13462_v55  ;;  %v1878_v45 = vpop.f32.mrb[37].mxu1  ;;  %v1768_v56 = vadd.f32 %v1767_v61, %v13456_v34  ;;  %v1769_v18 = vpop.f32.mrb[39].mxu0  ;;  %10689 = vmatprep.subr.bf16.mxu0 %v13512_v15  ;;  %10736 = vmatpush3.bf16.msra.mxu1 %v13490_v48  ;;  %v1965_v54 = vmax.f32 %v1764_v33, 0.0 }
 0x236   : > { %19303 = vst [vmem:[#allocation60_spill] sm:$0xff] %v13667_v43  ;;  %v1879_v53 = vadd.f32 %v1878_v45, %v13462_v55  ;;  %v1880_v44 = vpop.f32.mrb[38].mxu1  ;;  %v1770_v20 = vadd.f32 %v1769_v18, %v13456_v34  ;;  %10737 = vmatprep.subr.bf16.mxu1 %v13516_v27  ;;  %v1966_v61 = vmax.f32 %v1766_v29, 0.0 }
 0x237   : > { %v1973_v59 = vmax.f32 %v1768_v56, 0.0  ;;  %v1881_v10 = vadd.f32 %v1880_v44, %v13456_v34  ;;  %v1882_v40 = vpop.f32.mrb[39].mxu1  ;;  %10610 = vmatmul.mubr.bf16.gmra.mrb[68].mxu0 %v13664_v8  ;;  %v1967_v55 = vmax.f32 %v1877_v52, 0.0 }
 0x238   : > { %v1974_v37 = vmax.f32 %v1770_v20, 0.0  ;;  %v1883_v48 = vadd.f32 %v1882_v40, %v13456_v34  ;;  %10658 = vmatmul.mubr.bf16.gmra.mrb[68].mxu1 %v13664_v8  ;;  %10690 = vmatpush3.bf16.msra.mxu0 %v13512_v15  ;;  %v1968_v33 = vmax.f32 %v1879_v53, 0.0  ;;  %v13696_v20 = vld [vmem:[#allocation3 + $0x28] sm:$0xff]  }
 0x239   : > { %v13685_v45 = vpack.c.bf16 %v1973_v59, %v1965_v54  ;;  %v1975_v18 = vmax.f32 %v1881_v10, 0.0  ;;  %10691 = vmatprep.subr.bf16.mxu0 %v13536_v22  ;;  %10738 = vmatpush3.bf16.msra.mxu1 %v13516_v27 }
 0x23a   : > { %v13689_v56 = vpack.c.bf16 %v1974_v37, %v1966_v61  ;;  %v1976_v44 = vmax.f32 %v1883_v48, 0.0  ;;  %v1773_v29 = vpop.f32.mrb[40].mxu0  ;;  %10739 = vmatprep.subr.bf16.mxu1 %v13540_v14  ;;  %10613 = vmatprep.mubr.bf16.mxu0 %v13678_v25 }
 0x23b   : > { %19304 = vst [vmem:[#allocation14_spill] sm:$0xff] %v13685_v45  ;;  %v13693_v34 = vpack.c.bf16 %v1975_v18, %v1967_v55  ;;  %v1774_v40 = vadd.f32 %v1773_v29, %v13482_v47  ;;  %v1775_v52 = vpop.f32.mrb[41].mxu0  ;;  %10661 = vmatprep.mubr.bf16.mxu1 %v13678_v25  ;;  %v13710_v29 = vld [vmem:[#allocation3 + $0x30] sm:$0xff]  }
 0x23c   : > { %19305 = vst [vmem:[#allocation29_spill] sm:$0xff] %v13689_v56  ;;  %v13699_v54 = vpack.c.bf16 %v1976_v44, %v1968_v33  ;;  %v1886_v53 = vpop.f32.mrb[40].mxu1  ;;  %v1776_v37 = vadd.f32 %v1775_v52, %v13482_v47  ;;  %v1777_v48 = vpop.f32.mrb[42].mxu0  ;;  %10692 = vmatpush3.bf16.msra.mxu0 %v13536_v22 }
 0x23d   : > { %19306 = vst [vmem:[#allocation11_spill] sm:$0xff] %v13693_v34  ;;  %v1887_v59 = vadd.f32 %v1886_v53, %v13482_v47  ;;  %v1888_v10 = vpop.f32.mrb[41].mxu1  ;;  %v1778_v61 = vadd.f32 %v1777_v48, %v13488_v12  ;;  %v1779_v55 = vpop.f32.mrb[43].mxu0  ;;  %10693 = vmatprep.subr.bf16.mxu0 %v13560_v41  ;;  %10740 = vmatpush3.bf16.msra.mxu1 %v13540_v14  ;;  %v1981_v52 = vmax.f32 %v1774_v40, 0.0 }
 0x23e   : > { %19307 = vst [vmem:[#allocation46_spill] sm:$0xff] %v13699_v54  ;;  %v1889_v18 = vadd.f32 %v1888_v10, %v13482_v47  ;;  %v1890_v33 = vpop.f32.mrb[42].mxu1  ;;  %v1780_v44 = vadd.f32 %v1779_v55, %v13488_v12  ;;  %10741 = vmatprep.subr.bf16.mxu1 %v13564_v4  ;;  %v1982_v48 = vmax.f32 %v1776_v37, 0.0 }
 0x23f   : > { %v1989_v22 = vmax.f32 %v1778_v61, 0.0  ;;  %v1891_v53 = vadd.f32 %v1890_v33, %v13488_v12  ;;  %v1892_v27 = vpop.f32.mrb[43].mxu1  ;;  %10614 = vmatmul.mubr.bf16.gmra.mrb[72].mxu0 %v13696_v20  ;;  %v1983_v47 = vmax.f32 %v1887_v59, 0.0  ;;  %v13728_v59 = vld [vmem:[#allocation3 + $0x38] sm:$0xff]  }
 0x240   : > { %v1990_v15 = vmax.f32 %v1780_v44, 0.0  ;;  %v1893_v14 = vadd.f32 %v1892_v27, %v13488_v12  ;;  %10662 = vmatmul.mubr.bf16.gmra.mrb[72].mxu1 %v13696_v20  ;;  %10694 = vmatpush3.bf16.msra.mxu0 %v13560_v41  ;;  %v1984_v40 = vmax.f32 %v1889_v18, 0.0 }
 0x241   : > { %v13717_v10 = vpack.c.bf16 %v1989_v22, %v1981_v52  ;;  %v1991_v55 = vmax.f32 %v1891_v53, 0.0  ;;  %10695 = vmatprep.subr.bf16.mxu0 %v13584_v6  ;;  %10742 = vmatpush3.bf16.msra.mxu1 %v13564_v4 }
 0x242   : > { %v13721_v61 = vpack.c.bf16 %v1990_v15, %v1982_v48  ;;  %v1992_v33 = vmax.f32 %v1893_v14, 0.0  ;;  %v1783_v37 = vpop.f32.mrb[44].mxu0  ;;  %10743 = vmatprep.subr.bf16.mxu1 %v13588_v49  ;;  %10617 = vmatprep.mubr.bf16.mxu0 %v13710_v29 }
 0x243   : > { %19308 = vst [vmem:[#allocation63_spill] sm:$0xff] %v13717_v10  ;;  %v13725_v12 = vpack.c.bf16 %v1991_v55, %v1983_v47  ;;  %v1784_v27 = vadd.f32 %v1783_v37, %v13506_v31  ;;  %v1785_v22 = vpop.f32.mrb[45].mxu0  ;;  %10665 = vmatprep.mubr.bf16.mxu1 %v13710_v29  ;;  %v13742_v37 = vld [vmem:[#allocation3 + $0x40] sm:$0xff]  }
 0x244   : > { %19309 = vst [vmem:[#allocation15_spill] sm:$0xff] %v13721_v61  ;;  %v13731_v44 = vpack.c.bf16 %v1992_v33, %v1984_v40  ;;  %v1896_v18 = vpop.f32.mrb[44].mxu1  ;;  %v1786_v15 = vadd.f32 %v1785_v22, %v13506_v31  ;;  %v1787_v14 = vpop.f32.mrb[46].mxu0  ;;  %10696 = vmatpush3.bf16.msra.mxu0 %v13584_v6 }
 0x245   : > { %19310 = vst [vmem:[#allocation33_spill] sm:$0xff] %v13725_v12  ;;  %v1897_v52 = vadd.f32 %v1896_v18, %v13506_v31  ;;  %v1898_v53 = vpop.f32.mrb[45].mxu1  ;;  %v1788_v48 = vadd.f32 %v1787_v14, %v13510_v62  ;;  %v1789_v47 = vpop.f32.mrb[47].mxu0  ;;  %10697 = vmatprep.subr.bf16.mxu0 %v13608_v35  ;;  %10744 = vmatpush3.bf16.msra.mxu1 %v13588_v49  ;;  %v1997_v22 = vmax.f32 %v1784_v27, 0.0 }
 0x246   : > { %19311 = vst [vmem:[#allocation65_spill] sm:$0xff] %v13731_v44  ;;  %v1899_v55 = vadd.f32 %v1898_v53, %v13506_v31  ;;  %v1900_v40 = vpop.f32.mrb[46].mxu1  ;;  %v1790_v33 = vadd.f32 %v1789_v47, %v13510_v62  ;;  %10745 = vmatprep.subr.bf16.mxu1 %v13612_v11  ;;  %v1998_v14 = vmax.f32 %v1786_v15, 0.0 }
 0x247   : > { %v2005_v6 = vmax.f32 %v1788_v48, 0.0  ;;  %v1901_v18 = vadd.f32 %v1900_v40, %v13510_v62  ;;  %v1902_v4 = vpop.f32.mrb[47].mxu1  ;;  %10618 = vmatmul.mubr.bf16.gmra.mrb[76].mxu0 %v13728_v59  ;;  %v1999_v31 = vmax.f32 %v1897_v52, 0.0  ;;  %v13760_v52 = vld [vmem:[#allocation3 + $0x48] sm:$0xff]  }
 0x248   : > { %v2006_v41 = vmax.f32 %v1790_v33, 0.0  ;;  %v1903_v49 = vadd.f32 %v1902_v4, %v13510_v62  ;;  %10666 = vmatmul.mubr.bf16.gmra.mrb[76].mxu1 %v13728_v59  ;;  %10698 = vmatpush3.bf16.msra.mxu0 %v13608_v35  ;;  %v2000_v27 = vmax.f32 %v1899_v55, 0.0 }
 0x249   : > { %v13749_v53 = vpack.c.bf16 %v2005_v6, %v1997_v22  ;;  %v2007_v47 = vmax.f32 %v1901_v18, 0.0  ;;  %10699 = vmatprep.subr.bf16.mxu0 %v13628_v9  ;;  %10746 = vmatpush3.bf16.msra.mxu1 %v13612_v11  ;;  %v13767_v22 = vld [vmem:[#allocation3 + $0x50] sm:$0xff]  }
 0x24a   : > { %v13753_v48 = vpack.c.bf16 %v2006_v41, %v1998_v14  ;;  %v2008_v40 = vmax.f32 %v1903_v49, 0.0  ;;  %v1793_v15 = vpop.f32.mrb[48].mxu0  ;;  %10747 = vmatprep.subr.bf16.mxu1 %v13634_v1  ;;  %10621 = vmatprep.mubr.bf16.mxu0 %v13742_v37 }
 0x24b   : > { %19312 = vst [vmem:[#allocation67_spill] sm:$0xff] %v13749_v53  ;;  %v13757_v62 = vpack.c.bf16 %v2007_v47, %v1999_v31  ;;  %v1794_v4 = vadd.f32 %v1793_v15, %v13530_v26  ;;  %v1795_v6 = vpop.f32.mrb[49].mxu0  ;;  %10669 = vmatprep.mubr.bf16.mxu1 %v13742_v37 }
 0x24c   : > { %19313 = vst [vmem:[#allocation69_spill] sm:$0xff] %v13753_v48  ;;  %v13763_v33 = vpack.c.bf16 %v2008_v40, %v2000_v27  ;;  %v1906_v55 = vpop.f32.mrb[48].mxu1  ;;  %v1796_v41 = vadd.f32 %v1795_v6, %v13530_v26  ;;  %v1797_v49 = vpop.f32.mrb[50].mxu0  ;;  %10700 = vmatpush3.bf16.msra.mxu0 %v13628_v9 }
 0x24d   : > { %19314 = vst [vmem:[#allocation47_spill] sm:$0xff] %v13757_v62  ;;  %v1907_v18 = vadd.f32 %v1906_v55, %v13530_v26  ;;  %v1908_v14 = vpop.f32.mrb[49].mxu1  ;;  %v1798_v31 = vadd.f32 %v1797_v49, %v13534_v24  ;;  %v1799_v47 = vpop.f32.mrb[51].mxu0  ;;  %10748 = vmatpush3.bf16.msra.mxu1 %v13634_v1  ;;  %10781 = vmatprep.subr.bf16.mxu0 %v13653_v58  ;;  %v2013_v6 = vmax.f32 %v1794_v4, 0.0 }
 0x24e   : > { %19315 = vst [vmem:[#allocation48_spill] sm:$0xff] %v13763_v33  ;;  %v1909_v27 = vadd.f32 %v1908_v14, %v13530_v26  ;;  %v1910_v40 = vpop.f32.mrb[50].mxu1  ;;  %v1800_v15 = vadd.f32 %v1799_v47, %v13534_v24  ;;  %10829 = vmatprep.subr.bf16.mxu1 %v13657_v57  ;;  %v2014_v49 = vmax.f32 %v1796_v41, 0.0 }
 0x24f   : > { %v2021_v9 = vmax.f32 %v1798_v31, 0.0  ;;  %v1911_v11 = vadd.f32 %v1910_v40, %v13534_v24  ;;  %v1912_v55 = vpop.f32.mrb[51].mxu1  ;;  %10622 = vmatmul.mubr.bf16.gmra.mrb[80].mxu0 %v13760_v52  ;;  %v2015_v26 = vmax.f32 %v1907_v18, 0.0 }
 0x250   : > { %v2022_v35 = vmax.f32 %v1800_v15, 0.0  ;;  %v1913_v1 = vadd.f32 %v1912_v55, %v13534_v24  ;;  %10670 = vmatmul.mubr.bf16.gmra.mrb[80].mxu1 %v13760_v52  ;;  %10625 = vmatprep.mubr.bf16.mxu0 %v13767_v22  ;;  %v2016_v4 = vmax.f32 %v1909_v27, 0.0  ;;  %v13789_v15 = vld [vmem:[#allocation3 + $0x58] sm:$0xff]  }
 0x251   : > { %v13781_v14 = vpack.c.bf16 %v2021_v9, %v2013_v6  ;;  %v2023_v47 = vmax.f32 %v1911_v11, 0.0  ;;  %10673 = vmatprep.mubr.bf16.mxu1 %v13767_v22  ;;  %v13794_v6 = vld [vmem:[#allocation3 + $0x60] sm:$0xff]  }
 0x252   : > { %v13784_v31 = vpack.c.bf16 %v2022_v35, %v2014_v49  ;;  %v2024_v40 = vmax.f32 %v1913_v1, 0.0  ;;  %v1803_v7 = vpop.f32.mrb[52].mxu0 }
 0x253   : > { %19316 = vst [vmem:[#allocation39_spill] sm:$0xff] %v13781_v14  ;;  %v13786_v63 = vpack.c.bf16 %v2023_v47, %v2015_v26  ;;  %v1804_v41 = vadd.f32 %v1803_v7, %v13554_v32  ;;  %v1805_v24 = vpop.f32.mrb[53].mxu0 }
 0x254   : > { %19317 = vst [vmem:[#allocation18_spill] sm:$0xff] %v13784_v31  ;;  %v13791_v55 = vpack.c.bf16 %v2024_v40, %v2016_v4  ;;  %v1916_v18 = vpop.f32.mrb[52].mxu1  ;;  %v1806_v9 = vadd.f32 %v1805_v24, %v13554_v32  ;;  %v1807_v11 = vpop.f32.mrb[54].mxu0 }
 0x255   : > { %19318 = vst [vmem:[#allocation16_spill] sm:$0xff] %v13786_v63  ;;  %v1917_v35 = vadd.f32 %v1916_v18, %v13554_v32  ;;  %v1918_v27 = vpop.f32.mrb[53].mxu1  ;;  %v1808_v1 = vadd.f32 %v1807_v11, %v13558_v39  ;;  %v1809_v49 = vpop.f32.mrb[55].mxu0  ;;  %v2029_v16 = vmax.f32 %v1804_v41, 0.0 }
 0x256   : > { %19319 = vst [vmem:[#allocation40_spill] sm:$0xff] %v13791_v55  ;;  %v1919_v26 = vadd.f32 %v1918_v27, %v13554_v32  ;;  %v1920_v7 = vpop.f32.mrb[54].mxu1  ;;  %v1810_v47 = vadd.f32 %v1809_v49, %v13558_v39  ;;  %v2030_v24 = vmax.f32 %v1806_v9, 0.0 }
 0x257   : > { %v2037_v4 = vmax.f32 %v1808_v1, 0.0  ;;  %v1921_v40 = vadd.f32 %v1920_v7, %v13558_v39  ;;  %v1922_v17 = vpop.f32.mrb[55].mxu1  ;;  %10626 = vmatmul.mubr.bf16.gmra.mrb[84].mxu0 %v13789_v15  ;;  %v2031_v11 = vmax.f32 %v1917_v35, 0.0 }
 0x258   : > { %v2038_v50 = vmax.f32 %v1810_v47, 0.0  ;;  %v1923_v18 = vadd.f32 %v1922_v17, %v13558_v39  ;;  %10674 = vmatmul.mubr.bf16.gmra.mrb[84].mxu1 %v13789_v15  ;;  %10629 = vmatprep.mubr.bf16.mxu0 %v13794_v6  ;;  %v2032_v41 = vmax.f32 %v1919_v26, 0.0  ;;  %v13813_v17 = vld [vmem:[#allocation3 + $0x68] sm:$0xff]  }
 0x259   : > { %v13805_v32 = vpack.c.bf16 %v2037_v4, %v2029_v16  ;;  %v2039_v27 = vmax.f32 %v1921_v40, 0.0  ;;  %10677 = vmatprep.mubr.bf16.mxu1 %v13794_v6  ;;  %v13818_v40 = vld [vmem:[#allocation3 + $0x70] sm:$0xff]  }
 0x25a   : > { %v13808_v1 = vpack.c.bf16 %v2038_v50, %v2030_v24  ;;  %v2040_v49 = vmax.f32 %v1923_v18, 0.0  ;;  %v1813_v7 = vpop.f32.mrb[56].mxu0 }
 0x25b   : > { %19320 = vst [vmem:[#allocation10_spill] sm:$0xff] %v13805_v32  ;;  %v13810_v42 = vpack.c.bf16 %v2039_v27, %v2031_v11  ;;  %v1814_v9 = vadd.f32 %v1813_v7, %v13578_v51  ;;  %v1815_v39 = vpop.f32.mrb[57].mxu0 }
 0x25c   : > { %19321 = vst [vmem:[#allocation49_spill] sm:$0xff] %v13808_v1  ;;  %v13815_v47 = vpack.c.bf16 %v2040_v49, %v2032_v41  ;;  %v1926_v35 = vpop.f32.mrb[56].mxu1  ;;  %v1816_v16 = vadd.f32 %v1815_v39, %v13578_v51  ;;  %v1817_v4 = vpop.f32.mrb[58].mxu0 }
 0x25d   : > { %19322 = vst [vmem:[#allocation53_spill] sm:$0xff] %v13810_v42  ;;  %v1927_v50 = vadd.f32 %v1926_v35, %v13578_v51  ;;  %v1928_v26 = vpop.f32.mrb[57].mxu1  ;;  %v1818_v24 = vadd.f32 %v1817_v4, %v13582_v5  ;;  %v1819_v18 = vpop.f32.mrb[59].mxu0  ;;  %v2045_v36 = vmax.f32 %v1814_v9, 0.0 }
 0x25e   : > { %19323 = vst [vmem:[#allocation41_spill] sm:$0xff] %v13815_v47  ;;  %v1929_v11 = vadd.f32 %v1928_v26, %v13578_v51  ;;  %v1930_v27 = vpop.f32.mrb[58].mxu1  ;;  %v1820_v7 = vadd.f32 %v1819_v18, %v13582_v5  ;;  %v2046_v39 = vmax.f32 %v1816_v16, 0.0 }
 0x25f   : > { %v2053_v41 = vmax.f32 %v1818_v24, 0.0  ;;  %v1931_v49 = vadd.f32 %v1930_v27, %v13582_v5  ;;  %v1932_v30 = vpop.f32.mrb[59].mxu1  ;;  %10630 = vmatmul.mubr.bf16.gmra.mrb[88].mxu0 %v13813_v17  ;;  %v2047_v4 = vmax.f32 %v1927_v50, 0.0 }
 0x260   : > { %v2054_v23 = vmax.f32 %v1820_v7, 0.0  ;;  %v1933_v35 = vadd.f32 %v1932_v30, %v13582_v5  ;;  %10678 = vmatmul.mubr.bf16.gmra.mrb[88].mxu1 %v13813_v17  ;;  %10633 = vmatprep.mubr.bf16.mxu0 %v13818_v40  ;;  %v2048_v9 = vmax.f32 %v1929_v11, 0.0  ;;  %v13837_v5 = vld [vmem:[#allocation3 + $0x78] sm:$0xff]  }
 0x261   : > { %v13829_v51 = vpack.c.bf16 %v2053_v41, %v2045_v36  ;;  %v2055_v26 = vmax.f32 %v1931_v49, 0.0  ;;  %10681 = vmatprep.mubr.bf16.mxu1 %v13818_v40 }
 0x262   : > { %v13832_v24 = vpack.c.bf16 %v2054_v23, %v2046_v39  ;;  %v2056_v18 = vmax.f32 %v1933_v35, 0.0  ;;  %v1823_v27 = vpop.f32.mrb[60].mxu0 }
 0x263   : > { %19324 = vst [vmem:[#allocation66_spill] sm:$0xff] %v13829_v51  ;;  %v13834_v2 = vpack.c.bf16 %v2055_v26, %v2047_v4  ;;  %v1824_v16 = vadd.f32 %v1823_v27, %v13602_v19  ;;  %v1825_v30 = vpop.f32.mrb[61].mxu0 }
 0x264   : > { %19325 = vst [vmem:[#allocation17_spill] sm:$0xff] %v13832_v24  ;;  %v13839_v7 = vpack.c.bf16 %v2056_v18, %v2048_v9  ;;  %v1936_v50 = vpop.f32.mrb[60].mxu1  ;;  %v1826_v36 = vadd.f32 %v1825_v30, %v13602_v19  ;;  %v1827_v41 = vpop.f32.mrb[62].mxu0 }
 0x265   : > { %19326 = vst [vmem:[#allocation42_spill] sm:$0xff] %v13834_v2  ;;  %v1937_v49 = vadd.f32 %v1936_v50, %v13602_v19  ;;  %v1938_v11 = vpop.f32.mrb[61].mxu1  ;;  %v1828_v23 = vadd.f32 %v1827_v41, %v13606_v46  ;;  %v1829_v39 = vpop.f32.mrb[63].mxu0  ;;  %v2061_v27 = vmax.f32 %v1824_v16, 0.0  ;;  %v13850_v41 = vld [vmem:[#allocation3] sm:$0xff]  }
 0x266   : > { %19327 = vst [vmem:[#allocation35_spill] sm:$0xff] %v13839_v7  ;;  %v1939_v35 = vadd.f32 %v1938_v11, %v13602_v19  ;;  %v1940_v4 = vpop.f32.mrb[62].mxu1  ;;  %v1830_v26 = vadd.f32 %v1829_v39, %v13606_v46  ;;  %v2062_v30 = vmax.f32 %v1826_v36, 0.0 }
 0x267   : > { %v2069_v3 = vmax.f32 %v1828_v23, 0.0  ;;  %v1941_v9 = vadd.f32 %v1940_v4, %v13606_v46  ;;  %v1942_v18 = vpop.f32.mrb[63].mxu1  ;;  %10634 = vmatmul.mubr.bf16.gmra.mrb[92].mxu0 %v13837_v5  ;;  %v2063_v19 = vmax.f32 %v1937_v49, 0.0  ;;  %v19335_v49 = vld [vmem:[#allocation22_spill] sm:$0xff] }
 0x268   : > { %v2070_v0 = vmax.f32 %v1830_v26, 0.0  ;;  %v1943_v50 = vadd.f32 %v1942_v18, %v13606_v46  ;;  %10682 = vmatmul.mubr.bf16.gmra.mrb[92].mxu1 %v13837_v5  ;;  %10701 = vmatprep.mubr.bf16.mxu0 %v13850_v41  ;;  %v2064_v23 = vmax.f32 %v1939_v35, 0.0  ;;  %v19334_v46 = vld [vmem:[#allocation21_spill] sm:$0xff]  ;;  %v19337_v35 = vld [vmem:[#allocation38_spill] sm:$0xff] }
 0x269   : > { %v13853_v11 = vpack.c.bf16 %v2069_v3, %v2061_v27  ;;  %v2071_v16 = vmax.f32 %v1941_v9, 0.0  ;;  %10749 = vmatprep.mubr.bf16.mxu1 %v13850_v41  ;;  %v19333_v3 = vld [vmem:[#allocation20_spill] sm:$0xff]  ;;  %v19339_v27 = vld [vmem:[#allocation54_spill] sm:$0xff] }
 0x26a   : > { %v13856_v39 = vpack.c.bf16 %v2070_v0, %v2062_v30  ;;  %v2072_v4 = vmax.f32 %v1943_v50, 0.0  ;;  %v19332_v0 = vld [vmem:[#allocation36_spill] sm:$0xff]  ;;  %v19341_v9 = vld [vmem:[#allocation58_spill] sm:$0xff] }
 0x26b   : > { %19328 = vst [vmem:[#allocation55_spill] sm:$0xff] %v13853_v11  ;;  %v13858_v36 = vpack.c.bf16 %v2071_v16, %v2063_v19  ;;  %v19342_v19 = vld [vmem:[#allocation68_spill] sm:$0xff]  ;;  %v19344_v16 = vld [vmem:[#allocation7_spill] sm:$0xff] }
 0x26c   : > { %19329 = vst [vmem:[#allocation24_spill] sm:$0xff] %v13856_v39  ;;  %v13860_v26 = vpack.c.bf16 %v2072_v4, %v2064_v23 }
 0x26d   : > { %19330 = vst [vmem:[#allocation56_spill] sm:$0xff] %v13858_v36 }
 0x26e   : > { %19331 = vst [vmem:[#allocation57_spill] sm:$0xff] %v13860_v26 }
 0x26f   : > { %10702 = vmatmul.mubr.bf16.vlgmr.msra.gmra.mrb[96].mxu0 %v13632_v38 }
 0x270   : > { %10782 = vmatpush3.bf16.msra.mxu0 %v13653_v58  ;;  %10750 = vmatmul.mubr.bf16.vlgmr.msra.gmra.mrb[96].mxu1 %v13632_v38 }
 0x271   : > { %10783 = vmatprep.subr.bf16.mxu0 %v13685_v45  ;;  %10830 = vmatpush3.bf16.msra.mxu1 %v13657_v57 }
 0x272   : > { %10831 = vmatprep.subr.bf16.mxu1 %v13689_v56  ;;  %10705 = vmatprep.mubr.bf16.mxu0 %v13646_v60 }
 0x273   : > { %10753 = vmatprep.mubr.bf16.mxu1 %v13646_v60 }
 0x274   : > { %10784 = vmatpush3.bf16.msra.mxu0 %v13685_v45  ;;  %v19366_v45 = vld [vmem:[#allocation50_spill] sm:$0xff] }
 0x275   : > { %10785 = vmatprep.subr.bf16.mxu0 %v13717_v10  ;;  %10832 = vmatpush3.bf16.msra.mxu1 %v13689_v56  ;;  %v19360_v56 = vld [vmem:[#allocation37_spill] sm:$0xff] }
 0x276   : > { %10833 = vmatprep.subr.bf16.mxu1 %v13721_v61 }
 0x277   : > { %10706 = vmatmul.mubr.bf16.gmra.mrb[100].mxu0 %v13664_v8 }
 0x278   : > { %10786 = vmatpush3.bf16.msra.mxu0 %v13717_v10  ;;  %10754 = vmatmul.mubr.bf16.gmra.mrb[100].mxu1 %v13664_v8 }
 0x279   : > { %10787 = vmatprep.subr.bf16.mxu0 %v13749_v53  ;;  %10834 = vmatpush3.bf16.msra.mxu1 %v13721_v61 }
 0x27a   : > { %10835 = vmatprep.subr.bf16.mxu1 %v13753_v48  ;;  %10709 = vmatprep.mubr.bf16.mxu0 %v13678_v25 }
 0x27b   : > { %10757 = vmatprep.mubr.bf16.mxu1 %v13678_v25 }
 0x27c   : > { %10788 = vmatpush3.bf16.msra.mxu0 %v13749_v53 }
 0x27d   : > { %10789 = vmatprep.subr.bf16.mxu0 %v13781_v14  ;;  %10836 = vmatpush3.bf16.msra.mxu1 %v13753_v48  ;;  %v19353_v48 = vld [vmem:[#allocation25_spill] sm:$0xff] }
 0x27e   : > { %10837 = vmatprep.subr.bf16.mxu1 %v13784_v31 }
 0x27f   : > { %10710 = vmatmul.mubr.bf16.gmra.mrb[104].mxu0 %v13696_v20 }
 0x280   : > { %10790 = vmatpush3.bf16.msra.mxu0 %v13781_v14  ;;  %10758 = vmatmul.mubr.bf16.gmra.mrb[104].mxu1 %v13696_v20  ;;  %v14200_v14 = vld [vmem:[#allocation3 + $0x90] sm:$0xff]  }
 0x281   : > { %10791 = vmatprep.subr.bf16.mxu0 %v13805_v32  ;;  %10838 = vmatpush3.bf16.msra.mxu1 %v13784_v31  ;;  %19351 = vst [vmem:[#allocation73_spill] sm:$0xff] %v14200_v14 }
 0x282   : > { %10839 = vmatprep.subr.bf16.mxu1 %v13808_v1  ;;  %10713 = vmatprep.mubr.bf16.mxu0 %v13710_v29 }
 0x283   : > { %10761 = vmatprep.mubr.bf16.mxu1 %v13710_v29 }
 0x284   : > { %10792 = vmatpush3.bf16.msra.mxu0 %v13805_v32 }
 0x285   : > { %10793 = vmatprep.subr.bf16.mxu0 %v13829_v51  ;;  %10840 = vmatpush3.bf16.msra.mxu1 %v13808_v1 }
 0x286   : > { %10841 = vmatprep.subr.bf16.mxu1 %v13832_v24 }
 0x287   : > { %10714 = vmatmul.mubr.bf16.gmra.mrb[108].mxu0 %v13728_v59 }
 0x288   : > { %10794 = vmatpush3.bf16.msra.mxu0 %v13829_v51  ;;  %10762 = vmatmul.mubr.bf16.gmra.mrb[108].mxu1 %v13728_v59 }
 0x289   : > { %10795 = vmatprep.subr.bf16.mxu0 %v13853_v11  ;;  %10842 = vmatpush3.bf16.msra.mxu1 %v13832_v24 }
 0x28a   : > { %10843 = vmatprep.subr.bf16.mxu1 %v13856_v39  ;;  %10717 = vmatprep.mubr.bf16.mxu0 %v13742_v37 }
 0x28b   : > { %10765 = vmatprep.mubr.bf16.mxu1 %v13742_v37 }
 0x28c   : > { %10796 = vmatpush3.bf16.msra.mxu0 %v13853_v11  ;;  %v14217_v11 = vld [vmem:[#allocation3 + $0x98] sm:$0xff]  }
 0x28d   : > { %10844 = vmatpush3.bf16.msra.mxu1 %v13856_v39  ;;  %10877 = vmatprep.subr.bf16.mxu0 %v13661_v28  ;;  %19357 = vst [vmem:[#allocation77_spill] sm:$0xff] %v14217_v11 }
 0x28e   : > { %10925 = vmatprep.subr.bf16.mxu1 %v13667_v43 }
 0x28f   : > { %10718 = vmatmul.mubr.bf16.gmra.mrb[112].mxu0 %v13760_v52 }
 0x290   : > { %10766 = vmatmul.mubr.bf16.gmra.mrb[112].mxu1 %v13760_v52  ;;  %10721 = vmatprep.mubr.bf16.mxu0 %v13767_v22 }
 0x291   : > { %10769 = vmatprep.mubr.bf16.mxu1 %v13767_v22 }
 0x297   : > { %10722 = vmatmul.mubr.bf16.gmra.mrb[116].mxu0 %v13789_v15 }
 0x298   : > { %10770 = vmatmul.mubr.bf16.gmra.mrb[116].mxu1 %v13789_v15  ;;  %10725 = vmatprep.mubr.bf16.mxu0 %v13794_v6 }
 0x299   : > { %10773 = vmatprep.mubr.bf16.mxu1 %v13794_v6 }
 0x29f   : > { %10726 = vmatmul.mubr.bf16.gmra.mrb[120].mxu0 %v13813_v17 }
 0x2a0   : > { %10774 = vmatmul.mubr.bf16.gmra.mrb[120].mxu1 %v13813_v17  ;;  %10729 = vmatprep.mubr.bf16.mxu0 %v13818_v40 }
 0x2a1   : > { %10777 = vmatprep.mubr.bf16.mxu1 %v13818_v40 }
 0x2a7   : > { %10730 = vmatmul.mubr.bf16.gmra.mrb[124].mxu0 %v13837_v5 }
 0x2a8   : > { %10778 = vmatmul.mubr.bf16.gmra.mrb[124].mxu1 %v13837_v5  ;;  %10797 = vmatprep.mubr.bf16.mxu0 %v13850_v41 }
 0x2a9   : > { %10845 = vmatprep.mubr.bf16.mxu1 %v13850_v41 }
 0x2af   : > { %10798 = vmatmul.mubr.bf16.vlgmr.msra.gmra.mrb[128].mxu0 %v13632_v38 }
 0x2b0   : > { %10878 = vmatpush3.bf16.msra.mxu0 %v13661_v28  ;;  %10846 = vmatmul.mubr.bf16.vlgmr.msra.gmra.mrb[128].mxu1 %v13632_v38 }
 0x2b1   : > { %10879 = vmatprep.subr.bf16.mxu0 %v13693_v34  ;;  %10926 = vmatpush3.bf16.msra.mxu1 %v13667_v43 }
 0x2b2   : > { %10927 = vmatprep.subr.bf16.mxu1 %v13699_v54  ;;  %10801 = vmatprep.mubr.bf16.mxu0 %v13646_v60 }
 0x2b3   : > { %10849 = vmatprep.mubr.bf16.mxu1 %v13646_v60 }
 0x2b4   : > { %10880 = vmatpush3.bf16.msra.mxu0 %v13693_v34  ;;  %v14182_v34 = vld [vmem:[#allocation3 + $0x88] sm:$0xff]  }
 0x2b5   : > { %10881 = vmatprep.subr.bf16.mxu0 %v13725_v12  ;;  %10928 = vmatpush3.bf16.msra.mxu1 %v13699_v54  ;;  %19349 = vst [vmem:[#allocation71_spill] sm:$0xff] %v14182_v34 }
 0x2b6   : > { %10929 = vmatprep.subr.bf16.mxu1 %v13731_v44 }
 0x2b7   : > { %10802 = vmatmul.mubr.bf16.gmra.mrb[132].mxu0 %v13664_v8 }
 0x2b8   : > { %10882 = vmatpush3.bf16.msra.mxu0 %v13725_v12  ;;  %10850 = vmatmul.mubr.bf16.gmra.mrb[132].mxu1 %v13664_v8  ;;  %v14158_v12 = vld [vmem:[#allocation3 + $0x80] sm:$0xff]  }
 0x2b9   : > { %10883 = vmatprep.subr.bf16.mxu0 %v13757_v62  ;;  %10930 = vmatpush3.bf16.msra.mxu1 %v13731_v44  ;;  %19348 = vst [vmem:[#allocation61_spill] sm:$0xff] %v14158_v12 }
 0x2ba   : > { %10931 = vmatprep.subr.bf16.mxu1 %v13763_v33  ;;  %10805 = vmatprep.mubr.bf16.mxu0 %v13678_v25 }
 0x2bb   : > { %10853 = vmatprep.mubr.bf16.mxu1 %v13678_v25 }
 0x2bc   : > { %10884 = vmatpush3.bf16.msra.mxu0 %v13757_v62 }
 0x2bd   : > { %10885 = vmatprep.subr.bf16.mxu0 %v13786_v63  ;;  %10932 = vmatpush3.bf16.msra.mxu1 %v13763_v33 }
 0x2be   : > { %10933 = vmatprep.subr.bf16.mxu1 %v13791_v55 }
 0x2bf   : > { %10806 = vmatmul.mubr.bf16.gmra.mrb[136].mxu0 %v13696_v20 }
 0x2c0   : > { %10886 = vmatpush3.bf16.msra.mxu0 %v13786_v63  ;;  %10854 = vmatmul.mubr.bf16.gmra.mrb[136].mxu1 %v13696_v20 }
 0x2c1   : > { %10887 = vmatprep.subr.bf16.mxu0 %v13810_v42  ;;  %10934 = vmatpush3.bf16.msra.mxu1 %v13791_v55 }
 0x2c2   : > { %10935 = vmatprep.subr.bf16.mxu1 %v13815_v47  ;;  %10809 = vmatprep.mubr.bf16.mxu0 %v13710_v29 }
 0x2c3   : > { %10857 = vmatprep.mubr.bf16.mxu1 %v13710_v29 }
 0x2c4   : > { %10888 = vmatpush3.bf16.msra.mxu0 %v13810_v42 }
 0x2c5   : > { %10889 = vmatprep.subr.bf16.mxu0 %v13834_v2  ;;  %10936 = vmatpush3.bf16.msra.mxu1 %v13815_v47 }
 0x2c6   : > { %10937 = vmatprep.subr.bf16.mxu1 %v13839_v7 }
 0x2c7   : > { %10810 = vmatmul.mubr.bf16.gmra.mrb[140].mxu0 %v13728_v59 }
 0x2c8   : > { %10890 = vmatpush3.bf16.msra.mxu0 %v13834_v2  ;;  %10858 = vmatmul.mubr.bf16.gmra.mrb[140].mxu1 %v13728_v59 }
 0x2c9   : > { %10891 = vmatprep.subr.bf16.mxu0 %v13858_v36  ;;  %10938 = vmatpush3.bf16.msra.mxu1 %v13839_v7 }
 0x2ca   : > { %10939 = vmatprep.subr.bf16.mxu1 %v13860_v26  ;;  %10813 = vmatprep.mubr.bf16.mxu0 %v13742_v37 }
 0x2cb   : > { %10861 = vmatprep.mubr.bf16.mxu1 %v13742_v37 }
 0x2cc   : > { %10892 = vmatpush3.bf16.msra.mxu0 %v13858_v36 }
 0x2cd   : > { %10940 = vmatpush3.bf16.msra.mxu1 %v13860_v26  ;;  %10973 = vmatprep.subr.bf16.mxu0 %v13458_v21 }
 0x2ce   : > { %11021 = vmatprep.subr.bf16.mxu1 %v13464_v13 }
 0x2cf   : > { %10814 = vmatmul.mubr.bf16.gmra.mrb[144].mxu0 %v13760_v52 }
 0x2d0   : > { %10862 = vmatmul.mubr.bf16.gmra.mrb[144].mxu1 %v13760_v52  ;;  %10817 = vmatprep.mubr.bf16.mxu0 %v13767_v22 }
 0x2d1   : > { %10865 = vmatprep.mubr.bf16.mxu1 %v13767_v22 }
 0x2d7   : > { %10818 = vmatmul.mubr.bf16.gmra.mrb[148].mxu0 %v13789_v15 }
 0x2d8   : > { %10866 = vmatmul.mubr.bf16.gmra.mrb[148].mxu1 %v13789_v15  ;;  %10821 = vmatprep.mubr.bf16.mxu0 %v13794_v6 }
 0x2d9   : > { %10869 = vmatprep.mubr.bf16.mxu1 %v13794_v6 }
 0x2df   : > { %10822 = vmatmul.mubr.bf16.gmra.mrb[152].mxu0 %v13813_v17 }
 0x2e0   : > { %10870 = vmatmul.mubr.bf16.gmra.mrb[152].mxu1 %v13813_v17  ;;  %10825 = vmatprep.mubr.bf16.mxu0 %v13818_v40 }
 0x2e1   : > { %10873 = vmatprep.mubr.bf16.mxu1 %v13818_v40 }
 0x2e7   : > { %10826 = vmatmul.mubr.bf16.gmra.mrb[156].mxu0 %v13837_v5 }
 0x2e8   : > { %10874 = vmatmul.mubr.bf16.gmra.mrb[156].mxu1 %v13837_v5  ;;  %10893 = vmatprep.mubr.bf16.mxu0 %v13850_v41 }
 0x2e9   : > { %10941 = vmatprep.mubr.bf16.mxu1 %v13850_v41 }
 0x2ef   : > { %10894 = vmatmul.mubr.bf16.vlgmr.msra.gmra.mrb[160].mxu0 %v13632_v38 }
 0x2f0   : > { %10974 = vmatpush3.bf16.msra.mxu0 %v13458_v21  ;;  %10942 = vmatmul.mubr.bf16.vlgmr.msra.gmra.mrb[160].mxu1 %v13632_v38  ;;  %v19336_v38 = vld [vmem:[#allocation23_spill] sm:$0xff] }
 0x2f1   : > { %10975 = vmatprep.subr.bf16.mxu0 %v19332_v0  ;;  %11022 = vmatpush3.bf16.msra.mxu1 %v13464_v13 }
 0x2f2   : > { %11023 = vmatprep.subr.bf16.mxu1 %v19333_v3  ;;  %10897 = vmatprep.mubr.bf16.mxu0 %v13646_v60 }
 0x2f3   : > { %10945 = vmatprep.mubr.bf16.mxu1 %v13646_v60  ;;  %v19338_v60 = vld [vmem:[#allocation52_spill] sm:$0xff] }
 0x2f4   : > { %10976 = vmatpush3.bf16.msra.mxu0 %v19332_v0 }
 0x2f5   : > { %10977 = vmatprep.subr.bf16.mxu0 %v19334_v46  ;;  %11024 = vmatpush3.bf16.msra.mxu1 %v19333_v3 }
 0x2f6   : > { %11025 = vmatprep.subr.bf16.mxu1 %v19335_v49 }
 0x2f7   : > { %10898 = vmatmul.mubr.bf16.gmra.mrb[164].mxu0 %v13664_v8 }
 0x2f8   : > { %10978 = vmatpush3.bf16.msra.mxu0 %v19334_v46  ;;  %10946 = vmatmul.mubr.bf16.gmra.mrb[164].mxu1 %v13664_v8  ;;  %v19340_v8 = vld [vmem:[#allocation43_spill] sm:$0xff] }
 0x2f9   : > { %10979 = vmatprep.subr.bf16.mxu0 %v19336_v38  ;;  %11026 = vmatpush3.bf16.msra.mxu1 %v19335_v49 }
 0x2fa   : > { %11027 = vmatprep.subr.bf16.mxu1 %v19337_v35  ;;  %10901 = vmatprep.mubr.bf16.mxu0 %v13678_v25 }
 0x2fb   : > { %10949 = vmatprep.mubr.bf16.mxu1 %v13678_v25 }
 0x2fc   : > { %10980 = vmatpush3.bf16.msra.mxu0 %v19336_v38 }
 0x2fd   : > { %10981 = vmatprep.subr.bf16.mxu0 %v19338_v60  ;;  %11028 = vmatpush3.bf16.msra.mxu1 %v19337_v35 }
 0x2fe   : > { %11029 = vmatprep.subr.bf16.mxu1 %v19339_v27 }
 0x2ff   : > { %10902 = vmatmul.mubr.bf16.gmra.mrb[168].mxu0 %v13696_v20 }
 0x300   : > { %10982 = vmatpush3.bf16.msra.mxu0 %v19338_v60  ;;  %10950 = vmatmul.mubr.bf16.gmra.mrb[168].mxu1 %v13696_v20 }
 0x301   : > { %10983 = vmatprep.subr.bf16.mxu0 %v19340_v8  ;;  %11030 = vmatpush3.bf16.msra.mxu1 %v19339_v27 }
 0x302   : > { %11031 = vmatprep.subr.bf16.mxu1 %v19341_v9  ;;  %v14020_v25 = vpop.f32.mrb[64].mxu0  ;;  %10905 = vmatprep.mubr.bf16.mxu0 %v13710_v29 }
 0x303   : > { %v14023_v18 = vpop.f32.mrb[64].mxu1  ;;  %v14025_v30 = vpop.f32.mrb[65].mxu0  ;;  %10953 = vmatprep.mubr.bf16.mxu1 %v13710_v29  ;;  %v19343_v29 = vld [vmem:[#allocation70_spill] sm:$0xff] }
 0x304   : > { %10984 = vmatpush3.bf16.msra.mxu0 %v19340_v8  ;;  %v14031_v50 = vpop.f32.mrb[65].mxu1  ;;  %v14033_v41 = vpop.f32.mrb[66].mxu0 }
 0x305   : > { %10985 = vmatprep.subr.bf16.mxu0 %v19342_v19  ;;  %11032 = vmatpush3.bf16.msra.mxu1 %v19341_v9  ;;  %v14039_v23 = vpop.f32.mrb[66].mxu1  ;;  %v14041_v4 = vpop.f32.mrb[67].mxu0  ;;  %v19345_v9 = vld [vmem:[#allocation44_spill] sm:$0xff] }
 0x306   : > { %11033 = vmatprep.subr.bf16.mxu1 %v19343_v29  ;;  %v14046_v8 = vpop.f32.mrb[67].mxu1 }
 0x307   : > { %10906 = vmatmul.mubr.bf16.gmra.mrb[172].mxu0 %v13728_v59 }
 0x308   : > { %10986 = vmatpush3.bf16.msra.mxu0 %v19342_v19  ;;  %10954 = vmatmul.mubr.bf16.gmra.mrb[172].mxu1 %v13728_v59  ;;  %v19346_v19 = vld [vmem:[#allocation30_spill] sm:$0xff] }
 0x309   : > { %10987 = vmatprep.subr.bf16.mxu0 %v19344_v16  ;;  %11034 = vmatpush3.bf16.msra.mxu1 %v19343_v29 }
 0x30a   : > { %11035 = vmatprep.subr.bf16.mxu1 %v19345_v9  ;;  %v14056_v60 = vpop.f32.mrb[68].mxu0  ;;  %10909 = vmatprep.mubr.bf16.mxu0 %v13742_v37 }
 0x30b   : > { %v14059_v20 = vpop.f32.mrb[68].mxu1  ;;  %v14061_v35 = vpop.f32.mrb[69].mxu0  ;;  %10957 = vmatprep.mubr.bf16.mxu1 %v13742_v37  ;;  %v19347_v37 = vld [vmem:[#allocation32_spill] sm:$0xff] }
 0x30c   : > { %10988 = vmatpush3.bf16.msra.mxu0 %v19344_v16  ;;  %v14067_v27 = vpop.f32.mrb[69].mxu1  ;;  %v14069_v29 = vpop.f32.mrb[70].mxu0 }
 0x30d   : > { %11036 = vmatpush3.bf16.msra.mxu1 %v19345_v9  ;;  %11069 = vmatprep.subr.bf16.mxu0 %v19346_v19  ;;  %v14075_v49 = vpop.f32.mrb[70].mxu1  ;;  %v14077_v46 = vpop.f32.mrb[71].mxu0 }
 0x30e   : > { %11117 = vmatprep.subr.bf16.mxu1 %v19347_v37  ;;  %v14082_v16 = vpop.f32.mrb[71].mxu1 }
 0x30f   : > { %10910 = vmatmul.mubr.bf16.gmra.mrb[176].mxu0 %v13760_v52 }
 0x310   : > { %10958 = vmatmul.mubr.bf16.gmra.mrb[176].mxu1 %v13760_v52  ;;  %10913 = vmatprep.mubr.bf16.mxu0 %v13767_v22 }
 0x311   : > { %10961 = vmatprep.mubr.bf16.mxu1 %v13767_v22 }
 0x312   : > { %v14090_v38 = vpop.f32.mrb[72].mxu0 }
 0x313   : > { %v14092_v9 = vpop.f32.mrb[72].mxu1  ;;  %v14094_v0 = vpop.f32.mrb[73].mxu0 }
 0x314   : > { %v14098_v13 = vpop.f32.mrb[73].mxu1  ;;  %v14100_v3 = vpop.f32.mrb[74].mxu0 }
 0x315   : > { %v14104_v21 = vpop.f32.mrb[74].mxu1  ;;  %v14106_v26 = vpop.f32.mrb[75].mxu0 }
 0x316   : > { %v14110_v36 = vpop.f32.mrb[75].mxu1 }
 0x317   : > { %10914 = vmatmul.mubr.bf16.gmra.mrb[180].mxu0 %v13789_v15 }
 0x318   : > { %10962 = vmatmul.mubr.bf16.gmra.mrb[180].mxu1 %v13789_v15  ;;  %10917 = vmatprep.mubr.bf16.mxu0 %v13794_v6 }
 0x319   : > { %10965 = vmatprep.mubr.bf16.mxu1 %v13794_v6 }
 0x31a   : > { %v14118_v52 = vpop.f32.mrb[76].mxu0 }
 0x31b   : > { %v14120_v59 = vpop.f32.mrb[76].mxu1  ;;  %v14122_v2 = vpop.f32.mrb[77].mxu0 }
 0x31c   : > { %v14126_v47 = vpop.f32.mrb[77].mxu1  ;;  %v14128_v7 = vpop.f32.mrb[78].mxu0 }
 0x31d   : > { %v14132_v42 = vpop.f32.mrb[78].mxu1  ;;  %v14134_v55 = vpop.f32.mrb[79].mxu0 }
 0x31e   : > { %v14138_v63 = vpop.f32.mrb[79].mxu1 }
 0x31f   : > { %10918 = vmatmul.mubr.bf16.gmra.mrb[184].mxu0 %v13813_v17 }
 0x320   : > { %10966 = vmatmul.mubr.bf16.gmra.mrb[184].mxu1 %v13813_v17  ;;  %10921 = vmatprep.mubr.bf16.mxu0 %v13818_v40 }
 0x321   : > { %10969 = vmatprep.mubr.bf16.mxu1 %v13818_v40 }
 0x322   : > { %v14146_v15 = vpop.f32.mrb[80].mxu0 }
 0x323   : > { %v14148_v22 = vpop.f32.mrb[80].mxu1  ;;  %v14150_v62 = vpop.f32.mrb[81].mxu0 }
 0x324   : > { %v14154_v44 = vpop.f32.mrb[81].mxu1  ;;  %v14156_v33 = vpop.f32.mrb[82].mxu0 }
 0x325   : > { %v14162_v54 = vpop.f32.mrb[82].mxu1  ;;  %v14164_v40 = vpop.f32.mrb[83].mxu0 }
 0x326   : > { %v14168_v43 = vpop.f32.mrb[83].mxu1 }
 0x327   : > { %10922 = vmatmul.mubr.bf16.gmra.mrb[188].mxu0 %v13837_v5 }
 0x328   : > { %10970 = vmatmul.mubr.bf16.gmra.mrb[188].mxu1 %v13837_v5  ;;  %10989 = vmatprep.mubr.bf16.mxu0 %v14158_v12  ;;  %v19352_v5 = vld [vmem:[#allocation34_spill] sm:$0xff] }
 0x329   : > { %11037 = vmatprep.mubr.bf16.mxu1 %v14158_v12 }
 0x32a   : > { %v14176_v17 = vpop.f32.mrb[84].mxu0 }
 0x32b   : > { %v14178_v28 = vpop.f32.mrb[84].mxu1  ;;  %v14180_v39 = vpop.f32.mrb[85].mxu0 }
 0x32c   : > { %v14186_v6 = vpop.f32.mrb[85].mxu1  ;;  %v14188_v24 = vpop.f32.mrb[86].mxu0 }
 0x32d   : > { %v14192_v51 = vpop.f32.mrb[86].mxu1  ;;  %v14194_v1 = vpop.f32.mrb[87].mxu0 }
 0x32e   : > { %v14198_v31 = vpop.f32.mrb[87].mxu1 }
 0x32f   : > { %19350 = vst [vmem:[#allocation72_spill] sm:$0xff] %v14198_v31  ;;  %10990 = vmatmul.mubr.bf16.vlgmr.msra.gmra.mrb[192].mxu0 %v14182_v34 }
 0x330   : > { %11070 = vmatpush3.bf16.msra.mxu0 %v19346_v19  ;;  %11038 = vmatmul.mubr.bf16.vlgmr.msra.gmra.mrb[192].mxu1 %v14182_v34 }
 0x331   : > { %11071 = vmatprep.subr.bf16.mxu0 %v19352_v5  ;;  %11118 = vmatpush3.bf16.msra.mxu1 %v19347_v37 }
 0x332   : > { %11119 = vmatprep.subr.bf16.mxu1 %v19353_v48  ;;  %v14210_v32 = vpop.f32.mrb[88].mxu0  ;;  %10993 = vmatprep.mubr.bf16.mxu0 %v14200_v14 }
 0x333   : > { %19354 = vst [vmem:[#allocation74_spill] sm:$0xff] %v14210_v32  ;;  %v14213_v53 = vpop.f32.mrb[88].mxu1  ;;  %v14215_v61 = vpop.f32.mrb[89].mxu0  ;;  %11041 = vmatprep.mubr.bf16.mxu1 %v14200_v14  ;;  %v19363_v14 = vld [vmem:[#allocation26_spill] sm:$0xff]  ;;  %v14257_v32 = vld [vmem:[#allocation3 + $0xa8] sm:$0xff]  }
 0x334   : > { %19355 = vst [vmem:[#allocation75_spill] sm:$0xff] %v14213_v53  ;;  %19356 = vst [vmem:[#allocation76_spill] sm:$0xff] %v14215_v61  ;;  %11072 = vmatpush3.bf16.msra.mxu0 %v19352_v5  ;;  %v14223_v37 = vpop.f32.mrb[89].mxu1  ;;  %v14225_v10 = vpop.f32.mrb[90].mxu0  ;;  %v14240_v53 = vld [vmem:[#allocation3 + $0xa0] sm:$0xff]  }
 0x335   : > { %19358 = vst [vmem:[#allocation78_spill] sm:$0xff] %v14223_v37  ;;  %19359 = vst [vmem:[#allocation79_spill] sm:$0xff] %v14225_v10  ;;  %11073 = vmatprep.subr.bf16.mxu0 %v19360_v56  ;;  %11120 = vmatpush3.bf16.msra.mxu1 %v19353_v48  ;;  %v14231_v34 = vpop.f32.mrb[90].mxu1  ;;  %v14233_v31 = vpop.f32.mrb[91].mxu0  ;;  %v19367_v48 = vld [vmem:[#allocation51_spill] sm:$0xff] }
 0x336   : > { %19361 = vst [vmem:[#allocation80_spill] sm:$0xff] %v14231_v34  ;;  %19362 = vst [vmem:[#allocation81_spill] sm:$0xff] %v14233_v31  ;;  %11121 = vmatprep.subr.bf16.mxu1 %v19363_v14  ;;  %v14238_v5 = vpop.f32.mrb[91].mxu1  ;;  %v19378_v31 = vld [vmem:[#allocation64_spill] sm:$0xff] }
 0x337   : > { %19364 = vst [vmem:[#allocation82_spill] sm:$0xff] %v14238_v5  ;;  %19365 = vst [vmem:[#allocation83_spill] sm:$0xff] %v14240_v53  ;;  %10994 = vmatmul.mubr.bf16.gmra.mrb[196].mxu0 %v14217_v11  ;;  %v19373_v5 = vld [vmem:[#allocation62_spill] sm:$0xff] }
 0x338   : > { %11074 = vmatpush3.bf16.msra.mxu0 %v19360_v56  ;;  %11042 = vmatmul.mubr.bf16.gmra.mrb[196].mxu1 %v14217_v11  ;;  %19370 = vst [vmem:[#allocation86_spill] sm:$0xff] %v14257_v32 }
 0x339   : > { %11075 = vmatprep.subr.bf16.mxu0 %v19366_v45  ;;  %11122 = vmatpush3.bf16.msra.mxu1 %v19363_v14 }
 0x33a   : > { %11123 = vmatprep.subr.bf16.mxu1 %v19367_v48  ;;  %v14250_v19 = vpop.f32.mrb[92].mxu0  ;;  %10997 = vmatprep.mubr.bf16.mxu0 %v14240_v53 }
 0x33b   : > { %19368 = vst [vmem:[#allocation84_spill] sm:$0xff] %v14250_v19  ;;  %v14253_v34 = vpop.f32.mrb[92].mxu1  ;;  %v14255_v10 = vpop.f32.mrb[93].mxu0  ;;  %11045 = vmatprep.mubr.bf16.mxu1 %v14240_v53  ;;  %v19376_v53 = vld [vmem:[#allocation6_spill] sm:$0xff] }
 0x33c   : > { %19369 = vst [vmem:[#allocation85_spill] sm:$0xff] %v14253_v34  ;;  %11076 = vmatpush3.bf16.msra.mxu0 %v19366_v45  ;;  %v14263_v14 = vpop.f32.mrb[93].mxu1  ;;  %v14265_v11 = vpop.f32.mrb[94].mxu0  ;;  %v14280_v34 = vld [vmem:[#allocation3 + $0xb0] sm:$0xff]  }
 0x33d   : > { %19371 = vst [vmem:[#allocation87_spill] sm:$0xff] %v14263_v14  ;;  %19372 = vst [vmem:[#allocation88_spill] sm:$0xff] %v14265_v11  ;;  %11077 = vmatprep.subr.bf16.mxu0 %v19373_v5  ;;  %11124 = vmatpush3.bf16.msra.mxu1 %v19367_v48  ;;  %v14271_v37 = vpop.f32.mrb[94].mxu1  ;;  %v14273_v61 = vpop.f32.mrb[95].mxu0  ;;  %v19379_v48 = vld [vmem:[#allocation8_spill] sm:$0xff] }
 0x33e   : > { %19374 = vst [vmem:[#allocation89_spill] sm:$0xff] %v14271_v37  ;;  %19375 = vst [vmem:[#allocation90_spill] sm:$0xff] %v14273_v61  ;;  %11125 = vmatprep.subr.bf16.mxu1 %v19376_v53  ;;  %v14278_v45 = vpop.f32.mrb[95].mxu1  ;;  %v19380_v37 = vmax.f32 %v14020_v25, %v14023_v18 }
 0x33f   : > { %19377 = vst [vmem:[#allocation91_spill] sm:$0xff] %v14278_v45  ;;  %10998 = vmatmul.mubr.bf16.gmra.mrb[200].mxu0 %v14257_v32 }
 0x340   : > { %11078 = vmatpush3.bf16.msra.mxu0 %v19373_v5  ;;  %11046 = vmatmul.mubr.bf16.gmra.mrb[200].mxu1 %v14257_v32  ;;  %v14298_v5 = vld [vmem:[#allocation3 + $0xb8] sm:$0xff]  }
 0x341   : > { %11079 = vmatprep.subr.bf16.mxu0 %v19378_v31  ;;  %11126 = vmatpush3.bf16.msra.mxu1 %v19376_v53  ;;  %19381 = vst [vmem:[#allocation92_spill] sm:$0xff] %v14298_v5  ;;  %v19382_v53 = vmax.f32 %v14025_v30, %v14031_v50  ;;  %v19385_v50 = vmax.f32 %v14041_v4, %v14046_v8  ;;  %v19388_v8 = vld [vmem:[#allocation59_spill] sm:$0xff]  ;;  %v19389_v4 = vld [vmem:[#allocation9_spill] sm:$0xff] }
 0x342   : > { %11127 = vmatprep.subr.bf16.mxu1 %v19379_v48  ;;  %v10703_v56 = vpop.f32.mrb[96].mxu0  ;;  %11001 = vmatprep.mubr.bf16.mxu0 %v14280_v34 }
 0x343   : > { %v14294_v11 = vmax.f32 %v19380_v37, %v10703_v56  ;;  %v2653_v19 = vpop.f32.mrb[97].mxu0  ;;  %v14296_v45 = vpop.f32.mrb[96].mxu1  ;;  %11049 = vmatprep.mubr.bf16.mxu1 %v14280_v34  ;;  %v19383_v56 = vmax.f32 %v14033_v41, %v14039_v23  ;;  %v19384_v37 = vld [vmem:[#allocation27_spill] sm:$0xff] }
 0x344   : > { %v14304_v32 = vmax.f32 %v19382_v53, %v2653_v19  ;;  %11080 = vmatpush3.bf16.msra.mxu0 %v19378_v31  ;;  %v10704_v61 = vpop.f32.mrb[98].mxu0  ;;  %v14307_v14 = vpop.f32.mrb[97].mxu1 }
 0x345   : > { %v14312_v25 = vmax.f32 %v19383_v56, %v10704_v61  ;;  %11081 = vmatprep.subr.bf16.mxu0 %v19384_v37  ;;  %11128 = vmatpush3.bf16.msra.mxu1 %v19379_v48  ;;  %v2656_v30 = vpop.f32.mrb[99].mxu0  ;;  %v14318_v53 = vpop.f32.mrb[98].mxu1  ;;  %v19386_v61 = vld [vmem:[#allocation12_spill] sm:$0xff]  ;;  %v14330_v56 = vld [vmem:[#allocation3 + $0xc0] sm:$0xff]  }
 0x346   : > { %v14323_v19 = vmax.f32 %v19385_v50, %v2656_v30  ;;  %11129 = vmatprep.subr.bf16.mxu1 %v19386_v61  ;;  %v14328_v23 = vpop.f32.mrb[99].mxu1  ;;  %v19390_v50 = vmax.f32 %v14056_v60, %v14059_v20  ;;  %v14361_v60 = vld [vmem:[#allocation3 + $0xd0] sm:$0xff]   ;;  %v19394_v20 = vmax.f32 %v14069_v29, %v14075_v49 }
 0x347   : > { %19387 = vst [vmem:[#allocation93_spill] sm:$0xff] %v14328_v23  ;;  %11002 = vmatmul.mubr.bf16.gmra.mrb[204].mxu0 %v14298_v5  ;;  %19393 = vst [vmem:[#allocation95_spill] sm:$0xff] %v14361_v60 }
 0x348   : > { %11082 = vmatpush3.bf16.msra.mxu0 %v19384_v37  ;;  %11050 = vmatmul.mubr.bf16.gmra.mrb[204].mxu1 %v14298_v5  ;;  %v14350_v37 = vld [vmem:[#allocation3 + $0xc8] sm:$0xff]  }
 0x349   : > { %11083 = vmatprep.subr.bf16.mxu0 %v19388_v8  ;;  %11130 = vmatpush3.bf16.msra.mxu1 %v19386_v61  ;;  %19391 = vst [vmem:[#allocation94_spill] sm:$0xff] %v14350_v37  ;;  %v19392_v61 = vmax.f32 %v14061_v35, %v14067_v27 }
 0x34a   : > { %11131 = vmatprep.subr.bf16.mxu1 %v19389_v4  ;;  %v10707_v30 = vpop.f32.mrb[100].mxu0  ;;  %11005 = vmatprep.mubr.bf16.mxu0 %v14330_v56 }
 0x34b   : > { %v14346_v18 = vmax.f32 %v19390_v50, %v10707_v30  ;;  %v2669_v41 = vpop.f32.mrb[101].mxu0  ;;  %v14348_v48 = vpop.f32.mrb[100].mxu1  ;;  %11053 = vmatprep.mubr.bf16.mxu1 %v14330_v56 }
 0x34c   : > { %v14356_v31 = vmax.f32 %v19392_v61, %v2669_v41  ;;  %11084 = vmatpush3.bf16.msra.mxu0 %v19388_v8  ;;  %v10708_v5 = vpop.f32.mrb[102].mxu0  ;;  %v14359_v23 = vpop.f32.mrb[101].mxu1  ;;  %v19395_v41 = vmax.f32 %v14077_v46, %v14082_v16  ;;  %v19396_v16 = vmax.f32 %v14090_v38, %v14092_v9  ;;  %v19400_v38 = vmax.f32 %v14100_v3, %v14104_v21 }
 0x34d   : > { %v14366_v30 = vmax.f32 %v19394_v20, %v10708_v5  ;;  %11132 = vmatpush3.bf16.msra.mxu1 %v19389_v4  ;;  %11165 = vmatprep.subr.bf16.mxu0 %v13653_v58  ;;  %v2672_v35 = vpop.f32.mrb[103].mxu0  ;;  %v14372_v27 = vpop.f32.mrb[102].mxu1  ;;  %v14399_v5 = vld [vmem:[#allocation3 + $0xd8] sm:$0xff]   ;;  %v19398_v20 = vmax.f32 %v14094_v0, %v14098_v13  ;;  %v19401_v13 = vmax.f32 %v14106_v26, %v14110_v36 }
 0x34e   : > { %v14377_v61 = vmax.f32 %v19395_v41, %v2672_v35  ;;  %11213 = vmatprep.subr.bf16.mxu1 %v13657_v57  ;;  %v14382_v29 = vpop.f32.mrb[103].mxu1  ;;  %19397 = vst [vmem:[#allocation96_spill] sm:$0xff] %v14399_v5  ;;  %v19402_v26 = vmax.f32 %v14118_v52, %v14120_v59  ;;  %v19404_v3 = vmax.f32 %v14122_v2, %v14126_v47 }
 0x34f   : > { %11006 = vmatmul.mubr.bf16.gmra.mrb[208].mxu0 %v14350_v37  ;;  %v19406_v59 = vmax.f32 %v14128_v7, %v14132_v42  ;;  %v19407_v2 = vmax.f32 %v14134_v55, %v14138_v63  ;;  %v19408_v55 = vmax.f32 %v14146_v15, %v14148_v22  ;;  %v19410_v7 = vmax.f32 %v14150_v62, %v14154_v44 }
 0x350   : > { %11054 = vmatmul.mubr.bf16.gmra.mrb[208].mxu1 %v14350_v37  ;;  %11009 = vmatprep.mubr.bf16.mxu0 %v14361_v60  ;;  %v19416_v62 = vmax.f32 %v14188_v24, %v14192_v51  ;;  %v19423_v24 = vld [vmem:[#allocation71_spill] sm:$0xff] }
 0x351   : > { %11057 = vmatprep.mubr.bf16.mxu1 %v14361_v60  ;;  %v14408_v60 = vld [vmem:[#allocation3 + $0xe0] sm:$0xff]  }
 0x352   : > { %v10711_v46 = vpop.f32.mrb[104].mxu0  ;;  %19399 = vst [vmem:[#allocation97_spill] sm:$0xff] %v14408_v60 }
 0x353   : > { %v14395_v35 = vmax.f32 %v19396_v16, %v10711_v46  ;;  %v2685_v41 = vpop.f32.mrb[105].mxu0  ;;  %v14397_v49 = vpop.f32.mrb[104].mxu1 }
 0x354   : > { %v14404_v50 = vmax.f32 %v19398_v20, %v2685_v41  ;;  %v10712_v4 = vpop.f32.mrb[106].mxu0  ;;  %v14406_v8 = vpop.f32.mrb[105].mxu1 }
 0x355   : > { %v14413_v9 = vmax.f32 %v19400_v38, %v10712_v4  ;;  %v2688_v16 = vpop.f32.mrb[107].mxu0  ;;  %v14417_v37 = vpop.f32.mrb[106].mxu1 }
 0x356   : > { %v14422_v0 = vmax.f32 %v19401_v13, %v2688_v16  ;;  %v14426_v41 = vpop.f32.mrb[107].mxu1  ;;  %v14443_v13 = vld [vmem:[#allocation3 + $0xe8] sm:$0xff]  }
 0x357   : > { %11010 = vmatmul.mubr.bf16.gmra.mrb[212].mxu0 %v14399_v5  ;;  %19403 = vst [vmem:[#allocation98_spill] sm:$0xff] %v14443_v13 }
 0x358   : > { %11058 = vmatmul.mubr.bf16.gmra.mrb[212].mxu1 %v14399_v5  ;;  %11013 = vmatprep.mubr.bf16.mxu0 %v14408_v60 }
 0x359   : > { %11061 = vmatprep.mubr.bf16.mxu1 %v14408_v60  ;;  %v14452_v60 = vld [vmem:[#allocation3 + $0xf0] sm:$0xff]  }
 0x35a   : > { %v10715_v36 = vpop.f32.mrb[108].mxu0  ;;  %19405 = vst [vmem:[#allocation99_spill] sm:$0xff] %v14452_v60 }
 0x35b   : > { %v14439_v4 = vmax.f32 %v19402_v26, %v10715_v36  ;;  %v2701_v38 = vpop.f32.mrb[109].mxu0  ;;  %v14441_v16 = vpop.f32.mrb[108].mxu1 }
 0x35c   : > { %v14448_v21 = vmax.f32 %v19404_v3, %v2701_v38  ;;  %v10716_v20 = vpop.f32.mrb[110].mxu0  ;;  %v14450_v46 = vpop.f32.mrb[109].mxu1 }
 0x35d   : > { %v14457_v52 = vmax.f32 %v19406_v59, %v10716_v20  ;;  %v2704_v26 = vpop.f32.mrb[111].mxu0  ;;  %v14461_v5 = vpop.f32.mrb[110].mxu1 }
 0x35e   : > { %v14466_v47 = vmax.f32 %v19407_v2, %v2704_v26  ;;  %v14470_v38 = vpop.f32.mrb[111].mxu1  ;;  %v14487_v2 = vld [vmem:[#allocation3 + $0xf8] sm:$0xff]  }
 0x35f   : > { %11014 = vmatmul.mubr.bf16.gmra.mrb[216].mxu0 %v14443_v13  ;;  %19409 = vst [vmem:[#allocation100_spill] sm:$0xff] %v14487_v2 }
 0x360   : > { %11062 = vmatmul.mubr.bf16.gmra.mrb[216].mxu1 %v14443_v13  ;;  %11017 = vmatprep.mubr.bf16.mxu0 %v14452_v60 }
 0x361   : > { %11065 = vmatprep.mubr.bf16.mxu1 %v14452_v60  ;;  %v19411_v60 = vmax.f32 %v14156_v33, %v14162_v54 }
 0x362   : > { %v10719_v63 = vpop.f32.mrb[112].mxu0 }
 0x363   : > { %v14483_v20 = vmax.f32 %v19408_v55, %v10719_v63  ;;  %v2717_v59 = vpop.f32.mrb[113].mxu0  ;;  %v14485_v26 = vpop.f32.mrb[112].mxu1  ;;  %v19412_v55 = vmax.f32 %v14164_v40, %v14168_v43  ;;  %v19413_v40 = vmax.f32 %v14176_v17, %v14178_v28 }
 0x364   : > { %v14492_v42 = vmax.f32 %v19410_v7, %v2717_v59  ;;  %v10720_v3 = vpop.f32.mrb[114].mxu0  ;;  %v14494_v36 = vpop.f32.mrb[113].mxu1 }
 0x365   : > { %v14499_v13 = vmax.f32 %v19411_v60, %v10720_v3  ;;  %v2720_v15 = vpop.f32.mrb[115].mxu0  ;;  %v14503_v63 = vpop.f32.mrb[114].mxu1 }
 0x366   : > { %v14508_v44 = vmax.f32 %v19412_v55, %v2720_v15  ;;  %v14512_v7 = vpop.f32.mrb[115].mxu1  ;;  %v19414_v15 = vmax.f32 %v14180_v39, %v14186_v6 }
 0x367   : > { %11018 = vmatmul.mubr.bf16.gmra.mrb[220].mxu0 %v14487_v2 }
 0x368   : > { %11066 = vmatmul.mubr.bf16.gmra.mrb[220].mxu1 %v14487_v2  ;;  %11085 = vmatprep.mubr.bf16.mxu0 %v14158_v12 }
 0x369   : > { %11133 = vmatprep.mubr.bf16.mxu1 %v14158_v12 }
 0x36a   : > { %v10723_v43 = vpop.f32.mrb[116].mxu0 }
 0x36b   : > { %v14525_v60 = vmax.f32 %v19413_v40, %v10723_v43  ;;  %v2733_v3 = vpop.f32.mrb[117].mxu0  ;;  %v14527_v59 = vpop.f32.mrb[116].mxu1  ;;  %v19419_v40 = vld [vmem:[#allocation72_spill] sm:$0xff] }
 0x36c   : > { %v14532_v55 = vmax.f32 %v19414_v15, %v2733_v3  ;;  %v10724_v33 = vpop.f32.mrb[118].mxu0  ;;  %v14534_v54 = vpop.f32.mrb[117].mxu1  ;;  %v19420_v12 = vmax.f32 %v14194_v1, %v19419_v40  ;;  %v19424_v1 = vld [vmem:[#allocation14_spill] sm:$0xff]  ;;  %v19426_v15 = vld [vmem:[#allocation73_spill] sm:$0xff]  ;;  %v19428_v40 = vld [vmem:[#allocation75_spill] sm:$0xff] }
 0x36d   : > { %19415 = vst [vmem:[#allocation101_spill] sm:$0xff] %v14534_v54  ;;  %v14539_v22 = vmax.f32 %v19416_v62, %v10724_v33  ;;  %v2736_v17 = vpop.f32.mrb[119].mxu0  ;;  %v14543_v43 = vpop.f32.mrb[118].mxu1  ;;  %v19437_v54 = vld [vmem:[#allocation80_spill] sm:$0xff] }
 0x36e   : > { %19418 = vst [vmem:[#allocation103_spill] sm:$0xff] %v14543_v43  ;;  %v14548_v39 = vmax.f32 %v19420_v12, %v2736_v17  ;;  %v14552_v3 = vpop.f32.mrb[119].mxu1  ;;  %v19425_v12 = vld [vmem:[#allocation29_spill] sm:$0xff]  ;;  %v19427_v17 = vld [vmem:[#allocation74_spill] sm:$0xff] }
 0x36f   : > { %19417 = vst [vmem:[#allocation102_spill] sm:$0xff] %v14539_v22  ;;  %19422 = vst [vmem:[#allocation104_spill] sm:$0xff] %v14552_v3  ;;  %11086 = vmatmul.mubr.bf16.vlgmr.msra.gmra.mrb[224].mxu0 %v19423_v24  ;;  %v19429_v51 = vmax.f32 %v19427_v17, %v19428_v40  ;;  %v19436_v22 = vld [vmem:[#allocation79_spill] sm:$0xff] }
 0x370   : > { %19421 = vst [vmem:[#allocation72_spill] sm:$0xff] %v14548_v39  ;;  %11166 = vmatpush3.bf16.msra.mxu0 %v13653_v58  ;;  %11134 = vmatmul.mubr.bf16.vlgmr.msra.gmra.mrb[224].mxu1 %v19423_v24  ;;  %v19431_v58 = vld [vmem:[#allocation76_spill] sm:$0xff]  ;;  %v19432_v24 = vld [vmem:[#allocation78_spill] sm:$0xff]  ;;  %v19438_v17 = vmax.f32 %v19436_v22, %v19437_v54  ;;  %v19440_v40 = vld [vmem:[#allocation63_spill] sm:$0xff] }
 0x371   : > { %11167 = vmatprep.subr.bf16.mxu0 %v19424_v1  ;;  %11214 = vmatpush3.bf16.msra.mxu1 %v13657_v57  ;;  %v19433_v3 = vmax.f32 %v19431_v58, %v19432_v24  ;;  %v19443_v24 = vld [vmem:[#allocation82_spill] sm:$0xff]  ;;  %v19452_v22 = vld [vmem:[#allocation84_spill] sm:$0xff] }
 0x372   : > { %11215 = vmatprep.subr.bf16.mxu1 %v19425_v12  ;;  %v10727_v33 = vpop.f32.mrb[120].mxu0  ;;  %11089 = vmatprep.mubr.bf16.mxu0 %v19426_v15 }
 0x373   : > { %v14568_v6 = vmax.f32 %v19429_v51, %v10727_v33  ;;  %v2749_v28 = vpop.f32.mrb[121].mxu0  ;;  %v14570_v62 = vpop.f32.mrb[120].mxu1  ;;  %11137 = vmatprep.mubr.bf16.mxu1 %v19426_v15  ;;  %v19448_v33 = vld [vmem:[#allocation77_spill] sm:$0xff] }
 0x374   : > { %19430 = vst [vmem:[#allocation74_spill] sm:$0xff] %v14570_v62  ;;  %v14576_v39 = vmax.f32 %v19433_v3, %v2749_v28  ;;  %11168 = vmatpush3.bf16.msra.mxu0 %v19424_v1  ;;  %v10728_v57 = vpop.f32.mrb[122].mxu0  ;;  %v14579_v43 = vpop.f32.mrb[121].mxu1  ;;  %v19442_v3 = vld [vmem:[#allocation81_spill] sm:$0xff] }
 0x375   : > { %19435 = vst [vmem:[#allocation76_spill] sm:$0xff] %v14579_v43  ;;  %v14584_v51 = vmax.f32 %v19438_v17, %v10728_v57  ;;  %11169 = vmatprep.subr.bf16.mxu0 %v19440_v40  ;;  %11216 = vmatpush3.bf16.msra.mxu1 %v19425_v12  ;;  %v2752_v58 = vpop.f32.mrb[123].mxu0  ;;  %v14590_v28 = vpop.f32.mrb[122].mxu1  ;;  %v19444_v1 = vmax.f32 %v19442_v3, %v19443_v24  ;;  %v19446_v57 = vld [vmem:[#allocation15_spill] sm:$0xff]  ;;  %v19453_v17 = vld [vmem:[#allocation85_spill] sm:$0xff] }
 0x376   : > { %19434 = vst [vmem:[#allocation75_spill] sm:$0xff] %v14576_v39  ;;  %19441 = vst [vmem:[#allocation79_spill] sm:$0xff] %v14590_v28  ;;  %11217 = vmatprep.subr.bf16.mxu1 %v19446_v57  ;;  %v14600_v54 = vpop.f32.mrb[123].mxu1  ;;  %v19451_v24 = vld [vmem:[#allocation83_spill] sm:$0xff]  ;;  %v19454_v28 = vmax.f32 %v19452_v22, %v19453_v17  ;;  %v19457_v39 = vld [vmem:[#allocation88_spill] sm:$0xff] }
 0x377   : > { %19439 = vst [vmem:[#allocation78_spill] sm:$0xff] %v14584_v51  ;;  %v14595_v15 = vmax.f32 %v19444_v1, %v2752_v58  ;;  %19447 = vst [vmem:[#allocation81_spill] sm:$0xff] %v14600_v54  ;;  %11090 = vmatmul.mubr.bf16.gmra.mrb[228].mxu0 %v19448_v33  ;;  %v19449_v1 = vld [vmem:[#allocation67_spill] sm:$0xff]  ;;  %v19450_v58 = vld [vmem:[#allocation69_spill] sm:$0xff] }
 0x378   : > { %11170 = vmatpush3.bf16.msra.mxu0 %v19440_v40  ;;  %11138 = vmatmul.mubr.bf16.gmra.mrb[228].mxu1 %v19448_v33  ;;  %v19455_v40 = vld [vmem:[#allocation87_spill] sm:$0xff]  ;;  %v19458_v62 = vld [vmem:[#allocation89_spill] sm:$0xff]  ;;  %v19466_v17 = vld [vmem:[#allocation86_spill] sm:$0xff] }
 0x379   : > { %19445 = vst [vmem:[#allocation80_spill] sm:$0xff] %v14595_v15  ;;  %11171 = vmatprep.subr.bf16.mxu0 %v19449_v1  ;;  %11218 = vmatpush3.bf16.msra.mxu1 %v19446_v57  ;;  %v19456_v33 = vmax.f32 %v14255_v10, %v19455_v40  ;;  %v19459_v22 = vmax.f32 %v19457_v39, %v19458_v62  ;;  %v19462_v40 = vld [vmem:[#allocation91_spill] sm:$0xff]  ;;  %v19464_v62 = vld [vmem:[#allocation18_spill] sm:$0xff] }
 0x37a   : > { %11219 = vmatprep.subr.bf16.mxu1 %v19450_v58  ;;  %v10731_v3 = vpop.f32.mrb[124].mxu0  ;;  %11093 = vmatprep.mubr.bf16.mxu0 %v19451_v24 }
 0x37b   : > { %v14616_v51 = vmax.f32 %v19454_v28, %v10731_v3  ;;  %v2765_v43 = vpop.f32.mrb[125].mxu0  ;;  %v14618_v12 = vpop.f32.mrb[124].mxu1  ;;  %11141 = vmatprep.mubr.bf16.mxu1 %v19451_v24  ;;  %v19460_v3 = vld [vmem:[#allocation39_spill] sm:$0xff] }
 0x37c   : > { %v14624_v54 = vmax.f32 %v19456_v33, %v2765_v43  ;;  %11172 = vmatpush3.bf16.msra.mxu0 %v19449_v1  ;;  %v10732_v57 = vpop.f32.mrb[126].mxu0  ;;  %v14627_v15 = vpop.f32.mrb[125].mxu1  ;;  %v19461_v33 = vld [vmem:[#allocation90_spill] sm:$0xff] }
 0x37d   : > { %v14632_v28 = vmax.f32 %v19459_v22, %v10732_v57  ;;  %11173 = vmatprep.subr.bf16.mxu0 %v19460_v3  ;;  %11220 = vmatpush3.bf16.msra.mxu1 %v19450_v58  ;;  %v2768_v10 = vpop.f32.mrb[127].mxu0  ;;  %v14638_v43 = vpop.f32.mrb[126].mxu1  ;;  %v19463_v1 = vmax.f32 %v19461_v33, %v19462_v40  ;;  %v19469_v40 = vmax.f32 %v14294_v11, %v14296_v45 }
 0x37e   : > { %11221 = vmatprep.subr.bf16.mxu1 %v19464_v62  ;;  %v14648_v57 = vpop.f32.mrb[127].mxu1  ;;  %v19471_v45 = vmax.f32 %v14312_v25, %v14318_v53  ;;  %v19475_v53 = vld [vmem:[#allocation17_spill] sm:$0xff] }
 0x37f   : > { %v14643_v24 = vmax.f32 %v19463_v1, %v2768_v10  ;;  %19465 = vst [vmem:[#allocation82_spill] sm:$0xff] %v14648_v57  ;;  %11094 = vmatmul.mubr.bf16.gmra.mrb[232].mxu0 %v19466_v17  ;;  %v19467_v1 = vld [vmem:[#allocation10_spill] sm:$0xff]  ;;  %v19468_v10 = vld [vmem:[#allocation49_spill] sm:$0xff] }
 0x380   : > { %11174 = vmatpush3.bf16.msra.mxu0 %v19460_v3  ;;  %11142 = vmatmul.mubr.bf16.gmra.mrb[232].mxu1 %v19466_v17  ;;  %v19470_v3 = vmax.f32 %v14304_v32, %v14307_v14 }
 0x381   : > { %11175 = vmatprep.subr.bf16.mxu0 %v19467_v1  ;;  %11222 = vmatpush3.bf16.msra.mxu1 %v19464_v62 }
 0x382   : > { %11223 = vmatprep.subr.bf16.mxu1 %v19468_v10  ;;  %v10799_v33 = vpop.f32.mrb[128].mxu0  ;;  %11097 = vmatprep.mubr.bf16.mxu0 %v14280_v34 }
 0x383   : > { %v14664_v22 = vmax.f32 %v19469_v40, %v10799_v33  ;;  %v3039_v39 = vpop.f32.mrb[129].mxu0  ;;  %v14666_v58 = vpop.f32.mrb[128].mxu1  ;;  %11145 = vmatprep.mubr.bf16.mxu1 %v14280_v34  ;;  %v19472_v40 = vld [vmem:[#allocation66_spill] sm:$0xff]  ;;  %v19477_v33 = vld [vmem:[#allocation92_spill] sm:$0xff] }
 0x384   : > { %v14672_v17 = vmax.f32 %v19470_v3, %v3039_v39  ;;  %11176 = vmatpush3.bf16.msra.mxu0 %v19467_v1  ;;  %v10800_v62 = vpop.f32.mrb[130].mxu0  ;;  %v14675_v57 = vpop.f32.mrb[129].mxu1  ;;  %v19473_v3 = vld [vmem:[#allocation93_spill] sm:$0xff] }
 0x385   : > { %v14680_v11 = vmax.f32 %v19471_v45, %v10800_v62  ;;  %11177 = vmatprep.subr.bf16.mxu0 %v19472_v40  ;;  %11224 = vmatpush3.bf16.msra.mxu1 %v19468_v10  ;;  %v3042_v14 = vpop.f32.mrb[131].mxu0  ;;  %v14686_v32 = vpop.f32.mrb[130].mxu1  ;;  %v19474_v39 = vmax.f32 %v14323_v19, %v19473_v3  ;;  %v19478_v19 = vld [vmem:[#allocation55_spill] sm:$0xff] }
 0x386   : > { %11225 = vmatprep.subr.bf16.mxu1 %v19475_v53  ;;  %v14696_v62 = vpop.f32.mrb[131].mxu1 }
 0x387   : > { %v14691_v1 = vmax.f32 %v19474_v39, %v3042_v14  ;;  %19476 = vst [vmem:[#allocation84_spill] sm:$0xff] %v14696_v62  ;;  %11098 = vmatmul.mubr.bf16.gmra.mrb[236].mxu0 %v19477_v33  ;;  %v19479_v14 = vld [vmem:[#allocation24_spill] sm:$0xff]  ;;  %v19480_v39 = vmax.f32 %v14346_v18, %v14348_v48  ;;  %v19482_v48 = vmax.f32 %v14366_v30, %v14372_v27 }
 0x388   : > { %11178 = vmatpush3.bf16.msra.mxu0 %v19472_v40  ;;  %11146 = vmatmul.mubr.bf16.gmra.mrb[236].mxu1 %v19477_v33  ;;  %v19481_v40 = vmax.f32 %v14356_v31, %v14359_v23  ;;  %v19486_v27 = vld [vmem:[#allocation60_spill] sm:$0xff] }
 0x389   : > { %11179 = vmatprep.subr.bf16.mxu0 %v19478_v19  ;;  %11226 = vmatpush3.bf16.msra.mxu1 %v19475_v53 }
 0x38a   : > { %11227 = vmatprep.subr.bf16.mxu1 %v19479_v14  ;;  %v10803_v3 = vpop.f32.mrb[132].mxu0  ;;  %11101 = vmatprep.mubr.bf16.mxu0 %v14330_v56 }
 0x38b   : > { %v14712_v45 = vmax.f32 %v19480_v39, %v10803_v3  ;;  %v3055_v25 = vpop.f32.mrb[133].mxu0  ;;  %v14714_v10 = vpop.f32.mrb[132].mxu1  ;;  %11149 = vmatprep.mubr.bf16.mxu1 %v14330_v56  ;;  %v19483_v39 = vld [vmem:[#allocation45_spill] sm:$0xff]  ;;  %v19488_v3 = vld [vmem:[#allocation94_spill] sm:$0xff] }
 0x38c   : > { %v14720_v33 = vmax.f32 %v19481_v40, %v3055_v25  ;;  %11180 = vmatpush3.bf16.msra.mxu0 %v19478_v19  ;;  %v10804_v53 = vpop.f32.mrb[134].mxu0  ;;  %v14723_v62 = vpop.f32.mrb[133].mxu1  ;;  %v19485_v40 = vmax.f32 %v14377_v61, %v14382_v29  ;;  %v19489_v61 = vld [vmem:[#allocation95_spill] sm:$0xff] }
 0x38d   : > { %v14728_v18 = vmax.f32 %v19482_v48, %v10804_v53  ;;  %11228 = vmatpush3.bf16.msra.mxu1 %v19479_v14  ;;  %11261 = vmatprep.subr.bf16.mxu0 %v19483_v39  ;;  %v3058_v31 = vpop.f32.mrb[135].mxu0  ;;  %v14734_v23 = vpop.f32.mrb[134].mxu1  ;;  %v19491_v48 = vmax.f32 %v14404_v50, %v14406_v8 }
 0x38e   : > { %19484 = vst [vmem:[#allocation85_spill] sm:$0xff] %v14734_v23  ;;  %v14739_v25 = vmax.f32 %v19485_v40, %v3058_v31  ;;  %11309 = vmatprep.subr.bf16.mxu1 %v19486_v27  ;;  %v14744_v53 = vpop.f32.mrb[135].mxu1  ;;  %v19490_v31 = vmax.f32 %v14395_v35, %v14397_v49 }
 0x38f   : > { %19487 = vst [vmem:[#allocation87_spill] sm:$0xff] %v14744_v53  ;;  %11102 = vmatmul.mubr.bf16.gmra.mrb[240].mxu0 %v19488_v3 }
 0x390   : > { %11150 = vmatmul.mubr.bf16.gmra.mrb[240].mxu1 %v19488_v3  ;;  %11105 = vmatprep.mubr.bf16.mxu0 %v19489_v61 }
 0x391   : > { %11153 = vmatprep.mubr.bf16.mxu1 %v19489_v61  ;;  %v19492_v61 = vmax.f32 %v14413_v9, %v14417_v37  ;;  %v19494_v9 = vld [vmem:[#allocation96_spill] sm:$0xff]  ;;  %v19497_v37 = vmax.f32 %v14448_v21, %v14450_v46 }
 0x392   : > { %v10807_v29 = vpop.f32.mrb[136].mxu0 }
 0x393   : > { %v14757_v40 = vmax.f32 %v19490_v31, %v10807_v29  ;;  %v3071_v30 = vpop.f32.mrb[137].mxu0  ;;  %v14759_v19 = vpop.f32.mrb[136].mxu1  ;;  %v19493_v31 = vmax.f32 %v14422_v0, %v14426_v41  ;;  %v19496_v41 = vmax.f32 %v14439_v4, %v14441_v16 }
 0x394   : > { %v14764_v23 = vmax.f32 %v19491_v48, %v3071_v30  ;;  %v10808_v14 = vpop.f32.mrb[138].mxu0  ;;  %v14766_v3 = vpop.f32.mrb[137].mxu1  ;;  %v19495_v48 = vld [vmem:[#allocation97_spill] sm:$0xff] }
 0x395   : > { %v14771_v53 = vmax.f32 %v19492_v61, %v10808_v14  ;;  %v3074_v35 = vpop.f32.mrb[139].mxu0  ;;  %v14775_v29 = vpop.f32.mrb[138].mxu1 }
 0x396   : > { %v14780_v8 = vmax.f32 %v19493_v31, %v3074_v35  ;;  %v14784_v30 = vpop.f32.mrb[139].mxu1 }
 0x397   : > { %11106 = vmatmul.mubr.bf16.gmra.mrb[244].mxu0 %v19494_v9 }
 0x398   : > { %11154 = vmatmul.mubr.bf16.gmra.mrb[244].mxu1 %v19494_v9  ;;  %11109 = vmatprep.mubr.bf16.mxu0 %v19495_v48 }
 0x399   : > { %11157 = vmatprep.mubr.bf16.mxu1 %v19495_v48  ;;  %v19498_v48 = vmax.f32 %v14457_v52, %v14461_v5  ;;  %v19500_v52 = vld [vmem:[#allocation98_spill] sm:$0xff]  ;;  %v19503_v5 = vmax.f32 %v14492_v42, %v14494_v36 }
 0x39a   : > { %v10811_v0 = vpop.f32.mrb[140].mxu0 }
 0x39b   : > { %v14797_v61 = vmax.f32 %v19496_v41, %v10811_v0  ;;  %v3087_v35 = vpop.f32.mrb[141].mxu0  ;;  %v14799_v31 = vpop.f32.mrb[140].mxu1  ;;  %v19499_v41 = vmax.f32 %v14466_v47, %v14470_v38  ;;  %v19502_v38 = vmax.f32 %v14483_v20, %v14485_v26 }
 0x39c   : > { %v14804_v50 = vmax.f32 %v19497_v37, %v3087_v35  ;;  %v10812_v14 = vpop.f32.mrb[142].mxu0  ;;  %v14806_v49 = vpop.f32.mrb[141].mxu1 }
 0x39d   : > { %v14811_v9 = vmax.f32 %v19498_v48, %v10812_v14  ;;  %v3090_v16 = vpop.f32.mrb[143].mxu0  ;;  %v14815_v0 = vpop.f32.mrb[142].mxu1  ;;  %v19501_v48 = vld [vmem:[#allocation99_spill] sm:$0xff] }
 0x39e   : > { %v14820_v46 = vmax.f32 %v19499_v41, %v3090_v16  ;;  %v14824_v37 = vpop.f32.mrb[143].mxu1 }
 0x39f   : > { %11110 = vmatmul.mubr.bf16.gmra.mrb[248].mxu0 %v19500_v52 }
 0x3a0   : > { %11158 = vmatmul.mubr.bf16.gmra.mrb[248].mxu1 %v19500_v52  ;;  %11113 = vmatprep.mubr.bf16.mxu0 %v19501_v48 }
 0x3a1   : > { %11161 = vmatprep.mubr.bf16.mxu1 %v19501_v48  ;;  %v19504_v48 = vmax.f32 %v14499_v13, %v14503_v63 }
 0x3a2   : > { %v10815_v47 = vpop.f32.mrb[144].mxu0 }
 0x3a3   : > { %v14837_v35 = vmax.f32 %v19502_v38, %v10815_v47  ;;  %v3103_v16 = vpop.f32.mrb[145].mxu0  ;;  %v14839_v41 = vpop.f32.mrb[144].mxu1  ;;  %v19507_v38 = vmax.f32 %v14508_v44, %v14512_v7  ;;  %v19511_v7 = vmax.f32 %v14525_v60, %v14527_v59  ;;  %v19531_v60 = vld [vmem:[#allocation76_spill] sm:$0xff] }
 0x3a4   : > { %v14844_v21 = vmax.f32 %v19503_v5, %v3103_v16  ;;  %v10816_v14 = vpop.f32.mrb[146].mxu0  ;;  %v14846_v4 = vpop.f32.mrb[145].mxu1 }
 0x3a5   : > { %v14851_v52 = vmax.f32 %v19504_v48, %v10816_v14  ;;  %v3106_v26 = vpop.f32.mrb[147].mxu0  ;;  %v14855_v47 = vpop.f32.mrb[146].mxu1  ;;  %v19510_v14 = vld [vmem:[#allocation61_spill] sm:$0xff] }
 0x3a6   : > { %19506 = vst [vmem:[#allocation89_spill] sm:$0xff] %v14855_v47  ;;  %v14860_v36 = vmax.f32 %v19507_v38, %v3106_v26  ;;  %v14864_v5 = vpop.f32.mrb[147].mxu1  ;;  %v19512_v38 = vld [vmem:[#allocation101_spill] sm:$0xff]  ;;  %v19520_v47 = vld [vmem:[#allocation104_spill] sm:$0xff] }
 0x3a7   : > { %19505 = vst [vmem:[#allocation88_spill] sm:$0xff] %v14851_v52  ;;  %19509 = vst [vmem:[#allocation91_spill] sm:$0xff] %v14864_v5  ;;  %11114 = vmatmul.mubr.bf16.gmra.mrb[252].mxu0 %v14487_v2  ;;  %v19513_v13 = vmax.f32 %v14532_v55, %v19512_v38  ;;  %v19515_v5 = vld [vmem:[#allocation103_spill] sm:$0xff] }
 0x3a8   : > { %19508 = vst [vmem:[#allocation90_spill] sm:$0xff] %v14860_v36  ;;  %11162 = vmatmul.mubr.bf16.gmra.mrb[252].mxu1 %v14487_v2  ;;  %11181 = vmatprep.mubr.bf16.mxu0 %v19510_v14  ;;  %v19514_v2 = vld [vmem:[#allocation102_spill] sm:$0xff] }
 0x3a9   : > { %11229 = vmatprep.mubr.bf16.mxu1 %v19510_v14  ;;  %v19516_v14 = vmax.f32 %v19514_v2, %v19515_v5  ;;  %v19524_v5 = vld [vmem:[#allocation71_spill] sm:$0xff] }
 0x3aa   : > { %v10819_v44 = vpop.f32.mrb[148].mxu0 }
 0x3ab   : > { %v14877_v48 = vmax.f32 %v19511_v7, %v10819_v44  ;;  %v3119_v16 = vpop.f32.mrb[149].mxu0  ;;  %v14879_v26 = vpop.f32.mrb[148].mxu1  ;;  %v19519_v7 = vld [vmem:[#allocation72_spill] sm:$0xff] }
 0x3ac   : > { %v14884_v42 = vmax.f32 %v19513_v13, %v3119_v16  ;;  %v10820_v63 = vpop.f32.mrb[150].mxu0  ;;  %v14886_v20 = vpop.f32.mrb[149].mxu1  ;;  %v19521_v52 = vmax.f32 %v19519_v7, %v19520_v47  ;;  %v19525_v47 = vld [vmem:[#allocation11_spill] sm:$0xff] }
 0x3ad   : > { %v14891_v36 = vmax.f32 %v19516_v14, %v10820_v63  ;;  %v3122_v59 = vpop.f32.mrb[151].mxu0  ;;  %v14895_v44 = vpop.f32.mrb[150].mxu1  ;;  %v19527_v14 = vld [vmem:[#allocation73_spill] sm:$0xff] }
 0x3ae   : > { %19518 = vst [vmem:[#allocation61_spill] sm:$0xff] %v14895_v44  ;;  %v14900_v55 = vmax.f32 %v19521_v52, %v3122_v59  ;;  %v14904_v16 = vpop.f32.mrb[151].mxu1  ;;  %v19526_v52 = vld [vmem:[#allocation46_spill] sm:$0xff] }
 0x3af   : > { %19517 = vst [vmem:[#allocation93_spill] sm:$0xff] %v14891_v36  ;;  %19523 = vst [vmem:[#allocation102_spill] sm:$0xff] %v14904_v16  ;;  %11182 = vmatmul.mubr.bf16.vlgmr.msra.gmra.mrb[0].mxu0 %v19524_v5  ;;  %v19528_v59 = vld [vmem:[#allocation74_spill] sm:$0xff]  ;;  %v19534_v36 = vld [vmem:[#allocation79_spill] sm:$0xff] }
 0x3b0   : > { %19522 = vst [vmem:[#allocation101_spill] sm:$0xff] %v14900_v55  ;;  %11262 = vmatpush3.bf16.msra.mxu0 %v19483_v39  ;;  %11230 = vmatmul.mubr.bf16.vlgmr.msra.gmra.mrb[0].mxu1 %v19524_v5  ;;  %v19529_v7 = vmax.f32 %v14568_v6, %v19528_v59  ;;  %v19530_v5 = vld [vmem:[#allocation75_spill] sm:$0xff]  ;;  %v19533_v44 = vld [vmem:[#allocation78_spill] sm:$0xff]  ;;  %v19543_v59 = vld [vmem:[#allocation77_spill] sm:$0xff] }
 0x3b1   : > { %11263 = vmatprep.subr.bf16.mxu0 %v19525_v47  ;;  %11310 = vmatpush3.bf16.msra.mxu1 %v19486_v27  ;;  %v19532_v39 = vmax.f32 %v19530_v5, %v19531_v60  ;;  %v19535_v6 = vmax.f32 %v19533_v44, %v19534_v36 }
 0x3b2   : > { %11311 = vmatprep.subr.bf16.mxu1 %v19526_v52  ;;  %v10823_v38 = vpop.f32.mrb[152].mxu0  ;;  %11185 = vmatprep.mubr.bf16.mxu0 %v19527_v14 }
 0x3b3   : > { %v14920_v2 = vmax.f32 %v19529_v7, %v10823_v38  ;;  %v3135_v13 = vpop.f32.mrb[153].mxu0  ;;  %v14922_v63 = vpop.f32.mrb[152].mxu1  ;;  %11233 = vmatprep.mubr.bf16.mxu1 %v19527_v14  ;;  %v19536_v7 = vld [vmem:[#allocation33_spill] sm:$0xff] }
 0x3b4   : > { %v14928_v16 = vmax.f32 %v19532_v39, %v3135_v13  ;;  %11264 = vmatpush3.bf16.msra.mxu0 %v19525_v47  ;;  %v10824_v27 = vpop.f32.mrb[154].mxu0  ;;  %v14931_v55 = vpop.f32.mrb[153].mxu1  ;;  %v19538_v13 = vld [vmem:[#allocation80_spill] sm:$0xff]  ;;  %v19539_v14 = vld [vmem:[#allocation81_spill] sm:$0xff] }
 0x3b5   : > { %v14936_v38 = vmax.f32 %v19535_v6, %v10824_v27  ;;  %11265 = vmatprep.subr.bf16.mxu0 %v19536_v7  ;;  %11312 = vmatpush3.bf16.msra.mxu1 %v19526_v52  ;;  %v3138_v60 = vpop.f32.mrb[155].mxu0  ;;  %v14942_v39 = vpop.f32.mrb[154].mxu1  ;;  %v19540_v5 = vmax.f32 %v19538_v13, %v19539_v14  ;;  %v19541_v27 = vld [vmem:[#allocation65_spill] sm:$0xff]  ;;  %v19545_v13 = vld [vmem:[#allocation48_spill] sm:$0xff]  ;;  %v19547_v6 = vmax.f32 %v14616_v51, %v14618_v12 }
 0x3b6   : > { %19537 = vst [vmem:[#allocation103_spill] sm:$0xff] %v14942_v39  ;;  %11313 = vmatprep.subr.bf16.mxu1 %v19541_v27  ;;  %v14952_v44 = vpop.f32.mrb[155].mxu1  ;;  %v19550_v12 = vmax.f32 %v14632_v28, %v14638_v43  ;;  %v19557_v43 = vld [vmem:[#allocation40_spill] sm:$0xff] }
 0x3b7   : > { %v14947_v47 = vmax.f32 %v19540_v5, %v3138_v60  ;;  %19542 = vst [vmem:[#allocation72_spill] sm:$0xff] %v14952_v44  ;;  %11186 = vmatmul.mubr.bf16.gmra.mrb[4].mxu0 %v19543_v59  ;;  %v19544_v60 = vld [vmem:[#allocation47_spill] sm:$0xff] }
 0x3b8   : > { %11266 = vmatpush3.bf16.msra.mxu0 %v19536_v7  ;;  %11234 = vmatmul.mubr.bf16.gmra.mrb[4].mxu1 %v19543_v59  ;;  %v19546_v5 = vld [vmem:[#allocation83_spill] sm:$0xff]  ;;  %v19548_v59 = vmax.f32 %v14624_v54, %v14627_v15 }
 0x3b9   : > { %11267 = vmatprep.subr.bf16.mxu0 %v19544_v60  ;;  %11314 = vmatpush3.bf16.msra.mxu1 %v19541_v27 }
 0x3ba   : > { %11315 = vmatprep.subr.bf16.mxu1 %v19545_v13  ;;  %v10827_v14 = vpop.f32.mrb[156].mxu0  ;;  %11189 = vmatprep.mubr.bf16.mxu0 %v19546_v5 }
 0x3bb   : > { %v14968_v36 = vmax.f32 %v19547_v6, %v10827_v14  ;;  %v3151_v39 = vpop.f32.mrb[157].mxu0  ;;  %v14970_v52 = vpop.f32.mrb[156].mxu1  ;;  %11237 = vmatprep.mubr.bf16.mxu1 %v19546_v5  ;;  %v19552_v14 = vld [vmem:[#allocation16_spill] sm:$0xff]  ;;  %v19559_v6 = vld [vmem:[#allocation86_spill] sm:$0xff] }
 0x3bc   : > { %v14976_v7 = vmax.f32 %v19548_v59, %v3151_v39  ;;  %11268 = vmatpush3.bf16.msra.mxu0 %v19544_v60  ;;  %v10828_v27 = vpop.f32.mrb[158].mxu0  ;;  %v14979_v44 = vpop.f32.mrb[157].mxu1  ;;  %v19554_v39 = vld [vmem:[#allocation82_spill] sm:$0xff] }
 0x3bd   : > { %19549 = vst [vmem:[#allocation104_spill] sm:$0xff] %v14979_v44  ;;  %v14984_v51 = vmax.f32 %v19550_v12, %v10828_v27  ;;  %11269 = vmatprep.subr.bf16.mxu0 %v19552_v14  ;;  %11316 = vmatpush3.bf16.msra.mxu1 %v19545_v13  ;;  %v3154_v15 = vpop.f32.mrb[159].mxu0  ;;  %v14990_v54 = vpop.f32.mrb[158].mxu1  ;;  %v19555_v5 = vmax.f32 %v14643_v24, %v19554_v39  ;;  %v19560_v24 = vld [vmem:[#allocation53_spill] sm:$0xff] }
 0x3be   : > { %19553 = vst [vmem:[#allocation73_spill] sm:$0xff] %v14990_v54  ;;  %11317 = vmatprep.subr.bf16.mxu1 %v19557_v43  ;;  %v15000_v27 = vpop.f32.mrb[159].mxu1  ;;  %v19562_v13 = vmax.f32 %v14664_v22, %v14666_v58  ;;  %v19566_v22 = vld [vmem:[#allocation35_spill] sm:$0xff] }
 0x3bf   : > { %19551 = vst [vmem:[#allocation71_spill] sm:$0xff] %v14984_v51  ;;  %v14995_v59 = vmax.f32 %v19555_v5, %v3154_v15  ;;  %19558 = vst [vmem:[#allocation75_spill] sm:$0xff] %v15000_v27  ;;  %11190 = vmatmul.mubr.bf16.gmra.mrb[8].mxu0 %v19559_v6  ;;  %v19561_v15 = vld [vmem:[#allocation41_spill] sm:$0xff]  ;;  %v19564_v27 = vld [vmem:[#allocation42_spill] sm:$0xff] }
 0x3c0   : > { %11270 = vmatpush3.bf16.msra.mxu0 %v19552_v14  ;;  %11238 = vmatmul.mubr.bf16.gmra.mrb[8].mxu1 %v19559_v6 }
 0x3c1   : > { %19556 = vst [vmem:[#allocation74_spill] sm:$0xff] %v14995_v59  ;;  %11271 = vmatprep.subr.bf16.mxu0 %v19560_v24  ;;  %11318 = vmatpush3.bf16.msra.mxu1 %v19557_v43  ;;  %v19563_v43 = vmax.f32 %v14672_v17, %v14675_v57  ;;  %v19569_v57 = vld [vmem:[#allocation92_spill] sm:$0xff] }
 0x3c2   : > { %11319 = vmatprep.subr.bf16.mxu1 %v19561_v15  ;;  %v10895_v39 = vpop.f32.mrb[160].mxu0  ;;  %11193 = vmatprep.mubr.bf16.mxu0 %v14280_v34 }
 0x3c3   : > { %v3425_v5 = vpop.f32.mrb[161].mxu0  ;;  %v10943_v12 = vpop.f32.mrb[160].mxu1  ;;  %11241 = vmatprep.mubr.bf16.mxu1 %v14280_v34  ;;  %v3554_v28 = vmax.f32 %v19562_v13, %v10895_v39  ;;  %v19565_v34 = vmax.f32 %v14680_v11, %v14686_v32  ;;  %v19571_v11 = vld [vmem:[#allocation57_spill] sm:$0xff] }
 0x3c4   : > { %11272 = vmatpush3.bf16.msra.mxu0 %v19560_v24  ;;  %v10896_v6 = vpop.f32.mrb[162].mxu0  ;;  %v3618_v14 = vpop.f32.mrb[161].mxu1  ;;  %v3552_v60 = vmax.f32 %v19563_v43, %v3425_v5  ;;  %v19567_v24 = vld [vmem:[#allocation84_spill] sm:$0xff]  ;;  %v19574_v5 = vld [vmem:[#allocation19_spill] sm:$0xff] }
 0x3c5   : > { %11273 = vmatprep.subr.bf16.mxu0 %v19564_v27  ;;  %11320 = vmatpush3.bf16.msra.mxu1 %v19561_v15  ;;  %v3428_v59 = vpop.f32.mrb[163].mxu0  ;;  %v10944_v54 = vpop.f32.mrb[162].mxu1  ;;  %v3747_v51 = vmax.f32 %v3554_v28, %v10943_v12  ;;  %v3555_v58 = vmax.f32 %v19565_v34, %v10896_v6  ;;  %v19568_v44 = vmax.f32 %v14691_v1, %v19567_v24  ;;  %v19570_v12 = vld [vmem:[#allocation56_spill] sm:$0xff] }
 0x3c6   : > { %11321 = vmatprep.subr.bf16.mxu1 %v19566_v22  ;;  %v3621_v13 = vpop.f32.mrb[163].mxu1  ;;  %v3745_v39 = vmax.f32 %v3552_v60, %v3618_v14  ;;  %v19572_v60 = vmax.f32 %v14712_v45, %v14714_v10  ;;  %v19575_v10 = vld [vmem:[#allocation85_spill] sm:$0xff] }
 0x3c7   : > { %v3553_v17 = vmax.f32 %v19568_v44, %v3428_v59  ;;  %11194 = vmatmul.mubr.bf16.gmra.mrb[12].mxu0 %v19569_v57  ;;  %9216 = vmax.xlane.f32.xlu0 %v3747_v51  ;;  %v3748_v43 = vmax.f32 %v3555_v58, %v10944_v54  ;;  %v19573_v59 = vmax.f32 %v14720_v33, %v14723_v62 }
 0x3c8   : > { %11274 = vmatpush3.bf16.msra.mxu0 %v19564_v27  ;;  %11242 = vmatmul.mubr.bf16.gmra.mrb[12].mxu1 %v19569_v57  ;;  %v19576_v45 = vmax.f32 %v14728_v18, %v19575_v10  ;;  %v19578_v57 = vld [vmem:[#allocation87_spill] sm:$0xff]  ;;  %v19584_v10 = vmax.f32 %v14771_v53, %v14775_v29 }
 0x3c9   : > { %v3746_v28 = vmax.f32 %v3553_v17, %v3621_v13  ;;  %11275 = vmatprep.subr.bf16.mxu0 %v19570_v12  ;;  %11322 = vmatpush3.bf16.msra.mxu1 %v19566_v22  ;;  %v19579_v33 = vmax.f32 %v14739_v25, %v19578_v57  ;;  %v19582_v25 = vmax.f32 %v14757_v40, %v14759_v19  ;;  %v19658_v22 = vld [vmem:[#allocation50_spill] sm:$0xff] }
 0x3ca   : > { %9212 = vmax.xlane.f32.xlu1 %v3745_v39  ;;  %11323 = vmatprep.subr.bf16.mxu1 %v19571_v11  ;;  %v10899_v32 = vpop.f32.mrb[164].mxu0  ;;  %v19577_v39 = vld [vmem:[#allocation31_spill] sm:$0xff]  ;;  %v19585_v19 = vmax.f32 %v14780_v8, %v14784_v30  ;;  %v19588_v8 = vmax.f32 %v14797_v61, %v14799_v31  ;;  %v19591_v61 = vmax.f32 %v14820_v46, %v14824_v37 }
 0x3cb   : > { %9214 = vmax.xlane.f32.xlu0 %v3746_v28  ;;  %v3441_v1 = vpop.f32.mrb[165].mxu0  ;;  %v10947_v44 = vpop.f32.mrb[164].mxu1  ;;  %11197 = vmatprep.mubr.bf16.mxu0 %v14330_v56  ;;  %v3558_v51 = vmax.f32 %v19572_v60, %v10899_v32  ;;  %v19580_v28 = vld [vmem:[#allocation94_spill] sm:$0xff]  ;;  %v19594_v46 = vmax.f32 %v14837_v35, %v14839_v41 }
 0x3cc   : > { %11276 = vmatpush3.bf16.msra.mxu0 %v19570_v12  ;;  %v10900_v14 = vpop.f32.mrb[166].mxu0  ;;  %v3634_v54 = vpop.f32.mrb[165].mxu1  ;;  %11245 = vmatprep.mubr.bf16.mxu1 %v14330_v56  ;;  %v3556_v24 = vmax.f32 %v19573_v59, %v3441_v1  ;;  %v19583_v59 = vmax.f32 %v14764_v23, %v14766_v3  ;;  %v19587_v23 = vld [vmem:[#allocation97_spill] sm:$0xff] }
 0x3cd   : > { %11324 = vmatpush3.bf16.msra.mxu1 %v19571_v11  ;;  %11357 = vmatprep.subr.bf16.mxu0 %v19574_v5  ;;  %v3444_v6 = vpop.f32.mrb[167].mxu0  ;;  %v10948_v34 = vpop.f32.mrb[166].mxu1  ;;  %v3751_v58 = vmax.f32 %v3558_v51, %v10947_v44  ;;  %v3559_v13 = vmax.f32 %v19576_v45, %v10900_v14  ;;  %v19581_v44 = vld [vmem:[#allocation95_spill] sm:$0xff]  ;;  %v19652_v12 = vld [vmem:[#allocation37_spill] sm:$0xff] }
 0x3ce   : > { %9218 = vmax.xlane.f32.xlu1 %v3748_v43  ;;  %11405 = vmatprep.subr.bf16.mxu1 %v19577_v39  ;;  %v3637_v17 = vpop.f32.mrb[167].mxu1  ;;  %v3749_v56 = vmax.f32 %v3556_v24, %v3634_v54  ;;  %v3557_v62 = vmax.f32 %v19579_v33, %v3444_v6 }
 0x3cf   : > { %11198 = vmatmul.mubr.bf16.gmra.mrb[16].mxu0 %v19580_v28  ;;  %9224 = vmax.xlane.f32.xlu0 %v3751_v58  ;;  %v3752_v32 = vmax.f32 %v3559_v13, %v10948_v34 }
 0x3d0   : > { %11246 = vmatmul.mubr.bf16.gmra.mrb[16].mxu1 %v19580_v28  ;;  %v3750_v1 = vmax.f32 %v3557_v62, %v3637_v17  ;;  %11201 = vmatprep.mubr.bf16.mxu0 %v19581_v44 }
 0x3d1   : > { %11249 = vmatprep.mubr.bf16.mxu1 %v19581_v44 }
 0x3d2   : > { %9226 = vmax.xlane.f32.xlu1 %v3752_v32  ;;  %v10903_v18 = vpop.f32.mrb[168].mxu0  ;;  %v19589_v32 = vmax.f32 %v14804_v50, %v14806_v49  ;;  %v19593_v50 = vld [vmem:[#allocation99_spill] sm:$0xff] }
 0x3d3   : > { %9220 = vmax.xlane.f32.xlu0 %v3749_v56  ;;  %v3457_v43 = vpop.f32.mrb[169].mxu0  ;;  %v10951_v60 = vpop.f32.mrb[168].mxu1  ;;  %v3562_v51 = vmax.f32 %v19582_v25, %v10903_v18  ;;  %v19586_v56 = vld [vmem:[#allocation96_spill] sm:$0xff] }
 0x3d4   : > { %v10904_v14 = vpop.f32.mrb[170].mxu0  ;;  %v3650_v54 = vpop.f32.mrb[169].mxu1  ;;  %v3560_v24 = vmax.f32 %v19583_v59, %v3457_v43 }
 0x3d5   : > { %v3460_v6 = vpop.f32.mrb[171].mxu0  ;;  %v10952_v34 = vpop.f32.mrb[170].mxu1  ;;  %v3755_v58 = vmax.f32 %v3562_v51, %v10951_v60  ;;  %v3563_v45 = vmax.f32 %v19584_v10, %v10904_v14  ;;  %v19590_v60 = vmax.f32 %v14811_v9, %v14815_v0 }
 0x3d6   : > { %9222 = vmax.xlane.f32.xlu1 %v3750_v1  ;;  %v3653_v13 = vpop.f32.mrb[171].mxu1  ;;  %v3753_v17 = vmax.f32 %v3560_v24, %v3650_v54  ;;  %v3561_v40 = vmax.f32 %v19585_v19, %v3460_v6  ;;  %v19592_v54 = vld [vmem:[#allocation98_spill] sm:$0xff]  ;;  %v19596_v19 = vld [vmem:[#allocation88_spill] sm:$0xff] }
 0x3d7   : > { %11202 = vmatmul.mubr.bf16.gmra.mrb[20].mxu0 %v19586_v56  ;;  %9232 = vmax.xlane.f32.xlu0 %v3755_v58  ;;  %v3756_v57 = vmax.f32 %v3563_v45, %v10952_v34  ;;  %v19595_v58 = vmax.f32 %v14844_v21, %v14846_v4  ;;  %v12253_v21 = vld [vmem:[#allocation3 + $0x80] sm:$0xff]  }
 0x3d8   : > { %11250 = vmatmul.mubr.bf16.gmra.mrb[20].mxu1 %v19586_v56  ;;  %v3754_v3 = vmax.f32 %v3561_v40, %v3653_v13  ;;  %11205 = vmatprep.mubr.bf16.mxu0 %v19587_v23  ;;  %v19597_v40 = vld [vmem:[#allocation89_spill] sm:$0xff] }
 0x3d9   : > { %11253 = vmatprep.mubr.bf16.mxu1 %v19587_v23  ;;  %v19598_v56 = vmax.f32 %v19596_v19, %v19597_v40  ;;  %v19614_v40 = vmax.f32 %v14928_v16, %v14931_v55 }
 0x3da   : > { %9234 = vmax.xlane.f32.xlu1 %v3756_v57  ;;  %v10907_v53 = vpop.f32.mrb[172].mxu0 }
 0x3db   : > { %9228 = vmax.xlane.f32.xlu0 %v3753_v17  ;;  %v3473_v29 = vpop.f32.mrb[173].mxu0  ;;  %v10955_v33 = vpop.f32.mrb[172].mxu1  ;;  %v3566_v30 = vmax.f32 %v19588_v8, %v10907_v53  ;;  %v19599_v53 = vld [vmem:[#allocation90_spill] sm:$0xff] }
 0x3dc   : > { %v10908_v62 = vpop.f32.mrb[174].mxu0  ;;  %v3666_v28 = vpop.f32.mrb[173].mxu1  ;;  %v3564_v1 = vmax.f32 %v19589_v32, %v3473_v29  ;;  %v19600_v29 = vld [vmem:[#allocation91_spill] sm:$0xff]  ;;  %v19603_v32 = vmax.f32 %v14877_v48, %v14879_v26 }
 0x3dd   : > { %v3476_v44 = vpop.f32.mrb[175].mxu0  ;;  %v10956_v18 = vpop.f32.mrb[174].mxu1  ;;  %v3759_v43 = vmax.f32 %v3566_v30, %v10955_v33  ;;  %v3567_v25 = vmax.f32 %v19590_v60, %v10908_v62  ;;  %v19601_v35 = vmax.f32 %v19599_v53, %v19600_v29  ;;  %v19602_v33 = vld [vmem:[#allocation100_spill] sm:$0xff]  ;;  %v19616_v29 = vld [vmem:[#allocation103_spill] sm:$0xff] }
 0x3de   : > { %9230 = vmax.xlane.f32.xlu1 %v3754_v3  ;;  %v3669_v51 = vpop.f32.mrb[175].mxu1  ;;  %v3757_v14 = vmax.f32 %v3564_v1, %v3666_v28  ;;  %v3565_v31 = vmax.f32 %v19591_v61, %v3476_v44  ;;  %v19605_v61 = vld [vmem:[#allocation93_spill] sm:$0xff] }
 0x3df   : > { %11206 = vmatmul.mubr.bf16.gmra.mrb[24].mxu0 %v19592_v54  ;;  %9240 = vmax.xlane.f32.xlu0 %v3759_v43  ;;  %v3760_v59 = vmax.f32 %v3567_v25, %v10956_v18  ;;  %v19604_v43 = vmax.f32 %v14884_v42, %v14886_v20  ;;  %v19611_v42 = vld [vmem:[#allocation36_spill] sm:$0xff] }
 0x3e0   : > { %11254 = vmatmul.mubr.bf16.gmra.mrb[24].mxu1 %v19592_v54  ;;  %v3758_v49 = vmax.f32 %v3565_v31, %v3669_v51  ;;  %11209 = vmatprep.mubr.bf16.mxu0 %v19593_v50  ;;  %v19606_v31 = vld [vmem:[#allocation61_spill] sm:$0xff] }
 0x3e1   : > { %11257 = vmatprep.mubr.bf16.mxu1 %v19593_v50  ;;  %v19607_v54 = vmax.f32 %v19605_v61, %v19606_v31  ;;  %v19626_v61 = vld [vmem:[#allocation52_spill] sm:$0xff] }
 0x3e2   : > { %9242 = vmax.xlane.f32.xlu1 %v3760_v59  ;;  %v10911_v9 = vpop.f32.mrb[176].mxu0 }
 0x3e3   : > { %9236 = vmax.xlane.f32.xlu0 %v3757_v14  ;;  %v3489_v0 = vpop.f32.mrb[177].mxu0  ;;  %v10959_v24 = vpop.f32.mrb[176].mxu1  ;;  %v3570_v37 = vmax.f32 %v19594_v46, %v10911_v9  ;;  %v19608_v9 = vld [vmem:[#allocation101_spill] sm:$0xff] }
 0x3e4   : > { %v10912_v6 = vpop.f32.mrb[178].mxu0  ;;  %v3682_v34 = vpop.f32.mrb[177].mxu1  ;;  %v3568_v10 = vmax.f32 %v19595_v58, %v3489_v0  ;;  %v19609_v0 = vld [vmem:[#allocation102_spill] sm:$0xff] }
 0x3e5   : > { %v3492_v45 = vpop.f32.mrb[179].mxu0  ;;  %v10960_v13 = vpop.f32.mrb[178].mxu1  ;;  %v3763_v17 = vmax.f32 %v3570_v37, %v10959_v24  ;;  %v3571_v57 = vmax.f32 %v19598_v56, %v10912_v6  ;;  %v19610_v48 = vmax.f32 %v19608_v9, %v19609_v0  ;;  %v12254_v24 = vld [vmem:[#allocation3 + $0x88] sm:$0xff]   ;;  %v19612_v37 = vld [vmem:[#allocation20_spill] sm:$0xff]  ;;  %v19630_v9 = vld [vmem:[#allocation54_spill] sm:$0xff] }
 0x3e6   : > { %9238 = vmax.xlane.f32.xlu1 %v3758_v49  ;;  %v3685_v3 = vpop.f32.mrb[179].mxu1  ;;  %v3761_v23 = vmax.f32 %v3568_v10, %v3682_v34  ;;  %v3569_v41 = vmax.f32 %v19601_v35, %v3492_v45  ;;  %v12255_v10 = vld [vmem:[#allocation3 + $0x90] sm:$0xff]   ;;  %v19613_v45 = vmax.f32 %v14920_v2, %v14922_v63  ;;  %v19617_v2 = vmax.f32 %v14936_v38, %v19616_v29  ;;  %v19618_v35 = vld [vmem:[#allocation22_spill] sm:$0xff] }
 0x3e7   : > { %11210 = vmatmul.mubr.bf16.gmra.mrb[28].mxu0 %v19602_v33  ;;  %9248 = vmax.xlane.f32.xlu0 %v3763_v17  ;;  %v3764_v8 = vmax.f32 %v3571_v57, %v10960_v13  ;;  %v19615_v57 = vld [vmem:[#allocation21_spill] sm:$0xff]  ;;  %v19622_v38 = vld [vmem:[#allocation38_spill] sm:$0xff] }
 0x3e8   : > { %11258 = vmatmul.mubr.bf16.gmra.mrb[28].mxu1 %v19602_v33  ;;  %v3762_v4 = vmax.f32 %v3569_v41, %v3685_v3  ;;  %11277 = vmatprep.mubr.bf16.mxu0 %v12253_v21 }
 0x3e9   : > { %11325 = vmatprep.mubr.bf16.mxu1 %v12253_v21 }
 0x3ea   : > { %9250 = vmax.xlane.f32.xlu1 %v3764_v8  ;;  %v10915_v30 = vpop.f32.mrb[180].mxu0  ;;  %v19619_v8 = vld [vmem:[#allocation72_spill] sm:$0xff] }
 0x3eb   : > { %9244 = vmax.xlane.f32.xlu0 %v3761_v23  ;;  %v3505_v62 = vpop.f32.mrb[181].mxu0  ;;  %v10963_v28 = vpop.f32.mrb[180].mxu1  ;;  %v3574_v1 = vmax.f32 %v19603_v32, %v10915_v30  ;;  %v19620_v55 = vmax.f32 %v14947_v47, %v19619_v8 }
 0x3ec   : > { %v10916_v44 = vpop.f32.mrb[182].mxu0  ;;  %v3698_v18 = vpop.f32.mrb[181].mxu1  ;;  %v3572_v60 = vmax.f32 %v19604_v43, %v3505_v62  ;;  %v19621_v62 = vld [vmem:[#allocation23_spill] sm:$0xff] }
 0x3ed   : > { %v3508_v25 = vpop.f32.mrb[183].mxu0  ;;  %v10964_v51 = vpop.f32.mrb[182].mxu1  ;;  %v3767_v14 = vmax.f32 %v3574_v1, %v10963_v28  ;;  %v3575_v59 = vmax.f32 %v19607_v54, %v10916_v44  ;;  %v12257_v1 = vld [vmem:[#allocation3 + $0xa0] sm:$0xff]   ;;  %v19623_v44 = vmax.f32 %v14968_v36, %v14970_v52 }
 0x3ee   : > { %9246 = vmax.xlane.f32.xlu1 %v3762_v4  ;;  %v3701_v49 = vpop.f32.mrb[183].mxu1  ;;  %v3765_v50 = vmax.f32 %v3572_v60, %v3698_v18  ;;  %v3573_v26 = vmax.f32 %v19610_v48, %v3508_v25  ;;  %v12256_v4 = vld [vmem:[#allocation3 + $0x98] sm:$0xff]   ;;  %v19624_v25 = vld [vmem:[#allocation104_spill] sm:$0xff] }
 0x3ef   : > { %11278 = vmatmul.mubr.bf16.vlgmr.msra.gmra.mrb[32].mxu0 %v12254_v24  ;;  %9256 = vmax.xlane.f32.xlu0 %v3767_v14  ;;  %v3768_v46 = vmax.f32 %v3575_v59, %v10964_v51  ;;  %v19625_v51 = vmax.f32 %v14976_v7, %v19624_v25 }
 0x3f0   : > { %11358 = vmatpush3.bf16.msra.mxu0 %v19574_v5  ;;  %11326 = vmatmul.mubr.bf16.vlgmr.msra.gmra.mrb[32].mxu1 %v12254_v24  ;;  %v3766_v20 = vmax.f32 %v3573_v26, %v3701_v49  ;;  %v19627_v49 = vld [vmem:[#allocation71_spill] sm:$0xff]  ;;  %v19631_v26 = vld [vmem:[#allocation74_spill] sm:$0xff] }
 0x3f1   : > { %11359 = vmatprep.subr.bf16.mxu0 %v19611_v42  ;;  %11406 = vmatpush3.bf16.msra.mxu1 %v19577_v39  ;;  %v19632_v24 = vld [vmem:[#allocation75_spill] sm:$0xff] }
 0x3f2   : > { %11407 = vmatprep.subr.bf16.mxu1 %v19612_v37  ;;  %9258 = vmax.xlane.f32.xlu1 %v3768_v46  ;;  %v10919_v6 = vpop.f32.mrb[184].mxu0  ;;  %v19633_v7 = vmax.f32 %v19631_v26, %v19632_v24 }
 0x3f3   : > { %9252 = vmax.xlane.f32.xlu0 %v3765_v50  ;;  %v3521_v34 = vpop.f32.mrb[185].mxu0  ;;  %v10967_v58 = vpop.f32.mrb[184].mxu1  ;;  %11281 = vmatprep.mubr.bf16.mxu0 %v12255_v10  ;;  %v3578_v13 = vmax.f32 %v19613_v45, %v10919_v6  ;;  %v19628_v50 = vld [vmem:[#allocation73_spill] sm:$0xff] }
 0x3f4   : > { %11360 = vmatpush3.bf16.msra.mxu0 %v19611_v42  ;;  %v10920_v17 = vpop.f32.mrb[186].mxu0  ;;  %v3714_v19 = vpop.f32.mrb[185].mxu1  ;;  %11329 = vmatprep.mubr.bf16.mxu1 %v12255_v10  ;;  %v3576_v56 = vmax.f32 %v19614_v40, %v3521_v34  ;;  %v19629_v52 = vmax.f32 %v19627_v49, %v19628_v50  ;;  %v19635_v10 = vld [vmem:[#allocation58_spill] sm:$0xff]  ;;  %v12263_v49 = vld [vmem:[#allocation3 + $0xd0] sm:$0xff]   ;;  %v19645_v42 = vld [vmem:[#allocation25_spill] sm:$0xff] }
 0x3f5   : > { %11361 = vmatprep.subr.bf16.mxu0 %v19615_v57  ;;  %11408 = vmatpush3.bf16.msra.mxu1 %v19612_v37  ;;  %v3524_v3 = vpop.f32.mrb[187].mxu0  ;;  %v10968_v23 = vpop.f32.mrb[186].mxu1  ;;  %v3771_v53 = vmax.f32 %v3578_v13, %v10967_v58  ;;  %v3579_v63 = vmax.f32 %v19617_v2, %v10920_v17  ;;  %v19634_v58 = vld [vmem:[#allocation43_spill] sm:$0xff]  ;;  %v15320_v37 = vld [vmem:[#allocation3 + $0x110] sm:$0xff]  }
 0x3f6   : > { %11409 = vmatprep.subr.bf16.mxu1 %v19618_v35  ;;  %9254 = vmax.xlane.f32.xlu1 %v3766_v20  ;;  %v3717_v41 = vpop.f32.mrb[187].mxu1  ;;  %v3769_v33 = vmax.f32 %v3576_v56, %v3714_v19  ;;  %v3577_v16 = vmax.f32 %v19620_v55, %v3524_v3  ;;  %v12258_v20 = vld [vmem:[#allocation3 + $0xa8] sm:$0xff]   ;;  %v12259_v19 = vld [vmem:[#allocation3 + $0xb0] sm:$0xff]   ;;  %v12260_v55 = vld [vmem:[#allocation3 + $0xb8] sm:$0xff]   ;;  %19643 = vst [vmem:[#allocation78_spill] sm:$0xff] %v15320_v37 }
 0x3f7   : > { %11282 = vmatmul.mubr.bf16.gmra.mrb[36].mxu0 %v12256_v4  ;;  %9264 = vmax.xlane.f32.xlu0 %v3771_v53  ;;  %v3772_v21 = vmax.f32 %v3579_v63, %v10968_v23  ;;  %v19636_v23 = vld [vmem:[#allocation68_spill] sm:$0xff]  ;;  %v19637_v63 = vld [vmem:[#allocation70_spill] sm:$0xff] }
 0x3f8   : > { %11362 = vmatpush3.bf16.msra.mxu0 %v19615_v57  ;;  %11330 = vmatmul.mubr.bf16.gmra.mrb[36].mxu1 %v12256_v4  ;;  %v3770_v30 = vmax.f32 %v3577_v16, %v3717_v41  ;;  %v19638_v16 = vld [vmem:[#allocation7_spill] sm:$0xff]  ;;  %v19639_v4 = vld [vmem:[#allocation44_spill] sm:$0xff] }
 0x3f9   : > { %11363 = vmatprep.subr.bf16.mxu0 %v19621_v62  ;;  %11410 = vmatpush3.bf16.msra.mxu1 %v19618_v35 }
 0x3fa   : > { %11411 = vmatprep.subr.bf16.mxu1 %v19622_v38  ;;  %9266 = vmax.xlane.f32.xlu1 %v3772_v21  ;;  %v10923_v28 = vpop.f32.mrb[188].mxu0 }
 0x3fb   : > { %9260 = vmax.xlane.f32.xlu0 %v3769_v33  ;;  %v3537_v32 = vpop.f32.mrb[189].mxu0  ;;  %v10971_v47 = vpop.f32.mrb[188].mxu1  ;;  %11285 = vmatprep.mubr.bf16.mxu0 %v12257_v1  ;;  %v3582_v18 = vmax.f32 %v19623_v44, %v10923_v28 }
 0x3fc   : > { %11364 = vmatpush3.bf16.msra.mxu0 %v19621_v62  ;;  %v10924_v43 = vpop.f32.mrb[190].mxu0  ;;  %v3730_v60 = vpop.f32.mrb[189].mxu1  ;;  %11333 = vmatprep.mubr.bf16.mxu1 %v12257_v1  ;;  %v3580_v14 = vmax.f32 %v19625_v51, %v3537_v32  ;;  %v19641_v51 = vld [vmem:[#allocation32_spill] sm:$0xff] }
 0x3fd   : > { %11365 = vmatprep.subr.bf16.mxu0 %v19626_v61  ;;  %11412 = vmatpush3.bf16.msra.mxu1 %v19622_v38  ;;  %v3540_v31 = vpop.f32.mrb[191].mxu0  ;;  %v10972_v54 = vpop.f32.mrb[190].mxu1  ;;  %v3775_v59 = vmax.f32 %v3582_v18, %v10971_v47  ;;  %v3583_v36 = vmax.f32 %v19629_v52, %v10924_v43  ;;  %v19640_v18 = vld [vmem:[#allocation30_spill] sm:$0xff]  ;;  %v12267_v47 = vld [vmem:[#allocation3 + $0xf0] sm:$0xff]  }
 0x3fe   : > { %11413 = vmatprep.subr.bf16.mxu1 %v19630_v9  ;;  %9262 = vmax.xlane.f32.xlu1 %v3770_v30  ;;  %v3733_v0 = vpop.f32.mrb[191].mxu1  ;;  %v3773_v48 = vmax.f32 %v3580_v14, %v3730_v60  ;;  %v3581_v46 = vmax.f32 %v19633_v7, %v3540_v31  ;;  %v12261_v30 = vld [vmem:[#allocation3 + $0xc0] sm:$0xff]  }
 0x3ff   : > { %11286 = vmatmul.mubr.bf16.gmra.mrb[40].mxu0 %v12258_v20  ;;  %9272 = vmax.xlane.f32.xlu0 %v3775_v59  ;;  %v3776_v6 = vmax.f32 %v3583_v36, %v10972_v54  ;;  %v12262_v59 = vld [vmem:[#allocation3 + $0xc8] sm:$0xff]   ;;  %v15280_v43 = vld [vmem:[#allocation3 + $0x100] sm:$0xff]  }
 0x400   : > { %11366 = vmatpush3.bf16.msra.mxu0 %v19626_v61  ;;  %11334 = vmatmul.mubr.bf16.gmra.mrb[40].mxu1 %v12258_v20  ;;  %v3774_v34 = vmax.f32 %v3581_v46, %v3733_v0  ;;  %v12266_v20 = vld [vmem:[#allocation3 + $0xe8] sm:$0xff]  }
 0x401   : > { %11367 = vmatprep.subr.bf16.mxu0 %v19634_v58  ;;  %11414 = vmatpush3.bf16.msra.mxu1 %v19630_v9  ;;  %v15302_v9 = vld [vmem:[#allocation3 + $0x108] sm:$0xff]  }
 0x402   : > { %11415 = vmatprep.subr.bf16.mxu1 %v19635_v10  ;;  %9274 = vmax.xlane.f32.xlu1 %v3776_v6  ;;  %v15160_v45 = vpop.f32.mrb[192].mxu0  ;;  %19642 = vst [vmem:[#allocation76_spill] sm:$0xff] %v15302_v9 }
 0x403   : > { %9268 = vmax.xlane.f32.xlu0 %v3773_v48  ;;  %v15162_v13 = vpop.f32.mrb[192].mxu1  ;;  %v15164_v17 = vpop.f32.mrb[193].mxu0  ;;  %11289 = vmatprep.mubr.bf16.mxu0 %v12259_v19 }
 0x404   : > { %11368 = vmatpush3.bf16.msra.mxu0 %v19634_v58  ;;  %v15169_v56 = vpop.f32.mrb[193].mxu1  ;;  %v15171_v3 = vpop.f32.mrb[194].mxu0  ;;  %11337 = vmatprep.mubr.bf16.mxu1 %v12259_v19  ;;  %v12264_v19 = vld [vmem:[#allocation3 + $0xd8] sm:$0xff]  }
 0x405   : > { %11369 = vmatprep.subr.bf16.mxu0 %v19636_v23  ;;  %11416 = vmatpush3.bf16.msra.mxu1 %v19635_v10  ;;  %v15177_v29 = vpop.f32.mrb[194].mxu1  ;;  %v15179_v2 = vpop.f32.mrb[195].mxu0 }
 0x406   : > { %11417 = vmatprep.subr.bf16.mxu1 %v19637_v63  ;;  %9270 = vmax.xlane.f32.xlu1 %v3774_v34  ;;  %v15184_v33 = vpop.f32.mrb[195].mxu1 }
 0x407   : > { %11290 = vmatmul.mubr.bf16.gmra.mrb[44].mxu0 %v12260_v55 }
 0x408   : > { %11370 = vmatpush3.bf16.msra.mxu0 %v19636_v23  ;;  %11338 = vmatmul.mubr.bf16.gmra.mrb[44].mxu1 %v12260_v55  ;;  %v12265_v55 = vld [vmem:[#allocation3 + $0xe0] sm:$0xff]   ;;  %v12268_v23 = vld [vmem:[#allocation3 + $0xf8] sm:$0xff]  }
 0x409   : > { %11371 = vmatprep.subr.bf16.mxu0 %v19638_v16  ;;  %11418 = vmatpush3.bf16.msra.mxu1 %v19637_v63 }
 0x40a   : > { %11419 = vmatprep.subr.bf16.mxu1 %v19639_v4  ;;  %v15192_v21 = vpop.f32.mrb[196].mxu0  ;;  %11293 = vmatprep.mubr.bf16.mxu0 %v12261_v30 }
 0x40b   : > { %v15194_v28 = vpop.f32.mrb[196].mxu1  ;;  %v15196_v32 = vpop.f32.mrb[197].mxu0  ;;  %11341 = vmatprep.mubr.bf16.mxu1 %v12261_v30 }
 0x40c   : > { %11372 = vmatpush3.bf16.msra.mxu0 %v19638_v16  ;;  %v15201_v1 = vpop.f32.mrb[197].mxu1  ;;  %v15203_v44 = vpop.f32.mrb[198].mxu0  ;;  %v15337_v16 = vld [vmem:[#allocation3 + $0x118] sm:$0xff]  }
 0x40d   : > { %11420 = vmatpush3.bf16.msra.mxu1 %v19639_v4  ;;  %11453 = vmatprep.subr.bf16.mxu0 %v19640_v18  ;;  %v15209_v60 = vpop.f32.mrb[198].mxu1  ;;  %v15211_v25 = vpop.f32.mrb[199].mxu0  ;;  %19649 = vst [vmem:[#allocation77_spill] sm:$0xff] %v15337_v16 }
 0x40e   : > { %11501 = vmatprep.subr.bf16.mxu1 %v19641_v51  ;;  %v15216_v31 = vpop.f32.mrb[199].mxu1 }
 0x40f   : > { %11294 = vmatmul.mubr.bf16.gmra.mrb[48].mxu0 %v12262_v59 }
 0x410   : > { %11342 = vmatmul.mubr.bf16.gmra.mrb[48].mxu1 %v12262_v59  ;;  %11297 = vmatprep.mubr.bf16.mxu0 %v12263_v49 }
 0x411   : > { %11345 = vmatprep.mubr.bf16.mxu1 %v12263_v49 }
 0x412   : > { %v15220_v50 = vpop.f32.mrb[200].mxu0 }
 0x413   : > { %v15222_v52 = vpop.f32.mrb[200].mxu1  ;;  %v15224_v36 = vpop.f32.mrb[201].mxu0 }
 0x414   : > { %v15228_v48 = vpop.f32.mrb[201].mxu1  ;;  %v15230_v26 = vpop.f32.mrb[202].mxu0 }
 0x415   : > { %v15234_v7 = vpop.f32.mrb[202].mxu1  ;;  %v15236_v46 = vpop.f32.mrb[203].mxu0 }
 0x416   : > { %v15240_v6 = vpop.f32.mrb[203].mxu1 }
 0x417   : > { %11298 = vmatmul.mubr.bf16.gmra.mrb[52].mxu0 %v12264_v19 }
 0x418   : > { %11346 = vmatmul.mubr.bf16.gmra.mrb[52].mxu1 %v12264_v19  ;;  %11301 = vmatprep.mubr.bf16.mxu0 %v12265_v55 }
 0x419   : > { %11349 = vmatprep.mubr.bf16.mxu1 %v12265_v55 }
 0x41a   : > { %v15244_v30 = vpop.f32.mrb[204].mxu0 }
 0x41b   : > { %v15246_v59 = vpop.f32.mrb[204].mxu1  ;;  %v15248_v49 = vpop.f32.mrb[205].mxu0 }
 0x41c   : > { %v15252_v24 = vpop.f32.mrb[205].mxu1  ;;  %v15254_v0 = vpop.f32.mrb[206].mxu0 }
 0x41d   : > { %v15258_v19 = vpop.f32.mrb[206].mxu1  ;;  %v15260_v54 = vpop.f32.mrb[207].mxu0 }
 0x41e   : > { %v15264_v14 = vpop.f32.mrb[207].mxu1 }
 0x41f   : > { %11302 = vmatmul.mubr.bf16.gmra.mrb[56].mxu0 %v12266_v20 }
 0x420   : > { %11350 = vmatmul.mubr.bf16.gmra.mrb[56].mxu1 %v12266_v20  ;;  %11305 = vmatprep.mubr.bf16.mxu0 %v12267_v47 }
 0x421   : > { %11353 = vmatprep.mubr.bf16.mxu1 %v12267_v47 }
 0x422   : > { %v15268_v8 = vpop.f32.mrb[208].mxu0 }
 0x423   : > { %v15270_v34 = vpop.f32.mrb[208].mxu1  ;;  %v15272_v41 = vpop.f32.mrb[209].mxu0 }
 0x424   : > { %v15276_v53 = vpop.f32.mrb[209].mxu1  ;;  %v15278_v40 = vpop.f32.mrb[210].mxu0 }
 0x425   : > { %v15284_v4 = vpop.f32.mrb[210].mxu1  ;;  %v15286_v47 = vpop.f32.mrb[211].mxu0 }
 0x426   : > { %v15290_v63 = vpop.f32.mrb[211].mxu1 }
 0x427   : > { %11306 = vmatmul.mubr.bf16.gmra.mrb[60].mxu0 %v12268_v23 }
 0x428   : > { %11354 = vmatmul.mubr.bf16.gmra.mrb[60].mxu1 %v12268_v23  ;;  %11373 = vmatprep.mubr.bf16.mxu0 %v15280_v43  ;;  %v19644_v23 = vld [vmem:[#allocation34_spill] sm:$0xff] }
 0x429   : > { %11421 = vmatprep.mubr.bf16.mxu1 %v15280_v43 }
 0x42a   : > { %v15296_v20 = vpop.f32.mrb[212].mxu0 }
 0x42b   : > { %v15298_v10 = vpop.f32.mrb[212].mxu1  ;;  %v15300_v58 = vpop.f32.mrb[213].mxu0 }
 0x42c   : > { %v15306_v61 = vpop.f32.mrb[213].mxu1  ;;  %v15308_v55 = vpop.f32.mrb[214].mxu0 }
 0x42d   : > { %v15312_v38 = vpop.f32.mrb[214].mxu1  ;;  %v15314_v62 = vpop.f32.mrb[215].mxu0 }
 0x42e   : > { %v15318_v57 = vpop.f32.mrb[215].mxu1 }
 0x42f   : > { %11374 = vmatmul.mubr.bf16.vlgmr.msra.gmra.mrb[64].mxu0 %v15302_v9 }
 0x430   : > { %11454 = vmatpush3.bf16.msra.mxu0 %v19640_v18  ;;  %11422 = vmatmul.mubr.bf16.vlgmr.msra.gmra.mrb[64].mxu1 %v15302_v9 }
 0x431   : > { %11455 = vmatprep.subr.bf16.mxu0 %v19644_v23  ;;  %11502 = vmatpush3.bf16.msra.mxu1 %v19641_v51 }
 0x432   : > { %11503 = vmatprep.subr.bf16.mxu1 %v19645_v42  ;;  %v15330_v35 = vpop.f32.mrb[216].mxu0  ;;  %11377 = vmatprep.mubr.bf16.mxu0 %v15320_v37 }
 0x433   : > { %19646 = vst [vmem:[#allocation79_spill] sm:$0xff] %v15330_v35  ;;  %v15333_v39 = vpop.f32.mrb[216].mxu1  ;;  %v15335_v5 = vpop.f32.mrb[217].mxu0  ;;  %11425 = vmatprep.mubr.bf16.mxu1 %v15320_v37  ;;  %v19655_v37 = vld [vmem:[#allocation26_spill] sm:$0xff]  ;;  %v15377_v35 = vld [vmem:[#allocation3 + $0x128] sm:$0xff]  }
 0x434   : > { %19647 = vst [vmem:[#allocation80_spill] sm:$0xff] %v15333_v39  ;;  %19648 = vst [vmem:[#allocation81_spill] sm:$0xff] %v15335_v5  ;;  %11456 = vmatpush3.bf16.msra.mxu0 %v19644_v23  ;;  %v15343_v51 = vpop.f32.mrb[217].mxu1  ;;  %v15345_v11 = vpop.f32.mrb[218].mxu0  ;;  %v15360_v39 = vld [vmem:[#allocation3 + $0x120] sm:$0xff]  }
 0x435   : > { %19650 = vst [vmem:[#allocation83_spill] sm:$0xff] %v15343_v51  ;;  %19651 = vst [vmem:[#allocation82_spill] sm:$0xff] %v15345_v11  ;;  %11457 = vmatprep.subr.bf16.mxu0 %v19652_v12  ;;  %11504 = vmatpush3.bf16.msra.mxu1 %v19645_v42  ;;  %v15351_v27 = vpop.f32.mrb[218].mxu1  ;;  %v15353_v15 = vpop.f32.mrb[219].mxu0  ;;  %v19659_v42 = vld [vmem:[#allocation51_spill] sm:$0xff] }
 0x436   : > { %19653 = vst [vmem:[#allocation86_spill] sm:$0xff] %v15351_v27  ;;  %19654 = vst [vmem:[#allocation84_spill] sm:$0xff] %v15353_v15  ;;  %11505 = vmatprep.subr.bf16.mxu1 %v19655_v37  ;;  %v15358_v23 = vpop.f32.mrb[219].mxu1  ;;  %v19670_v15 = vld [vmem:[#allocation64_spill] sm:$0xff] }
 0x437   : > { %19656 = vst [vmem:[#allocation92_spill] sm:$0xff] %v15358_v23  ;;  %19657 = vst [vmem:[#allocation85_spill] sm:$0xff] %v15360_v39  ;;  %11378 = vmatmul.mubr.bf16.gmra.mrb[68].mxu0 %v15337_v16  ;;  %v19665_v23 = vld [vmem:[#allocation62_spill] sm:$0xff] }
 0x438   : > { %11458 = vmatpush3.bf16.msra.mxu0 %v19652_v12  ;;  %11426 = vmatmul.mubr.bf16.gmra.mrb[68].mxu1 %v15337_v16  ;;  %19662 = vst [vmem:[#allocation95_spill] sm:$0xff] %v15377_v35 }
 0x439   : > { %11459 = vmatprep.subr.bf16.mxu0 %v19658_v22  ;;  %11506 = vmatpush3.bf16.msra.mxu1 %v19655_v37 }
 0x43a   : > { %11507 = vmatprep.subr.bf16.mxu1 %v19659_v42  ;;  %v15370_v18 = vpop.f32.mrb[220].mxu0  ;;  %11381 = vmatprep.mubr.bf16.mxu0 %v15360_v39 }
 0x43b   : > { %19660 = vst [vmem:[#allocation87_spill] sm:$0xff] %v15370_v18  ;;  %v15373_v27 = vpop.f32.mrb[220].mxu1  ;;  %v15375_v11 = vpop.f32.mrb[221].mxu0  ;;  %11429 = vmatprep.mubr.bf16.mxu1 %v15360_v39  ;;  %v19668_v39 = vld [vmem:[#allocation6_spill] sm:$0xff] }
 0x43c   : > { %19661 = vst [vmem:[#allocation94_spill] sm:$0xff] %v15373_v27  ;;  %11460 = vmatpush3.bf16.msra.mxu0 %v19658_v22  ;;  %v15383_v37 = vpop.f32.mrb[221].mxu1  ;;  %v15385_v16 = vpop.f32.mrb[222].mxu0  ;;  %v15400_v27 = vld [vmem:[#allocation3 + $0x130] sm:$0xff]  }
 0x43d   : > { %19663 = vst [vmem:[#allocation96_spill] sm:$0xff] %v15383_v37  ;;  %19664 = vst [vmem:[#allocation97_spill] sm:$0xff] %v15385_v16  ;;  %11461 = vmatprep.subr.bf16.mxu0 %v19665_v23  ;;  %11508 = vmatpush3.bf16.msra.mxu1 %v19659_v42  ;;  %v15391_v51 = vpop.f32.mrb[222].mxu1  ;;  %v15393_v5 = vpop.f32.mrb[223].mxu0  ;;  %v19671_v42 = vld [vmem:[#allocation8_spill] sm:$0xff] }
 0x43e   : > { %19666 = vst [vmem:[#allocation98_spill] sm:$0xff] %v15391_v51  ;;  %19667 = vst [vmem:[#allocation99_spill] sm:$0xff] %v15393_v5  ;;  %11509 = vmatprep.subr.bf16.mxu1 %v19668_v39  ;;  %v15398_v22 = vpop.f32.mrb[223].mxu1  ;;  %v19672_v51 = vmax.f32 %v15160_v45, %v15162_v13 }
 0x43f   : > { %19669 = vst [vmem:[#allocation88_spill] sm:$0xff] %v15398_v22  ;;  %11382 = vmatmul.mubr.bf16.gmra.mrb[72].mxu0 %v15377_v35 }
 0x440   : > { %11462 = vmatpush3.bf16.msra.mxu0 %v19665_v23  ;;  %11430 = vmatmul.mubr.bf16.gmra.mrb[72].mxu1 %v15377_v35  ;;  %v15418_v23 = vld [vmem:[#allocation3 + $0x138] sm:$0xff]  }
 0x441   : > { %11463 = vmatprep.subr.bf16.mxu0 %v19670_v15  ;;  %11510 = vmatpush3.bf16.msra.mxu1 %v19668_v39  ;;  %19673 = vst [vmem:[#allocation89_spill] sm:$0xff] %v15418_v23  ;;  %v19674_v39 = vmax.f32 %v15164_v17, %v15169_v56  ;;  %v19677_v56 = vmax.f32 %v15179_v2, %v15184_v33  ;;  %v19680_v2 = vld [vmem:[#allocation59_spill] sm:$0xff]  ;;  %v19681_v33 = vld [vmem:[#allocation9_spill] sm:$0xff] }
 0x442   : > { %11511 = vmatprep.subr.bf16.mxu1 %v19671_v42  ;;  %v11087_v12 = vpop.f32.mrb[224].mxu0  ;;  %11385 = vmatprep.mubr.bf16.mxu0 %v15400_v27 }
 0x443   : > { %v15414_v16 = vmax.f32 %v19672_v51, %v11087_v12  ;;  %v4389_v18 = vpop.f32.mrb[225].mxu0  ;;  %v15416_v22 = vpop.f32.mrb[224].mxu1  ;;  %11433 = vmatprep.mubr.bf16.mxu1 %v15400_v27  ;;  %v19675_v12 = vmax.f32 %v15171_v3, %v15177_v29  ;;  %v19676_v51 = vld [vmem:[#allocation27_spill] sm:$0xff] }
 0x444   : > { %v15424_v35 = vmax.f32 %v19674_v39, %v4389_v18  ;;  %11464 = vmatpush3.bf16.msra.mxu0 %v19670_v15  ;;  %v11088_v5 = vpop.f32.mrb[226].mxu0  ;;  %v15427_v37 = vpop.f32.mrb[225].mxu1 }
 0x445   : > { %v15432_v45 = vmax.f32 %v19675_v12, %v11088_v5  ;;  %11465 = vmatprep.subr.bf16.mxu0 %v19676_v51  ;;  %11512 = vmatpush3.bf16.msra.mxu1 %v19671_v42  ;;  %v4392_v17 = vpop.f32.mrb[227].mxu0  ;;  %v15438_v39 = vpop.f32.mrb[226].mxu1  ;;  %v19678_v5 = vld [vmem:[#allocation12_spill] sm:$0xff]  ;;  %v15450_v12 = vld [vmem:[#allocation3 + $0x140] sm:$0xff]  }
 0x446   : > { %v15443_v18 = vmax.f32 %v19677_v56, %v4392_v17  ;;  %11513 = vmatprep.subr.bf16.mxu1 %v19678_v5  ;;  %v15448_v29 = vpop.f32.mrb[227].mxu1  ;;  %v19682_v56 = vmax.f32 %v15192_v21, %v15194_v28  ;;  %v15481_v21 = vld [vmem:[#allocation3 + $0x150] sm:$0xff]   ;;  %v19686_v28 = vmax.f32 %v15203_v44, %v15209_v60  ;;  %v19693_v44 = vmax.f32 %v15224_v36, %v15228_v48 }
 0x447   : > { %19679 = vst [vmem:[#allocation90_spill] sm:$0xff] %v15448_v29  ;;  %11386 = vmatmul.mubr.bf16.gmra.mrb[76].mxu0 %v15418_v23  ;;  %19685 = vst [vmem:[#allocation100_spill] sm:$0xff] %v15481_v21  ;;  %v19689_v60 = vld [vmem:[#allocation28_spill] sm:$0xff] }
 0x448   : > { %11466 = vmatpush3.bf16.msra.mxu0 %v19676_v51  ;;  %11434 = vmatmul.mubr.bf16.gmra.mrb[76].mxu1 %v15418_v23  ;;  %v15470_v51 = vld [vmem:[#allocation3 + $0x148] sm:$0xff]  }
 0x449   : > { %11467 = vmatprep.subr.bf16.mxu0 %v19680_v2  ;;  %11514 = vmatpush3.bf16.msra.mxu1 %v19678_v5  ;;  %19683 = vst [vmem:[#allocation91_spill] sm:$0xff] %v15470_v51  ;;  %v19684_v5 = vmax.f32 %v15196_v32, %v15201_v1  ;;  %v19687_v32 = vld [vmem:[#allocation13_spill] sm:$0xff] }
 0x44a   : > { %11515 = vmatprep.subr.bf16.mxu1 %v19681_v33  ;;  %v11091_v17 = vpop.f32.mrb[228].mxu0  ;;  %11389 = vmatprep.mubr.bf16.mxu0 %v15450_v12 }
 0x44b   : > { %v15466_v13 = vmax.f32 %v19682_v56, %v11091_v17  ;;  %v4405_v3 = vpop.f32.mrb[229].mxu0  ;;  %v15468_v42 = vpop.f32.mrb[228].mxu1  ;;  %11437 = vmatprep.mubr.bf16.mxu1 %v15450_v12 }
 0x44c   : > { %v15476_v15 = vmax.f32 %v19684_v5, %v4405_v3  ;;  %11468 = vmatpush3.bf16.msra.mxu0 %v19680_v2  ;;  %v11092_v23 = vpop.f32.mrb[230].mxu0  ;;  %v15479_v29 = vpop.f32.mrb[229].mxu1  ;;  %v19688_v5 = vmax.f32 %v15211_v25, %v15216_v31  ;;  %v19691_v31 = vmax.f32 %v15220_v50, %v15222_v52  ;;  %v19695_v52 = vmax.f32 %v15230_v26, %v15234_v7  ;;  %v15573_v26 = vld [vmem:[#allocation3 + $0x168] sm:$0xff]  }
 0x44d   : > { %v15486_v17 = vmax.f32 %v19686_v28, %v11092_v23  ;;  %11516 = vmatpush3.bf16.msra.mxu1 %v19681_v33  ;;  %11549 = vmatprep.subr.bf16.mxu0 %v19687_v32  ;;  %v4408_v1 = vpop.f32.mrb[231].mxu0  ;;  %v15492_v3 = vpop.f32.mrb[230].mxu1  ;;  %v15525_v28 = vld [vmem:[#allocation3 + $0x158] sm:$0xff]  }
 0x44e   : > { %v15497_v2 = vmax.f32 %v19688_v5, %v4408_v1  ;;  %11597 = vmatprep.subr.bf16.mxu1 %v19689_v60  ;;  %v15502_v23 = vpop.f32.mrb[231].mxu1  ;;  %19692 = vst [vmem:[#allocation61_spill] sm:$0xff] %v15525_v28 }
 0x44f   : > { %19690 = vst [vmem:[#allocation93_spill] sm:$0xff] %v15502_v23  ;;  %11390 = vmatmul.mubr.bf16.gmra.mrb[80].mxu0 %v15470_v51  ;;  %v15532_v23 = vld [vmem:[#allocation3 + $0x160] sm:$0xff]  }
 0x450   : > { %11438 = vmatmul.mubr.bf16.gmra.mrb[80].mxu1 %v15470_v51  ;;  %11393 = vmatprep.mubr.bf16.mxu0 %v15481_v21  ;;  %19694 = vst [vmem:[#allocation101_spill] sm:$0xff] %v15532_v23 }
 0x451   : > { %11441 = vmatprep.mubr.bf16.mxu1 %v15481_v21 }
 0x452   : > { %v11095_v25 = vpop.f32.mrb[232].mxu0 }
 0x453   : > { %v15521_v1 = vmax.f32 %v19691_v31, %v11095_v25  ;;  %v4421_v5 = vpop.f32.mrb[233].mxu0  ;;  %v15523_v56 = vpop.f32.mrb[232].mxu1 }
 0x454   : > { %v15530_v33 = vmax.f32 %v19693_v44, %v4421_v5  ;;  %v9217_v21 = vpop.xlane.xlu0 %9216  ;;  %v11096_v51 = vpop.f32.mrb[234].mxu0  ;;  %v19696_v44 = vmax.f32 %v15236_v46, %v15240_v6 }
 0x455   : > { %9471 = vst.msk [vmem:[%s15516_s30 + $0x10] sm:$0xff] %vm9468_vm1, %v9217_v21  ;;  %v15541_v25 = vmax.f32 %v19695_v52, %v11096_v51  ;;  %v15543_v31 = vpop.f32.mrb[233].mxu1  ;;  %v4424_v36 = vpop.f32.mrb[235].mxu0  ;;  %v19698_v51 = vmax.f32 %v15248_v49, %v15252_v24  ;;  %v19701_v24 = vmax.f32 %v15254_v0, %v15258_v19  ;;  %v19705_v0 = vmax.f32 %v15272_v41, %v15276_v53 }
 0x456   : > { %v15550_v5 = vmax.f32 %v19696_v44, %v4424_v36  ;;  %v15552_v50 = vpop.f32.mrb[234].mxu1  ;;  %v19697_v36 = vmax.f32 %v15244_v30, %v15246_v59 }
 0x457   : > { %v9213_v21 = vpop.xlane.xlu1 %9212  ;;  %v15556_v7 = vpop.f32.mrb[235].mxu1  ;;  %11394 = vmatmul.mubr.bf16.gmra.mrb[84].mxu0 %v15525_v28 }
 0x458   : > { %9469 = vst.msk [vmem:[%s15516_s30] sm:$0xff] %vm9468_vm1, %v9213_v21  ;;  %11442 = vmatmul.mubr.bf16.gmra.mrb[84].mxu1 %v15525_v28  ;;  %v9215_v46 = vpop.xlane.xlu0 %9214  ;;  %11397 = vmatprep.mubr.bf16.mxu0 %v15532_v23  ;;  %v15584_v28 = vld [vmem:[#allocation3 + $0x170] sm:$0xff]  }
 0x459   : > { %9470 = vst.msk [vmem:[%s15516_s30 + $0x8] sm:$0xff] %vm9468_vm1, %v9215_v46  ;;  %11445 = vmatprep.mubr.bf16.mxu1 %v15532_v23  ;;  %19700 = vst [vmem:[#allocation103_spill] sm:$0xff] %v15584_v28 }
 0x45a   : > { %v11099_v6 = vpop.f32.mrb[236].mxu0 }
 0x45b   : > { %v9219_v52 = vpop.xlane.xlu1 %9218  ;;  %v15571_v44 = vmax.f32 %v19697_v36, %v11099_v6  ;;  %v4437_v21 = vpop.f32.mrb[237].mxu0 }
 0x45c   : > { %9472 = vst.msk [vmem:[%s15516_s30 + $0x18] sm:$0xff] %vm9468_vm1, %v9219_v52  ;;  %v15580_v48 = vmax.f32 %v19698_v51, %v4437_v21  ;;  %v15582_v46 = vpop.f32.mrb[236].mxu1  ;;  %v9225_v23 = vpop.xlane.xlu0 %9224  ;;  %v19702_v21 = vmax.f32 %v15260_v54, %v15264_v14 }
 0x45d   : > { %19699 = vst [vmem:[#allocation102_spill] sm:$0xff] %v15582_v46  ;;  %9475 = vst.msk [vmem:[%s15516_s30 + $0x30] sm:$0xff] %vm9468_vm1, %v9225_v23  ;;  %v11100_v59 = vpop.f32.mrb[238].mxu0  ;;  %v15590_v6 = vpop.f32.mrb[237].mxu1 }
 0x45e   : > { %v15595_v49 = vmax.f32 %v19701_v24, %v11100_v59  ;;  %v4440_v51 = vpop.f32.mrb[239].mxu0  ;;  %v15599_v36 = vpop.f32.mrb[238].mxu1  ;;  %v19703_v24 = vmax.f32 %v15268_v8, %v15270_v34 }
 0x45f   : > { %v15604_v30 = vmax.f32 %v19702_v21, %v4440_v51  ;;  %v9227_v23 = vpop.xlane.xlu1 %9226  ;;  %v15606_v46 = vpop.f32.mrb[239].mxu1  ;;  %11398 = vmatmul.mubr.bf16.gmra.mrb[88].mxu0 %v15573_v26 }
 0x460   : > { %9476 = vst.msk [vmem:[%s15516_s30 + $0x38] sm:$0xff] %vm9468_vm1, %v9227_v23  ;;  %11446 = vmatmul.mubr.bf16.gmra.mrb[88].mxu1 %v15573_v26  ;;  %v9221_v19 = vpop.xlane.xlu0 %9220  ;;  %11401 = vmatprep.mubr.bf16.mxu0 %v15584_v28  ;;  %v15625_v23 = vld [vmem:[#allocation3 + $0x178] sm:$0xff]  }
 0x461   : > { %9473 = vst.msk [vmem:[%s15516_s30 + $0x20] sm:$0xff] %vm9468_vm1, %v9221_v19  ;;  %11449 = vmatprep.mubr.bf16.mxu1 %v15584_v28  ;;  %19704 = vst [vmem:[#allocation72_spill] sm:$0xff] %v15625_v23 }
 0x462   : > { %v11103_v54 = vpop.f32.mrb[240].mxu0 }
 0x463   : > { %v9223_v59 = vpop.xlane.xlu1 %9222  ;;  %v15623_v51 = vmax.f32 %v19703_v24, %v11103_v54  ;;  %v4453_v21 = vpop.f32.mrb[241].mxu0  ;;  %v19706_v54 = vmax.f32 %v15278_v40, %v15284_v4  ;;  %v19707_v24 = vmax.f32 %v15286_v47, %v15290_v63 }
 0x464   : > { %9474 = vst.msk [vmem:[%s15516_s30 + $0x28] sm:$0xff] %vm9468_vm1, %v9223_v59  ;;  %v15632_v14 = vmax.f32 %v19705_v0, %v4453_v21  ;;  %v15634_v19 = vpop.f32.mrb[240].mxu1  ;;  %v9233_v52 = vpop.xlane.xlu0 %9232 }
 0x465   : > { %9479 = vst.msk [vmem:[%s15516_s30 + $0x50] sm:$0xff] %vm9468_vm1, %v9233_v52  ;;  %v11104_v8 = vpop.f32.mrb[242].mxu0  ;;  %v15640_v34 = vpop.f32.mrb[241].mxu1 }
 0x466   : > { %v15645_v59 = vmax.f32 %v19706_v54, %v11104_v8  ;;  %v4456_v53 = vpop.f32.mrb[243].mxu0  ;;  %v15649_v0 = vpop.f32.mrb[242].mxu1  ;;  %v19708_v54 = vmax.f32 %v15296_v20, %v15298_v10 }
 0x467   : > { %v15654_v21 = vmax.f32 %v19707_v24, %v4456_v53  ;;  %v9235_v52 = vpop.xlane.xlu1 %9234  ;;  %v15656_v28 = vpop.f32.mrb[243].mxu1  ;;  %11402 = vmatmul.mubr.bf16.gmra.mrb[92].mxu0 %v15625_v23 }
 0x468   : > { %9480 = vst.msk [vmem:[%s15516_s30 + $0x58] sm:$0xff] %vm9468_vm1, %v9235_v52  ;;  %11450 = vmatmul.mubr.bf16.gmra.mrb[92].mxu1 %v15625_v23  ;;  %v9229_v4 = vpop.xlane.xlu0 %9228  ;;  %11469 = vmatprep.mubr.bf16.mxu0 %v15280_v43  ;;  %v19709_v52 = vmax.f32 %v15300_v58, %v15306_v61 }
 0x469   : > { %9477 = vst.msk [vmem:[%s15516_s30 + $0x40] sm:$0xff] %vm9468_vm1, %v9229_v4  ;;  %11517 = vmatprep.mubr.bf16.mxu1 %v15280_v43 }
 0x46a   : > { %v11107_v47 = vpop.f32.mrb[244].mxu0 }
 0x46b   : > { %v9231_v8 = vpop.xlane.xlu1 %9230  ;;  %v15673_v53 = vmax.f32 %v19708_v54, %v11107_v47  ;;  %v4469_v24 = vpop.f32.mrb[245].mxu0  ;;  %v19711_v47 = vmax.f32 %v15308_v55, %v15312_v38  ;;  %v19721_v38 = vld [vmem:[#allocation80_spill] sm:$0xff] }
 0x46c   : > { %9478 = vst.msk [vmem:[%s15516_s30 + $0x48] sm:$0xff] %vm9468_vm1, %v9231_v8  ;;  %v15680_v40 = vmax.f32 %v19709_v52, %v4469_v24  ;;  %v15682_v63 = vpop.f32.mrb[244].mxu1  ;;  %v9241_v4 = vpop.xlane.xlu0 %9240  ;;  %v19714_v24 = vmax.f32 %v15314_v62, %v15318_v57  ;;  %v19717_v62 = vld [vmem:[#allocation14_spill] sm:$0xff]  ;;  %v19724_v57 = vld [vmem:[#allocation81_spill] sm:$0xff] }
 0x46d   : > { %9483 = vst.msk [vmem:[%s15516_s30 + $0x70] sm:$0xff] %vm9468_vm1, %v9241_v4  ;;  %v11108_v10 = vpop.f32.mrb[246].mxu0  ;;  %v15688_v20 = vpop.f32.mrb[245].mxu1 }
 0x46e   : > { %19710 = vst [vmem:[#allocation104_spill] sm:$0xff] %v15688_v20  ;;  %v15693_v8 = vmax.f32 %v19711_v47, %v11108_v10  ;;  %v4472_v61 = vpop.f32.mrb[247].mxu0  ;;  %v15697_v54 = vpop.f32.mrb[246].mxu1  ;;  %v19718_v10 = vld [vmem:[#allocation29_spill] sm:$0xff] }
 0x46f   : > { %19713 = vst [vmem:[#allocation73_spill] sm:$0xff] %v15697_v54  ;;  %v15702_v52 = vmax.f32 %v19714_v24, %v4472_v61  ;;  %v9243_v4 = vpop.xlane.xlu1 %9242  ;;  %v15704_v41 = vpop.f32.mrb[247].mxu1  ;;  %11470 = vmatmul.mubr.bf16.vlgmr.msra.gmra.mrb[96].mxu0 %v15302_v9  ;;  %v19719_v61 = vld [vmem:[#allocation78_spill] sm:$0xff] }
 0x470   : > { %19712 = vst [vmem:[#allocation71_spill] sm:$0xff] %v15693_v8  ;;  %19716 = vst [vmem:[#allocation75_spill] sm:$0xff] %v15704_v41  ;;  %11550 = vmatpush3.bf16.msra.mxu0 %v19687_v32  ;;  %11518 = vmatmul.mubr.bf16.vlgmr.msra.gmra.mrb[96].mxu1 %v15302_v9  ;;  %v9237_v55 = vpop.xlane.xlu0 %9236 }
 0x471   : > { %19715 = vst [vmem:[#allocation74_spill] sm:$0xff] %v15702_v52  ;;  %9484 = vst.msk [vmem:[%s15516_s30 + $0x78] sm:$0xff] %vm9468_vm1, %v9243_v4  ;;  %11551 = vmatprep.subr.bf16.mxu0 %v19717_v62  ;;  %11598 = vmatpush3.bf16.msra.mxu1 %v19689_v60  ;;  %v19720_v4 = vld [vmem:[#allocation79_spill] sm:$0xff] }
 0x472   : > { %9481 = vst.msk [vmem:[%s15516_s30 + $0x60] sm:$0xff] %vm9468_vm1, %v9237_v55  ;;  %11599 = vmatprep.subr.bf16.mxu1 %v19718_v10  ;;  %v11111_v47 = vpop.f32.mrb[248].mxu0  ;;  %11473 = vmatprep.mubr.bf16.mxu0 %v19719_v61  ;;  %v19722_v58 = vmax.f32 %v19720_v4, %v19721_v38  ;;  %v19725_v60 = vld [vmem:[#allocation83_spill] sm:$0xff]  ;;  %v19746_v38 = vld [vmem:[#allocation94_spill] sm:$0xff] }
 0x473   : > { %v9239_v24 = vpop.xlane.xlu1 %9238  ;;  %v4485_v9 = vpop.f32.mrb[249].mxu0  ;;  %11521 = vmatprep.mubr.bf16.mxu1 %v19719_v61  ;;  %v19726_v55 = vmax.f32 %v19724_v57, %v19725_v60  ;;  %v19731_v60 = vld [vmem:[#allocation86_spill] sm:$0xff] }
 0x474   : > { %v15724_v32 = vmax.f32 %v19722_v58, %v11111_v47  ;;  %9482 = vst.msk [vmem:[%s15516_s30 + $0x68] sm:$0xff] %vm9468_vm1, %v9239_v24  ;;  %11552 = vmatpush3.bf16.msra.mxu0 %v19717_v62  ;;  %v15735_v52 = vpop.f32.mrb[248].mxu1  ;;  %v9249_v54 = vpop.xlane.xlu0 %9248  ;;  %v19728_v58 = vld [vmem:[#allocation63_spill] sm:$0xff] }
 0x475   : > { %v15732_v41 = vmax.f32 %v19726_v55, %v4485_v9  ;;  %19727 = vst [vmem:[#allocation80_spill] sm:$0xff] %v15735_v52  ;;  %11553 = vmatprep.subr.bf16.mxu0 %v19728_v58  ;;  %11600 = vmatpush3.bf16.msra.mxu1 %v19718_v10  ;;  %9487 = vst.msk [vmem:[%s15516_s30 + $0x90] sm:$0xff] %vm9468_vm1, %v9249_v54  ;;  %v11112_v47 = vpop.f32.mrb[250].mxu0  ;;  %v15743_v24 = vpop.f32.mrb[249].mxu1  ;;  %v19730_v9 = vld [vmem:[#allocation82_spill] sm:$0xff]  ;;  %v19734_v62 = vld [vmem:[#allocation15_spill] sm:$0xff] }
 0x476   : > { %19723 = vst [vmem:[#allocation79_spill] sm:$0xff] %v15724_v32  ;;  %19729 = vst [vmem:[#allocation81_spill] sm:$0xff] %v15743_v24  ;;  %v19732_v57 = vmax.f32 %v19730_v9, %v19731_v60  ;;  %v4488_v55 = vpop.f32.mrb[251].mxu0  ;;  %11601 = vmatprep.subr.bf16.mxu1 %v19734_v62  ;;  %v15753_v52 = vpop.f32.mrb[250].mxu1  ;;  %v19736_v10 = vld [vmem:[#allocation84_spill] sm:$0xff]  ;;  %v19741_v9 = vld [vmem:[#allocation77_spill] sm:$0xff] }
 0x477   : > { %19735 = vst [vmem:[#allocation82_spill] sm:$0xff] %v15753_v52  ;;  %v19737_v32 = vld [vmem:[#allocation92_spill] sm:$0xff]  ;;  %v9251_v8 = vpop.xlane.xlu1 %9250  ;;  %v15760_v20 = vpop.f32.mrb[251].mxu1  ;;  %11474 = vmatmul.mubr.bf16.gmra.mrb[100].mxu0 %v19741_v9 }
 0x478   : > { %v15748_v4 = vmax.f32 %v19732_v57, %v11112_v47  ;;  %v19738_v54 = vmax.f32 %v19736_v10, %v19737_v32  ;;  %19740 = vst [vmem:[#allocation84_spill] sm:$0xff] %v15760_v20  ;;  %9488 = vst.msk [vmem:[%s15516_s30 + $0x98] sm:$0xff] %vm9468_vm1, %v9251_v8  ;;  %11554 = vmatpush3.bf16.msra.mxu0 %v19728_v58  ;;  %11522 = vmatmul.mubr.bf16.gmra.mrb[100].mxu1 %v19741_v9  ;;  %v9245_v60 = vpop.xlane.xlu0 %9244  ;;  %v19742_v10 = vld [vmem:[#allocation67_spill] sm:$0xff]  ;;  %v19743_v57 = vld [vmem:[#allocation69_spill] sm:$0xff] }
 0x479   : > { %11555 = vmatprep.subr.bf16.mxu0 %v19742_v10  ;;  %11602 = vmatpush3.bf16.msra.mxu1 %v19734_v62  ;;  %9485 = vst.msk [vmem:[%s15516_s30 + $0x80] sm:$0xff] %vm9468_vm1, %v9245_v60  ;;  %v19745_v47 = vld [vmem:[#allocation87_spill] sm:$0xff]  ;;  %v19749_v32 = vld [vmem:[#allocation96_spill] sm:$0xff] }
 0x47a   : > { %19733 = vst [vmem:[#allocation83_spill] sm:$0xff] %v15748_v4  ;;  %v15758_v61 = vmax.f32 %v19738_v54, %v4488_v55  ;;  %11603 = vmatprep.subr.bf16.mxu1 %v19743_v57  ;;  %v11115_v55 = vpop.f32.mrb[252].mxu0  ;;  %v19744_v54 = vld [vmem:[#allocation85_spill] sm:$0xff]  ;;  %v19747_v58 = vmax.f32 %v19745_v47, %v19746_v38  ;;  %v19750_v60 = vmax.f32 %v15375_v11, %v19749_v32 }
 0x47b   : > { %11477 = vmatprep.mubr.bf16.mxu0 %v19744_v54  ;;  %v9247_v8 = vpop.xlane.xlu1 %9246  ;;  %v4501_v52 = vpop.f32.mrb[253].mxu0  ;;  %11525 = vmatprep.mubr.bf16.mxu1 %v19744_v54  ;;  %v19753_v11 = vld [vmem:[#allocation97_spill] sm:$0xff] }
 0x47c   : > { %19739 = vst [vmem:[#allocation86_spill] sm:$0xff] %v15758_v61  ;;  %v15780_v9 = vmax.f32 %v19747_v58, %v11115_v55  ;;  %9486 = vst.msk [vmem:[%s15516_s30 + $0x88] sm:$0xff] %vm9468_vm1, %v9247_v8  ;;  %v15788_v62 = vmax.f32 %v19750_v60, %v4501_v52  ;;  %11556 = vmatpush3.bf16.msra.mxu0 %v19742_v10  ;;  %v15791_v20 = vpop.f32.mrb[252].mxu1  ;;  %v9257_v61 = vpop.xlane.xlu0 %9256  ;;  %v19752_v58 = vld [vmem:[#allocation39_spill] sm:$0xff]  ;;  %v19754_v52 = vld [vmem:[#allocation98_spill] sm:$0xff] }
 0x47d   : > { %19751 = vst [vmem:[#allocation87_spill] sm:$0xff] %v15791_v20  ;;  %11557 = vmatprep.subr.bf16.mxu0 %v19752_v58  ;;  %11604 = vmatpush3.bf16.msra.mxu1 %v19743_v57  ;;  %9491 = vst.msk [vmem:[%s15516_s30 + $0xb0] sm:$0xff] %vm9468_vm1, %v9257_v61  ;;  %v11116_v47 = vpop.f32.mrb[254].mxu0  ;;  %v15799_v55 = vpop.f32.mrb[253].mxu1  ;;  %v19755_v32 = vmax.f32 %v19753_v11, %v19754_v52  ;;  %v19756_v10 = vld [vmem:[#allocation18_spill] sm:$0xff]  ;;  %v19757_v57 = vld [vmem:[#allocation99_spill] sm:$0xff] }
 0x47e   : > { %19748 = vst [vmem:[#allocation92_spill] sm:$0xff] %v15780_v9  ;;  %v4504_v60 = vpop.f32.mrb[255].mxu0  ;;  %11605 = vmatprep.subr.bf16.mxu1 %v19756_v10  ;;  %v15809_v20 = vpop.f32.mrb[254].mxu1  ;;  %v19758_v9 = vld [vmem:[#allocation88_spill] sm:$0xff]  ;;  %v19760_v11 = vld [vmem:[#allocation95_spill] sm:$0xff] }
 0x47f   : > { %v15804_v8 = vmax.f32 %v19755_v32, %v11116_v47  ;;  %v19759_v61 = vmax.f32 %v19757_v57, %v19758_v9  ;;  %v9259_v4 = vpop.xlane.xlu1 %9258  ;;  %v15816_v24 = vpop.f32.mrb[255].mxu1  ;;  %11478 = vmatmul.mubr.bf16.gmra.mrb[104].mxu0 %v19760_v11  ;;  %v19761_v57 = vld [vmem:[#allocation10_spill] sm:$0xff]  ;;  %v19762_v32 = vld [vmem:[#allocation49_spill] sm:$0xff] }
 0x480   : > { %9492 = vst.msk [vmem:[%s15516_s30 + $0xb8] sm:$0xff] %vm9468_vm1, %v9259_v4  ;;  %11558 = vmatpush3.bf16.msra.mxu0 %v19752_v58  ;;  %11526 = vmatmul.mubr.bf16.gmra.mrb[104].mxu1 %v19760_v11  ;;  %v9253_v52 = vpop.xlane.xlu0 %9252 }
 0x481   : > { %v15814_v54 = vmax.f32 %v19759_v61, %v4504_v60  ;;  %11559 = vmatprep.subr.bf16.mxu0 %v19761_v57  ;;  %11606 = vmatpush3.bf16.msra.mxu1 %v19756_v10  ;;  %9489 = vst.msk [vmem:[%s15516_s30 + $0xa0] sm:$0xff] %vm9468_vm1, %v9253_v52  ;;  %v19763_v61 = vmax.f32 %v15414_v16, %v15416_v22  ;;  %v19767_v16 = vld [vmem:[#allocation66_spill] sm:$0xff] }
 0x482   : > { %11607 = vmatprep.subr.bf16.mxu1 %v19762_v32  ;;  %v11183_v60 = vpop.f32.mrb[0].mxu0  ;;  %11481 = vmatprep.mubr.bf16.mxu0 %v15400_v27  ;;  %v19765_v52 = vmax.f32 %v15424_v35, %v15427_v37  ;;  %v19768_v37 = vmax.f32 %v15432_v45, %v15438_v39  ;;  %v19772_v45 = vld [vmem:[#allocation89_spill] sm:$0xff] }
 0x483   : > { %v9255_v4 = vpop.xlane.xlu1 %9254  ;;  %v15836_v47 = vmax.f32 %v19763_v61, %v11183_v60  ;;  %v4775_v38 = vpop.f32.mrb[1].mxu0  ;;  %11529 = vmatprep.mubr.bf16.mxu1 %v15400_v27 }
 0x484   : > { %9490 = vst.msk [vmem:[%s15516_s30 + $0xa8] sm:$0xff] %vm9468_vm1, %v9255_v4  ;;  %v15844_v9 = vmax.f32 %v19765_v52, %v4775_v38  ;;  %11560 = vmatpush3.bf16.msra.mxu0 %v19761_v57  ;;  %v15847_v10 = vpop.f32.mrb[0].mxu1  ;;  %v9265_v58 = vpop.xlane.xlu0 %9264  ;;  %v19769_v52 = vld [vmem:[#allocation17_spill] sm:$0xff] }
 0x485   : > { %19764 = vst [vmem:[#allocation94_spill] sm:$0xff] %v15836_v47  ;;  %19766 = vst [vmem:[#allocation96_spill] sm:$0xff] %v15847_v10  ;;  %11561 = vmatprep.subr.bf16.mxu0 %v19767_v16  ;;  %11608 = vmatpush3.bf16.msra.mxu1 %v19762_v32  ;;  %v11184_v60 = vpop.f32.mrb[2].mxu0  ;;  %v15855_v4 = vpop.f32.mrb[1].mxu1  ;;  %v19770_v32 = vld [vmem:[#allocation90_spill] sm:$0xff] }
 0x486   : > { %9495 = vst.msk [vmem:[%s15516_s30 + $0xd0] sm:$0xff] %vm9468_vm1, %v9265_v58  ;;  %v15860_v35 = vmax.f32 %v19768_v37, %v11184_v60  ;;  %v4778_v38 = vpop.f32.mrb[3].mxu0  ;;  %11609 = vmatprep.subr.bf16.mxu1 %v19769_v52  ;;  %v15865_v22 = vpop.f32.mrb[2].mxu1  ;;  %v19771_v58 = vmax.f32 %v15443_v18, %v19770_v32  ;;  %v19773_v32 = vld [vmem:[#allocation55_spill] sm:$0xff]  ;;  %v19774_v37 = vld [vmem:[#allocation24_spill] sm:$0xff] }
 0x487   : > { %v9267_v10 = vpop.xlane.xlu1 %9266  ;;  %v15872_v47 = vpop.f32.mrb[3].mxu1  ;;  %11482 = vmatmul.mubr.bf16.gmra.mrb[108].mxu0 %v19772_v45 }
 0x488   : > { %v15870_v57 = vmax.f32 %v19771_v58, %v4778_v38  ;;  %9496 = vst.msk [vmem:[%s15516_s30 + $0xd8] sm:$0xff] %vm9468_vm1, %v9267_v10  ;;  %11562 = vmatpush3.bf16.msra.mxu0 %v19767_v16  ;;  %11530 = vmatmul.mubr.bf16.gmra.mrb[108].mxu1 %v19772_v45  ;;  %v9261_v60 = vpop.xlane.xlu0 %9260  ;;  %v19775_v58 = vmax.f32 %v15466_v13, %v15468_v42  ;;  %v19779_v13 = vld [vmem:[#allocation45_spill] sm:$0xff] }
 0x489   : > { %11563 = vmatprep.subr.bf16.mxu0 %v19773_v32  ;;  %11610 = vmatpush3.bf16.msra.mxu1 %v19769_v52  ;;  %9493 = vst.msk [vmem:[%s15516_s30 + $0xc0] sm:$0xff] %vm9468_vm1, %v9261_v60  ;;  %v19777_v60 = vmax.f32 %v15476_v15, %v15479_v29  ;;  %v19780_v15 = vmax.f32 %v15486_v17, %v15492_v3  ;;  %v19785_v17 = vld [vmem:[#allocation91_spill] sm:$0xff] }
 0x48a   : > { %11611 = vmatprep.subr.bf16.mxu1 %v19774_v37  ;;  %v11187_v38 = vpop.f32.mrb[4].mxu0  ;;  %11485 = vmatprep.mubr.bf16.mxu0 %v15450_v12 }
 0x48b   : > { %v9263_v10 = vpop.xlane.xlu1 %9262  ;;  %v15892_v39 = vmax.f32 %v19775_v58, %v11187_v38  ;;  %v4791_v61 = vpop.f32.mrb[5].mxu0  ;;  %11533 = vmatprep.mubr.bf16.mxu1 %v15450_v12  ;;  %v19788_v58 = vmax.f32 %v15530_v33, %v15543_v31  ;;  %v19796_v31 = vmax.f32 %v15580_v48, %v15590_v6 }
 0x48c   : > { %9494 = vst.msk [vmem:[%s15516_s30 + $0xc8] sm:$0xff] %vm9468_vm1, %v9263_v10  ;;  %v15900_v18 = vmax.f32 %v19777_v60, %v4791_v61  ;;  %11564 = vmatpush3.bf16.msra.mxu0 %v19773_v32  ;;  %v15903_v52 = vpop.f32.mrb[4].mxu1  ;;  %v9273_v16 = vpop.xlane.xlu0 %9272  ;;  %v19781_v60 = vld [vmem:[#allocation60_spill] sm:$0xff] }
 0x48d   : > { %19776 = vst [vmem:[#allocation97_spill] sm:$0xff] %v15892_v39  ;;  %19778 = vst [vmem:[#allocation98_spill] sm:$0xff] %v15903_v52  ;;  %11612 = vmatpush3.bf16.msra.mxu1 %v19774_v37  ;;  %11645 = vmatprep.subr.bf16.mxu0 %v19779_v13  ;;  %v11188_v38 = vpop.f32.mrb[6].mxu0  ;;  %v15911_v10 = vpop.f32.mrb[5].mxu1  ;;  %v19782_v37 = vld [vmem:[#allocation93_spill] sm:$0xff] }
 0x48e   : > { %9499 = vst.msk [vmem:[%s15516_s30 + $0xf0] sm:$0xff] %vm9468_vm1, %v9273_v16  ;;  %v15916_v29 = vmax.f32 %v19780_v15, %v11188_v38  ;;  %v4794_v61 = vpop.f32.mrb[7].mxu0  ;;  %11693 = vmatprep.subr.bf16.mxu1 %v19781_v60  ;;  %v15921_v42 = vpop.f32.mrb[6].mxu1  ;;  %v19783_v16 = vmax.f32 %v15497_v2, %v19782_v37  ;;  %v19786_v15 = vld [vmem:[#allocation100_spill] sm:$0xff] }
 0x48f   : > { %v9275_v52 = vpop.xlane.xlu1 %9274  ;;  %v15928_v39 = vpop.f32.mrb[7].mxu1  ;;  %11486 = vmatmul.mubr.bf16.gmra.mrb[112].mxu0 %v19785_v17 }
 0x490   : > { %v15926_v32 = vmax.f32 %v19783_v16, %v4794_v61  ;;  %19784 = vst [vmem:[#allocation99_spill] sm:$0xff] %v15928_v39  ;;  %9500 = vst.msk [vmem:[%s15516_s30 + $0xf8] sm:$0xff] %vm9468_vm1, %v9275_v52  ;;  %11534 = vmatmul.mubr.bf16.gmra.mrb[112].mxu1 %v19785_v17  ;;  %v9269_v38 = vpop.xlane.xlu0 %9268  ;;  %11489 = vmatprep.mubr.bf16.mxu0 %v19786_v15  ;;  %v19787_v61 = vmax.f32 %v15521_v1, %v15523_v56 }
 0x491   : > { %9497 = vst.msk [vmem:[%s15516_s30 + $0xe0] sm:$0xff] %vm9468_vm1, %v9269_v38  ;;  %11537 = vmatprep.mubr.bf16.mxu1 %v19786_v15  ;;  %v19789_v38 = vmax.f32 %v15541_v25, %v15552_v50 }
 0x492   : > { %v11191_v37 = vpop.f32.mrb[8].mxu0 }
 0x493   : > { %v15945_v16 = vmax.f32 %v19787_v61, %v11191_v37  ;;  %v9271_v3 = vpop.xlane.xlu1 %9270  ;;  %v4807_v52 = vpop.f32.mrb[9].mxu0 }
 0x494   : > { %9498 = vst.msk [vmem:[%s15516_s30 + $0xe8] sm:$0xff] %vm9468_vm1, %v9271_v3  ;;  %v15952_v17 = vmax.f32 %v19788_v58, %v4807_v52  ;;  %v11192_v2 = vpop.f32.mrb[10].mxu0  ;;  %v15954_v39 = vpop.f32.mrb[8].mxu1  ;;  %v19790_v3 = vmax.f32 %v15550_v5, %v15556_v7  ;;  %v19793_v5 = vld [vmem:[#allocation101_spill] sm:$0xff]  ;;  %v19794_v52 = vld [vmem:[#allocation102_spill] sm:$0xff] }
 0x495   : > { %v15959_v15 = vmax.f32 %v19789_v38, %v11192_v2  ;;  %v4810_v1 = vpop.f32.mrb[11].mxu0  ;;  %v15963_v37 = vpop.f32.mrb[9].mxu1  ;;  %v19792_v2 = vld [vmem:[#allocation61_spill] sm:$0xff]  ;;  %v19795_v38 = vmax.f32 %v15571_v44, %v19794_v52  ;;  %v19802_v44 = vmax.f32 %v15645_v59, %v15649_v0 }
 0x496   : > { %v15968_v33 = vmax.f32 %v19790_v3, %v4810_v1  ;;  %v15972_v58 = vpop.f32.mrb[10].mxu1 }
 0x497   : > { %v15976_v25 = vpop.f32.mrb[11].mxu1  ;;  %11490 = vmatmul.mubr.bf16.gmra.mrb[116].mxu0 %v19792_v2 }
 0x498   : > { %19791 = vst [vmem:[#allocation88_spill] sm:$0xff] %v15976_v25  ;;  %11538 = vmatmul.mubr.bf16.gmra.mrb[116].mxu1 %v19792_v2  ;;  %11493 = vmatprep.mubr.bf16.mxu0 %v19793_v5 }
 0x499   : > { %11541 = vmatprep.mubr.bf16.mxu1 %v19793_v5  ;;  %v19797_v5 = vmax.f32 %v15595_v49, %v15599_v36 }
 0x49a   : > { %v11195_v7 = vpop.f32.mrb[12].mxu0 }
 0x49b   : > { %v15987_v1 = vmax.f32 %v19795_v38, %v11195_v7  ;;  %v4823_v3 = vpop.f32.mrb[13].mxu0  ;;  %v15989_v50 = vpop.f32.mrb[12].mxu1  ;;  %v19798_v38 = vmax.f32 %v15604_v30, %v15606_v46  ;;  %v19800_v30 = vmax.f32 %v15623_v51, %v15634_v19  ;;  %v19810_v51 = vld [vmem:[#allocation71_spill] sm:$0xff] }
 0x49c   : > { %v15994_v56 = vmax.f32 %v19796_v31, %v4823_v3  ;;  %v11196_v61 = vpop.f32.mrb[14].mxu0  ;;  %v15996_v2 = vpop.f32.mrb[13].mxu1 }
 0x49d   : > { %v16001_v25 = vmax.f32 %v19797_v5, %v11196_v61  ;;  %v4826_v7 = vpop.f32.mrb[15].mxu0  ;;  %v16005_v52 = vpop.f32.mrb[14].mxu1  ;;  %v19799_v61 = vld [vmem:[#allocation103_spill] sm:$0xff] }
 0x49e   : > { %v16010_v48 = vmax.f32 %v19798_v38, %v4826_v7  ;;  %v16014_v31 = vpop.f32.mrb[15].mxu1  ;;  %v19801_v38 = vmax.f32 %v15632_v14, %v15640_v34 }
 0x49f   : > { %11494 = vmatmul.mubr.bf16.gmra.mrb[120].mxu0 %v15573_v26 }
 0x4a0   : > { %11542 = vmatmul.mubr.bf16.gmra.mrb[120].mxu1 %v15573_v26  ;;  %11497 = vmatprep.mubr.bf16.mxu0 %v19799_v61 }
 0x4a1   : > { %11545 = vmatprep.mubr.bf16.mxu1 %v19799_v61 }
 0x4a2   : > { %v11199_v46 = vpop.f32.mrb[16].mxu0 }
 0x4a3   : > { %v16027_v5 = vmax.f32 %v19800_v30, %v11199_v46  ;;  %v4839_v3 = vpop.f32.mrb[17].mxu0  ;;  %v16029_v7 = vpop.f32.mrb[16].mxu1  ;;  %v19804_v30 = vmax.f32 %v15654_v21, %v15656_v28  ;;  %v19807_v21 = vmax.f32 %v15673_v53, %v15682_v63 }
 0x4a4   : > { %v16034_v49 = vmax.f32 %v19801_v38, %v4839_v3  ;;  %v11200_v36 = vpop.f32.mrb[18].mxu0  ;;  %v16036_v6 = vpop.f32.mrb[17].mxu1 }
 0x4a5   : > { %v16041_v61 = vmax.f32 %v19802_v44, %v11200_v36  ;;  %v4842_v19 = vpop.f32.mrb[19].mxu0  ;;  %v16045_v46 = vpop.f32.mrb[18].mxu1 }
 0x4a6   : > { %19803 = vst [vmem:[#allocation95_spill] sm:$0xff] %v16045_v46  ;;  %v16050_v14 = vmax.f32 %v19804_v30, %v4842_v19  ;;  %v16054_v3 = vpop.f32.mrb[19].mxu1  ;;  %v19808_v19 = vld [vmem:[#allocation104_spill] sm:$0xff] }
 0x4a7   : > { %19806 = vst [vmem:[#allocation89_spill] sm:$0xff] %v16054_v3  ;;  %11498 = vmatmul.mubr.bf16.gmra.mrb[124].mxu0 %v15625_v23  ;;  %v19809_v30 = vmax.f32 %v15680_v40, %v19808_v19 }
 0x4a8   : > { %19805 = vst [vmem:[#allocation90_spill] sm:$0xff] %v16050_v14  ;;  %11546 = vmatmul.mubr.bf16.gmra.mrb[124].mxu1 %v15625_v23  ;;  %11565 = vmatprep.mubr.bf16.mxu0 %v15280_v43  ;;  %v19811_v23 = vld [vmem:[#allocation73_spill] sm:$0xff]  ;;  %v19816_v14 = vld [vmem:[#allocation75_spill] sm:$0xff] }
 0x4a9   : > { %11613 = vmatprep.mubr.bf16.mxu1 %v15280_v43  ;;  %v19812_v43 = vmax.f32 %v19810_v51, %v19811_v23  ;;  %v19820_v51 = vld [vmem:[#allocation76_spill] sm:$0xff] }
 0x4aa   : > { %v11203_v28 = vpop.f32.mrb[20].mxu0 }
 0x4ab   : > { %v16067_v44 = vmax.f32 %v19807_v21, %v11203_v28  ;;  %v4855_v36 = vpop.f32.mrb[21].mxu0  ;;  %v16069_v38 = vpop.f32.mrb[20].mxu1  ;;  %v19815_v21 = vld [vmem:[#allocation74_spill] sm:$0xff] }
 0x4ac   : > { %v16074_v59 = vmax.f32 %v19809_v30, %v4855_v36  ;;  %v11204_v0 = vpop.f32.mrb[22].mxu0  ;;  %v16076_v34 = vpop.f32.mrb[21].mxu1  ;;  %v19817_v46 = vmax.f32 %v19815_v21, %v19816_v14  ;;  %v19821_v14 = vld [vmem:[#allocation11_spill] sm:$0xff]  ;;  %v19825_v21 = vld [vmem:[#allocation80_spill] sm:$0xff] }
 0x4ad   : > { %v16081_v3 = vmax.f32 %v19812_v43, %v11204_v0  ;;  %v4858_v53 = vpop.f32.mrb[23].mxu0  ;;  %v16085_v28 = vpop.f32.mrb[22].mxu1  ;;  %v19823_v43 = vld [vmem:[#allocation78_spill] sm:$0xff] }
 0x4ae   : > { %19814 = vst [vmem:[#allocation102_spill] sm:$0xff] %v16085_v28  ;;  %v16090_v40 = vmax.f32 %v19817_v46, %v4858_v53  ;;  %v16094_v19 = vpop.f32.mrb[23].mxu1  ;;  %v19822_v46 = vld [vmem:[#allocation46_spill] sm:$0xff]  ;;  %v19824_v53 = vld [vmem:[#allocation79_spill] sm:$0xff] }
 0x4af   : > { %19813 = vst [vmem:[#allocation93_spill] sm:$0xff] %v16081_v3  ;;  %19819 = vst [vmem:[#allocation71_spill] sm:$0xff] %v16094_v19  ;;  %11566 = vmatmul.mubr.bf16.vlgmr.msra.gmra.mrb[128].mxu0 %v19820_v51  ;;  %v19826_v23 = vmax.f32 %v19824_v53, %v19825_v21  ;;  %v19830_v28 = vld [vmem:[#allocation83_spill] sm:$0xff]  ;;  %v19831_v3 = vld [vmem:[#allocation82_spill] sm:$0xff] }
 0x4b0   : > { %19818 = vst [vmem:[#allocation104_spill] sm:$0xff] %v16090_v40  ;;  %11646 = vmatpush3.bf16.msra.mxu0 %v19779_v13  ;;  %11614 = vmatmul.mubr.bf16.vlgmr.msra.gmra.mrb[128].mxu1 %v19820_v51  ;;  %v19827_v51 = vld [vmem:[#allocation81_spill] sm:$0xff]  ;;  %v19832_v53 = vmax.f32 %v19830_v28, %v19831_v3  ;;  %v19845_v3 = vld [vmem:[#allocation92_spill] sm:$0xff] }
 0x4b1   : > { %11647 = vmatprep.subr.bf16.mxu0 %v19821_v14  ;;  %11694 = vmatpush3.bf16.msra.mxu1 %v19781_v60  ;;  %v19828_v13 = vmax.f32 %v15732_v41, %v19827_v51  ;;  %v19834_v21 = vld [vmem:[#allocation33_spill] sm:$0xff] }
 0x4b2   : > { %11695 = vmatprep.subr.bf16.mxu1 %v19822_v46  ;;  %v11207_v30 = vpop.f32.mrb[24].mxu0  ;;  %11569 = vmatprep.mubr.bf16.mxu0 %v19823_v43 }
 0x4b3   : > { %v16110_v36 = vmax.f32 %v19826_v23, %v11207_v30  ;;  %v4871_v63 = vpop.f32.mrb[25].mxu0  ;;  %v16112_v0 = vpop.f32.mrb[24].mxu1  ;;  %11617 = vmatprep.mubr.bf16.mxu1 %v19823_v43  ;;  %v19837_v43 = vld [vmem:[#allocation84_spill] sm:$0xff]  ;;  %v19841_v30 = vld [vmem:[#allocation77_spill] sm:$0xff] }
 0x4b4   : > { %v16118_v19 = vmax.f32 %v19828_v13, %v4871_v63  ;;  %11648 = vmatpush3.bf16.msra.mxu0 %v19821_v14  ;;  %v11208_v60 = vpop.f32.mrb[26].mxu0  ;;  %v16121_v40 = vpop.f32.mrb[25].mxu1  ;;  %v19836_v63 = vld [vmem:[#allocation86_spill] sm:$0xff] }
 0x4b5   : > { %19829 = vst [vmem:[#allocation73_spill] sm:$0xff] %v16121_v40  ;;  %v16126_v23 = vmax.f32 %v19832_v53, %v11208_v60  ;;  %11649 = vmatprep.subr.bf16.mxu0 %v19834_v21  ;;  %11696 = vmatpush3.bf16.msra.mxu1 %v19822_v46  ;;  %v4874_v41 = vpop.f32.mrb[27].mxu0  ;;  %v16132_v13 = vpop.f32.mrb[26].mxu1  ;;  %v19838_v51 = vmax.f32 %v19836_v63, %v19837_v43  ;;  %v19839_v60 = vld [vmem:[#allocation65_spill] sm:$0xff]  ;;  %v19843_v63 = vld [vmem:[#allocation48_spill] sm:$0xff]  ;;  %v19846_v53 = vld [vmem:[#allocation87_spill] sm:$0xff] }
 0x4b6   : > { %19835 = vst [vmem:[#allocation75_spill] sm:$0xff] %v16132_v13  ;;  %11697 = vmatprep.subr.bf16.mxu1 %v19839_v60  ;;  %v16142_v28 = vpop.f32.mrb[27].mxu1  ;;  %v19847_v13 = vmax.f32 %v19845_v3, %v19846_v53  ;;  %v19849_v3 = vmax.f32 %v15804_v8, %v15809_v20  ;;  %v19855_v8 = vld [vmem:[#allocation40_spill] sm:$0xff]  ;;  %v19859_v20 = vld [vmem:[#allocation94_spill] sm:$0xff] }
 0x4b7   : > { %19833 = vst [vmem:[#allocation74_spill] sm:$0xff] %v16126_v23  ;;  %v16137_v14 = vmax.f32 %v19838_v51, %v4874_v41  ;;  %19840 = vst [vmem:[#allocation76_spill] sm:$0xff] %v16142_v28  ;;  %11570 = vmatmul.mubr.bf16.gmra.mrb[132].mxu0 %v19841_v30  ;;  %v19842_v41 = vld [vmem:[#allocation47_spill] sm:$0xff]  ;;  %v19844_v51 = vld [vmem:[#allocation85_spill] sm:$0xff] }
 0x4b8   : > { %11650 = vmatpush3.bf16.msra.mxu0 %v19834_v21  ;;  %11618 = vmatmul.mubr.bf16.gmra.mrb[132].mxu1 %v19841_v30  ;;  %v19848_v30 = vmax.f32 %v15788_v62, %v15799_v55  ;;  %v19860_v53 = vld [vmem:[#allocation96_spill] sm:$0xff] }
 0x4b9   : > { %11651 = vmatprep.subr.bf16.mxu0 %v19842_v41  ;;  %11698 = vmatpush3.bf16.msra.mxu1 %v19839_v60 }
 0x4ba   : > { %11699 = vmatprep.subr.bf16.mxu1 %v19843_v63  ;;  %v11211_v43 = vpop.f32.mrb[28].mxu0  ;;  %11573 = vmatprep.mubr.bf16.mxu0 %v19844_v51 }
 0x4bb   : > { %v16158_v23 = vmax.f32 %v19847_v13, %v11211_v43  ;;  %v4887_v40 = vpop.f32.mrb[29].mxu0  ;;  %v16160_v46 = vpop.f32.mrb[28].mxu1  ;;  %11621 = vmatprep.mubr.bf16.mxu1 %v19844_v51  ;;  %v19851_v43 = vld [vmem:[#allocation16_spill] sm:$0xff] }
 0x4bc   : > { %v16166_v21 = vmax.f32 %v19848_v30, %v4887_v40  ;;  %11652 = vmatpush3.bf16.msra.mxu0 %v19842_v41  ;;  %v11212_v60 = vpop.f32.mrb[30].mxu0  ;;  %v16169_v28 = vpop.f32.mrb[29].mxu1  ;;  %v19853_v40 = vmax.f32 %v15814_v54, %v15816_v24  ;;  %v19857_v24 = vld [vmem:[#allocation53_spill] sm:$0xff] }
 0x4bd   : > { %v16174_v13 = vmax.f32 %v19849_v3, %v11212_v60  ;;  %11653 = vmatprep.subr.bf16.mxu0 %v19851_v43  ;;  %11700 = vmatpush3.bf16.msra.mxu1 %v19843_v63  ;;  %v4890_v62 = vpop.f32.mrb[31].mxu0  ;;  %v16180_v55 = vpop.f32.mrb[30].mxu1  ;;  %v19858_v54 = vld [vmem:[#allocation41_spill] sm:$0xff]  ;;  %v19861_v3 = vmax.f32 %v19859_v20, %v19860_v53  ;;  %v19865_v20 = vld [vmem:[#allocation35_spill] sm:$0xff] }
 0x4be   : > { %19852 = vst [vmem:[#allocation79_spill] sm:$0xff] %v16180_v55  ;;  %v16185_v51 = vmax.f32 %v19853_v40, %v4890_v62  ;;  %11701 = vmatprep.subr.bf16.mxu1 %v19855_v8  ;;  %v16190_v60 = vpop.f32.mrb[31].mxu1 }
 0x4bf   : > { %19850 = vst [vmem:[#allocation78_spill] sm:$0xff] %v16174_v13  ;;  %19856 = vst [vmem:[#allocation81_spill] sm:$0xff] %v16190_v60  ;;  %11574 = vmatmul.mubr.bf16.gmra.mrb[136].mxu0 %v19760_v11  ;;  %v19863_v60 = vld [vmem:[#allocation42_spill] sm:$0xff] }
 0x4c0   : > { %19854 = vst [vmem:[#allocation80_spill] sm:$0xff] %v16185_v51  ;;  %11654 = vmatpush3.bf16.msra.mxu0 %v19851_v43  ;;  %11622 = vmatmul.mubr.bf16.gmra.mrb[136].mxu1 %v19760_v11 }
 0x4c1   : > { %11655 = vmatprep.subr.bf16.mxu0 %v19857_v24  ;;  %11702 = vmatpush3.bf16.msra.mxu1 %v19855_v8  ;;  %v19862_v8 = vmax.f32 %v15844_v9, %v15855_v4 }
 0x4c2   : > { %11703 = vmatprep.subr.bf16.mxu1 %v19858_v54  ;;  %v11279_v62 = vpop.f32.mrb[32].mxu0  ;;  %11577 = vmatprep.mubr.bf16.mxu0 %v15400_v27 }
 0x4c3   : > { %v5161_v40 = vpop.f32.mrb[33].mxu0  ;;  %v11327_v30 = vpop.f32.mrb[32].mxu1  ;;  %11625 = vmatprep.mubr.bf16.mxu1 %v15400_v27  ;;  %v5290_v63 = vmax.f32 %v19861_v3, %v11279_v62  ;;  %v19864_v27 = vmax.f32 %v15860_v35, %v15865_v22  ;;  %v19868_v22 = vld [vmem:[#allocation57_spill] sm:$0xff] }
 0x4c4   : > { %11656 = vmatpush3.bf16.msra.mxu0 %v19857_v24  ;;  %v11280_v11 = vpop.f32.mrb[34].mxu0  ;;  %v5354_v43 = vpop.f32.mrb[33].mxu1  ;;  %v5288_v41 = vmax.f32 %v19862_v8, %v5161_v40  ;;  %v19866_v24 = vmax.f32 %v15870_v57, %v15872_v47  ;;  %v19867_v8 = vld [vmem:[#allocation56_spill] sm:$0xff]  ;;  %v19873_v40 = vld [vmem:[#allocation19_spill] sm:$0xff] }
 0x4c5   : > { %11657 = vmatprep.subr.bf16.mxu0 %v19863_v60  ;;  %11704 = vmatpush3.bf16.msra.mxu1 %v19858_v54  ;;  %v5164_v51 = vpop.f32.mrb[35].mxu0  ;;  %v11328_v55 = vpop.f32.mrb[34].mxu1  ;;  %v5483_v13 = vmax.f32 %v5290_v63, %v11327_v30  ;;  %v5291_v53 = vmax.f32 %v19864_v27, %v11280_v11  ;;  %v19872_v30 = vmax.f32 %v15900_v18, %v15911_v10 }
 0x4c6   : > { %11705 = vmatprep.subr.bf16.mxu1 %v19865_v20  ;;  %v5357_v3 = vpop.f32.mrb[35].mxu1  ;;  %v5481_v62 = vmax.f32 %v5288_v41, %v5354_v43  ;;  %v5289_v9 = vmax.f32 %v19866_v24, %v5164_v51  ;;  %v19869_v41 = vld [vmem:[#allocation97_spill] sm:$0xff] }
 0x4c7   : > { %11578 = vmatmul.mubr.bf16.gmra.mrb[140].mxu0 %v19772_v45  ;;  %9280 = vmax.xlane.f32.xlu0 %v5483_v13  ;;  %v5484_v4 = vmax.f32 %v5291_v53, %v11328_v55  ;;  %v19870_v13 = vld [vmem:[#allocation98_spill] sm:$0xff] }
 0x4c8   : > { %11658 = vmatpush3.bf16.msra.mxu0 %v19863_v60  ;;  %11626 = vmatmul.mubr.bf16.gmra.mrb[140].mxu1 %v19772_v45  ;;  %v5482_v63 = vmax.f32 %v5289_v9, %v5357_v3  ;;  %v19871_v43 = vmax.f32 %v19869_v41, %v19870_v13  ;;  %v19874_v3 = vmax.f32 %v15916_v29, %v15921_v42  ;;  %v19875_v9 = vld [vmem:[#allocation31_spill] sm:$0xff]  ;;  %v19879_v13 = vld [vmem:[#allocation100_spill] sm:$0xff] }
 0x4c9   : > { %11659 = vmatprep.subr.bf16.mxu0 %v19867_v8  ;;  %11706 = vmatpush3.bf16.msra.mxu1 %v19865_v20  ;;  %v19957_v20 = vld [vmem:[#allocation51_spill] sm:$0xff] }
 0x4ca   : > { %11707 = vmatprep.subr.bf16.mxu1 %v19868_v22  ;;  %9282 = vmax.xlane.f32.xlu1 %v5484_v4  ;;  %v11283_v35 = vpop.f32.mrb[36].mxu0 }
 0x4cb   : > { %9276 = vmax.xlane.f32.xlu0 %v5481_v62  ;;  %v5177_v47 = vpop.f32.mrb[37].mxu0  ;;  %v11331_v57 = vpop.f32.mrb[36].mxu1  ;;  %11581 = vmatprep.mubr.bf16.mxu0 %v15450_v12  ;;  %v5294_v55 = vmax.f32 %v19871_v43, %v11283_v35  ;;  %v19876_v35 = vld [vmem:[#allocation99_spill] sm:$0xff] }
 0x4cc   : > { %11660 = vmatpush3.bf16.msra.mxu0 %v19867_v8  ;;  %v11284_v45 = vpop.f32.mrb[38].mxu0  ;;  %v5370_v51 = vpop.f32.mrb[37].mxu1  ;;  %11629 = vmatprep.mubr.bf16.mxu1 %v15450_v12  ;;  %v5292_v24 = vmax.f32 %v19872_v30, %v5177_v47  ;;  %v19877_v18 = vmax.f32 %v15926_v32, %v19876_v35  ;;  %v19878_v47 = vld [vmem:[#allocation91_spill] sm:$0xff]  ;;  %v19880_v32 = vmax.f32 %v15945_v16, %v15954_v39  ;;  %v19885_v35 = vld [vmem:[#allocation61_spill] sm:$0xff] }
 0x4cd   : > { %11708 = vmatpush3.bf16.msra.mxu1 %v19868_v22  ;;  %11741 = vmatprep.subr.bf16.mxu0 %v19873_v40  ;;  %v5180_v11 = vpop.f32.mrb[39].mxu0  ;;  %v11332_v27 = vpop.f32.mrb[38].mxu1  ;;  %v5487_v53 = vmax.f32 %v5294_v55, %v11331_v57  ;;  %v5295_v62 = vmax.f32 %v19874_v3, %v11284_v45  ;;  %v19950_v8 = vld [vmem:[#allocation37_spill] sm:$0xff] }
 0x4ce   : > { %11789 = vmatprep.subr.bf16.mxu1 %v19875_v9  ;;  %9278 = vmax.xlane.f32.xlu1 %v5482_v63  ;;  %v5373_v4 = vpop.f32.mrb[39].mxu1  ;;  %v5485_v12 = vmax.f32 %v5292_v24, %v5370_v51  ;;  %v5293_v10 = vmax.f32 %v19877_v18, %v5180_v11  ;;  %v19881_v51 = vmax.f32 %v15952_v17, %v15963_v37  ;;  %v19886_v37 = vld [vmem:[#allocation101_spill] sm:$0xff] }
 0x4cf   : > { %11582 = vmatmul.mubr.bf16.gmra.mrb[144].mxu0 %v19878_v47  ;;  %9288 = vmax.xlane.f32.xlu0 %v5487_v53  ;;  %v5488_v41 = vmax.f32 %v5295_v62, %v11332_v27  ;;  %v19882_v53 = vmax.f32 %v15959_v15, %v15972_v58  ;;  %v19883_v62 = vld [vmem:[#allocation88_spill] sm:$0xff] }
 0x4d0   : > { %11630 = vmatmul.mubr.bf16.gmra.mrb[144].mxu1 %v19878_v47  ;;  %v5486_v57 = vmax.f32 %v5293_v10, %v5373_v4  ;;  %11585 = vmatprep.mubr.bf16.mxu0 %v19879_v13  ;;  %v19884_v4 = vmax.f32 %v15968_v33, %v19883_v62  ;;  %v19887_v10 = vmax.f32 %v15987_v1, %v15989_v50 }
 0x4d1   : > { %11633 = vmatprep.mubr.bf16.mxu1 %v19879_v13  ;;  %v19888_v13 = vmax.f32 %v15994_v56, %v15996_v2  ;;  %v19891_v2 = vld [vmem:[#allocation103_spill] sm:$0xff] }
 0x4d2   : > { %9290 = vmax.xlane.f32.xlu1 %v5488_v41  ;;  %v11287_v42 = vpop.f32.mrb[40].mxu0 }
 0x4d3   : > { %9284 = vmax.xlane.f32.xlu0 %v5485_v12  ;;  %v5193_v29 = vpop.f32.mrb[41].mxu0  ;;  %v11335_v63 = vpop.f32.mrb[40].mxu1  ;;  %v5298_v43 = vmax.f32 %v19880_v32, %v11287_v42 }
 0x4d4   : > { %v11288_v55 = vpop.f32.mrb[42].mxu0  ;;  %v5386_v45 = vpop.f32.mrb[41].mxu1  ;;  %v5296_v30 = vmax.f32 %v19881_v51, %v5193_v29  ;;  %v19889_v29 = vmax.f32 %v16001_v25, %v16005_v52 }
 0x4d5   : > { %v5196_v24 = vpop.f32.mrb[43].mxu0  ;;  %v11336_v11 = vpop.f32.mrb[42].mxu1  ;;  %v5491_v27 = vmax.f32 %v5298_v43, %v11335_v63  ;;  %v5299_v3 = vmax.f32 %v19882_v53, %v11288_v55  ;;  %v19893_v53 = vmax.f32 %v16034_v49, %v16036_v6  ;;  %v12269_v49 = vld [vmem:[#allocation3 + $0x100] sm:$0xff]  }
 0x4d6   : > { %v5297_v12 = vmax.f32 %v19884_v4, %v5196_v24  ;;  %9286 = vmax.xlane.f32.xlu1 %v5486_v57  ;;  %v5389_v39 = vpop.f32.mrb[43].mxu1  ;;  %v5489_v16 = vmax.f32 %v5296_v30, %v5386_v45  ;;  %v19890_v45 = vmax.f32 %v16010_v48, %v16014_v31  ;;  %v19892_v31 = vmax.f32 %v16027_v5, %v16029_v7 }
 0x4d7   : > { %11586 = vmatmul.mubr.bf16.gmra.mrb[148].mxu0 %v19885_v35  ;;  %9296 = vmax.xlane.f32.xlu0 %v5491_v27  ;;  %v5492_v18 = vmax.f32 %v5299_v3, %v11336_v11 }
 0x4d8   : > { %v5490_v17 = vmax.f32 %v5297_v12, %v5389_v39  ;;  %11634 = vmatmul.mubr.bf16.gmra.mrb[148].mxu1 %v19885_v35  ;;  %11589 = vmatprep.mubr.bf16.mxu0 %v19886_v37  ;;  %v19896_v35 = vld [vmem:[#allocation90_spill] sm:$0xff] }
 0x4d9   : > { %11637 = vmatprep.mubr.bf16.mxu1 %v19886_v37 }
 0x4da   : > { %9298 = vmax.xlane.f32.xlu1 %v5492_v18  ;;  %v11291_v15 = vpop.f32.mrb[44].mxu0  ;;  %v19897_v18 = vld [vmem:[#allocation89_spill] sm:$0xff] }
 0x4db   : > { %9292 = vmax.xlane.f32.xlu0 %v5489_v16  ;;  %v5209_v58 = vpop.f32.mrb[45].mxu0  ;;  %v11339_v33 = vpop.f32.mrb[44].mxu1  ;;  %v5302_v47 = vmax.f32 %v19887_v10, %v11291_v15 }
 0x4dc   : > { %v11292_v41 = vpop.f32.mrb[46].mxu0  ;;  %v5402_v57 = vpop.f32.mrb[45].mxu1  ;;  %v5300_v42 = vmax.f32 %v19888_v13, %v5209_v58  ;;  %v19899_v58 = vld [vmem:[#allocation72_spill] sm:$0xff] }
 0x4dd   : > { %v5303_v63 = vmax.f32 %v19889_v29, %v11292_v41  ;;  %v5212_v32 = vpop.f32.mrb[47].mxu0  ;;  %v11340_v43 = vpop.f32.mrb[46].mxu1  ;;  %v5495_v55 = vmax.f32 %v5302_v47, %v11339_v33  ;;  %v19900_v47 = vmax.f32 %v16067_v44, %v16069_v38 }
 0x4de   : > { %v5301_v51 = vmax.f32 %v19890_v45, %v5212_v32  ;;  %9294 = vmax.xlane.f32.xlu1 %v5490_v17  ;;  %v5405_v50 = vpop.f32.mrb[47].mxu1  ;;  %v5493_v1 = vmax.f32 %v5300_v42, %v5402_v57  ;;  %v19898_v17 = vmax.f32 %v19896_v35, %v19897_v18  ;;  %v19901_v42 = vmax.f32 %v16074_v59, %v16076_v34  ;;  %v19903_v32 = vld [vmem:[#allocation102_spill] sm:$0xff]  ;;  %v19908_v59 = vld [vmem:[#allocation36_spill] sm:$0xff]  ;;  %v19916_v18 = vld [vmem:[#allocation21_spill] sm:$0xff] }
 0x4df   : > { %v5496_v30 = vmax.f32 %v5303_v63, %v11340_v43  ;;  %11590 = vmatmul.mubr.bf16.gmra.mrb[152].mxu0 %v15573_v26  ;;  %9304 = vmax.xlane.f32.xlu0 %v5495_v55  ;;  %v19902_v63 = vld [vmem:[#allocation93_spill] sm:$0xff] }
 0x4e0   : > { %v5494_v56 = vmax.f32 %v5301_v51, %v5405_v50  ;;  %11638 = vmatmul.mubr.bf16.gmra.mrb[152].mxu1 %v15573_v26  ;;  %11593 = vmatprep.mubr.bf16.mxu0 %v19891_v2  ;;  %v19894_v26 = vld [vmem:[#allocation95_spill] sm:$0xff]  ;;  %v19904_v43 = vmax.f32 %v19902_v63, %v19903_v32 }
 0x4e1   : > { %11641 = vmatprep.mubr.bf16.mxu1 %v19891_v2  ;;  %v19895_v62 = vmax.f32 %v16041_v61, %v19894_v26 }
 0x4e2   : > { %9306 = vmax.xlane.f32.xlu1 %v5496_v30  ;;  %v11295_v25 = vpop.f32.mrb[48].mxu0  ;;  %v19906_v30 = vld [vmem:[#allocation71_spill] sm:$0xff] }
 0x4e3   : > { %9300 = vmax.xlane.f32.xlu0 %v5493_v1  ;;  %v5225_v52 = vpop.f32.mrb[49].mxu0  ;;  %v11343_v48 = vpop.f32.mrb[48].mxu1  ;;  %v5306_v24 = vmax.f32 %v19892_v31, %v11295_v25  ;;  %v19905_v1 = vld [vmem:[#allocation104_spill] sm:$0xff] }
 0x4e4   : > { %v11296_v11 = vpop.f32.mrb[50].mxu0  ;;  %v5418_v27 = vpop.f32.mrb[49].mxu1  ;;  %v5304_v3 = vmax.f32 %v19893_v53, %v5225_v52  ;;  %v12270_v52 = vld [vmem:[#allocation3 + $0x108] sm:$0xff]   ;;  %v19910_v53 = vmax.f32 %v16110_v36, %v16112_v0 }
 0x4e5   : > { %v5307_v4 = vmax.f32 %v19895_v62, %v11296_v11  ;;  %v5228_v12 = vpop.f32.mrb[51].mxu0  ;;  %v11344_v39 = vpop.f32.mrb[50].mxu1  ;;  %v5499_v16 = vmax.f32 %v5306_v24, %v11343_v48  ;;  %v19909_v48 = vld [vmem:[#allocation20_spill] sm:$0xff] }
 0x4e6   : > { %v5305_v37 = vmax.f32 %v19898_v17, %v5228_v12  ;;  %9302 = vmax.xlane.f32.xlu1 %v5494_v56  ;;  %v5421_v5 = vpop.f32.mrb[51].mxu1  ;;  %v5497_v7 = vmax.f32 %v5304_v3, %v5418_v27  ;;  %v19907_v56 = vmax.f32 %v19905_v1, %v19906_v30  ;;  %v12271_v27 = vld [vmem:[#allocation3 + $0x110] sm:$0xff]   ;;  %v19913_v12 = vld [vmem:[#allocation74_spill] sm:$0xff] }
 0x4e7   : > { %v5500_v15 = vmax.f32 %v5307_v4, %v11344_v39  ;;  %11594 = vmatmul.mubr.bf16.gmra.mrb[156].mxu0 %v19899_v58  ;;  %9312 = vmax.xlane.f32.xlu0 %v5499_v16  ;;  %v19914_v39 = vld [vmem:[#allocation75_spill] sm:$0xff] }
 0x4e8   : > { %v5498_v6 = vmax.f32 %v5305_v37, %v5421_v5  ;;  %11642 = vmatmul.mubr.bf16.gmra.mrb[156].mxu1 %v19899_v58  ;;  %11661 = vmatprep.mubr.bf16.mxu0 %v12269_v49  ;;  %v19915_v16 = vmax.f32 %v19913_v12, %v19914_v39  ;;  %v19917_v37 = vld [vmem:[#allocation76_spill] sm:$0xff]  ;;  %v19935_v39 = vld [vmem:[#allocation70_spill] sm:$0xff] }
 0x4e9   : > { %11709 = vmatprep.mubr.bf16.mxu1 %v12269_v49  ;;  %v19918_v5 = vmax.f32 %v16137_v14, %v19917_v37  ;;  %v12272_v49 = vld [vmem:[#allocation3 + $0x118] sm:$0xff]  }
 0x4ea   : > { %9314 = vmax.xlane.f32.xlu1 %v5500_v15  ;;  %v11299_v61 = vpop.f32.mrb[52].mxu0  ;;  %v19919_v15 = vld [vmem:[#allocation22_spill] sm:$0xff] }
 0x4eb   : > { %9308 = vmax.xlane.f32.xlu0 %v5497_v7  ;;  %v5241_v33 = vpop.f32.mrb[53].mxu0  ;;  %v11347_v10 = vpop.f32.mrb[52].mxu1  ;;  %v5310_v41 = vmax.f32 %v19900_v47, %v11299_v61  ;;  %v19922_v47 = vmax.f32 %v16158_v23, %v16160_v46  ;;  %v19927_v23 = vld [vmem:[#allocation52_spill] sm:$0xff] }
 0x4ec   : > { %v11300_v57 = vpop.f32.mrb[54].mxu0  ;;  %v5434_v13 = vpop.f32.mrb[53].mxu1  ;;  %v5308_v29 = vmax.f32 %v19901_v42, %v5241_v33  ;;  %v19920_v33 = vld [vmem:[#allocation23_spill] sm:$0xff]  ;;  %v12273_v42 = vld [vmem:[#allocation3 + $0x120] sm:$0xff]  }
 0x4ed   : > { %v5311_v55 = vmax.f32 %v19904_v43, %v11300_v57  ;;  %v5244_v45 = vpop.f32.mrb[55].mxu0  ;;  %v11348_v51 = vpop.f32.mrb[54].mxu1  ;;  %v5503_v50 = vmax.f32 %v5310_v41, %v11347_v10  ;;  %v19921_v10 = vld [vmem:[#allocation38_spill] sm:$0xff] }
 0x4ee   : > { %v5309_v2 = vmax.f32 %v19907_v56, %v5244_v45  ;;  %9310 = vmax.xlane.f32.xlu1 %v5498_v6  ;;  %v5437_v44 = vpop.f32.mrb[55].mxu1  ;;  %v5501_v38 = vmax.f32 %v5308_v29, %v5434_v13  ;;  %v19923_v29 = vmax.f32 %v16166_v21, %v16169_v28  ;;  %v19925_v45 = vld [vmem:[#allocation79_spill] sm:$0xff]  ;;  %v19928_v56 = vld [vmem:[#allocation80_spill] sm:$0xff]  ;;  %v19931_v28 = vld [vmem:[#allocation54_spill] sm:$0xff] }
 0x4ef   : > { %v5504_v25 = vmax.f32 %v5311_v55, %v11348_v51  ;;  %11662 = vmatmul.mubr.bf16.vlgmr.msra.gmra.mrb[160].mxu0 %v12270_v52  ;;  %9320 = vmax.xlane.f32.xlu0 %v5503_v50  ;;  %v19924_v55 = vld [vmem:[#allocation78_spill] sm:$0xff] }
 0x4f0   : > { %v5502_v34 = vmax.f32 %v5309_v2, %v5437_v44  ;;  %11742 = vmatpush3.bf16.msra.mxu0 %v19873_v40  ;;  %11710 = vmatmul.mubr.bf16.vlgmr.msra.gmra.mrb[160].mxu1 %v12270_v52  ;;  %v19911_v40 = vld [vmem:[#allocation73_spill] sm:$0xff]  ;;  %v19926_v51 = vmax.f32 %v19924_v55, %v19925_v45 }
 0x4f1   : > { %11743 = vmatprep.subr.bf16.mxu0 %v19908_v59  ;;  %11790 = vmatpush3.bf16.msra.mxu1 %v19875_v9  ;;  %v19912_v26 = vmax.f32 %v16118_v19, %v19911_v40  ;;  %v19929_v2 = vld [vmem:[#allocation81_spill] sm:$0xff] }
 0x4f2   : > { %11791 = vmatprep.subr.bf16.mxu1 %v19909_v48  ;;  %9322 = vmax.xlane.f32.xlu1 %v5504_v25  ;;  %v11303_v31 = vpop.f32.mrb[56].mxu0  ;;  %v19930_v44 = vmax.f32 %v19928_v56, %v19929_v2  ;;  %v12280_v56 = vld [vmem:[#allocation3 + $0x158] sm:$0xff]   ;;  %v12281_v2 = vld [vmem:[#allocation3 + $0x160] sm:$0xff]  }
 0x4f3   : > { %9316 = vmax.xlane.f32.xlu0 %v5501_v38  ;;  %v5257_v24 = vpop.f32.mrb[57].mxu0  ;;  %v11351_v11 = vpop.f32.mrb[56].mxu1  ;;  %11665 = vmatprep.mubr.bf16.mxu0 %v12271_v27  ;;  %v5314_v3 = vmax.f32 %v19910_v53, %v11303_v31  ;;  %v19933_v31 = vld [vmem:[#allocation58_spill] sm:$0xff]  ;;  %v12275_v53 = vld [vmem:[#allocation3 + $0x130] sm:$0xff]  }
 0x4f4   : > { %11744 = vmatpush3.bf16.msra.mxu0 %v19908_v59  ;;  %v5312_v62 = vmax.f32 %v19912_v26, %v5257_v24  ;;  %v11304_v9 = vpop.f32.mrb[58].mxu0  ;;  %v5450_v4 = vpop.f32.mrb[57].mxu1  ;;  %11713 = vmatprep.mubr.bf16.mxu1 %v12271_v27 }
 0x4f5   : > { %v5315_v35 = vmax.f32 %v19915_v16, %v11304_v9  ;;  %11745 = vmatprep.subr.bf16.mxu0 %v19916_v18  ;;  %11792 = vmatpush3.bf16.msra.mxu1 %v19909_v48  ;;  %v5260_v17 = vpop.f32.mrb[59].mxu0  ;;  %v11352_v36 = vpop.f32.mrb[58].mxu1  ;;  %v5507_v0 = vmax.f32 %v5314_v3, %v11351_v11  ;;  %v19932_v48 = vld [vmem:[#allocation43_spill] sm:$0xff]  ;;  %v19943_v16 = vld [vmem:[#allocation25_spill] sm:$0xff] }
 0x4f6   : > { %v5313_v7 = vmax.f32 %v19918_v5, %v5260_v17  ;;  %v5505_v19 = vmax.f32 %v5312_v62, %v5450_v4  ;;  %11793 = vmatprep.subr.bf16.mxu1 %v19919_v15  ;;  %9318 = vmax.xlane.f32.xlu1 %v5502_v34  ;;  %v5453_v58 = vpop.f32.mrb[59].mxu1  ;;  %v12274_v34 = vld [vmem:[#allocation3 + $0x128] sm:$0xff]   ;;  %v19934_v62 = vld [vmem:[#allocation68_spill] sm:$0xff]  ;;  %v12276_v17 = vld [vmem:[#allocation3 + $0x138] sm:$0xff]  }
 0x4f7   : > { %v5508_v6 = vmax.f32 %v5315_v35, %v11352_v36  ;;  %11666 = vmatmul.mubr.bf16.gmra.mrb[164].mxu0 %v12272_v49  ;;  %9328 = vmax.xlane.f32.xlu0 %v5507_v0  ;;  %v19936_v36 = vld [vmem:[#allocation7_spill] sm:$0xff]  ;;  %v19937_v0 = vld [vmem:[#allocation44_spill] sm:$0xff]  ;;  %v12277_v5 = vld [vmem:[#allocation3 + $0x140] sm:$0xff]  }
 0x4f8   : > { %v5506_v61 = vmax.f32 %v5313_v7, %v5453_v58  ;;  %11746 = vmatpush3.bf16.msra.mxu0 %v19916_v18  ;;  %11714 = vmatmul.mubr.bf16.gmra.mrb[164].mxu1 %v12272_v49  ;;  %v19938_v49 = vld [vmem:[#allocation30_spill] sm:$0xff]  ;;  %v16510_v18 = vld [vmem:[#allocation3 + $0x190] sm:$0xff]  }
 0x4f9   : > { %11747 = vmatprep.subr.bf16.mxu0 %v19920_v33  ;;  %11794 = vmatpush3.bf16.msra.mxu1 %v19919_v15  ;;  %19941 = vst [vmem:[#allocation82_spill] sm:$0xff] %v16510_v18 }
 0x4fa   : > { %11795 = vmatprep.subr.bf16.mxu1 %v19921_v10  ;;  %9330 = vmax.xlane.f32.xlu1 %v5508_v6  ;;  %v11307_v14 = vpop.f32.mrb[60].mxu0 }
 0x4fb   : > { %v5318_v41 = vmax.f32 %v19922_v47, %v11307_v14  ;;  %9324 = vmax.xlane.f32.xlu0 %v5505_v19  ;;  %v5273_v57 = vpop.f32.mrb[61].mxu0  ;;  %v11355_v13 = vpop.f32.mrb[60].mxu1  ;;  %11669 = vmatprep.mubr.bf16.mxu0 %v12273_v42  ;;  %v19939_v14 = vld [vmem:[#allocation32_spill] sm:$0xff] }
 0x4fc   : > { %11748 = vmatpush3.bf16.msra.mxu0 %v19920_v33  ;;  %v5316_v63 = vmax.f32 %v19923_v29, %v5273_v57  ;;  %v11308_v32 = vpop.f32.mrb[62].mxu0  ;;  %v5466_v43 = vpop.f32.mrb[61].mxu1  ;;  %11717 = vmatprep.mubr.bf16.mxu1 %v12273_v42  ;;  %v12279_v42 = vld [vmem:[#allocation3 + $0x150] sm:$0xff]  }
 0x4fd   : > { %v5319_v50 = vmax.f32 %v19926_v51, %v11308_v32  ;;  %v5511_v46 = vmax.f32 %v5318_v41, %v11355_v13  ;;  %11749 = vmatprep.subr.bf16.mxu0 %v19927_v23  ;;  %11796 = vmatpush3.bf16.msra.mxu1 %v19921_v10  ;;  %v5276_v1 = vpop.f32.mrb[63].mxu0  ;;  %v11356_v30 = vpop.f32.mrb[62].mxu1  ;;  %v12278_v13 = vld [vmem:[#allocation3 + $0x148] sm:$0xff]  }
 0x4fe   : > { %v5317_v38 = vmax.f32 %v19930_v44, %v5276_v1  ;;  %v5509_v21 = vmax.f32 %v5316_v63, %v5466_v43  ;;  %11797 = vmatprep.subr.bf16.mxu1 %v19931_v28  ;;  %9326 = vmax.xlane.f32.xlu1 %v5506_v61  ;;  %v5469_v25 = vpop.f32.mrb[63].mxu1  ;;  %v16492_v51 = vld [vmem:[#allocation3 + $0x188] sm:$0xff]  }
 0x4ff   : > { %v5512_v52 = vmax.f32 %v5319_v50, %v11356_v30  ;;  %11670 = vmatmul.mubr.bf16.gmra.mrb[168].mxu0 %v12274_v34  ;;  %9336 = vmax.xlane.f32.xlu0 %v5511_v46  ;;  %19940 = vst [vmem:[#allocation83_spill] sm:$0xff] %v16492_v51 }
 0x500   : > { %v5510_v59 = vmax.f32 %v5317_v38, %v5469_v25  ;;  %11750 = vmatpush3.bf16.msra.mxu0 %v19927_v23  ;;  %11718 = vmatmul.mubr.bf16.gmra.mrb[168].mxu1 %v12274_v34 }
 0x501   : > { %11751 = vmatprep.subr.bf16.mxu0 %v19932_v48  ;;  %11798 = vmatpush3.bf16.msra.mxu1 %v19931_v28  ;;  %v12284_v28 = vld [vmem:[#allocation3 + $0x178] sm:$0xff]  }
 0x502   : > { %11799 = vmatprep.subr.bf16.mxu1 %v19933_v31  ;;  %9338 = vmax.xlane.f32.xlu1 %v5512_v52  ;;  %v16350_v24 = vpop.f32.mrb[64].mxu0 }
 0x503   : > { %9332 = vmax.xlane.f32.xlu0 %v5509_v21  ;;  %v16352_v11 = vpop.f32.mrb[64].mxu1  ;;  %v16354_v27 = vpop.f32.mrb[65].mxu0  ;;  %11673 = vmatprep.mubr.bf16.mxu0 %v12275_v53 }
 0x504   : > { %11752 = vmatpush3.bf16.msra.mxu0 %v19932_v48  ;;  %v16359_v40 = vpop.f32.mrb[65].mxu1  ;;  %v16361_v26 = vpop.f32.mrb[66].mxu0  ;;  %11721 = vmatprep.mubr.bf16.mxu1 %v12275_v53 }
 0x505   : > { %11753 = vmatprep.subr.bf16.mxu0 %v19934_v62  ;;  %11800 = vmatpush3.bf16.msra.mxu1 %v19933_v31  ;;  %v16367_v4 = vpop.f32.mrb[66].mxu1  ;;  %v16369_v12 = vpop.f32.mrb[67].mxu0  ;;  %v16527_v31 = vld [vmem:[#allocation3 + $0x198] sm:$0xff]  }
 0x506   : > { %11801 = vmatprep.subr.bf16.mxu1 %v19935_v39  ;;  %9334 = vmax.xlane.f32.xlu1 %v5510_v59  ;;  %v16374_v35 = vpop.f32.mrb[67].mxu1  ;;  %19947 = vst [vmem:[#allocation85_spill] sm:$0xff] %v16527_v31 }
 0x507   : > { %11674 = vmatmul.mubr.bf16.gmra.mrb[172].mxu0 %v12276_v17 }
 0x508   : > { %11754 = vmatpush3.bf16.msra.mxu0 %v19934_v62  ;;  %11722 = vmatmul.mubr.bf16.gmra.mrb[172].mxu1 %v12276_v17  ;;  %v12283_v17 = vld [vmem:[#allocation3 + $0x170] sm:$0xff]  }
 0x509   : > { %11755 = vmatprep.subr.bf16.mxu0 %v19936_v36  ;;  %11802 = vmatpush3.bf16.msra.mxu1 %v19935_v39  ;;  %v12282_v39 = vld [vmem:[#allocation3 + $0x168] sm:$0xff]  }
 0x50a   : > { %11803 = vmatprep.subr.bf16.mxu1 %v19937_v0  ;;  %v16382_v37 = vpop.f32.mrb[68].mxu0  ;;  %11677 = vmatprep.mubr.bf16.mxu0 %v12277_v5 }
 0x50b   : > { %v16384_v7 = vpop.f32.mrb[68].mxu1  ;;  %v16386_v19 = vpop.f32.mrb[69].mxu0  ;;  %11725 = vmatprep.mubr.bf16.mxu1 %v12277_v5 }
 0x50c   : > { %11756 = vmatpush3.bf16.msra.mxu0 %v19936_v36  ;;  %v16391_v58 = vpop.f32.mrb[69].mxu1  ;;  %v16393_v6 = vpop.f32.mrb[70].mxu0 }
 0x50d   : > { %11804 = vmatpush3.bf16.msra.mxu1 %v19937_v0  ;;  %11837 = vmatprep.subr.bf16.mxu0 %v19938_v49  ;;  %v16399_v33 = vpop.f32.mrb[70].mxu1  ;;  %v16401_v10 = vpop.f32.mrb[71].mxu0 }
 0x50e   : > { %11885 = vmatprep.subr.bf16.mxu1 %v19939_v14  ;;  %v16406_v41 = vpop.f32.mrb[71].mxu1 }
 0x50f   : > { %11678 = vmatmul.mubr.bf16.gmra.mrb[176].mxu0 %v12278_v13 }
 0x510   : > { %11726 = vmatmul.mubr.bf16.gmra.mrb[176].mxu1 %v12278_v13  ;;  %11681 = vmatprep.mubr.bf16.mxu0 %v12279_v42 }
 0x511   : > { %11729 = vmatprep.mubr.bf16.mxu1 %v12279_v42 }
 0x512   : > { %v16410_v29 = vpop.f32.mrb[72].mxu0 }
 0x513   : > { %v16412_v63 = vpop.f32.mrb[72].mxu1  ;;  %v16414_v32 = vpop.f32.mrb[73].mxu0 }
 0x514   : > { %v16418_v55 = vpop.f32.mrb[73].mxu1  ;;  %v16420_v45 = vpop.f32.mrb[74].mxu0 }
 0x515   : > { %v16424_v50 = vpop.f32.mrb[74].mxu1  ;;  %v16426_v46 = vpop.f32.mrb[75].mxu0 }
 0x516   : > { %v16430_v1 = vpop.f32.mrb[75].mxu1 }
 0x517   : > { %11682 = vmatmul.mubr.bf16.gmra.mrb[180].mxu0 %v12280_v56 }
 0x518   : > { %11730 = vmatmul.mubr.bf16.gmra.mrb[180].mxu1 %v12280_v56  ;;  %11685 = vmatprep.mubr.bf16.mxu0 %v12281_v2 }
 0x519   : > { %11733 = vmatprep.mubr.bf16.mxu1 %v12281_v2  ;;  %v16470_v2 = vld [vmem:[#allocation3 + $0x180] sm:$0xff]  }
 0x51a   : > { %v16434_v44 = vpop.f32.mrb[76].mxu0 }
 0x51b   : > { %v16436_v38 = vpop.f32.mrb[76].mxu1  ;;  %v16438_v21 = vpop.f32.mrb[77].mxu0 }
 0x51c   : > { %v16442_v25 = vpop.f32.mrb[77].mxu1  ;;  %v16444_v52 = vpop.f32.mrb[78].mxu0 }
 0x51d   : > { %v16448_v59 = vpop.f32.mrb[78].mxu1  ;;  %v16450_v48 = vpop.f32.mrb[79].mxu0 }
 0x51e   : > { %v16454_v53 = vpop.f32.mrb[79].mxu1 }
 0x51f   : > { %11686 = vmatmul.mubr.bf16.gmra.mrb[184].mxu0 %v12282_v39 }
 0x520   : > { %11734 = vmatmul.mubr.bf16.gmra.mrb[184].mxu1 %v12282_v39  ;;  %11689 = vmatprep.mubr.bf16.mxu0 %v12283_v17 }
 0x521   : > { %11737 = vmatprep.mubr.bf16.mxu1 %v12283_v17 }
 0x522   : > { %v16458_v36 = vpop.f32.mrb[80].mxu0 }
 0x523   : > { %v16460_v0 = vpop.f32.mrb[80].mxu1  ;;  %v16462_v5 = vpop.f32.mrb[81].mxu0 }
 0x524   : > { %v16466_v42 = vpop.f32.mrb[81].mxu1  ;;  %v16468_v56 = vpop.f32.mrb[82].mxu0 }
 0x525   : > { %v16474_v62 = vpop.f32.mrb[82].mxu1  ;;  %v16476_v17 = vpop.f32.mrb[83].mxu0 }
 0x526   : > { %v16480_v34 = vpop.f32.mrb[83].mxu1 }
 0x527   : > { %11690 = vmatmul.mubr.bf16.gmra.mrb[188].mxu0 %v12284_v28 }
 0x528   : > { %11738 = vmatmul.mubr.bf16.gmra.mrb[188].mxu1 %v12284_v28  ;;  %11757 = vmatprep.mubr.bf16.mxu0 %v16470_v2  ;;  %v19942_v28 = vld [vmem:[#allocation34_spill] sm:$0xff] }
 0x529   : > { %11805 = vmatprep.mubr.bf16.mxu1 %v16470_v2 }
 0x52a   : > { %v16486_v39 = vpop.f32.mrb[84].mxu0 }
 0x52b   : > { %v16488_v30 = vpop.f32.mrb[84].mxu1  ;;  %v16490_v23 = vpop.f32.mrb[85].mxu0 }
 0x52c   : > { %v16496_v43 = vpop.f32.mrb[85].mxu1  ;;  %v16498_v13 = vpop.f32.mrb[86].mxu0 }
 0x52d   : > { %v16502_v57 = vpop.f32.mrb[86].mxu1  ;;  %v16504_v47 = vpop.f32.mrb[87].mxu0 }
 0x52e   : > { %v16508_v15 = vpop.f32.mrb[87].mxu1 }
 0x52f   : > { %11758 = vmatmul.mubr.bf16.vlgmr.msra.gmra.mrb[192].mxu0 %v16492_v51 }
 0x530   : > { %11838 = vmatpush3.bf16.msra.mxu0 %v19938_v49  ;;  %11806 = vmatmul.mubr.bf16.vlgmr.msra.gmra.mrb[192].mxu1 %v16492_v51 }
 0x531   : > { %11839 = vmatprep.subr.bf16.mxu0 %v19942_v28  ;;  %11886 = vmatpush3.bf16.msra.mxu1 %v19939_v14 }
 0x532   : > { %11887 = vmatprep.subr.bf16.mxu1 %v19943_v16  ;;  %v16520_v61 = vpop.f32.mrb[88].mxu0  ;;  %11761 = vmatprep.mubr.bf16.mxu0 %v16510_v18 }
 0x533   : > { %19944 = vst [vmem:[#allocation86_spill] sm:$0xff] %v16520_v61  ;;  %v16523_v9 = vpop.f32.mrb[88].mxu1  ;;  %v16525_v3 = vpop.f32.mrb[89].mxu0  ;;  %11809 = vmatprep.mubr.bf16.mxu1 %v16510_v18  ;;  %v19953_v18 = vld [vmem:[#allocation26_spill] sm:$0xff]  ;;  %v16567_v61 = vld [vmem:[#allocation3 + $0x1a8] sm:$0xff]  }
 0x534   : > { %19945 = vst [vmem:[#allocation84_spill] sm:$0xff] %v16523_v9  ;;  %19946 = vst [vmem:[#allocation77_spill] sm:$0xff] %v16525_v3  ;;  %11840 = vmatpush3.bf16.msra.mxu0 %v19942_v28  ;;  %v16533_v14 = vpop.f32.mrb[89].mxu1  ;;  %v16535_v22 = vpop.f32.mrb[90].mxu0  ;;  %v16550_v9 = vld [vmem:[#allocation3 + $0x1a0] sm:$0xff]  }
 0x535   : > { %19948 = vst [vmem:[#allocation92_spill] sm:$0xff] %v16533_v14  ;;  %19949 = vst [vmem:[#allocation87_spill] sm:$0xff] %v16535_v22  ;;  %11841 = vmatprep.subr.bf16.mxu0 %v19950_v8  ;;  %11888 = vmatpush3.bf16.msra.mxu1 %v19943_v16  ;;  %v16541_v60 = vpop.f32.mrb[90].mxu1  ;;  %v16543_v54 = vpop.f32.mrb[91].mxu0  ;;  %v19956_v16 = vld [vmem:[#allocation50_spill] sm:$0xff] }
 0x536   : > { %19951 = vst [vmem:[#allocation94_spill] sm:$0xff] %v16541_v60  ;;  %19952 = vst [vmem:[#allocation96_spill] sm:$0xff] %v16543_v54  ;;  %11889 = vmatprep.subr.bf16.mxu1 %v19953_v18  ;;  %v16548_v49 = vpop.f32.mrb[91].mxu1  ;;  %v19969_v54 = vld [vmem:[#allocation8_spill] sm:$0xff] }
 0x537   : > { %19954 = vst [vmem:[#allocation97_spill] sm:$0xff] %v16548_v49  ;;  %19955 = vst [vmem:[#allocation98_spill] sm:$0xff] %v16550_v9  ;;  %11762 = vmatmul.mubr.bf16.gmra.mrb[196].mxu0 %v16527_v31  ;;  %v19963_v49 = vld [vmem:[#allocation62_spill] sm:$0xff] }
 0x538   : > { %11842 = vmatpush3.bf16.msra.mxu0 %v19950_v8  ;;  %11810 = vmatmul.mubr.bf16.gmra.mrb[196].mxu1 %v16527_v31  ;;  %19960 = vst [vmem:[#allocation99_spill] sm:$0xff] %v16567_v61 }
 0x539   : > { %11843 = vmatprep.subr.bf16.mxu0 %v19956_v16  ;;  %11890 = vmatpush3.bf16.msra.mxu1 %v19953_v18 }
 0x53a   : > { %11891 = vmatprep.subr.bf16.mxu1 %v19957_v20  ;;  %v16560_v28 = vpop.f32.mrb[92].mxu0  ;;  %11765 = vmatprep.mubr.bf16.mxu0 %v16550_v9 }
 0x53b   : > { %19958 = vst [vmem:[#allocation19_spill] sm:$0xff] %v16560_v28  ;;  %v16563_v60 = vpop.f32.mrb[92].mxu1  ;;  %v16565_v22 = vpop.f32.mrb[93].mxu0  ;;  %11813 = vmatprep.mubr.bf16.mxu1 %v16550_v9  ;;  %v19966_v9 = vld [vmem:[#allocation6_spill] sm:$0xff] }
 0x53c   : > { %19959 = vst [vmem:[#allocation31_spill] sm:$0xff] %v16563_v60  ;;  %11844 = vmatpush3.bf16.msra.mxu0 %v19956_v16  ;;  %v16573_v18 = vpop.f32.mrb[93].mxu1  ;;  %v16575_v31 = vpop.f32.mrb[94].mxu0  ;;  %v16590_v60 = vld [vmem:[#allocation3 + $0x1b0] sm:$0xff]  }
 0x53d   : > { %19961 = vst [vmem:[#allocation91_spill] sm:$0xff] %v16573_v18  ;;  %19962 = vst [vmem:[#allocation100_spill] sm:$0xff] %v16575_v31  ;;  %11845 = vmatprep.subr.bf16.mxu0 %v19963_v49  ;;  %11892 = vmatpush3.bf16.msra.mxu1 %v19957_v20  ;;  %v16581_v14 = vpop.f32.mrb[94].mxu1  ;;  %v16583_v3 = vpop.f32.mrb[95].mxu0  ;;  %v19968_v20 = vld [vmem:[#allocation64_spill] sm:$0xff] }
 0x53e   : > { %19964 = vst [vmem:[#allocation88_spill] sm:$0xff] %v16581_v14  ;;  %19965 = vst [vmem:[#allocation61_spill] sm:$0xff] %v16583_v3  ;;  %11893 = vmatprep.subr.bf16.mxu1 %v19966_v9  ;;  %v16588_v8 = vpop.f32.mrb[95].mxu1  ;;  %v19970_v14 = vmax.f32 %v16350_v24, %v16352_v11  ;;  %v19973_v24 = vmax.f32 %v16361_v26, %v16367_v4 }
 0x53f   : > { %19967 = vst [vmem:[#allocation101_spill] sm:$0xff] %v16588_v8  ;;  %11766 = vmatmul.mubr.bf16.gmra.mrb[200].mxu0 %v16567_v61 }
 0x540   : > { %11846 = vmatpush3.bf16.msra.mxu0 %v19963_v49  ;;  %11814 = vmatmul.mubr.bf16.gmra.mrb[200].mxu1 %v16567_v61  ;;  %v16608_v49 = vld [vmem:[#allocation3 + $0x1b8] sm:$0xff]  }
 0x541   : > { %11847 = vmatprep.subr.bf16.mxu0 %v19968_v20  ;;  %11894 = vmatpush3.bf16.msra.mxu1 %v19966_v9  ;;  %19971 = vst [vmem:[#allocation103_spill] sm:$0xff] %v16608_v49  ;;  %v19972_v9 = vmax.f32 %v16354_v27, %v16359_v40 }
 0x542   : > { %11895 = vmatprep.subr.bf16.mxu1 %v19969_v54  ;;  %v11471_v16 = vpop.f32.mrb[96].mxu0  ;;  %11769 = vmatprep.mubr.bf16.mxu0 %v16590_v60 }
 0x543   : > { %v16604_v31 = vmax.f32 %v19970_v14, %v11471_v16  ;;  %v6125_v28 = vpop.f32.mrb[97].mxu0  ;;  %v16606_v8 = vpop.f32.mrb[96].mxu1  ;;  %11817 = vmatprep.mubr.bf16.mxu1 %v16590_v60  ;;  %v19974_v16 = vld [vmem:[#allocation27_spill] sm:$0xff] }
 0x544   : > { %v16614_v61 = vmax.f32 %v19972_v9, %v6125_v28  ;;  %11848 = vmatpush3.bf16.msra.mxu0 %v19968_v20  ;;  %v11472_v3 = vpop.f32.mrb[98].mxu0  ;;  %v16617_v18 = vpop.f32.mrb[97].mxu1  ;;  %v19975_v28 = vmax.f32 %v16369_v12, %v16374_v35  ;;  %v16640_v9 = vld [vmem:[#allocation3 + $0x1c0] sm:$0xff]   ;;  %v19979_v12 = vld [vmem:[#allocation59_spill] sm:$0xff]  ;;  %v19980_v35 = vld [vmem:[#allocation9_spill] sm:$0xff] }
 0x545   : > { %v16622_v11 = vmax.f32 %v19973_v24, %v11472_v3  ;;  %11849 = vmatprep.subr.bf16.mxu0 %v19974_v16  ;;  %11896 = vmatpush3.bf16.msra.mxu1 %v19969_v54  ;;  %v6128_v27 = vpop.f32.mrb[99].mxu0  ;;  %v16628_v40 = vpop.f32.mrb[98].mxu1  ;;  %v19976_v3 = vld [vmem:[#allocation12_spill] sm:$0xff]  ;;  %19978 = vst [vmem:[#allocation90_spill] sm:$0xff] %v16640_v9 }
 0x546   : > { %v16633_v20 = vmax.f32 %v19975_v28, %v6128_v27  ;;  %11897 = vmatprep.subr.bf16.mxu1 %v19976_v3  ;;  %v16638_v4 = vpop.f32.mrb[99].mxu1  ;;  %v19981_v28 = vmax.f32 %v16382_v37, %v16384_v7  ;;  %v16671_v37 = vld [vmem:[#allocation3 + $0x1d0] sm:$0xff]   ;;  %v19985_v7 = vmax.f32 %v16393_v6, %v16399_v33  ;;  %v16709_v6 = vld [vmem:[#allocation3 + $0x1d8] sm:$0xff]  }
 0x547   : > { %19977 = vst [vmem:[#allocation95_spill] sm:$0xff] %v16638_v4  ;;  %11770 = vmatmul.mubr.bf16.gmra.mrb[204].mxu0 %v16608_v49  ;;  %19984 = vst [vmem:[#allocation72_spill] sm:$0xff] %v16671_v37  ;;  %v19988_v33 = vld [vmem:[#allocation28_spill] sm:$0xff] }
 0x548   : > { %11850 = vmatpush3.bf16.msra.mxu0 %v19974_v16  ;;  %11818 = vmatmul.mubr.bf16.gmra.mrb[204].mxu1 %v16608_v49  ;;  %v16660_v16 = vld [vmem:[#allocation3 + $0x1c8] sm:$0xff]   ;;  %19991 = vst [vmem:[#allocation102_spill] sm:$0xff] %v16709_v6 }
 0x549   : > { %11851 = vmatprep.subr.bf16.mxu0 %v19979_v12  ;;  %11898 = vmatpush3.bf16.msra.mxu1 %v19976_v3  ;;  %19982 = vst [vmem:[#allocation89_spill] sm:$0xff] %v16660_v16  ;;  %v19983_v3 = vmax.f32 %v16386_v19, %v16391_v58  ;;  %v19986_v19 = vld [vmem:[#allocation13_spill] sm:$0xff] }
 0x54a   : > { %11899 = vmatprep.subr.bf16.mxu1 %v19980_v35  ;;  %v11475_v27 = vpop.f32.mrb[100].mxu0  ;;  %11773 = vmatprep.mubr.bf16.mxu0 %v16640_v9 }
 0x54b   : > { %v16656_v54 = vmax.f32 %v19981_v28, %v11475_v27  ;;  %v6141_v26 = vpop.f32.mrb[101].mxu0  ;;  %v16658_v24 = vpop.f32.mrb[100].mxu1  ;;  %11821 = vmatprep.mubr.bf16.mxu1 %v16640_v9 }
 0x54c   : > { %v16666_v14 = vmax.f32 %v19983_v3, %v6141_v26  ;;  %11852 = vmatpush3.bf16.msra.mxu0 %v19979_v12  ;;  %v11476_v49 = vpop.f32.mrb[102].mxu0  ;;  %v16669_v4 = vpop.f32.mrb[101].mxu1  ;;  %v19987_v12 = vmax.f32 %v16401_v10, %v16406_v41  ;;  %v19990_v41 = vmax.f32 %v16410_v29, %v16412_v63  ;;  %v19994_v63 = vmax.f32 %v16420_v45, %v16424_v50 }
 0x54d   : > { %v16676_v27 = vmax.f32 %v19985_v7, %v11476_v49  ;;  %11900 = vmatpush3.bf16.msra.mxu1 %v19980_v35  ;;  %11933 = vmatprep.subr.bf16.mxu0 %v19986_v19  ;;  %v6144_v58 = vpop.f32.mrb[103].mxu0  ;;  %v16682_v26 = vpop.f32.mrb[102].mxu1  ;;  %v19992_v7 = vmax.f32 %v16414_v32, %v16418_v55  ;;  %v19995_v55 = vmax.f32 %v16426_v46, %v16430_v1 }
 0x54e   : > { %v16687_v3 = vmax.f32 %v19987_v12, %v6144_v58  ;;  %11981 = vmatprep.subr.bf16.mxu1 %v19988_v33  ;;  %v16692_v49 = vpop.f32.mrb[103].mxu1  ;;  %v19997_v46 = vmax.f32 %v16438_v21, %v16442_v25  ;;  %v20000_v21 = vmax.f32 %v16444_v52, %v16448_v59  ;;  %v20004_v52 = vmax.f32 %v16462_v5, %v16466_v42 }
 0x54f   : > { %19989 = vst [vmem:[#allocation93_spill] sm:$0xff] %v16692_v49  ;;  %11774 = vmatmul.mubr.bf16.gmra.mrb[208].mxu0 %v16660_v16 }
 0x550   : > { %11822 = vmatmul.mubr.bf16.gmra.mrb[208].mxu1 %v16660_v16  ;;  %11777 = vmatprep.mubr.bf16.mxu0 %v16671_v37 }
 0x551   : > { %11825 = vmatprep.mubr.bf16.mxu1 %v16671_v37  ;;  %v16716_v37 = vld [vmem:[#allocation3 + $0x1e0] sm:$0xff]  }
 0x552   : > { %v11479_v10 = vpop.f32.mrb[104].mxu0  ;;  %19993 = vst [vmem:[#allocation104_spill] sm:$0xff] %v16716_v37 }
 0x553   : > { %v16705_v58 = vmax.f32 %v19990_v41, %v11479_v10  ;;  %v6157_v12 = vpop.f32.mrb[105].mxu0  ;;  %v16707_v35 = vpop.f32.mrb[104].mxu1 }
 0x554   : > { %v16714_v28 = vmax.f32 %v19992_v7, %v6157_v12  ;;  %v9281_v16 = vpop.xlane.xlu0 %9280  ;;  %v11480_v49 = vpop.f32.mrb[106].mxu0 }
 0x555   : > { %9503 = vst.msk [vmem:[%s15516_s30 + $0x110] sm:$0xff] %vm9468_vm1, %v9281_v16  ;;  %v16725_v10 = vmax.f32 %v19994_v63, %v11480_v49  ;;  %v6160_v41 = vpop.f32.mrb[107].mxu0  ;;  %v16727_v32 = vpop.f32.mrb[105].mxu1  ;;  %v19996_v63 = vmax.f32 %v16434_v44, %v16436_v38  ;;  %v16757_v16 = vld [vmem:[#allocation3 + $0x1e8] sm:$0xff]  }
 0x556   : > { %v16732_v7 = vmax.f32 %v19995_v55, %v6160_v41  ;;  %v16736_v29 = vpop.f32.mrb[106].mxu1 }
 0x557   : > { %v9283_v45 = vpop.xlane.xlu1 %9282  ;;  %v16740_v50 = vpop.f32.mrb[107].mxu1  ;;  %11778 = vmatmul.mubr.bf16.gmra.mrb[212].mxu0 %v16709_v6 }
 0x558   : > { %9504 = vst.msk [vmem:[%s15516_s30 + $0x118] sm:$0xff] %vm9468_vm1, %v9283_v45  ;;  %11826 = vmatmul.mubr.bf16.gmra.mrb[212].mxu1 %v16709_v6  ;;  %v9277_v1 = vpop.xlane.xlu0 %9276  ;;  %11781 = vmatprep.mubr.bf16.mxu0 %v16716_v37  ;;  %v16768_v6 = vld [vmem:[#allocation3 + $0x1f0] sm:$0xff]  }
 0x559   : > { %9501 = vst.msk [vmem:[%s15516_s30 + $0x100] sm:$0xff] %vm9468_vm1, %v9277_v1  ;;  %11829 = vmatprep.mubr.bf16.mxu1 %v16716_v37  ;;  %19999 = vst [vmem:[#allocation36_spill] sm:$0xff] %v16768_v6 }
 0x55a   : > { %v11483_v49 = vpop.f32.mrb[108].mxu0 }
 0x55b   : > { %v16755_v41 = vmax.f32 %v19996_v63, %v11483_v49  ;;  %v9279_v55 = vpop.xlane.xlu1 %9278  ;;  %v6173_v45 = vpop.f32.mrb[109].mxu0 }
 0x55c   : > { %9502 = vst.msk [vmem:[%s15516_s30 + $0x108] sm:$0xff] %vm9468_vm1, %v9279_v55  ;;  %v16764_v12 = vmax.f32 %v19997_v46, %v6173_v45  ;;  %v16766_v1 = vpop.f32.mrb[108].mxu1  ;;  %v9289_v37 = vpop.xlane.xlu0 %9288  ;;  %v20001_v45 = vmax.f32 %v16450_v48, %v16454_v53 }
 0x55d   : > { %19998 = vst [vmem:[#allocation71_spill] sm:$0xff] %v16766_v1  ;;  %9507 = vst.msk [vmem:[%s15516_s30 + $0x130] sm:$0xff] %vm9468_vm1, %v9289_v37  ;;  %v11484_v38 = vpop.f32.mrb[110].mxu0  ;;  %v16774_v49 = vpop.f32.mrb[109].mxu1 }
 0x55e   : > { %v16779_v25 = vmax.f32 %v20000_v21, %v11484_v38  ;;  %v6176_v46 = vpop.f32.mrb[111].mxu0  ;;  %v16783_v55 = vpop.f32.mrb[110].mxu1  ;;  %v20002_v38 = vmax.f32 %v16458_v36, %v16460_v0 }
 0x55f   : > { %v16788_v44 = vmax.f32 %v20001_v45, %v6176_v46  ;;  %v9291_v37 = vpop.xlane.xlu1 %9290  ;;  %v16790_v1 = vpop.f32.mrb[111].mxu1  ;;  %11782 = vmatmul.mubr.bf16.gmra.mrb[216].mxu0 %v16757_v16 }
 0x560   : > { %9508 = vst.msk [vmem:[%s15516_s30 + $0x138] sm:$0xff] %vm9468_vm1, %v9291_v37  ;;  %11830 = vmatmul.mubr.bf16.gmra.mrb[216].mxu1 %v16757_v16  ;;  %v9285_v59 = vpop.xlane.xlu0 %9284  ;;  %11785 = vmatprep.mubr.bf16.mxu0 %v16768_v6  ;;  %v16809_v37 = vld [vmem:[#allocation3 + $0x1f8] sm:$0xff]  }
 0x561   : > { %9505 = vst.msk [vmem:[%s15516_s30 + $0x120] sm:$0xff] %vm9468_vm1, %v9285_v59  ;;  %11833 = vmatprep.mubr.bf16.mxu1 %v16768_v6  ;;  %20003 = vst [vmem:[#allocation20_spill] sm:$0xff] %v16809_v37 }
 0x562   : > { %v11487_v53 = vpop.f32.mrb[112].mxu0 }
 0x563   : > { %v16807_v21 = vmax.f32 %v20002_v38, %v11487_v53  ;;  %v9287_v46 = vpop.xlane.xlu1 %9286  ;;  %v6189_v45 = vpop.f32.mrb[113].mxu0  ;;  %v20006_v38 = vmax.f32 %v16468_v56, %v16474_v62 }
 0x564   : > { %9506 = vst.msk [vmem:[%s15516_s30 + $0x128] sm:$0xff] %vm9468_vm1, %v9287_v46  ;;  %v16816_v48 = vmax.f32 %v20004_v52, %v6189_v45  ;;  %v16818_v59 = vpop.f32.mrb[112].mxu1  ;;  %v9297_v63 = vpop.xlane.xlu0 %9296  ;;  %v20007_v45 = vmax.f32 %v16476_v17, %v16480_v34 }
 0x565   : > { %20005 = vst [vmem:[#allocation73_spill] sm:$0xff] %v16818_v59  ;;  %9511 = vst.msk [vmem:[%s15516_s30 + $0x150] sm:$0xff] %vm9468_vm1, %v9297_v63  ;;  %v11488_v0 = vpop.f32.mrb[114].mxu0  ;;  %v16824_v53 = vpop.f32.mrb[113].mxu1 }
 0x566   : > { %v16829_v46 = vmax.f32 %v20006_v38, %v11488_v0  ;;  %v6192_v5 = vpop.f32.mrb[115].mxu0  ;;  %v16833_v52 = vpop.f32.mrb[114].mxu1  ;;  %v20008_v0 = vmax.f32 %v16486_v39, %v16488_v30 }
 0x567   : > { %v16838_v36 = vmax.f32 %v20007_v45, %v6192_v5  ;;  %v9299_v63 = vpop.xlane.xlu1 %9298  ;;  %v16840_v59 = vpop.f32.mrb[115].mxu1  ;;  %11786 = vmatmul.mubr.bf16.gmra.mrb[220].mxu0 %v16809_v37 }
 0x568   : > { %9512 = vst.msk [vmem:[%s15516_s30 + $0x158] sm:$0xff] %vm9468_vm1, %v9299_v63  ;;  %11834 = vmatmul.mubr.bf16.gmra.mrb[220].mxu1 %v16809_v37  ;;  %v9293_v56 = vpop.xlane.xlu0 %9292  ;;  %11853 = vmatprep.mubr.bf16.mxu0 %v16470_v2  ;;  %v20009_v63 = vmax.f32 %v16490_v23, %v16496_v43 }
 0x569   : > { %9509 = vst.msk [vmem:[%s15516_s30 + $0x140] sm:$0xff] %vm9468_vm1, %v9293_v56  ;;  %11901 = vmatprep.mubr.bf16.mxu1 %v16470_v2 }
 0x56a   : > { %v11491_v17 = vpop.f32.mrb[116].mxu0 }
 0x56b   : > { %v16857_v38 = vmax.f32 %v20008_v0, %v11491_v17  ;;  %v9295_v5 = vpop.xlane.xlu1 %9294  ;;  %v6205_v45 = vpop.f32.mrb[117].mxu0  ;;  %v20011_v17 = vmax.f32 %v16498_v13, %v16502_v57 }
 0x56c   : > { %9510 = vst.msk [vmem:[%s15516_s30 + $0x148] sm:$0xff] %vm9468_vm1, %v9295_v5  ;;  %v16864_v62 = vmax.f32 %v20009_v63, %v6205_v45  ;;  %v16866_v34 = vpop.f32.mrb[116].mxu1  ;;  %v9305_v56 = vpop.xlane.xlu0 %9304  ;;  %v20014_v45 = vmax.f32 %v16504_v47, %v16508_v15  ;;  %v20017_v47 = vld [vmem:[#allocation14_spill] sm:$0xff]  ;;  %v20025_v15 = vld [vmem:[#allocation92_spill] sm:$0xff] }
 0x56d   : > { %9515 = vst.msk [vmem:[%s15516_s30 + $0x170] sm:$0xff] %vm9468_vm1, %v9305_v56  ;;  %v11492_v30 = vpop.f32.mrb[118].mxu0  ;;  %v16872_v39 = vpop.f32.mrb[117].mxu1 }
 0x56e   : > { %20010 = vst [vmem:[#allocation74_spill] sm:$0xff] %v16872_v39  ;;  %v16877_v0 = vmax.f32 %v20011_v17, %v11492_v30  ;;  %v6208_v43 = vpop.f32.mrb[119].mxu0  ;;  %v16881_v5 = vpop.f32.mrb[118].mxu1  ;;  %v20018_v30 = vld [vmem:[#allocation29_spill] sm:$0xff] }
 0x56f   : > { %20013 = vst [vmem:[#allocation21_spill] sm:$0xff] %v16881_v5  ;;  %v16886_v63 = vmax.f32 %v20014_v45, %v6208_v43  ;;  %v9307_v56 = vpop.xlane.xlu1 %9306  ;;  %v16888_v42 = vpop.f32.mrb[119].mxu1  ;;  %11854 = vmatmul.mubr.bf16.vlgmr.msra.gmra.mrb[224].mxu0 %v16492_v51  ;;  %v20019_v43 = vld [vmem:[#allocation82_spill] sm:$0xff] }
 0x570   : > { %20012 = vst [vmem:[#allocation75_spill] sm:$0xff] %v16877_v0  ;;  %20016 = vst [vmem:[#allocation22_spill] sm:$0xff] %v16888_v42  ;;  %11934 = vmatpush3.bf16.msra.mxu0 %v19986_v19  ;;  %11902 = vmatmul.mubr.bf16.vlgmr.msra.gmra.mrb[224].mxu1 %v16492_v51  ;;  %v9301_v13 = vpop.xlane.xlu0 %9300  ;;  %v20020_v45 = vld [vmem:[#allocation86_spill] sm:$0xff]  ;;  %v20021_v19 = vld [vmem:[#allocation84_spill] sm:$0xff] }
 0x571   : > { %20015 = vst [vmem:[#allocation76_spill] sm:$0xff] %v16886_v63  ;;  %9516 = vst.msk [vmem:[%s15516_s30 + $0x178] sm:$0xff] %vm9468_vm1, %v9307_v56  ;;  %11935 = vmatprep.subr.bf16.mxu0 %v20017_v47  ;;  %11982 = vmatpush3.bf16.msra.mxu1 %v19988_v33  ;;  %v20022_v56 = vmax.f32 %v20020_v45, %v20021_v19  ;;  %v20024_v33 = vld [vmem:[#allocation77_spill] sm:$0xff]  ;;  %v20028_v45 = vld [vmem:[#allocation63_spill] sm:$0xff] }
 0x572   : > { %9513 = vst.msk [vmem:[%s15516_s30 + $0x160] sm:$0xff] %vm9468_vm1, %v9301_v13  ;;  %11983 = vmatprep.subr.bf16.mxu1 %v20018_v30  ;;  %v11495_v17 = vpop.f32.mrb[120].mxu0  ;;  %11857 = vmatprep.mubr.bf16.mxu0 %v20019_v43  ;;  %v20026_v13 = vmax.f32 %v20024_v33, %v20025_v15  ;;  %v20031_v15 = vld [vmem:[#allocation94_spill] sm:$0xff] }
 0x573   : > { %v16908_v57 = vmax.f32 %v20022_v56, %v11495_v17  ;;  %v9303_v23 = vpop.xlane.xlu1 %9302  ;;  %v6221_v51 = vpop.f32.mrb[121].mxu0  ;;  %11905 = vmatprep.mubr.bf16.mxu1 %v20019_v43  ;;  %v20034_v17 = vld [vmem:[#allocation15_spill] sm:$0xff] }
 0x574   : > { %9514 = vst.msk [vmem:[%s15516_s30 + $0x168] sm:$0xff] %vm9468_vm1, %v9303_v23  ;;  %v16916_v42 = vmax.f32 %v20026_v13, %v6221_v51  ;;  %11936 = vmatpush3.bf16.msra.mxu0 %v20017_v47  ;;  %v16919_v63 = vpop.f32.mrb[120].mxu1  ;;  %v9313_v5 = vpop.xlane.xlu0 %9312  ;;  %v20030_v51 = vld [vmem:[#allocation87_spill] sm:$0xff] }
 0x575   : > { %20023 = vst [vmem:[#allocation23_spill] sm:$0xff] %v16908_v57  ;;  %20027 = vst [vmem:[#allocation38_spill] sm:$0xff] %v16919_v63  ;;  %11937 = vmatprep.subr.bf16.mxu0 %v20028_v45  ;;  %11984 = vmatpush3.bf16.msra.mxu1 %v20018_v30  ;;  %v11496_v23 = vpop.f32.mrb[122].mxu0  ;;  %v16927_v19 = vpop.f32.mrb[121].mxu1  ;;  %v20032_v56 = vmax.f32 %v20030_v51, %v20031_v15  ;;  %v20036_v30 = vld [vmem:[#allocation96_spill] sm:$0xff]  ;;  %v20037_v57 = vld [vmem:[#allocation97_spill] sm:$0xff] }
 0x576   : > { %9519 = vst.msk [vmem:[%s15516_s30 + $0x190] sm:$0xff] %vm9468_vm1, %v9313_v5  ;;  %20029 = vst [vmem:[#allocation78_spill] sm:$0xff] %v16927_v19  ;;  %v6224_v33 = vpop.f32.mrb[123].mxu0  ;;  %11985 = vmatprep.subr.bf16.mxu1 %v20034_v17  ;;  %v16937_v63 = vpop.f32.mrb[122].mxu1  ;;  %v20038_v5 = vmax.f32 %v20036_v30, %v20037_v57  ;;  %v20041_v51 = vld [vmem:[#allocation85_spill] sm:$0xff] }
 0x577   : > { %v16932_v47 = vmax.f32 %v20032_v56, %v11496_v23  ;;  %20035 = vst [vmem:[#allocation52_spill] sm:$0xff] %v16937_v63  ;;  %v9315_v0 = vpop.xlane.xlu1 %9314  ;;  %v16944_v39 = vpop.f32.mrb[123].mxu1  ;;  %11858 = vmatmul.mubr.bf16.gmra.mrb[228].mxu0 %v20041_v51  ;;  %v20042_v56 = vld [vmem:[#allocation67_spill] sm:$0xff] }
 0x578   : > { %v16942_v43 = vmax.f32 %v20038_v5, %v6224_v33  ;;  %20040 = vst [vmem:[#allocation81_spill] sm:$0xff] %v16944_v39  ;;  %9520 = vst.msk [vmem:[%s15516_s30 + $0x198] sm:$0xff] %vm9468_vm1, %v9315_v0  ;;  %11938 = vmatpush3.bf16.msra.mxu0 %v20028_v45  ;;  %11906 = vmatmul.mubr.bf16.gmra.mrb[228].mxu1 %v20041_v51  ;;  %v9309_v15 = vpop.xlane.xlu0 %9308  ;;  %v20043_v33 = vld [vmem:[#allocation69_spill] sm:$0xff]  ;;  %v20044_v5 = vld [vmem:[#allocation98_spill] sm:$0xff] }
 0x579   : > { %20033 = vst [vmem:[#allocation79_spill] sm:$0xff] %v16932_v47  ;;  %11939 = vmatprep.subr.bf16.mxu0 %v20042_v56  ;;  %11986 = vmatpush3.bf16.msra.mxu1 %v20034_v17  ;;  %9517 = vst.msk [vmem:[%s15516_s30 + $0x180] sm:$0xff] %vm9468_vm1, %v9309_v15  ;;  %v20045_v0 = vld [vmem:[#allocation19_spill] sm:$0xff] }
 0x57a   : > { %20039 = vst [vmem:[#allocation80_spill] sm:$0xff] %v16942_v43  ;;  %11987 = vmatprep.subr.bf16.mxu1 %v20043_v33  ;;  %v11499_v30 = vpop.f32.mrb[124].mxu0  ;;  %11861 = vmatprep.mubr.bf16.mxu0 %v20044_v5  ;;  %v20046_v45 = vld [vmem:[#allocation31_spill] sm:$0xff] }
 0x57b   : > { %v20047_v23 = vmax.f32 %v20045_v0, %v20046_v45  ;;  %v9311_v51 = vpop.xlane.xlu1 %9310  ;;  %v6237_v63 = vpop.f32.mrb[125].mxu0  ;;  %11909 = vmatprep.mubr.bf16.mxu1 %v20044_v5  ;;  %v20049_v17 = vld [vmem:[#allocation91_spill] sm:$0xff] }
 0x57c   : > { %9518 = vst.msk [vmem:[%s15516_s30 + $0x188] sm:$0xff] %vm9468_vm1, %v9311_v51  ;;  %v20050_v15 = vmax.f32 %v16565_v22, %v20049_v17  ;;  %11940 = vmatpush3.bf16.msra.mxu0 %v20042_v56  ;;  %v16975_v39 = vpop.f32.mrb[124].mxu1  ;;  %v9321_v43 = vpop.xlane.xlu0 %9320  ;;  %v20053_v22 = vld [vmem:[#allocation100_spill] sm:$0xff] }
 0x57d   : > { %v16964_v13 = vmax.f32 %v20047_v23, %v11499_v30  ;;  %20051 = vst [vmem:[#allocation43_spill] sm:$0xff] %v16975_v39  ;;  %v20052_v30 = vld [vmem:[#allocation39_spill] sm:$0xff]  ;;  %11988 = vmatpush3.bf16.msra.mxu1 %v20043_v33  ;;  %9523 = vst.msk [vmem:[%s15516_s30 + $0x1b0] sm:$0xff] %vm9468_vm1, %v9321_v43  ;;  %v11500_v51 = vpop.f32.mrb[126].mxu0  ;;  %v16983_v0 = vpop.f32.mrb[125].mxu1  ;;  %v20056_v23 = vld [vmem:[#allocation18_spill] sm:$0xff] }
 0x57e   : > { %v16972_v57 = vmax.f32 %v20050_v15, %v6237_v63  ;;  %11941 = vmatprep.subr.bf16.mxu0 %v20052_v30  ;;  %v20054_v63 = vld [vmem:[#allocation88_spill] sm:$0xff]  ;;  %v6240_v17 = vpop.f32.mrb[127].mxu0  ;;  %11989 = vmatprep.subr.bf16.mxu1 %v20056_v23  ;;  %v16993_v39 = vpop.f32.mrb[126].mxu1  ;;  %v20057_v33 = vld [vmem:[#allocation61_spill] sm:$0xff] }
 0x57f   : > { %20048 = vst [vmem:[#allocation54_spill] sm:$0xff] %v16964_v13  ;;  %v20055_v45 = vmax.f32 %v20053_v22, %v20054_v63  ;;  %v20058_v13 = vld [vmem:[#allocation101_spill] sm:$0xff]  ;;  %v9323_v47 = vpop.xlane.xlu1 %9322  ;;  %v17000_v19 = vpop.f32.mrb[127].mxu1  ;;  %v20060_v22 = vld [vmem:[#allocation99_spill] sm:$0xff] }
 0x580   : > { %v20059_v43 = vmax.f32 %v20057_v33, %v20058_v13  ;;  %11862 = vmatmul.mubr.bf16.gmra.mrb[232].mxu0 %v20060_v22  ;;  %9524 = vst.msk [vmem:[%s15516_s30 + $0x1b8] sm:$0xff] %vm9468_vm1, %v9323_v47  ;;  %11910 = vmatmul.mubr.bf16.gmra.mrb[232].mxu1 %v20060_v22  ;;  %v9317_v63 = vpop.xlane.xlu0 %9316  ;;  %v20063_v47 = vmax.f32 %v16604_v31, %v16606_v8  ;;  %v20067_v8 = vld [vmem:[#allocation66_spill] sm:$0xff] }
 0x581   : > { %v16988_v56 = vmax.f32 %v20055_v45, %v11500_v51  ;;  %11942 = vmatpush3.bf16.msra.mxu0 %v20052_v30  ;;  %v20061_v45 = vld [vmem:[#allocation10_spill] sm:$0xff]  ;;  %11990 = vmatpush3.bf16.msra.mxu1 %v20056_v23  ;;  %9521 = vst.msk [vmem:[%s15516_s30 + $0x1a0] sm:$0xff] %vm9468_vm1, %v9317_v63  ;;  %v20065_v23 = vmax.f32 %v16614_v61, %v16617_v18 }
 0x582   : > { %v16998_v5 = vmax.f32 %v20059_v43, %v6240_v17  ;;  %11943 = vmatprep.subr.bf16.mxu0 %v20061_v45  ;;  %v20062_v17 = vld [vmem:[#allocation49_spill] sm:$0xff]  ;;  %v11567_v33 = vpop.f32.mrb[128].mxu0  ;;  %11865 = vmatprep.mubr.bf16.mxu0 %v16590_v60  ;;  %v20068_v61 = vmax.f32 %v16622_v11, %v16628_v40  ;;  %v20072_v11 = vld [vmem:[#allocation103_spill] sm:$0xff] }
 0x583   : > { %11991 = vmatprep.subr.bf16.mxu1 %v20062_v17  ;;  %v17020_v30 = vmax.f32 %v20063_v47, %v11567_v33  ;;  %v9319_v43 = vpop.xlane.xlu1 %9318  ;;  %v6511_v51 = vpop.f32.mrb[129].mxu0  ;;  %11913 = vmatprep.mubr.bf16.mxu1 %v16590_v60 }
 0x584   : > { %9522 = vst.msk [vmem:[%s15516_s30 + $0x1a8] sm:$0xff] %vm9468_vm1, %v9319_v43  ;;  %v17028_v63 = vmax.f32 %v20065_v23, %v6511_v51  ;;  %v17031_v13 = vpop.f32.mrb[128].mxu1  ;;  %v9329_v15 = vpop.xlane.xlu0 %9328  ;;  %v20069_v43 = vld [vmem:[#allocation17_spill] sm:$0xff] }
 0x585   : > { %20064 = vst [vmem:[#allocation58_spill] sm:$0xff] %v17020_v30  ;;  %11944 = vmatpush3.bf16.msra.mxu0 %v20061_v45  ;;  %20066 = vst [vmem:[#allocation68_spill] sm:$0xff] %v17031_v13  ;;  %11992 = vmatpush3.bf16.msra.mxu1 %v20062_v17  ;;  %v11568_v33 = vpop.f32.mrb[130].mxu0  ;;  %v17039_v47 = vpop.f32.mrb[129].mxu1  ;;  %v20070_v17 = vld [vmem:[#allocation95_spill] sm:$0xff] }
 0x586   : > { %11945 = vmatprep.subr.bf16.mxu0 %v20067_v8  ;;  %9527 = vst.msk [vmem:[%s15516_s30 + $0x1d0] sm:$0xff] %vm9468_vm1, %v9329_v15  ;;  %v17044_v18 = vmax.f32 %v20068_v61, %v11568_v33  ;;  %v6514_v51 = vpop.f32.mrb[131].mxu0  ;;  %11993 = vmatprep.subr.bf16.mxu1 %v20069_v43  ;;  %v17049_v23 = vpop.f32.mrb[130].mxu1  ;;  %v20071_v15 = vmax.f32 %v16633_v20, %v20070_v17  ;;  %v20073_v61 = vld [vmem:[#allocation55_spill] sm:$0xff] }
 0x587   : > { %v9331_v13 = vpop.xlane.xlu1 %9330  ;;  %v17056_v30 = vpop.f32.mrb[131].mxu1 }
 0x588   : > { %v17054_v31 = vmax.f32 %v20071_v15, %v6514_v51  ;;  %11866 = vmatmul.mubr.bf16.gmra.mrb[236].mxu0 %v20072_v11  ;;  %9528 = vst.msk [vmem:[%s15516_s30 + $0x1d8] sm:$0xff] %vm9468_vm1, %v9331_v13  ;;  %11914 = vmatmul.mubr.bf16.gmra.mrb[236].mxu1 %v20072_v11  ;;  %v9325_v33 = vpop.xlane.xlu0 %9324  ;;  %v20074_v51 = vld [vmem:[#allocation24_spill] sm:$0xff]  ;;  %v20075_v13 = vmax.f32 %v16656_v54, %v16658_v24  ;;  %v20078_v24 = vld [vmem:[#allocation45_spill] sm:$0xff] }
 0x589   : > { %11946 = vmatpush3.bf16.msra.mxu0 %v20067_v8  ;;  %11994 = vmatpush3.bf16.msra.mxu1 %v20069_v43  ;;  %9525 = vst.msk [vmem:[%s15516_s30 + $0x1c0] sm:$0xff] %vm9468_vm1, %v9325_v33  ;;  %v20076_v43 = vmax.f32 %v16666_v14, %v16669_v4  ;;  %v20079_v14 = vmax.f32 %v16676_v27, %v16682_v26  ;;  %v20084_v27 = vld [vmem:[#allocation89_spill] sm:$0xff] }
 0x58a   : > { %11947 = vmatprep.subr.bf16.mxu0 %v20073_v61  ;;  %11995 = vmatprep.subr.bf16.mxu1 %v20074_v51  ;;  %v11571_v17 = vpop.f32.mrb[132].mxu0 }
 0x58b   : > { %11869 = vmatprep.mubr.bf16.mxu0 %v16640_v9  ;;  %v17076_v8 = vmax.f32 %v20075_v13, %v11571_v17  ;;  %v9327_v15 = vpop.xlane.xlu1 %9326  ;;  %v6527_v40 = vpop.f32.mrb[133].mxu0  ;;  %11917 = vmatprep.mubr.bf16.mxu1 %v16640_v9 }
 0x58c   : > { %9526 = vst.msk [vmem:[%s15516_s30 + $0x1c8] sm:$0xff] %vm9468_vm1, %v9327_v15  ;;  %v17084_v33 = vmax.f32 %v20076_v43, %v6527_v40  ;;  %v17087_v20 = vpop.f32.mrb[132].mxu1  ;;  %v9337_v45 = vpop.xlane.xlu0 %9336  ;;  %v20080_v15 = vld [vmem:[#allocation60_spill] sm:$0xff]  ;;  %v20081_v43 = vld [vmem:[#allocation93_spill] sm:$0xff] }
 0x58d   : > { %11948 = vmatpush3.bf16.msra.mxu0 %v20073_v61  ;;  %20077 = vst [vmem:[#allocation70_spill] sm:$0xff] %v17087_v20  ;;  %11996 = vmatpush3.bf16.msra.mxu1 %v20074_v51  ;;  %9531 = vst.msk [vmem:[%s15516_s30 + $0x1f0] sm:$0xff] %vm9468_vm1, %v9337_v45  ;;  %v11572_v17 = vpop.f32.mrb[134].mxu0  ;;  %v17095_v13 = vpop.f32.mrb[133].mxu1  ;;  %v20082_v45 = vmax.f32 %v16687_v3, %v20081_v43  ;;  %v20086_v43 = vmax.f32 %v16705_v58, %v16707_v35 }
 0x58e   : > { %12029 = vmatprep.subr.bf16.mxu0 %v20078_v24  ;;  %v17100_v4 = vmax.f32 %v20079_v14, %v11572_v17  ;;  %v6530_v40 = vpop.f32.mrb[135].mxu0  ;;  %12077 = vmatprep.subr.bf16.mxu1 %v20080_v15  ;;  %v17105_v51 = vpop.f32.mrb[134].mxu1  ;;  %v20085_v14 = vld [vmem:[#allocation72_spill] sm:$0xff]  ;;  %v20087_v61 = vmax.f32 %v16714_v28, %v16727_v32  ;;  %v20095_v32 = vmax.f32 %v16764_v12, %v16774_v49 }
 0x58f   : > { %v17110_v54 = vmax.f32 %v20082_v45, %v6530_v40  ;;  %v9339_v9 = vpop.xlane.xlu1 %9338  ;;  %v17112_v20 = vpop.f32.mrb[135].mxu1 }
 0x590   : > { %20083 = vst [vmem:[#allocation7_spill] sm:$0xff] %v17112_v20  ;;  %11870 = vmatmul.mubr.bf16.gmra.mrb[240].mxu0 %v20084_v27  ;;  %9532 = vst.msk [vmem:[%s15516_s30 + $0x1f8] sm:$0xff] %vm9468_vm1, %v9339_v9  ;;  %11918 = vmatmul.mubr.bf16.gmra.mrb[240].mxu1 %v20084_v27  ;;  %v9333_v17 = vpop.xlane.xlu0 %9332 }
 0x591   : > { %11873 = vmatprep.mubr.bf16.mxu0 %v20085_v14  ;;  %9529 = vst.msk [vmem:[%s15516_s30 + $0x1e0] sm:$0xff] %vm9468_vm1, %v9333_v17  ;;  %11921 = vmatprep.mubr.bf16.mxu1 %v20085_v14  ;;  %v20088_v17 = vmax.f32 %v16725_v10, %v16736_v29 }
 0x592   : > { %v11575_v40 = vpop.f32.mrb[136].mxu0 }
 0x593   : > { %v17129_v45 = vmax.f32 %v20086_v43, %v11575_v40  ;;  %v9335_v26 = vpop.xlane.xlu1 %9334  ;;  %v6543_v9 = vpop.f32.mrb[137].mxu0 }
 0x594   : > { %9530 = vst.msk [vmem:[%s15516_s30 + $0x1e8] sm:$0xff] %vm9468_vm1, %v9335_v26  ;;  %v17136_v27 = vmax.f32 %v20087_v61, %v6543_v9  ;;  %v11576_v3 = vpop.f32.mrb[138].mxu0  ;;  %v17138_v20 = vpop.f32.mrb[136].mxu1  ;;  %v20089_v26 = vmax.f32 %v16732_v7, %v16740_v50  ;;  %v20092_v7 = vld [vmem:[#allocation104_spill] sm:$0xff]  ;;  %v20093_v9 = vld [vmem:[#allocation71_spill] sm:$0xff] }
 0x595   : > { %v17143_v14 = vmax.f32 %v20088_v17, %v11576_v3  ;;  %v6546_v58 = vpop.f32.mrb[139].mxu0  ;;  %v17147_v40 = vpop.f32.mrb[137].mxu1  ;;  %v20091_v3 = vld [vmem:[#allocation102_spill] sm:$0xff]  ;;  %v20094_v17 = vmax.f32 %v16755_v41, %v20093_v9  ;;  %v20101_v41 = vmax.f32 %v16829_v46, %v16833_v52 }
 0x596   : > { %v17152_v28 = vmax.f32 %v20089_v26, %v6546_v58  ;;  %v17156_v61 = vpop.f32.mrb[138].mxu1 }
 0x597   : > { %v17160_v10 = vpop.f32.mrb[139].mxu1 }
 0x598   : > { %20090 = vst [vmem:[#allocation44_spill] sm:$0xff] %v17160_v10  ;;  %11874 = vmatmul.mubr.bf16.gmra.mrb[244].mxu0 %v20091_v3  ;;  %11922 = vmatmul.mubr.bf16.gmra.mrb[244].mxu1 %v20091_v3 }
 0x599   : > { %11877 = vmatprep.mubr.bf16.mxu0 %v20092_v7  ;;  %11925 = vmatprep.mubr.bf16.mxu1 %v20092_v7  ;;  %v20096_v7 = vmax.f32 %v16779_v25, %v16783_v55 }
 0x59a   : > { %v11579_v50 = vpop.f32.mrb[140].mxu0 }
 0x59b   : > { %v17171_v58 = vmax.f32 %v20094_v17, %v11579_v50  ;;  %v6559_v26 = vpop.f32.mrb[141].mxu0  ;;  %v17173_v29 = vpop.f32.mrb[140].mxu1  ;;  %v20097_v17 = vmax.f32 %v16788_v44, %v16790_v1  ;;  %v20098_v44 = vld [vmem:[#allocation73_spill] sm:$0xff] }
 0x59c   : > { %v17178_v35 = vmax.f32 %v20095_v32, %v6559_v26  ;;  %v11580_v43 = vpop.f32.mrb[142].mxu0  ;;  %v17180_v3 = vpop.f32.mrb[141].mxu1 }
 0x59d   : > { %v17185_v10 = vmax.f32 %v20096_v7, %v11580_v43  ;;  %v6562_v50 = vpop.f32.mrb[143].mxu0  ;;  %v17189_v9 = vpop.f32.mrb[142].mxu1  ;;  %v20099_v43 = vmax.f32 %v16807_v21, %v20098_v44  ;;  %v20109_v21 = vld [vmem:[#allocation75_spill] sm:$0xff] }
 0x59e   : > { %v17194_v12 = vmax.f32 %v20097_v17, %v6562_v50  ;;  %v17198_v32 = vpop.f32.mrb[143].mxu1  ;;  %v20100_v17 = vmax.f32 %v16816_v48, %v16824_v53 }
 0x5a0   : > { %11878 = vmatmul.mubr.bf16.gmra.mrb[248].mxu0 %v16757_v16  ;;  %11926 = vmatmul.mubr.bf16.gmra.mrb[248].mxu1 %v16757_v16 }
 0x5a1   : > { %11881 = vmatprep.mubr.bf16.mxu0 %v16768_v6  ;;  %11929 = vmatprep.mubr.bf16.mxu1 %v16768_v6 }
 0x5a2   : > { %v11583_v1 = vpop.f32.mrb[144].mxu0 }
 0x5a3   : > { %v17211_v7 = vmax.f32 %v20099_v43, %v11583_v1  ;;  %v6575_v26 = vpop.f32.mrb[145].mxu0  ;;  %v17213_v50 = vpop.f32.mrb[144].mxu1  ;;  %v20103_v43 = vmax.f32 %v16838_v36, %v16840_v59  ;;  %v20106_v36 = vmax.f32 %v16857_v38, %v16866_v34 }
 0x5a4   : > { %v17218_v25 = vmax.f32 %v20100_v17, %v6575_v26  ;;  %v11584_v55 = vpop.f32.mrb[146].mxu0  ;;  %v17220_v49 = vpop.f32.mrb[145].mxu1 }
 0x5a5   : > { %v17225_v6 = vmax.f32 %v20101_v41, %v11584_v55  ;;  %v6578_v1 = vpop.f32.mrb[147].mxu0  ;;  %v17229_v44 = vpop.f32.mrb[146].mxu1 }
 0x5a6   : > { %20102 = vst [vmem:[#allocation30_spill] sm:$0xff] %v17229_v44  ;;  %v17234_v48 = vmax.f32 %v20103_v43, %v6578_v1  ;;  %v17238_v26 = vpop.f32.mrb[147].mxu1  ;;  %v20107_v1 = vld [vmem:[#allocation74_spill] sm:$0xff] }
 0x5a7   : > { %20105 = vst [vmem:[#allocation34_spill] sm:$0xff] %v17238_v26  ;;  %v20108_v43 = vmax.f32 %v16864_v62, %v20107_v1 }
 0x5a8   : > { %20104 = vst [vmem:[#allocation32_spill] sm:$0xff] %v17234_v48  ;;  %11882 = vmatmul.mubr.bf16.gmra.mrb[252].mxu0 %v16809_v37  ;;  %11930 = vmatmul.mubr.bf16.gmra.mrb[252].mxu1 %v16809_v37  ;;  %v20110_v37 = vld [vmem:[#allocation21_spill] sm:$0xff]  ;;  %v20115_v48 = vld [vmem:[#allocation22_spill] sm:$0xff] }
 0x5a9   : > { %11949 = vmatprep.mubr.bf16.mxu0 %v16470_v2  ;;  %11997 = vmatprep.mubr.bf16.mxu1 %v16470_v2  ;;  %v20111_v2 = vmax.f32 %v20109_v21, %v20110_v37  ;;  %v20119_v21 = vld [vmem:[#allocation83_spill] sm:$0xff] }
 0x5aa   : > { %v11587_v59 = vpop.f32.mrb[148].mxu0 }
 0x5ab   : > { %v17251_v41 = vmax.f32 %v20106_v36, %v11587_v59  ;;  %v6591_v55 = vpop.f32.mrb[149].mxu0  ;;  %v17253_v17 = vpop.f32.mrb[148].mxu1  ;;  %v20114_v36 = vld [vmem:[#allocation76_spill] sm:$0xff] }
 0x5ac   : > { %v17258_v46 = vmax.f32 %v20108_v43, %v6591_v55  ;;  %v11588_v52 = vpop.f32.mrb[150].mxu0  ;;  %v17260_v53 = vpop.f32.mrb[149].mxu1  ;;  %v20116_v44 = vmax.f32 %v20114_v36, %v20115_v48  ;;  %v20120_v48 = vld [vmem:[#allocation11_spill] sm:$0xff]  ;;  %v20124_v36 = vld [vmem:[#allocation38_spill] sm:$0xff] }
 0x5ad   : > { %v17265_v26 = vmax.f32 %v20111_v2, %v11588_v52  ;;  %v6594_v38 = vpop.f32.mrb[151].mxu0  ;;  %v17269_v59 = vpop.f32.mrb[150].mxu1  ;;  %v20122_v2 = vld [vmem:[#allocation82_spill] sm:$0xff] }
 0x5ae   : > { %20113 = vst [vmem:[#allocation37_spill] sm:$0xff] %v17269_v59  ;;  %v17274_v62 = vmax.f32 %v20116_v44, %v6594_v38  ;;  %v17278_v1 = vpop.f32.mrb[151].mxu1  ;;  %v20121_v44 = vld [vmem:[#allocation46_spill] sm:$0xff]  ;;  %v20123_v38 = vld [vmem:[#allocation23_spill] sm:$0xff] }
 0x5af   : > { %20112 = vst [vmem:[#allocation25_spill] sm:$0xff] %v17265_v26  ;;  %20118 = vst [vmem:[#allocation50_spill] sm:$0xff] %v17278_v1  ;;  %v20125_v37 = vmax.f32 %v20123_v38, %v20124_v36  ;;  %v20129_v59 = vld [vmem:[#allocation79_spill] sm:$0xff]  ;;  %v20130_v26 = vld [vmem:[#allocation52_spill] sm:$0xff] }
 0x5b0   : > { %20117 = vst [vmem:[#allocation26_spill] sm:$0xff] %v17274_v62  ;;  %11950 = vmatmul.mubr.bf16.vlgmr.msra.gmra.mrb[0].mxu0 %v20119_v21  ;;  %11998 = vmatmul.mubr.bf16.vlgmr.msra.gmra.mrb[0].mxu1 %v20119_v21  ;;  %v20131_v38 = vmax.f32 %v20129_v59, %v20130_v26  ;;  %v20133_v36 = vld [vmem:[#allocation33_spill] sm:$0xff]  ;;  %v20144_v26 = vld [vmem:[#allocation54_spill] sm:$0xff] }
 0x5b1   : > { %12030 = vmatpush3.bf16.msra.mxu0 %v20078_v24  ;;  %12078 = vmatpush3.bf16.msra.mxu1 %v20080_v15  ;;  %v20126_v24 = vld [vmem:[#allocation78_spill] sm:$0xff]  ;;  %v20138_v59 = vld [vmem:[#allocation65_spill] sm:$0xff] }
 0x5b2   : > { %12031 = vmatprep.subr.bf16.mxu0 %v20120_v48  ;;  %12079 = vmatprep.subr.bf16.mxu1 %v20121_v44  ;;  %v11591_v43 = vpop.f32.mrb[152].mxu0  ;;  %v20127_v21 = vmax.f32 %v16916_v42, %v20126_v24 }
 0x5b3   : > { %11953 = vmatprep.mubr.bf16.mxu0 %v20122_v2  ;;  %v17294_v55 = vmax.f32 %v20125_v37, %v11591_v43  ;;  %v6607_v34 = vpop.f32.mrb[153].mxu0  ;;  %v17296_v52 = vpop.f32.mrb[152].mxu1  ;;  %12001 = vmatprep.mubr.bf16.mxu1 %v20122_v2  ;;  %v20135_v2 = vld [vmem:[#allocation80_spill] sm:$0xff]  ;;  %v20140_v43 = vld [vmem:[#allocation85_spill] sm:$0xff] }
 0x5b4   : > { %v17302_v1 = vmax.f32 %v20127_v21, %v6607_v34  ;;  %v11592_v15 = vpop.f32.mrb[154].mxu0  ;;  %v17305_v62 = vpop.f32.mrb[153].mxu1 }
 0x5b5   : > { %12032 = vmatpush3.bf16.msra.mxu0 %v20120_v48  ;;  %20128 = vst [vmem:[#allocation51_spill] sm:$0xff] %v17305_v62  ;;  %v17310_v37 = vmax.f32 %v20131_v38, %v11592_v15  ;;  %12080 = vmatpush3.bf16.msra.mxu1 %v20121_v44  ;;  %v6610_v42 = vpop.f32.mrb[155].mxu0  ;;  %v17316_v34 = vpop.f32.mrb[154].mxu1  ;;  %v20136_v48 = vld [vmem:[#allocation81_spill] sm:$0xff]  ;;  %v20145_v38 = vld [vmem:[#allocation43_spill] sm:$0xff] }
 0x5b6   : > { %12033 = vmatprep.subr.bf16.mxu0 %v20133_v36  ;;  %20134 = vst [vmem:[#allocation6_spill] sm:$0xff] %v17316_v34  ;;  %v20137_v24 = vmax.f32 %v20135_v2, %v20136_v48  ;;  %12081 = vmatprep.subr.bf16.mxu1 %v20138_v59  ;;  %v17326_v15 = vpop.f32.mrb[155].mxu1  ;;  %v20142_v2 = vld [vmem:[#allocation48_spill] sm:$0xff]  ;;  %v20146_v34 = vmax.f32 %v20144_v26, %v20145_v38 }
 0x5b7   : > { %20132 = vst [vmem:[#allocation62_spill] sm:$0xff] %v17310_v37  ;;  %20139 = vst [vmem:[#allocation64_spill] sm:$0xff] %v17326_v15  ;;  %v20148_v26 = vmax.f32 %v16988_v56, %v16993_v39  ;;  %v20154_v56 = vld [vmem:[#allocation40_spill] sm:$0xff] }
 0x5b8   : > { %v17321_v21 = vmax.f32 %v20137_v24, %v6610_v42  ;;  %11954 = vmatmul.mubr.bf16.gmra.mrb[4].mxu0 %v20140_v43  ;;  %12002 = vmatmul.mubr.bf16.gmra.mrb[4].mxu1 %v20140_v43  ;;  %v20141_v42 = vld [vmem:[#allocation47_spill] sm:$0xff]  ;;  %v20143_v24 = vld [vmem:[#allocation98_spill] sm:$0xff]  ;;  %v20147_v43 = vmax.f32 %v16972_v57, %v16983_v0 }
 0x5b9   : > { %12034 = vmatpush3.bf16.msra.mxu0 %v20133_v36  ;;  %12082 = vmatpush3.bf16.msra.mxu1 %v20138_v59 }
 0x5ba   : > { %12035 = vmatprep.subr.bf16.mxu0 %v20141_v42  ;;  %12083 = vmatprep.subr.bf16.mxu1 %v20142_v2  ;;  %v11595_v48 = vpop.f32.mrb[156].mxu0 }
 0x5bb   : > { %11957 = vmatprep.mubr.bf16.mxu0 %v20143_v24  ;;  %v17342_v37 = vmax.f32 %v20146_v34, %v11595_v48  ;;  %v6623_v62 = vpop.f32.mrb[157].mxu0  ;;  %v17344_v44 = vpop.f32.mrb[156].mxu1  ;;  %12005 = vmatprep.mubr.bf16.mxu1 %v20143_v24  ;;  %v20150_v48 = vld [vmem:[#allocation16_spill] sm:$0xff] }
 0x5bc   : > { %v17350_v36 = vmax.f32 %v20147_v43, %v6623_v62  ;;  %v11596_v59 = vpop.f32.mrb[158].mxu0  ;;  %v17353_v15 = vpop.f32.mrb[157].mxu1  ;;  %v20152_v62 = vmax.f32 %v16998_v5, %v17000_v19  ;;  %v20156_v19 = vld [vmem:[#allocation53_spill] sm:$0xff] }
 0x5bd   : > { %12036 = vmatpush3.bf16.msra.mxu0 %v20141_v42  ;;  %v17358_v34 = vmax.f32 %v20148_v26, %v11596_v59  ;;  %12084 = vmatpush3.bf16.msra.mxu1 %v20142_v2  ;;  %v6626_v57 = vpop.f32.mrb[159].mxu0  ;;  %v17364_v0 = vpop.f32.mrb[158].mxu1  ;;  %v20157_v5 = vld [vmem:[#allocation41_spill] sm:$0xff]  ;;  %v20158_v26 = vld [vmem:[#allocation58_spill] sm:$0xff] }
 0x5be   : > { %12037 = vmatprep.subr.bf16.mxu0 %v20150_v48  ;;  %20151 = vst [vmem:[#allocation27_spill] sm:$0xff] %v17364_v0  ;;  %v17369_v42 = vmax.f32 %v20152_v62, %v6626_v57  ;;  %12085 = vmatprep.subr.bf16.mxu1 %v20154_v56  ;;  %v17374_v24 = vpop.f32.mrb[159].mxu1  ;;  %v20159_v57 = vld [vmem:[#allocation68_spill] sm:$0xff] }
 0x5bf   : > { %20149 = vst [vmem:[#allocation8_spill] sm:$0xff] %v17358_v34  ;;  %20155 = vst [vmem:[#allocation59_spill] sm:$0xff] %v17374_v24  ;;  %v20160_v62 = vmax.f32 %v20158_v26, %v20159_v57  ;;  %v20162_v24 = vmax.f32 %v17044_v18, %v17049_v23  ;;  %v20163_v34 = vld [vmem:[#allocation42_spill] sm:$0xff]  ;;  %v20166_v23 = vld [vmem:[#allocation56_spill] sm:$0xff] }
 0x5c0   : > { %20153 = vst [vmem:[#allocation12_spill] sm:$0xff] %v17369_v42  ;;  %11958 = vmatmul.mubr.bf16.gmra.mrb[8].mxu0 %v20060_v22  ;;  %12006 = vmatmul.mubr.bf16.gmra.mrb[8].mxu1 %v20060_v22  ;;  %v20161_v22 = vmax.f32 %v17028_v63, %v17039_v47 }
 0x5c1   : > { %12038 = vmatpush3.bf16.msra.mxu0 %v20150_v48  ;;  %12086 = vmatpush3.bf16.msra.mxu1 %v20154_v56 }
 0x5c2   : > { %12039 = vmatprep.subr.bf16.mxu0 %v20156_v19  ;;  %12087 = vmatprep.subr.bf16.mxu1 %v20157_v5  ;;  %v11663_v59 = vpop.f32.mrb[160].mxu0 }
 0x5c3   : > { %11961 = vmatprep.mubr.bf16.mxu0 %v16590_v60  ;;  %v7026_v43 = vmax.f32 %v20160_v62, %v11663_v59  ;;  %v6897_v39 = vpop.f32.mrb[161].mxu0  ;;  %v11711_v38 = vpop.f32.mrb[160].mxu1  ;;  %12009 = vmatprep.mubr.bf16.mxu1 %v16590_v60  ;;  %v20164_v60 = vmax.f32 %v17054_v31, %v17056_v30  ;;  %v20168_v31 = vld [vmem:[#allocation70_spill] sm:$0xff] }
 0x5c4   : > { %v7024_v48 = vmax.f32 %v20161_v22, %v6897_v39  ;;  %v11664_v56 = vpop.f32.mrb[162].mxu0  ;;  %v7090_v2 = vpop.f32.mrb[161].mxu1  ;;  %v20165_v39 = vld [vmem:[#allocation35_spill] sm:$0xff]  ;;  %v20172_v22 = vmax.f32 %v17100_v4, %v17105_v51  ;;  %v20176_v4 = vld [vmem:[#allocation72_spill] sm:$0xff] }
 0x5c5   : > { %12040 = vmatpush3.bf16.msra.mxu0 %v20156_v19  ;;  %v7027_v42 = vmax.f32 %v20162_v24, %v11664_v56  ;;  %v7219_v0 = vmax.f32 %v7026_v43, %v11711_v38  ;;  %12088 = vmatpush3.bf16.msra.mxu1 %v20157_v5  ;;  %v6900_v59 = vpop.f32.mrb[163].mxu0  ;;  %v11712_v26 = vpop.f32.mrb[162].mxu1  ;;  %v20167_v38 = vld [vmem:[#allocation57_spill] sm:$0xff]  ;;  %v20169_v24 = vmax.f32 %v17076_v8, %v20168_v31 }
 0x5c6   : > { %12041 = vmatprep.subr.bf16.mxu0 %v20163_v34  ;;  %v7025_v63 = vmax.f32 %v20164_v60, %v6900_v59  ;;  %v7217_v47 = vmax.f32 %v7024_v48, %v7090_v2  ;;  %12089 = vmatprep.subr.bf16.mxu1 %v20165_v39  ;;  %v7093_v19 = vpop.f32.mrb[163].mxu1  ;;  %v20170_v2 = vld [vmem:[#allocation90_spill] sm:$0xff] }
 0x5c7   : > { %v7220_v57 = vmax.f32 %v7027_v42, %v11712_v26  ;;  %9344 = vmax.xlane.f32.xlu0 %v7219_v0  ;;  %v20173_v26 = vld [vmem:[#allocation7_spill] sm:$0xff] }
 0x5c8   : > { %11962 = vmatmul.mubr.bf16.gmra.mrb[12].mxu0 %v20072_v11  ;;  %v7218_v18 = vmax.f32 %v7025_v63, %v7093_v19  ;;  %12010 = vmatmul.mubr.bf16.gmra.mrb[12].mxu1 %v20072_v11  ;;  %v20171_v11 = vmax.f32 %v17084_v33, %v17095_v13  ;;  %v20174_v60 = vmax.f32 %v17110_v54, %v20173_v26 }
 0x5c9   : > { %12042 = vmatpush3.bf16.msra.mxu0 %v20163_v34  ;;  %12090 = vmatpush3.bf16.msra.mxu1 %v20165_v39  ;;  %v20175_v39 = vld [vmem:[#allocation89_spill] sm:$0xff]  ;;  %v20177_v54 = vmax.f32 %v17129_v45, %v17138_v20 }
 0x5ca   : > { %12043 = vmatprep.subr.bf16.mxu0 %v20166_v23  ;;  %12091 = vmatprep.subr.bf16.mxu1 %v20167_v38  ;;  %v11667_v30 = vpop.f32.mrb[164].mxu0 }
 0x5cb   : > { %9346 = vmax.xlane.f32.xlu1 %v7220_v57  ;;  %v7030_v42 = vmax.f32 %v20169_v24, %v11667_v30  ;;  %9340 = vmax.xlane.f32.xlu0 %v7217_v47  ;;  %v6913_v43 = vpop.f32.mrb[165].mxu0  ;;  %v11715_v0 = vpop.f32.mrb[164].mxu1 }
 0x5cc   : > { %11965 = vmatprep.mubr.bf16.mxu0 %v20170_v2  ;;  %v7028_v34 = vmax.f32 %v20171_v11, %v6913_v43  ;;  %v11668_v5 = vpop.f32.mrb[166].mxu0  ;;  %v7106_v62 = vpop.f32.mrb[165].mxu1  ;;  %12013 = vmatprep.mubr.bf16.mxu1 %v20170_v2 }
 0x5cd   : > { %12044 = vmatpush3.bf16.msra.mxu0 %v20166_v23  ;;  %v7031_v8 = vmax.f32 %v20172_v22, %v11668_v5  ;;  %v7223_v48 = vmax.f32 %v7030_v42, %v11715_v0  ;;  %12092 = vmatpush3.bf16.msra.mxu1 %v20167_v38  ;;  %v6916_v56 = vpop.f32.mrb[167].mxu0  ;;  %v11716_v59 = vpop.f32.mrb[166].mxu1  ;;  %v20178_v38 = vmax.f32 %v17136_v27, %v17147_v40  ;;  %v20183_v40 = vld [vmem:[#allocation104_spill] sm:$0xff] }
 0x5ce   : > { %v7029_v63 = vmax.f32 %v20174_v60, %v6916_v56  ;;  %v7221_v47 = vmax.f32 %v7028_v34, %v7106_v62  ;;  %v7109_v33 = vpop.f32.mrb[167].mxu1  ;;  %v20179_v42 = vmax.f32 %v17143_v14, %v17156_v61  ;;  %v20180_v34 = vld [vmem:[#allocation44_spill] sm:$0xff] }
 0x5cf   : > { %9342 = vmax.xlane.f32.xlu1 %v7218_v18  ;;  %v7224_v13 = vmax.f32 %v7031_v8, %v11716_v59  ;;  %9352 = vmax.xlane.f32.xlu0 %v7223_v48  ;;  %v20181_v20 = vmax.f32 %v17152_v28, %v20180_v34  ;;  %v20182_v8 = vld [vmem:[#allocation102_spill] sm:$0xff]  ;;  %v20184_v28 = vmax.f32 %v17171_v58, %v17173_v29 }
 0x5d0   : > { %11966 = vmatmul.mubr.bf16.gmra.mrb[16].mxu0 %v20175_v39  ;;  %v7222_v19 = vmax.f32 %v7029_v63, %v7109_v33  ;;  %12014 = vmatmul.mubr.bf16.gmra.mrb[16].mxu1 %v20175_v39  ;;  %v20185_v59 = vmax.f32 %v17178_v35, %v17180_v3  ;;  %v20187_v29 = vmax.f32 %v17194_v12, %v17198_v32  ;;  %v20188_v3 = vld [vmem:[#allocation36_spill] sm:$0xff] }
 0x5d1   : > { %11969 = vmatprep.mubr.bf16.mxu0 %v20176_v4  ;;  %12017 = vmatprep.mubr.bf16.mxu1 %v20176_v4 }
 0x5d2   : > { %v11671_v51 = vpop.f32.mrb[168].mxu0 }
 0x5d3   : > { %9354 = vmax.xlane.f32.xlu1 %v7224_v13  ;;  %v7034_v57 = vmax.f32 %v20177_v54, %v11671_v51  ;;  %9348 = vmax.xlane.f32.xlu0 %v7221_v47  ;;  %v6929_v18 = vpop.f32.mrb[169].mxu0  ;;  %v11719_v23 = vpop.f32.mrb[168].mxu1  ;;  %v20186_v47 = vmax.f32 %v17185_v10, %v17189_v9  ;;  %v20189_v9 = vmax.f32 %v17211_v7, %v17213_v50 }
 0x5d4   : > { %v7032_v30 = vmax.f32 %v20178_v38, %v6929_v18  ;;  %v11672_v31 = vpop.f32.mrb[170].mxu0  ;;  %v7122_v24 = vpop.f32.mrb[169].mxu1  ;;  %v20190_v18 = vmax.f32 %v17218_v25, %v17220_v49  ;;  %v12285_v25 = vld [vmem:[#allocation3 + $0x180] sm:$0xff]  }
 0x5d5   : > { %v7035_v43 = vmax.f32 %v20179_v42, %v11672_v31  ;;  %v7227_v0 = vmax.f32 %v7034_v57, %v11719_v23  ;;  %v6932_v2 = vpop.f32.mrb[171].mxu0  ;;  %v11720_v11 = vpop.f32.mrb[170].mxu1 }
 0x5d6   : > { %v7033_v45 = vmax.f32 %v20181_v20, %v6932_v2  ;;  %v7225_v5 = vmax.f32 %v7032_v30, %v7122_v24  ;;  %v7125_v62 = vpop.f32.mrb[171].mxu1  ;;  %v20193_v2 = vld [vmem:[#allocation32_spill] sm:$0xff] }
 0x5d7   : > { %9350 = vmax.xlane.f32.xlu1 %v7222_v19  ;;  %v7228_v22 = vmax.f32 %v7035_v43, %v11720_v11  ;;  %9360 = vmax.xlane.f32.xlu0 %v7227_v0  ;;  %v20194_v11 = vld [vmem:[#allocation34_spill] sm:$0xff] }
 0x5d8   : > { %11970 = vmatmul.mubr.bf16.gmra.mrb[20].mxu0 %v20182_v8  ;;  %v7226_v27 = vmax.f32 %v7033_v45, %v7125_v62  ;;  %12018 = vmatmul.mubr.bf16.gmra.mrb[20].mxu1 %v20182_v8  ;;  %v20195_v7 = vmax.f32 %v20193_v2, %v20194_v11  ;;  %v20197_v62 = vmax.f32 %v17251_v41, %v17253_v17  ;;  %v12288_v11 = vld [vmem:[#allocation3 + $0x198] sm:$0xff]  }
 0x5d9   : > { %11973 = vmatprep.mubr.bf16.mxu0 %v20183_v40  ;;  %12021 = vmatprep.mubr.bf16.mxu1 %v20183_v40  ;;  %v20198_v40 = vmax.f32 %v17258_v46, %v17260_v53  ;;  %v12287_v46 = vld [vmem:[#allocation3 + $0x190] sm:$0xff]  }
 0x5da   : > { %v11675_v14 = vpop.f32.mrb[172].mxu0 }
 0x5db   : > { %9362 = vmax.xlane.f32.xlu1 %v7228_v22  ;;  %v7038_v61 = vmax.f32 %v20184_v28, %v11675_v14  ;;  %9356 = vmax.xlane.f32.xlu0 %v7225_v5  ;;  %v6945_v48 = vpop.f32.mrb[173].mxu0  ;;  %v11723_v56 = vpop.f32.mrb[172].mxu1  ;;  %v20196_v5 = vld [vmem:[#allocation20_spill] sm:$0xff] }
 0x5dc   : > { %v7036_v26 = vmax.f32 %v20185_v59, %v6945_v48  ;;  %v11676_v60 = vpop.f32.mrb[174].mxu0  ;;  %v7138_v63 = vpop.f32.mrb[173].mxu1  ;;  %v20199_v48 = vld [vmem:[#allocation25_spill] sm:$0xff] }
 0x5dd   : > { %v7039_v33 = vmax.f32 %v20186_v47, %v11676_v60  ;;  %v7231_v13 = vmax.f32 %v7038_v61, %v11723_v56  ;;  %v6948_v39 = vpop.f32.mrb[175].mxu0  ;;  %v11724_v19 = vpop.f32.mrb[174].mxu1  ;;  %v20200_v56 = vld [vmem:[#allocation37_spill] sm:$0xff] }
 0x5de   : > { %v7037_v58 = vmax.f32 %v20187_v29, %v6948_v39  ;;  %v7229_v4 = vmax.f32 %v7036_v26, %v7138_v63  ;;  %v7141_v51 = vpop.f32.mrb[175].mxu1  ;;  %v20201_v59 = vmax.f32 %v20199_v48, %v20200_v56  ;;  %v20219_v48 = vld [vmem:[#allocation59_spill] sm:$0xff] }
 0x5df   : > { %9358 = vmax.xlane.f32.xlu1 %v7226_v27  ;;  %v7232_v54 = vmax.f32 %v7039_v33, %v11724_v19  ;;  %9368 = vmax.xlane.f32.xlu0 %v7231_v13  ;;  %v20202_v33 = vld [vmem:[#allocation26_spill] sm:$0xff] }
 0x5e0   : > { %11974 = vmatmul.mubr.bf16.gmra.mrb[24].mxu0 %v16757_v16  ;;  %v7230_v35 = vmax.f32 %v7037_v58, %v7141_v51  ;;  %12022 = vmatmul.mubr.bf16.gmra.mrb[24].mxu1 %v16757_v16  ;;  %v20191_v16 = vld [vmem:[#allocation30_spill] sm:$0xff]  ;;  %v12286_v58 = vld [vmem:[#allocation3 + $0x188] sm:$0xff]   ;;  %v20205_v51 = vmax.f32 %v17294_v55, %v17296_v52 }
 0x5e1   : > { %11977 = vmatprep.mubr.bf16.mxu0 %v20188_v3  ;;  %12025 = vmatprep.mubr.bf16.mxu1 %v20188_v3  ;;  %v20192_v31 = vmax.f32 %v17225_v6, %v20191_v16  ;;  %v20203_v13 = vld [vmem:[#allocation50_spill] sm:$0xff] }
 0x5e2   : > { %v11679_v10 = vpop.f32.mrb[176].mxu0  ;;  %v20204_v41 = vmax.f32 %v20202_v33, %v20203_v13 }
 0x5e3   : > { %9370 = vmax.xlane.f32.xlu1 %v7232_v54  ;;  %v7042_v12 = vmax.f32 %v20189_v9, %v11679_v10  ;;  %9364 = vmax.xlane.f32.xlu0 %v7229_v4  ;;  %v6961_v32 = vpop.f32.mrb[177].mxu0  ;;  %v11727_v57 = vpop.f32.mrb[176].mxu1  ;;  %v20206_v10 = vld [vmem:[#allocation51_spill] sm:$0xff] }
 0x5e4   : > { %v7040_v23 = vmax.f32 %v20190_v18, %v6961_v32  ;;  %v11680_v38 = vpop.f32.mrb[178].mxu0  ;;  %v7154_v30 = vpop.f32.mrb[177].mxu1  ;;  %v20207_v9 = vmax.f32 %v17302_v1, %v20206_v10  ;;  %v20208_v18 = vld [vmem:[#allocation62_spill] sm:$0xff] }
 0x5e5   : > { %v7043_v24 = vmax.f32 %v20192_v31, %v11680_v38  ;;  %v7235_v42 = vmax.f32 %v7042_v12, %v11727_v57  ;;  %v6964_v43 = vpop.f32.mrb[179].mxu0  ;;  %v11728_v0 = vpop.f32.mrb[178].mxu1 }
 0x5e6   : > { %v7041_v50 = vmax.f32 %v20195_v7, %v6964_v43  ;;  %v7233_v34 = vmax.f32 %v7040_v23, %v7154_v30  ;;  %v7157_v20 = vpop.f32.mrb[179].mxu1  ;;  %v20209_v23 = vld [vmem:[#allocation6_spill] sm:$0xff] }
 0x5e7   : > { %9366 = vmax.xlane.f32.xlu1 %v7230_v35  ;;  %v7236_v45 = vmax.f32 %v7043_v24, %v11728_v0  ;;  %9376 = vmax.xlane.f32.xlu0 %v7235_v42  ;;  %v20210_v38 = vmax.f32 %v20208_v18, %v20209_v23  ;;  %v20211_v42 = vld [vmem:[#allocation64_spill] sm:$0xff]  ;;  %v12289_v7 = vld [vmem:[#allocation3 + $0x1a0] sm:$0xff]  }
 0x5e8   : > { %11978 = vmatmul.mubr.bf16.gmra.mrb[28].mxu0 %v20196_v5  ;;  %v7234_v49 = vmax.f32 %v7041_v50, %v7157_v20  ;;  %12026 = vmatmul.mubr.bf16.gmra.mrb[28].mxu1 %v20196_v5  ;;  %v20212_v55 = vmax.f32 %v17321_v21, %v20211_v42  ;;  %v20214_v5 = vmax.f32 %v17350_v36, %v17353_v15  ;;  %v12291_v36 = vld [vmem:[#allocation3 + $0x1b0] sm:$0xff]  }
 0x5e9   : > { %12045 = vmatprep.mubr.bf16.mxu0 %v12285_v25  ;;  %12093 = vmatprep.mubr.bf16.mxu1 %v12285_v25 }
 0x5ea   : > { %v11683_v6 = vpop.f32.mrb[180].mxu0 }
 0x5eb   : > { %9378 = vmax.xlane.f32.xlu1 %v7236_v45  ;;  %v7046_v22 = vmax.f32 %v20197_v62, %v11683_v6  ;;  %9372 = vmax.xlane.f32.xlu0 %v7233_v34  ;;  %v6977_v8 = vpop.f32.mrb[181].mxu0  ;;  %v11731_v27 = vpop.f32.mrb[180].mxu1  ;;  %v20213_v34 = vmax.f32 %v17342_v37, %v17344_v44  ;;  %v20215_v62 = vld [vmem:[#allocation8_spill] sm:$0xff] }
 0x5ec   : > { %v7044_v14 = vmax.f32 %v20198_v40, %v6977_v8  ;;  %v11684_v28 = vpop.f32.mrb[182].mxu0  ;;  %v7170_v61 = vpop.f32.mrb[181].mxu1 }
 0x5ed   : > { %v7047_v26 = vmax.f32 %v20201_v59, %v11684_v28  ;;  %v7239_v60 = vmax.f32 %v7046_v22, %v11731_v27  ;;  %v6980_v63 = vpop.f32.mrb[183].mxu0  ;;  %v11732_v47 = vpop.f32.mrb[182].mxu1  ;;  %v20216_v22 = vld [vmem:[#allocation27_spill] sm:$0xff] }
 0x5ee   : > { %v7045_v17 = vmax.f32 %v20204_v41, %v6980_v63  ;;  %v7237_v39 = vmax.f32 %v7044_v14, %v7170_v61  ;;  %v7173_v19 = vpop.f32.mrb[183].mxu1  ;;  %v20217_v8 = vmax.f32 %v20215_v62, %v20216_v22  ;;  %v20218_v61 = vld [vmem:[#allocation12_spill] sm:$0xff] }
 0x5ef   : > { %9374 = vmax.xlane.f32.xlu1 %v7234_v49  ;;  %v7240_v29 = vmax.f32 %v7047_v26, %v11732_v47  ;;  %9384 = vmax.xlane.f32.xlu0 %v7239_v60  ;;  %v20220_v37 = vmax.f32 %v20218_v61, %v20219_v48  ;;  %v12290_v60 = vld [vmem:[#allocation3 + $0x1a8] sm:$0xff]   ;;  %v12299_v48 = vld [vmem:[#allocation3 + $0x1f0] sm:$0xff]  }
 0x5f0   : > { %12046 = vmatmul.mubr.bf16.vlgmr.msra.gmra.mrb[32].mxu0 %v12286_v58  ;;  %v7238_v53 = vmax.f32 %v7045_v17, %v7173_v19  ;;  %12094 = vmatmul.mubr.bf16.vlgmr.msra.gmra.mrb[32].mxu1 %v12286_v58  ;;  %v12298_v61 = vld [vmem:[#allocation3 + $0x1e8] sm:$0xff]  }
 0x5f1   : > { %12049 = vmatprep.mubr.bf16.mxu0 %v12287_v46  ;;  %12097 = vmatprep.mubr.bf16.mxu1 %v12287_v46 }
 0x5f2   : > { %v11687_v4 = vpop.f32.mrb[184].mxu0 }
 0x5f3   : > { %9386 = vmax.xlane.f32.xlu1 %v7240_v29  ;;  %v7050_v54 = vmax.f32 %v20205_v51, %v11687_v4  ;;  %9380 = vmax.xlane.f32.xlu0 %v7237_v39  ;;  %v6993_v35 = vpop.f32.mrb[185].mxu0  ;;  %v11735_v3 = vpop.f32.mrb[184].mxu1  ;;  %v12292_v4 = vld [vmem:[#allocation3 + $0x1b8] sm:$0xff]   ;;  %v12293_v51 = vld [vmem:[#allocation3 + $0x1c0] sm:$0xff]  }
 0x5f4   : > { %v7048_v12 = vmax.f32 %v20207_v9, %v6993_v35  ;;  %v11688_v32 = vpop.f32.mrb[186].mxu0  ;;  %v7186_v57 = vpop.f32.mrb[185].mxu1 }
 0x5f5   : > { %v7051_v30 = vmax.f32 %v20210_v38, %v11688_v32  ;;  %v7243_v16 = vmax.f32 %v7050_v54, %v11735_v3  ;;  %v6996_v31 = vpop.f32.mrb[187].mxu0  ;;  %v11736_v24 = vpop.f32.mrb[186].mxu1 }
 0x5f6   : > { %v7049_v52 = vmax.f32 %v20212_v55, %v6996_v31  ;;  %v7241_v43 = vmax.f32 %v7048_v12, %v7186_v57  ;;  %v7189_v0 = vpop.f32.mrb[187].mxu1  ;;  %v12295_v31 = vld [vmem:[#allocation3 + $0x1d0] sm:$0xff]  }
 0x5f7   : > { %9382 = vmax.xlane.f32.xlu1 %v7238_v53  ;;  %v7244_v2 = vmax.f32 %v7051_v30, %v11736_v24  ;;  %9392 = vmax.xlane.f32.xlu0 %v7243_v16  ;;  %v12294_v16 = vld [vmem:[#allocation3 + $0x1c8] sm:$0xff]  }
 0x5f8   : > { %12050 = vmatmul.mubr.bf16.gmra.mrb[36].mxu0 %v12288_v11  ;;  %v7242_v1 = vmax.f32 %v7049_v52, %v7189_v0  ;;  %12098 = vmatmul.mubr.bf16.gmra.mrb[36].mxu1 %v12288_v11 }
 0x5f9   : > { %12053 = vmatprep.mubr.bf16.mxu0 %v12289_v7  ;;  %12101 = vmatprep.mubr.bf16.mxu1 %v12289_v7 }
 0x5fa   : > { %v11691_v50 = vpop.f32.mrb[188].mxu0 }
 0x5fb   : > { %9394 = vmax.xlane.f32.xlu1 %v7244_v2  ;;  %v7054_v20 = vmax.f32 %v20213_v34, %v11691_v50  ;;  %9388 = vmax.xlane.f32.xlu0 %v7241_v43  ;;  %v7009_v21 = vpop.f32.mrb[189].mxu0  ;;  %v11739_v45 = vpop.f32.mrb[188].mxu1 }
 0x5fc   : > { %v7052_v49 = vmax.f32 %v20214_v5, %v7009_v21  ;;  %v11692_v25 = vpop.f32.mrb[190].mxu0  ;;  %v7202_v6 = vpop.f32.mrb[189].mxu1  ;;  %v12297_v21 = vld [vmem:[#allocation3 + $0x1e0] sm:$0xff]  }
 0x5fd   : > { %v7055_v27 = vmax.f32 %v20217_v8, %v11692_v25  ;;  %v7247_v40 = vmax.f32 %v7054_v20, %v11739_v45  ;;  %v7012_v14 = vpop.f32.mrb[191].mxu0  ;;  %v11740_v28 = vpop.f32.mrb[190].mxu1  ;;  %v12296_v20 = vld [vmem:[#allocation3 + $0x1d8] sm:$0xff]  }
 0x5fe   : > { %v7053_v44 = vmax.f32 %v20220_v37, %v7012_v14  ;;  %v7245_v56 = vmax.f32 %v7052_v49, %v7202_v6  ;;  %v7205_v59 = vpop.f32.mrb[191].mxu1 }
 0x5ff   : > { %9390 = vmax.xlane.f32.xlu1 %v7242_v1  ;;  %v7248_v26 = vmax.f32 %v7055_v27, %v11740_v28  ;;  %9400 = vmax.xlane.f32.xlu0 %v7247_v40 }
 0x600   : > { %12054 = vmatmul.mubr.bf16.gmra.mrb[40].mxu0 %v12290_v60  ;;  %v7246_v15 = vmax.f32 %v7053_v44, %v7205_v59  ;;  %12102 = vmatmul.mubr.bf16.gmra.mrb[40].mxu1 %v12290_v60 }
 0x601   : > { %12057 = vmatprep.mubr.bf16.mxu0 %v12291_v36  ;;  %12105 = vmatprep.mubr.bf16.mxu1 %v12291_v36 }
 0x602   : > { %v17512_v63 = vpop.f32.mrb[192].mxu0 }
 0x603   : > { %9402 = vmax.xlane.f32.xlu1 %v7248_v26  ;;  %9396 = vmax.xlane.f32.xlu0 %v7245_v56  ;;  %v17514_v47 = vpop.f32.mrb[192].mxu1  ;;  %v17516_v33 = vpop.f32.mrb[193].mxu0 }
 0x604   : > { %v17520_v41 = vpop.f32.mrb[193].mxu1  ;;  %v17522_v17 = vpop.f32.mrb[194].mxu0 }
 0x605   : > { %v17526_v19 = vpop.f32.mrb[194].mxu1  ;;  %v17528_v29 = vpop.f32.mrb[195].mxu0 }
 0x606   : > { %v17532_v53 = vpop.f32.mrb[195].mxu1 }
 0x607   : > { %9398 = vmax.xlane.f32.xlu1 %v7246_v15 }
 0x608   : > { %12058 = vmatmul.mubr.bf16.gmra.mrb[44].mxu0 %v12292_v4  ;;  %12106 = vmatmul.mubr.bf16.gmra.mrb[44].mxu1 %v12292_v4 }
 0x609   : > { %12061 = vmatprep.mubr.bf16.mxu0 %v12293_v51  ;;  %12109 = vmatprep.mubr.bf16.mxu1 %v12293_v51 }
 0x60a   : > { %v17536_v54 = vpop.f32.mrb[196].mxu0 }
 0x60b   : > { %v17538_v35 = vpop.f32.mrb[196].mxu1  ;;  %v17540_v3 = vpop.f32.mrb[197].mxu0 }
 0x60c   : > { %v17544_v9 = vpop.f32.mrb[197].mxu1  ;;  %v17546_v12 = vpop.f32.mrb[198].mxu0 }
 0x60d   : > { %v17550_v57 = vpop.f32.mrb[198].mxu1  ;;  %v17552_v18 = vpop.f32.mrb[199].mxu0 }
 0x60e   : > { %v17556_v38 = vpop.f32.mrb[199].mxu1 }
 0x610   : > { %12062 = vmatmul.mubr.bf16.gmra.mrb[48].mxu0 %v12294_v16  ;;  %12110 = vmatmul.mubr.bf16.gmra.mrb[48].mxu1 %v12294_v16 }
 0x611   : > { %12065 = vmatprep.mubr.bf16.mxu0 %v12295_v31  ;;  %12113 = vmatprep.mubr.bf16.mxu1 %v12295_v31 }
 0x612   : > { %v17560_v24 = vpop.f32.mrb[200].mxu0 }
 0x613   : > { %v17562_v42 = vpop.f32.mrb[200].mxu1  ;;  %v17564_v55 = vpop.f32.mrb[201].mxu0 }
 0x614   : > { %v17568_v43 = vpop.f32.mrb[201].mxu1  ;;  %v17570_v0 = vpop.f32.mrb[202].mxu0 }
 0x615   : > { %v17574_v11 = vpop.f32.mrb[202].mxu1  ;;  %v17576_v1 = vpop.f32.mrb[203].mxu0 }
 0x616   : > { %v17580_v50 = vpop.f32.mrb[203].mxu1 }
 0x618   : > { %12066 = vmatmul.mubr.bf16.gmra.mrb[52].mxu0 %v12296_v20  ;;  %12114 = vmatmul.mubr.bf16.gmra.mrb[52].mxu1 %v12296_v20  ;;  %v12300_v20 = vld [vmem:[#allocation3 + $0x1f8] sm:$0xff]  }
 0x619   : > { %12069 = vmatprep.mubr.bf16.mxu0 %v12297_v21  ;;  %12117 = vmatprep.mubr.bf16.mxu1 %v12297_v21 }
 0x61a   : > { %v17584_v45 = vpop.f32.mrb[204].mxu0 }
 0x61b   : > { %v17586_v5 = vpop.f32.mrb[204].mxu1  ;;  %v17588_v49 = vpop.f32.mrb[205].mxu0 }
 0x61c   : > { %v17592_v6 = vpop.f32.mrb[205].mxu1  ;;  %v17594_v62 = vpop.f32.mrb[206].mxu0 }
 0x61d   : > { %v17598_v8 = vpop.f32.mrb[206].mxu1  ;;  %v17600_v27 = vpop.f32.mrb[207].mxu0 }
 0x61e   : > { %v17604_v14 = vpop.f32.mrb[207].mxu1 }
 0x620   : > { %12070 = vmatmul.mubr.bf16.gmra.mrb[56].mxu0 %v12298_v61  ;;  %12118 = vmatmul.mubr.bf16.gmra.mrb[56].mxu1 %v12298_v61 }
 0x621   : > { %12073 = vmatprep.mubr.bf16.mxu0 %v12299_v48  ;;  %12121 = vmatprep.mubr.bf16.mxu1 %v12299_v48 }
 0x622   : > { %v17608_v37 = vpop.f32.mrb[208].mxu0 }
 0x623   : > { %v17610_v44 = vpop.f32.mrb[208].mxu1  ;;  %v17612_v56 = vpop.f32.mrb[209].mxu0 }
 0x624   : > { %v17616_v26 = vpop.f32.mrb[209].mxu1  ;;  %v17618_v60 = vpop.f32.mrb[210].mxu0 }
 0x625   : > { %v17622_v36 = vpop.f32.mrb[210].mxu1  ;;  %v17624_v4 = vpop.f32.mrb[211].mxu0 }
 0x626   : > { %v17628_v16 = vpop.f32.mrb[211].mxu1 }
 0x628   : > { %12074 = vmatmul.mubr.bf16.gmra.mrb[60].mxu0 %v12300_v20  ;;  %12122 = vmatmul.mubr.bf16.gmra.mrb[60].mxu1 %v12300_v20 }
 0x62a   : > { %v17632_v21 = vpop.f32.mrb[212].mxu0 }
 0x62b   : > { %v17634_v61 = vpop.f32.mrb[212].mxu1  ;;  %v17636_v48 = vpop.f32.mrb[213].mxu0 }
 0x62c   : > { %v17640_v59 = vpop.f32.mrb[213].mxu1  ;;  %v17642_v51 = vpop.f32.mrb[214].mxu0 }
 0x62d   : > { %v17646_v31 = vpop.f32.mrb[214].mxu1  ;;  %v17648_v40 = vpop.f32.mrb[215].mxu0 }
 0x62e   : > { %v17652_v22 = vpop.f32.mrb[215].mxu1 }
 0x632   : > { %v17656_v15 = vpop.f32.mrb[216].mxu0 }
 0x633   : > { %v17658_v34 = vpop.f32.mrb[216].mxu1  ;;  %v17660_v7 = vpop.f32.mrb[217].mxu0 }
 0x634   : > { %v17664_v2 = vpop.f32.mrb[217].mxu1  ;;  %v17666_v52 = vpop.f32.mrb[218].mxu0 }
 0x635   : > { %20221 = vst [vmem:[#allocation9_spill] sm:$0xff] %v17664_v2  ;;  %20222 = vst [vmem:[#allocation13_spill] sm:$0xff] %v17666_v52  ;;  %v17670_v30 = vpop.f32.mrb[218].mxu1  ;;  %v17672_v23 = vpop.f32.mrb[219].mxu0 }
 0x636   : > { %20223 = vst [vmem:[#allocation28_spill] sm:$0xff] %v17670_v30  ;;  %20224 = vst [vmem:[#allocation14_spill] sm:$0xff] %v17672_v23  ;;  %v17676_v32 = vpop.f32.mrb[219].mxu1  ;;  %v20234_v23 = vmax.f32 %v17522_v17, %v17526_v19  ;;  %v20238_v19 = vmax.f32 %v17546_v12, %v17550_v57 }
 0x637   : > { %20225 = vst [vmem:[#allocation29_spill] sm:$0xff] %v17676_v32 }
 0x63a   : > { %v17680_v28 = vpop.f32.mrb[220].mxu0 }
 0x63b   : > { %20226 = vst [vmem:[#allocation86_spill] sm:$0xff] %v17680_v28  ;;  %v17682_v46 = vpop.f32.mrb[220].mxu1  ;;  %v17684_v58 = vpop.f32.mrb[221].mxu0 }
 0x63c   : > { %20227 = vst [vmem:[#allocation84_spill] sm:$0xff] %v17682_v46  ;;  %20228 = vst [vmem:[#allocation77_spill] sm:$0xff] %v17684_v58  ;;  %v17688_v39 = vpop.f32.mrb[221].mxu1  ;;  %v17690_v13 = vpop.f32.mrb[222].mxu0  ;;  %v20232_v46 = vmax.f32 %v17512_v63, %v17514_v47 }
 0x63d   : > { %20229 = vst [vmem:[#allocation92_spill] sm:$0xff] %v17688_v39  ;;  %v17694_v30 = vpop.f32.mrb[222].mxu1  ;;  %v17696_v52 = vpop.f32.mrb[223].mxu0  ;;  %v20233_v39 = vmax.f32 %v17516_v33, %v17520_v41 }
 0x63e   : > { %20230 = vst [vmem:[#allocation63_spill] sm:$0xff] %v17694_v30  ;;  %v17700_v32 = vpop.f32.mrb[223].mxu1 }
 0x63f   : > { %20231 = vst [vmem:[#allocation87_spill] sm:$0xff] %v17700_v32 }
 0x642   : > { %v11855_v20 = vpop.f32.mrb[224].mxu0 }
 0x643   : > { %v17707_v28 = vmax.f32 %v20232_v46, %v11855_v20  ;;  %v7861_v2 = vpop.f32.mrb[225].mxu0  ;;  %v17709_v25 = vpop.f32.mrb[224].mxu1  ;;  %v20235_v20 = vmax.f32 %v17528_v29, %v17532_v53 }
 0x644   : > { %v17714_v58 = vmax.f32 %v20233_v39, %v7861_v2  ;;  %v11856_v10 = vpop.f32.mrb[226].mxu0  ;;  %v17716_v30 = vpop.f32.mrb[225].mxu1 }
 0x645   : > { %v17721_v32 = vmax.f32 %v20234_v23, %v11856_v10  ;;  %v7864_v47 = vpop.f32.mrb[227].mxu0  ;;  %v17725_v46 = vpop.f32.mrb[226].mxu1  ;;  %v20236_v23 = vmax.f32 %v17536_v54, %v17538_v35 }
 0x646   : > { %v17730_v33 = vmax.f32 %v20235_v20, %v7864_v47  ;;  %v17734_v39 = vpop.f32.mrb[227].mxu1  ;;  %v20237_v47 = vmax.f32 %v17540_v3, %v17544_v9  ;;  %v20239_v3 = vmax.f32 %v17552_v18, %v17556_v38 }
 0x64a   : > { %v11859_v10 = vpop.f32.mrb[228].mxu0 }
 0x64b   : > { %v17743_v2 = vmax.f32 %v20236_v23, %v11859_v10  ;;  %v7877_v29 = vpop.f32.mrb[229].mxu0  ;;  %v17745_v53 = vpop.f32.mrb[228].mxu1 }
 0x64c   : > { %v17750_v20 = vmax.f32 %v20237_v47, %v7877_v29  ;;  %v11860_v41 = vpop.f32.mrb[230].mxu0  ;;  %v17752_v63 = vpop.f32.mrb[229].mxu1 }
 0x64d   : > { %v17757_v17 = vmax.f32 %v20238_v19, %v11860_v41  ;;  %v7880_v35 = vpop.f32.mrb[231].mxu0  ;;  %v17761_v10 = vpop.f32.mrb[230].mxu1  ;;  %v20240_v19 = vmax.f32 %v17560_v24, %v17562_v42  ;;  %v20242_v24 = vmax.f32 %v17570_v0, %v17574_v11 }
 0x64e   : > { %v17766_v9 = vmax.f32 %v20239_v3, %v7880_v35  ;;  %v17770_v29 = vpop.f32.mrb[231].mxu1  ;;  %v20241_v35 = vmax.f32 %v17564_v55, %v17568_v43  ;;  %v20243_v55 = vmax.f32 %v17576_v1, %v17580_v50 }
 0x653   : > { %v11863_v41 = vpop.f32.mrb[232].mxu0  ;;  %v17781_v38 = vpop.f32.mrb[232].mxu1 }
 0x654   : > { %v17779_v47 = vmax.f32 %v20240_v19, %v11863_v41  ;;  %v7893_v18 = vpop.f32.mrb[233].mxu0  ;;  %v9345_v23 = vpop.xlane.xlu0 %9344 }
 0x655   : > { %v17786_v3 = vmax.f32 %v20241_v35, %v7893_v18  ;;  %v11864_v12 = vpop.f32.mrb[234].mxu0  ;;  %9535 = vst.msk [vmem:[%s15516_s30 + $0x210] sm:$0xff] %vm9468_vm1, %v9345_v23  ;;  %v17797_v19 = vpop.f32.mrb[233].mxu1  ;;  %v20245_v18 = vmax.f32 %v17588_v49, %v17592_v6 }
 0x656   : > { %v17795_v42 = vmax.f32 %v20242_v24, %v11864_v12  ;;  %v7896_v41 = vpop.f32.mrb[235].mxu0  ;;  %v17806_v35 = vpop.f32.mrb[234].mxu1  ;;  %v20244_v24 = vmax.f32 %v17584_v45, %v17586_v5 }
 0x657   : > { %v17802_v43 = vmax.f32 %v20243_v55, %v7896_v41  ;;  %v17810_v11 = vpop.f32.mrb[235].mxu1 }
 0x658   : > { %v9347_v0 = vpop.xlane.xlu1 %9346  ;;  %v9341_v1 = vpop.xlane.xlu0 %9340 }
 0x659   : > { %9536 = vst.msk [vmem:[%s15516_s30 + $0x218] sm:$0xff] %vm9468_vm1, %v9347_v0  ;;  %9533 = vst.msk [vmem:[%s15516_s30 + $0x200] sm:$0xff] %vm9468_vm1, %v9341_v1 }
 0x65b   : > { %v11867_v50 = vpop.f32.mrb[236].mxu0  ;;  %v17830_v12 = vpop.f32.mrb[236].mxu1 }
 0x65c   : > { %v17821_v41 = vmax.f32 %v20244_v24, %v11867_v50  ;;  %v9343_v55 = vpop.xlane.xlu1 %9342  ;;  %v7909_v23 = vpop.f32.mrb[237].mxu0  ;;  %v20246_v50 = vmax.f32 %v17594_v62, %v17598_v8  ;;  %v20249_v62 = vmax.f32 %v17612_v56, %v17616_v26 }
 0x65d   : > { %9534 = vst.msk [vmem:[%s15516_s30 + $0x208] sm:$0xff] %vm9468_vm1, %v9343_v55  ;;  %v17828_v0 = vmax.f32 %v20245_v18, %v7909_v23  ;;  %v9353_v57 = vpop.xlane.xlu0 %9352  ;;  %v11868_v45 = vpop.f32.mrb[238].mxu0  ;;  %v20247_v23 = vmax.f32 %v17600_v27, %v17604_v14  ;;  %v20248_v27 = vmax.f32 %v17608_v37, %v17610_v44 }
 0x65e   : > { %9539 = vst.msk [vmem:[%s15516_s30 + $0x230] sm:$0xff] %vm9468_vm1, %v9353_v57  ;;  %v17836_v5 = vpop.f32.mrb[237].mxu1  ;;  %v17841_v24 = vmax.f32 %v20246_v50, %v11868_v45  ;;  %v7912_v49 = vpop.f32.mrb[239].mxu0 }
 0x65f   : > { %v17845_v18 = vpop.f32.mrb[238].mxu1  ;;  %v17850_v55 = vmax.f32 %v20247_v23, %v7912_v49 }
 0x660   : > { %v9355_v57 = vpop.xlane.xlu1 %9354  ;;  %v17852_v1 = vpop.f32.mrb[239].mxu1 }
 0x661   : > { %9540 = vst.msk [vmem:[%s15516_s30 + $0x238] sm:$0xff] %vm9468_vm1, %v9355_v57  ;;  %v9349_v8 = vpop.xlane.xlu0 %9348 }
 0x662   : > { %9537 = vst.msk [vmem:[%s15516_s30 + $0x220] sm:$0xff] %vm9468_vm1, %v9349_v8 }
 0x663   : > { %v11871_v50 = vpop.f32.mrb[240].mxu0  ;;  %v17874_v6 = vpop.f32.mrb[240].mxu1 }
 0x664   : > { %v17865_v14 = vmax.f32 %v20248_v27, %v11871_v50  ;;  %v9351_v49 = vpop.xlane.xlu1 %9350  ;;  %v7925_v23 = vpop.f32.mrb[241].mxu0  ;;  %v20250_v50 = vmax.f32 %v17618_v60, %v17622_v36  ;;  %v20253_v60 = vmax.f32 %v17636_v48, %v17640_v59 }
 0x665   : > { %9538 = vst.msk [vmem:[%s15516_s30 + $0x228] sm:$0xff] %vm9468_vm1, %v9351_v49  ;;  %v17872_v57 = vmax.f32 %v20249_v62, %v7925_v23  ;;  %v9361_v45 = vpop.xlane.xlu0 %9360  ;;  %v11872_v37 = vpop.f32.mrb[242].mxu0  ;;  %v20251_v49 = vmax.f32 %v17624_v4, %v17628_v16  ;;  %v20252_v4 = vmax.f32 %v17632_v21, %v17634_v61 }
 0x666   : > { %9543 = vst.msk [vmem:[%s15516_s30 + $0x250] sm:$0xff] %vm9468_vm1, %v9361_v45  ;;  %v17880_v44 = vpop.f32.mrb[241].mxu1  ;;  %v17885_v27 = vmax.f32 %v20250_v50, %v11872_v37  ;;  %v7928_v56 = vpop.f32.mrb[243].mxu0 }
 0x667   : > { %v17889_v62 = vpop.f32.mrb[242].mxu1  ;;  %v17894_v23 = vmax.f32 %v20251_v49, %v7928_v56 }
 0x668   : > { %v9363_v45 = vpop.xlane.xlu1 %9362  ;;  %v17896_v8 = vpop.f32.mrb[243].mxu1 }
 0x669   : > { %9544 = vst.msk [vmem:[%s15516_s30 + $0x258] sm:$0xff] %vm9468_vm1, %v9363_v45  ;;  %v9357_v36 = vpop.xlane.xlu0 %9356 }
 0x66a   : > { %9541 = vst.msk [vmem:[%s15516_s30 + $0x240] sm:$0xff] %vm9468_vm1, %v9357_v36 }
 0x66b   : > { %v11875_v50 = vpop.f32.mrb[244].mxu0  ;;  %v17918_v26 = vpop.f32.mrb[244].mxu1 }
 0x66c   : > { %v17909_v16 = vmax.f32 %v20252_v4, %v11875_v50  ;;  %v9359_v56 = vpop.xlane.xlu1 %9358  ;;  %v7941_v49 = vpop.f32.mrb[245].mxu0  ;;  %v20254_v50 = vmax.f32 %v17642_v51, %v17646_v31  ;;  %v20260_v51 = vld [vmem:[#allocation9_spill] sm:$0xff] }
 0x66d   : > { %9542 = vst.msk [vmem:[%s15516_s30 + $0x248] sm:$0xff] %vm9468_vm1, %v9359_v56  ;;  %v17916_v45 = vmax.f32 %v20253_v60, %v7941_v49  ;;  %v9369_v37 = vpop.xlane.xlu0 %9368  ;;  %v11876_v21 = vpop.f32.mrb[246].mxu0  ;;  %v20255_v56 = vmax.f32 %v17648_v40, %v17652_v22  ;;  %v20258_v22 = vmax.f32 %v17656_v15, %v17658_v34  ;;  %v20261_v48 = vmax.f32 %v17660_v7, %v20260_v51 }
 0x66e   : > { %9547 = vst.msk [vmem:[%s15516_s30 + $0x270] sm:$0xff] %vm9468_vm1, %v9369_v37  ;;  %v17924_v61 = vpop.f32.mrb[245].mxu1  ;;  %v17929_v4 = vmax.f32 %v20254_v50, %v11876_v21  ;;  %v7944_v59 = vpop.f32.mrb[247].mxu0 }
 0x66f   : > { %v17933_v60 = vpop.f32.mrb[246].mxu1  ;;  %v17938_v49 = vmax.f32 %v20255_v56, %v7944_v59 }
 0x670   : > { %v9371_v37 = vpop.xlane.xlu1 %9370  ;;  %v17940_v36 = vpop.f32.mrb[247].mxu1 }
 0x671   : > { %20256 = vst [vmem:[#allocation94_spill] sm:$0xff] %v17938_v49  ;;  %20257 = vst [vmem:[#allocation15_spill] sm:$0xff] %v17940_v36  ;;  %v9365_v31 = vpop.xlane.xlu0 %9364  ;;  %v20271_v49 = vld [vmem:[#allocation29_spill] sm:$0xff] }
 0x672   : > { %9548 = vst.msk [vmem:[%s15516_s30 + $0x278] sm:$0xff] %vm9468_vm1, %v9371_v37  ;;  %9545 = vst.msk [vmem:[%s15516_s30 + $0x260] sm:$0xff] %vm9468_vm1, %v9365_v31 }
 0x673   : > { %v11879_v50 = vpop.f32.mrb[248].mxu0  ;;  %v17962_v54 = vpop.f32.mrb[248].mxu1 }
 0x674   : > { %v17953_v40 = vmax.f32 %v20258_v22, %v11879_v50  ;;  %v9367_v59 = vpop.xlane.xlu1 %9366  ;;  %v7957_v56 = vpop.f32.mrb[249].mxu0  ;;  %20263 = vst [vmem:[#allocation67_spill] sm:$0xff] %v17962_v54  ;;  %v20265_v50 = vld [vmem:[#allocation13_spill] sm:$0xff]  ;;  %v20266_v22 = vld [vmem:[#allocation28_spill] sm:$0xff] }
 0x675   : > { %9546 = vst.msk [vmem:[%s15516_s30 + $0x268] sm:$0xff] %vm9468_vm1, %v9367_v59  ;;  %v17960_v37 = vmax.f32 %v20261_v48, %v7957_v56  ;;  %v9377_v21 = vpop.xlane.xlu0 %9376  ;;  %v11880_v34 = vpop.f32.mrb[250].mxu0  ;;  %v20267_v59 = vmax.f32 %v20265_v50, %v20266_v22  ;;  %v20270_v56 = vld [vmem:[#allocation14_spill] sm:$0xff] }
 0x676   : > { %20259 = vst [vmem:[#allocation96_spill] sm:$0xff] %v17953_v40  ;;  %9551 = vst.msk [vmem:[%s15516_s30 + $0x290] sm:$0xff] %vm9468_vm1, %v9377_v21  ;;  %v17968_v15 = vpop.f32.mrb[249].mxu1  ;;  %v7960_v7 = vpop.f32.mrb[251].mxu0  ;;  %v20272_v31 = vmax.f32 %v20270_v56, %v20271_v49  ;;  %v20273_v48 = vld [vmem:[#allocation86_spill] sm:$0xff]  ;;  %v20274_v49 = vld [vmem:[#allocation84_spill] sm:$0xff] }
 0x677   : > { %20262 = vst [vmem:[#allocation97_spill] sm:$0xff] %v17960_v37  ;;  %20264 = vst [vmem:[#allocation69_spill] sm:$0xff] %v17968_v15  ;;  %v17973_v36 = vmax.f32 %v20267_v59, %v11880_v34  ;;  %v17977_v51 = vpop.f32.mrb[250].mxu1  ;;  %v20277_v37 = vld [vmem:[#allocation77_spill] sm:$0xff]  ;;  %v20278_v34 = vld [vmem:[#allocation92_spill] sm:$0xff] }
 0x678   : > { %20269 = vst [vmem:[#allocation31_spill] sm:$0xff] %v17977_v51  ;;  %v17982_v54 = vmax.f32 %v20272_v31, %v7960_v7  ;;  %v9379_v21 = vpop.xlane.xlu1 %9378  ;;  %v17984_v40 = vpop.f32.mrb[251].mxu1  ;;  %v20275_v31 = vmax.f32 %v20273_v48, %v20274_v49  ;;  %v20279_v51 = vmax.f32 %v20277_v37, %v20278_v34  ;;  %v20281_v49 = vld [vmem:[#allocation63_spill] sm:$0xff] }
 0x679   : > { %20268 = vst [vmem:[#allocation19_spill] sm:$0xff] %v17973_v36  ;;  %9552 = vst.msk [vmem:[%s15516_s30 + $0x298] sm:$0xff] %vm9468_vm1, %v9379_v21  ;;  %v9373_v50 = vpop.xlane.xlu0 %9372  ;;  %v20283_v34 = vld [vmem:[#allocation87_spill] sm:$0xff] }
 0x67a   : > { %9549 = vst.msk [vmem:[%s15516_s30 + $0x280] sm:$0xff] %vm9468_vm1, %v9373_v50  ;;  %v20284_v50 = vmax.f32 %v17696_v52, %v20283_v34  ;;  %v20285_v52 = vmax.f32 %v17707_v28, %v17709_v25 }
 0x67b   : > { %v11883_v59 = vpop.f32.mrb[252].mxu0  ;;  %v18006_v36 = vpop.f32.mrb[252].mxu1 }
 0x67c   : > { %v17997_v7 = vmax.f32 %v20275_v31, %v11883_v59  ;;  %v9375_v56 = vpop.xlane.xlu1 %9374  ;;  %v7973_v15 = vpop.f32.mrb[253].mxu0  ;;  %20280 = vst [vmem:[#allocation39_spill] sm:$0xff] %v18006_v36  ;;  %v20282_v31 = vmax.f32 %v17690_v13, %v20281_v49  ;;  %v20286_v13 = vmax.f32 %v17714_v58, %v17716_v30 }
 0x67d   : > { %9550 = vst.msk [vmem:[%s15516_s30 + $0x288] sm:$0xff] %vm9468_vm1, %v9375_v56  ;;  %v18004_v21 = vmax.f32 %v20279_v51, %v7973_v15  ;;  %v9385_v22 = vpop.xlane.xlu0 %9384  ;;  %v11884_v48 = vpop.f32.mrb[254].mxu0 }
 0x67e   : > { %20276 = vst [vmem:[#allocation91_spill] sm:$0xff] %v17997_v7  ;;  %9555 = vst.msk [vmem:[%s15516_s30 + $0x2b0] sm:$0xff] %vm9468_vm1, %v9385_v22  ;;  %v18012_v59 = vpop.f32.mrb[253].mxu1  ;;  %v18017_v56 = vmax.f32 %v20282_v31, %v11884_v48  ;;  %v7976_v37 = vpop.f32.mrb[255].mxu0 }
 0x67f   : > { %v18021_v51 = vpop.f32.mrb[254].mxu1  ;;  %v18026_v36 = vmax.f32 %v20284_v50, %v7976_v37 }
 0x680   : > { %v9387_v22 = vpop.xlane.xlu1 %9386  ;;  %v18028_v7 = vpop.f32.mrb[255].mxu1 }
 0x681   : > { %9556 = vst.msk [vmem:[%s15516_s30 + $0x2b8] sm:$0xff] %vm9468_vm1, %v9387_v22  ;;  %v9381_v48 = vpop.xlane.xlu0 %9380 }
 0x682   : > { %9553 = vst.msk [vmem:[%s15516_s30 + $0x2a0] sm:$0xff] %vm9468_vm1, %v9381_v48 }
 0x683   : > { %v11951_v31 = vpop.f32.mrb[0].mxu0  ;;  %v18050_v15 = vpop.f32.mrb[0].mxu1 }
 0x684   : > { %v18041_v50 = vmax.f32 %v20285_v52, %v11951_v31  ;;  %v9383_v37 = vpop.xlane.xlu1 %9382  ;;  %v8247_v34 = vpop.f32.mrb[1].mxu0  ;;  %v20287_v31 = vmax.f32 %v17721_v32, %v17725_v46  ;;  %v20290_v32 = vmax.f32 %v17750_v20, %v17752_v63 }
 0x685   : > { %9554 = vst.msk [vmem:[%s15516_s30 + $0x2a8] sm:$0xff] %vm9468_vm1, %v9383_v37  ;;  %v18048_v22 = vmax.f32 %v20286_v13, %v8247_v34  ;;  %v9393_v49 = vpop.xlane.xlu0 %9392  ;;  %v11952_v25 = vpop.f32.mrb[2].mxu0  ;;  %v20288_v37 = vmax.f32 %v17730_v33, %v17734_v39  ;;  %v20289_v33 = vmax.f32 %v17743_v2, %v17745_v53 }
 0x686   : > { %9559 = vst.msk [vmem:[%s15516_s30 + $0x2d0] sm:$0xff] %vm9468_vm1, %v9393_v49  ;;  %v18056_v28 = vpop.f32.mrb[1].mxu1  ;;  %v18061_v52 = vmax.f32 %v20287_v31, %v11952_v25  ;;  %v8250_v58 = vpop.f32.mrb[3].mxu0 }
 0x687   : > { %v18065_v13 = vpop.f32.mrb[2].mxu1  ;;  %v18070_v34 = vmax.f32 %v20288_v37, %v8250_v58 }
 0x688   : > { %v9395_v49 = vpop.xlane.xlu1 %9394  ;;  %v18072_v48 = vpop.f32.mrb[3].mxu1 }
 0x689   : > { %9560 = vst.msk [vmem:[%s15516_s30 + $0x2d8] sm:$0xff] %vm9468_vm1, %v9395_v49  ;;  %v9389_v46 = vpop.xlane.xlu0 %9388 }
 0x68a   : > { %9557 = vst.msk [vmem:[%s15516_s30 + $0x2c0] sm:$0xff] %vm9468_vm1, %v9389_v46 }
 0x68b   : > { %v11955_v31 = vpop.f32.mrb[4].mxu0  ;;  %v18094_v30 = vpop.f32.mrb[4].mxu1 }
 0x68c   : > { %v18085_v39 = vmax.f32 %v20289_v33, %v11955_v31  ;;  %v9391_v58 = vpop.xlane.xlu1 %9390  ;;  %v8263_v37 = vpop.f32.mrb[5].mxu0  ;;  %v20291_v31 = vmax.f32 %v17757_v17, %v17761_v10  ;;  %v20295_v17 = vmax.f32 %v17786_v3, %v17797_v19 }
 0x68d   : > { %9558 = vst.msk [vmem:[%s15516_s30 + $0x2c8] sm:$0xff] %vm9468_vm1, %v9391_v58  ;;  %v18092_v49 = vmax.f32 %v20290_v32, %v8263_v37  ;;  %v9401_v25 = vpop.xlane.xlu0 %9400  ;;  %v11956_v2 = vpop.f32.mrb[6].mxu0  ;;  %v20293_v58 = vmax.f32 %v17766_v9, %v17770_v29  ;;  %v20294_v9 = vmax.f32 %v17779_v47, %v17781_v38 }
 0x68e   : > { %9563 = vst.msk [vmem:[%s15516_s30 + $0x2f0] sm:$0xff] %vm9468_vm1, %v9401_v25  ;;  %v18100_v53 = vpop.f32.mrb[5].mxu1  ;;  %v18105_v33 = vmax.f32 %v20291_v31, %v11956_v2  ;;  %v8266_v63 = vpop.f32.mrb[7].mxu0 }
 0x68f   : > { %v18109_v32 = vpop.f32.mrb[6].mxu1  ;;  %v18114_v37 = vmax.f32 %v20293_v58, %v8266_v63 }
 0x690   : > { %20292 = vst [vmem:[#allocation100_spill] sm:$0xff] %v18109_v32  ;;  %v9403_v25 = vpop.xlane.xlu1 %9402  ;;  %v18116_v46 = vpop.f32.mrb[7].mxu1 }
 0x691   : > { %9564 = vst.msk [vmem:[%s15516_s30 + $0x2f8] sm:$0xff] %vm9468_vm1, %v9403_v25  ;;  %v9397_v10 = vpop.xlane.xlu0 %9396 }
 0x692   : > { %9561 = vst.msk [vmem:[%s15516_s30 + $0x2e0] sm:$0xff] %vm9468_vm1, %v9397_v10  ;;  %v20296_v10 = vmax.f32 %v17795_v42, %v17806_v35 }
 0x693   : > { %v11959_v31 = vpop.f32.mrb[8].mxu0  ;;  %v18138_v32 = vpop.f32.mrb[8].mxu1 }
 0x694   : > { %v18129_v29 = vmax.f32 %v20294_v9, %v11959_v31  ;;  %v9399_v63 = vpop.xlane.xlu1 %9398  ;;  %v8279_v58 = vpop.f32.mrb[9].mxu0  ;;  %v20297_v9 = vmax.f32 %v17802_v43, %v17810_v11 }
 0x695   : > { %9562 = vst.msk [vmem:[%s15516_s30 + $0x2e8] sm:$0xff] %vm9468_vm1, %v9399_v63  ;;  %v18136_v25 = vmax.f32 %v20295_v17, %v8279_v58  ;;  %v11960_v20 = vpop.f32.mrb[10].mxu0  ;;  %v18147_v31 = vpop.f32.mrb[9].mxu1  ;;  %v20298_v58 = vmax.f32 %v17821_v41, %v17830_v12 }
 0x696   : > { %v18143_v2 = vmax.f32 %v20296_v10, %v11960_v20  ;;  %v8282_v38 = vpop.f32.mrb[11].mxu0  ;;  %v18156_v17 = vpop.f32.mrb[10].mxu1  ;;  %v20300_v20 = vmax.f32 %v17841_v24, %v17845_v18  ;;  %v20304_v18 = vmax.f32 %v17885_v27, %v17889_v62  ;;  %v20314_v62 = vmax.f32 %v17929_v4, %v17933_v60  ;;  %v20328_v4 = vld [vmem:[#allocation19_spill] sm:$0xff] }
 0x697   : > { %v18152_v3 = vmax.f32 %v20297_v9, %v8282_v38  ;;  %v18160_v35 = vpop.f32.mrb[11].mxu1  ;;  %v20299_v38 = vmax.f32 %v17828_v0, %v17836_v5 }
 0x69b   : > { %v11963_v63 = vpop.f32.mrb[12].mxu0  ;;  %v18169_v10 = vpop.f32.mrb[12].mxu1 }
 0x69c   : > { %v18167_v43 = vmax.f32 %v20298_v58, %v11963_v63  ;;  %v8295_v11 = vpop.f32.mrb[13].mxu0  ;;  %v18176_v19 = vpop.f32.mrb[13].mxu1  ;;  %v20301_v58 = vmax.f32 %v17850_v55, %v17852_v1 }
 0x69d   : > { %v18174_v9 = vmax.f32 %v20299_v38, %v8295_v11  ;;  %v11964_v42 = vpop.f32.mrb[14].mxu0  ;;  %v18185_v63 = vpop.f32.mrb[14].mxu1 }
 0x69e   : > { %v18181_v47 = vmax.f32 %v20300_v20, %v11964_v42  ;;  %v8298_v41 = vpop.f32.mrb[15].mxu0  ;;  %v18194_v11 = vpop.f32.mrb[15].mxu1  ;;  %v20302_v20 = vmax.f32 %v17865_v14, %v17874_v6 }
 0x69f   : > { %v18190_v0 = vmax.f32 %v20301_v58, %v8298_v41  ;;  %v20303_v41 = vmax.f32 %v17872_v57, %v17880_v44 }
 0x6a3   : > { %v11967_v42 = vpop.f32.mrb[16].mxu0  ;;  %v18205_v55 = vpop.f32.mrb[16].mxu1 }
 0x6a4   : > { %v18203_v38 = vmax.f32 %v20302_v20, %v11967_v42  ;;  %v8311_v1 = vpop.f32.mrb[17].mxu0  ;;  %v18212_v12 = vpop.f32.mrb[17].mxu1  ;;  %v20305_v20 = vmax.f32 %v17894_v23, %v17896_v8 }
 0x6a5   : > { %v18210_v58 = vmax.f32 %v20303_v41, %v8311_v1  ;;  %v11968_v5 = vpop.f32.mrb[18].mxu0  ;;  %v18221_v42 = vpop.f32.mrb[18].mxu1 }
 0x6a6   : > { %v18217_v24 = vmax.f32 %v20304_v18, %v11968_v5  ;;  %v8314_v14 = vpop.f32.mrb[19].mxu0  ;;  %v18230_v1 = vpop.f32.mrb[19].mxu1  ;;  %v20308_v18 = vmax.f32 %v17909_v16, %v17918_v26 }
 0x6a7   : > { %v18226_v57 = vmax.f32 %v20305_v20, %v8314_v14  ;;  %20307 = vst [vmem:[#allocation18_spill] sm:$0xff] %v18230_v1  ;;  %v20311_v14 = vmax.f32 %v17916_v45, %v17924_v61  ;;  %v20317_v1 = vld [vmem:[#allocation15_spill] sm:$0xff] }
 0x6a9   : > { %20306 = vst [vmem:[#allocation88_spill] sm:$0xff] %v18226_v57 }
 0x6ab   : > { %v11971_v5 = vpop.f32.mrb[20].mxu0  ;;  %v18241_v23 = vpop.f32.mrb[20].mxu1 }
 0x6ac   : > { %v18239_v41 = vmax.f32 %v20308_v18, %v11971_v5  ;;  %v8327_v8 = vpop.f32.mrb[21].mxu0  ;;  %20310 = vst [vmem:[#allocation101_spill] sm:$0xff] %v18241_v23  ;;  %v18248_v6 = vpop.f32.mrb[21].mxu1  ;;  %v20316_v18 = vld [vmem:[#allocation94_spill] sm:$0xff] }
 0x6ad   : > { %v18246_v20 = vmax.f32 %v20311_v14, %v8327_v8  ;;  %v11972_v44 = vpop.f32.mrb[22].mxu0  ;;  %20313 = vst [vmem:[#allocation10_spill] sm:$0xff] %v18248_v6  ;;  %v18257_v5 = vpop.f32.mrb[22].mxu1  ;;  %v20318_v57 = vmax.f32 %v20316_v18, %v20317_v1  ;;  %v20321_v14 = vld [vmem:[#allocation67_spill] sm:$0xff]  ;;  %v20325_v18 = vld [vmem:[#allocation69_spill] sm:$0xff] }
 0x6ae   : > { %20309 = vst [vmem:[#allocation61_spill] sm:$0xff] %v18239_v41  ;;  %v18253_v27 = vmax.f32 %v20314_v62, %v11972_v44  ;;  %v8330_v16 = vpop.f32.mrb[23].mxu0  ;;  %20315 = vst [vmem:[#allocation49_spill] sm:$0xff] %v18257_v5  ;;  %v18266_v8 = vpop.f32.mrb[23].mxu1  ;;  %v20320_v62 = vld [vmem:[#allocation96_spill] sm:$0xff]  ;;  %v20329_v5 = vld [vmem:[#allocation31_spill] sm:$0xff] }
 0x6af   : > { %20312 = vst [vmem:[#allocation99_spill] sm:$0xff] %v18246_v20  ;;  %v18262_v45 = vmax.f32 %v20318_v57, %v8330_v16  ;;  %20319 = vst [vmem:[#allocation66_spill] sm:$0xff] %v18266_v8  ;;  %v20322_v26 = vmax.f32 %v20320_v62, %v20321_v14  ;;  %v20324_v16 = vld [vmem:[#allocation97_spill] sm:$0xff]  ;;  %v20330_v60 = vmax.f32 %v20328_v4, %v20329_v5 }
 0x6b0   : > { %v20326_v61 = vmax.f32 %v20324_v16, %v20325_v18  ;;  %v20331_v14 = vmax.f32 %v17982_v54, %v17984_v40  ;;  %v20333_v18 = vld [vmem:[#allocation39_spill] sm:$0xff]  ;;  %v20337_v5 = vmax.f32 %v18017_v56, %v18021_v51 }
 0x6b3   : > { %v11975_v44 = vpop.f32.mrb[24].mxu0  ;;  %v18277_v57 = vpop.f32.mrb[24].mxu1 }
 0x6b4   : > { %v18275_v23 = vmax.f32 %v20322_v26, %v11975_v44  ;;  %v8343_v1 = vpop.f32.mrb[25].mxu0  ;;  %20323 = vst [vmem:[#allocation17_spill] sm:$0xff] %v18277_v57  ;;  %v18284_v41 = vpop.f32.mrb[25].mxu1 }
 0x6b5   : > { %v18282_v6 = vmax.f32 %v20326_v61, %v8343_v1  ;;  %v11976_v20 = vpop.f32.mrb[26].mxu0  ;;  %20327 = vst [vmem:[#allocation95_spill] sm:$0xff] %v18284_v41  ;;  %v18293_v62 = vpop.f32.mrb[26].mxu1 }
 0x6b6   : > { %v18289_v8 = vmax.f32 %v20330_v60, %v11976_v20  ;;  %v8346_v44 = vpop.f32.mrb[27].mxu0  ;;  %v18302_v1 = vpop.f32.mrb[27].mxu1  ;;  %v20332_v60 = vld [vmem:[#allocation91_spill] sm:$0xff] }
 0x6b7   : > { %v18298_v16 = vmax.f32 %v20331_v14, %v8346_v44  ;;  %v20334_v26 = vmax.f32 %v20332_v60, %v20333_v18  ;;  %v20335_v44 = vmax.f32 %v18004_v21, %v18012_v59  ;;  %v20340_v18 = vmax.f32 %v18026_v36, %v18028_v7 }
 0x6b8   : > { %v20344_v7 = vmax.f32 %v18048_v22, %v18056_v28  ;;  %v20347_v28 = vmax.f32 %v18085_v39, %v18094_v30  ;;  %v20351_v30 = vmax.f32 %v18114_v37, %v18116_v46 }
 0x6bb   : > { %v11979_v4 = vpop.f32.mrb[28].mxu0  ;;  %v18313_v40 = vpop.f32.mrb[28].mxu1 }
 0x6bc   : > { %v18311_v57 = vmax.f32 %v20334_v26, %v11979_v4  ;;  %v8359_v54 = vpop.f32.mrb[29].mxu0  ;;  %v18320_v41 = vpop.f32.mrb[29].mxu1 }
 0x6bd   : > { %v18318_v14 = vmax.f32 %v20335_v44, %v8359_v54  ;;  %v11980_v61 = vpop.f32.mrb[30].mxu0  ;;  %20336 = vst [vmem:[#allocation103_spill] sm:$0xff] %v18320_v41  ;;  %v18329_v60 = vpop.f32.mrb[30].mxu1  ;;  %v20345_v41 = vmax.f32 %v18061_v52, %v18065_v13 }
 0x6be   : > { %v18325_v20 = vmax.f32 %v20337_v5, %v11980_v61  ;;  %v8362_v4 = vpop.f32.mrb[31].mxu0  ;;  %20339 = vst [vmem:[#allocation24_spill] sm:$0xff] %v18329_v60  ;;  %v18338_v54 = vpop.f32.mrb[31].mxu1  ;;  %v20343_v5 = vmax.f32 %v18041_v50, %v18050_v15 }
 0x6bf   : > { %v18334_v21 = vmax.f32 %v20340_v18, %v8362_v4  ;;  %20342 = vst [vmem:[#allocation60_spill] sm:$0xff] %v18338_v54  ;;  %v20346_v54 = vmax.f32 %v18070_v34, %v18072_v48 }
 0x6c0   : > { %20338 = vst [vmem:[#allocation55_spill] sm:$0xff] %v18325_v20 }
 0x6c1   : > { %20341 = vst [vmem:[#allocation45_spill] sm:$0xff] %v18334_v21 }
 0x6c3   : > { %v12047_v61 = vpop.f32.mrb[32].mxu0  ;;  %v12095_v36 = vpop.f32.mrb[32].mxu1 }
 0x6c4   : > { %v8762_v44 = vmax.f32 %v20343_v5, %v12047_v61  ;;  %v8633_v26 = vpop.f32.mrb[33].mxu0  ;;  %v8826_v59 = vpop.f32.mrb[33].mxu1 }
 0x6c5   : > { %v8760_v4 = vmax.f32 %v20344_v7, %v8633_v26  ;;  %v12048_v18 = vpop.f32.mrb[34].mxu0  ;;  %v12096_v51 = vpop.f32.mrb[34].mxu1 }
 0x6c6   : > { %v8763_v56 = vmax.f32 %v20345_v41, %v12048_v18  ;;  %v8955_v60 = vmax.f32 %v8762_v44, %v12095_v36  ;;  %v8636_v20 = vpop.f32.mrb[35].mxu0  ;;  %v8829_v61 = vpop.f32.mrb[35].mxu1  ;;  %v20348_v41 = vmax.f32 %v18092_v49, %v18100_v53  ;;  %v20352_v18 = vmax.f32 %v18129_v29, %v18138_v32 }
 0x6c7   : > { %v8761_v15 = vmax.f32 %v20346_v54, %v8636_v20  ;;  %v8953_v50 = vmax.f32 %v8760_v4, %v8826_v59  ;;  %v20349_v20 = vld [vmem:[#allocation100_spill] sm:$0xff]  ;;  %v20355_v32 = vmax.f32 %v18152_v3, %v18160_v35 }
 0x6c8   : > { %v8956_v5 = vmax.f32 %v8763_v56, %v12096_v51  ;;  %9408 = vmax.xlane.f32.xlu0 %v8955_v60  ;;  %v20350_v59 = vmax.f32 %v18105_v33, %v20349_v20  ;;  %v20357_v20 = vmax.f32 %v18174_v9, %v18176_v19 }
 0x6c9   : > { %v8954_v21 = vmax.f32 %v8761_v15, %v8829_v61 }
 0x6ca   : > { %9410 = vmax.xlane.f32.xlu1 %v8956_v5  ;;  %v20354_v5 = vmax.f32 %v18143_v2, %v18156_v17 }
 0x6cb   : > { %v12051_v22 = vpop.f32.mrb[36].mxu0  ;;  %v12099_v13 = vpop.f32.mrb[36].mxu1 }
 0x6cc   : > { %v8766_v26 = vmax.f32 %v20347_v28, %v12051_v22  ;;  %9404 = vmax.xlane.f32.xlu0 %v8953_v50  ;;  %v8649_v52 = vpop.f32.mrb[37].mxu0  ;;  %v8842_v34 = vpop.f32.mrb[37].mxu1 }
 0x6cd   : > { %v8764_v44 = vmax.f32 %v20348_v41, %v8649_v52  ;;  %v12052_v48 = vpop.f32.mrb[38].mxu0  ;;  %v12100_v51 = vpop.f32.mrb[38].mxu1 }
 0x6ce   : > { %v8767_v60 = vmax.f32 %v20350_v59, %v12052_v48  ;;  %v8959_v54 = vmax.f32 %v8766_v26, %v12099_v13  ;;  %v8652_v56 = vpop.f32.mrb[39].mxu0  ;;  %9406 = vmax.xlane.f32.xlu1 %v8954_v21  ;;  %v8845_v7 = vpop.f32.mrb[39].mxu1  ;;  %v20353_v21 = vmax.f32 %v18136_v25, %v18147_v31  ;;  %v20356_v48 = vmax.f32 %v18167_v43, %v18169_v10 }
 0x6cf   : > { %v8765_v39 = vmax.f32 %v20351_v30, %v8652_v56  ;;  %v8957_v36 = vmax.f32 %v8764_v44, %v8842_v34  ;;  %v20359_v43 = vmax.f32 %v18190_v0, %v18194_v11 }
 0x6d0   : > { %v8960_v4 = vmax.f32 %v8767_v60, %v12100_v51  ;;  %9416 = vmax.xlane.f32.xlu0 %v8959_v54  ;;  %v20358_v60 = vmax.f32 %v18181_v47, %v18185_v63 }
 0x6d1   : > { %v8958_v49 = vmax.f32 %v8765_v39, %v8845_v7 }
 0x6d2   : > { %9418 = vmax.xlane.f32.xlu1 %v8960_v4  ;;  %v20360_v4 = vmax.f32 %v18203_v38, %v18205_v55  ;;  %v20364_v38 = vld [vmem:[#allocation18_spill] sm:$0xff] }
 0x6d3   : > { %v12055_v53 = vpop.f32.mrb[40].mxu0  ;;  %v12103_v50 = vpop.f32.mrb[40].mxu1 }
 0x6d4   : > { %v8770_v33 = vmax.f32 %v20352_v18, %v12055_v53  ;;  %9412 = vmax.xlane.f32.xlu0 %v8957_v36  ;;  %v8665_v15 = vpop.f32.mrb[41].mxu0  ;;  %v8858_v37 = vpop.f32.mrb[41].mxu1  ;;  %v20361_v53 = vmax.f32 %v18210_v58, %v18212_v12 }
 0x6d5   : > { %v8768_v61 = vmax.f32 %v20353_v21, %v8665_v15  ;;  %v12056_v46 = vpop.f32.mrb[42].mxu0  ;;  %v12104_v52 = vpop.f32.mrb[42].mxu1 }
 0x6d6   : > { %v8771_v22 = vmax.f32 %v20354_v5, %v12056_v46  ;;  %v8963_v28 = vmax.f32 %v8770_v33, %v12103_v50  ;;  %v8668_v26 = vpop.f32.mrb[43].mxu0  ;;  %9414 = vmax.xlane.f32.xlu1 %v8958_v49  ;;  %v8861_v41 = vpop.f32.mrb[43].mxu1  ;;  %v20362_v33 = vmax.f32 %v18217_v24, %v18221_v42  ;;  %v20363_v46 = vld [vmem:[#allocation88_spill] sm:$0xff] }
 0x6d7   : > { %v8769_v29 = vmax.f32 %v20355_v32, %v8668_v26  ;;  %v8961_v13 = vmax.f32 %v8768_v61, %v8858_v37  ;;  %v20365_v55 = vmax.f32 %v20363_v46, %v20364_v38  ;;  %v20366_v26 = vld [vmem:[#allocation61_spill] sm:$0xff]  ;;  %v20382_v46 = vmax.f32 %v18311_v57, %v18313_v40 }
 0x6d8   : > { %v8964_v44 = vmax.f32 %v8771_v22, %v12104_v52  ;;  %9424 = vmax.xlane.f32.xlu0 %v8963_v28  ;;  %v20367_v52 = vld [vmem:[#allocation101_spill] sm:$0xff] }
 0x6d9   : > { %v8962_v25 = vmax.f32 %v8769_v29, %v8861_v41  ;;  %v20368_v32 = vmax.f32 %v20366_v26, %v20367_v52  ;;  %v20370_v41 = vld [vmem:[#allocation10_spill] sm:$0xff]  ;;  %v20388_v40 = vld [vmem:[#allocation45_spill] sm:$0xff] }
 0x6da   : > { %9426 = vmax.xlane.f32.xlu1 %v8964_v44 }
 0x6db   : > { %v12059_v31 = vpop.f32.mrb[44].mxu0  ;;  %v12107_v34 = vpop.f32.mrb[44].mxu1 }
 0x6dc   : > { %v8774_v2 = vmax.f32 %v20356_v48, %v12059_v31  ;;  %9420 = vmax.xlane.f32.xlu0 %v8961_v13  ;;  %v8681_v17 = vpop.f32.mrb[45].mxu0  ;;  %v8874_v35 = vpop.f32.mrb[45].mxu1  ;;  %v20369_v13 = vld [vmem:[#allocation99_spill] sm:$0xff] }
 0x6dd   : > { %v8772_v59 = vmax.f32 %v20357_v20, %v8681_v17  ;;  %v12060_v3 = vpop.f32.mrb[46].mxu0  ;;  %v12108_v30 = vpop.f32.mrb[46].mxu1  ;;  %v20371_v44 = vmax.f32 %v20369_v13, %v20370_v41 }
 0x6de   : > { %v8775_v54 = vmax.f32 %v20358_v60, %v12060_v3  ;;  %v8967_v56 = vmax.f32 %v8774_v2, %v12107_v34  ;;  %v8684_v51 = vpop.f32.mrb[47].mxu0  ;;  %9422 = vmax.xlane.f32.xlu1 %v8962_v25  ;;  %v8877_v36 = vpop.f32.mrb[47].mxu1  ;;  %v20372_v2 = vld [vmem:[#allocation49_spill] sm:$0xff] }
 0x6df   : > { %v8773_v10 = vmax.f32 %v20359_v43, %v8684_v51  ;;  %v8965_v39 = vmax.f32 %v8772_v59, %v8874_v35  ;;  %v20373_v17 = vmax.f32 %v18253_v27, %v20372_v2  ;;  %v20374_v35 = vld [vmem:[#allocation66_spill] sm:$0xff] }
 0x6e0   : > { %v8968_v7 = vmax.f32 %v8775_v54, %v12108_v30  ;;  %9432 = vmax.xlane.f32.xlu0 %v8967_v56  ;;  %v20375_v60 = vmax.f32 %v18262_v45, %v20374_v35 }
 0x6e1   : > { %v8966_v19 = vmax.f32 %v8773_v10, %v8877_v36 }
 0x6e2   : > { %9434 = vmax.xlane.f32.xlu1 %v8968_v7 }
 0x6e3   : > { %v12063_v9 = vpop.f32.mrb[48].mxu0  ;;  %v12111_v49 = vpop.f32.mrb[48].mxu1 }
 0x6e4   : > { %v8778_v47 = vmax.f32 %v20360_v4, %v12063_v9  ;;  %9428 = vmax.xlane.f32.xlu0 %v8965_v39  ;;  %v8697_v63 = vpop.f32.mrb[49].mxu0  ;;  %v8890_v11 = vpop.f32.mrb[49].mxu1  ;;  %v20376_v39 = vld [vmem:[#allocation17_spill] sm:$0xff]  ;;  %v20378_v9 = vld [vmem:[#allocation95_spill] sm:$0xff] }
 0x6e5   : > { %v8776_v18 = vmax.f32 %v20361_v53, %v8697_v63  ;;  %v12064_v0 = vpop.f32.mrb[50].mxu0  ;;  %v12112_v61 = vpop.f32.mrb[50].mxu1  ;;  %v20377_v36 = vmax.f32 %v18275_v23, %v20376_v39  ;;  %v20379_v4 = vmax.f32 %v18282_v6, %v20378_v9  ;;  %v20381_v23 = vmax.f32 %v18298_v16, %v18302_v1 }
 0x6e6   : > { %v8779_v15 = vmax.f32 %v20362_v33, %v12064_v0  ;;  %v8971_v50 = vmax.f32 %v8778_v47, %v12111_v49  ;;  %v8700_v21 = vpop.f32.mrb[51].mxu0  ;;  %9430 = vmax.xlane.f32.xlu1 %v8966_v19  ;;  %v8893_v22 = vpop.f32.mrb[51].mxu1  ;;  %v20380_v49 = vmax.f32 %v18289_v8, %v18293_v62 }
 0x6e7   : > { %v8777_v37 = vmax.f32 %v20365_v55, %v8700_v21  ;;  %v8969_v5 = vmax.f32 %v8776_v18, %v8890_v11  ;;  %v20383_v55 = vld [vmem:[#allocation103_spill] sm:$0xff] }
 0x6e8   : > { %v8972_v28 = vmax.f32 %v8779_v15, %v12112_v61  ;;  %9440 = vmax.xlane.f32.xlu0 %v8971_v50 }
 0x6e9   : > { %v8970_v12 = vmax.f32 %v8777_v37, %v8893_v22  ;;  %v20384_v37 = vmax.f32 %v18318_v14, %v20383_v55  ;;  %v20385_v22 = vld [vmem:[#allocation55_spill] sm:$0xff] }
 0x6ea   : > { %9442 = vmax.xlane.f32.xlu1 %v8972_v28  ;;  %v20386_v28 = vld [vmem:[#allocation24_spill] sm:$0xff] }
 0x6eb   : > { %v12067_v58 = vpop.f32.mrb[52].mxu0  ;;  %v12115_v29 = vpop.f32.mrb[52].mxu1 }
 0x6ec   : > { %v8782_v24 = vmax.f32 %v20368_v32, %v12067_v58  ;;  %9436 = vmax.xlane.f32.xlu0 %v8969_v5  ;;  %v8713_v42 = vpop.f32.mrb[53].mxu0  ;;  %v8906_v48 = vpop.f32.mrb[53].mxu1  ;;  %v20389_v32 = vld [vmem:[#allocation60_spill] sm:$0xff] }
 0x6ed   : > { %v8780_v25 = vmax.f32 %v20371_v44, %v8713_v42  ;;  %v12068_v31 = vpop.f32.mrb[54].mxu0  ;;  %v12116_v3 = vpop.f32.mrb[54].mxu1 }
 0x6ee   : > { %v8783_v34 = vmax.f32 %v20373_v17, %v12068_v31  ;;  %v8975_v20 = vmax.f32 %v8782_v24, %v12115_v29  ;;  %v8716_v59 = vpop.f32.mrb[55].mxu0  ;;  %9438 = vmax.xlane.f32.xlu1 %v8970_v12  ;;  %v8909_v51 = vpop.f32.mrb[55].mxu1  ;;  %v20387_v12 = vmax.f32 %v20385_v22, %v20386_v28  ;;  %v20390_v24 = vmax.f32 %v20388_v40, %v20389_v32 }
 0x6ef   : > { %v8781_v54 = vmax.f32 %v20375_v60, %v8716_v59  ;;  %v8973_v56 = vmax.f32 %v8780_v25, %v8906_v48 }
 0x6f0   : > { %v8976_v30 = vmax.f32 %v8783_v34, %v12116_v3  ;;  %9448 = vmax.xlane.f32.xlu0 %v8975_v20 }
 0x6f1   : > { %v8974_v43 = vmax.f32 %v8781_v54, %v8909_v51 }
 0x6f2   : > { %9450 = vmax.xlane.f32.xlu1 %v8976_v30 }
 0x6f3   : > { %v12071_v10 = vpop.f32.mrb[56].mxu0  ;;  %v12119_v19 = vpop.f32.mrb[56].mxu1 }
 0x6f4   : > { %v8786_v27 = vmax.f32 %v20377_v36, %v12071_v10  ;;  %9444 = vmax.xlane.f32.xlu0 %v8973_v56  ;;  %v8729_v7 = vpop.f32.mrb[57].mxu0  ;;  %v8922_v63 = vpop.f32.mrb[57].mxu1 }
 0x6f5   : > { %v8784_v47 = vmax.f32 %v20379_v4, %v8729_v7  ;;  %v12072_v45 = vpop.f32.mrb[58].mxu0  ;;  %v12120_v11 = vpop.f32.mrb[58].mxu1 }
 0x6f6   : > { %v8787_v53 = vmax.f32 %v20380_v49, %v12072_v45  ;;  %v8979_v18 = vmax.f32 %v8786_v27, %v12119_v19  ;;  %v8732_v0 = vpop.f32.mrb[59].mxu0  ;;  %9446 = vmax.xlane.f32.xlu1 %v8974_v43  ;;  %v8925_v50 = vpop.f32.mrb[59].mxu1 }
 0x6f7   : > { %v8785_v33 = vmax.f32 %v20381_v23, %v8732_v0  ;;  %v8977_v15 = vmax.f32 %v8784_v47, %v8922_v63 }
 0x6f8   : > { %v8980_v21 = vmax.f32 %v8787_v53, %v12120_v11  ;;  %9456 = vmax.xlane.f32.xlu0 %v8979_v18 }
 0x6f9   : > { %v8978_v6 = vmax.f32 %v8785_v33, %v8925_v50 }
 0x6fa   : > { %9458 = vmax.xlane.f32.xlu1 %v8980_v21 }
 0x6fb   : > { %v12075_v61 = vpop.f32.mrb[60].mxu0  ;;  %v12123_v38 = vpop.f32.mrb[60].mxu1 }
 0x6fc   : > { %v8790_v8 = vmax.f32 %v20382_v46, %v12075_v61  ;;  %9452 = vmax.xlane.f32.xlu0 %v8977_v15  ;;  %v8745_v62 = vpop.f32.mrb[61].mxu0  ;;  %v8938_v1 = vpop.f32.mrb[61].mxu1 }
 0x6fd   : > { %v8788_v5 = vmax.f32 %v20384_v37, %v8745_v62  ;;  %v12076_v16 = vpop.f32.mrb[62].mxu0  ;;  %v12124_v57 = vpop.f32.mrb[62].mxu1 }
 0x6fe   : > { %v8791_v58 = vmax.f32 %v20387_v12, %v12076_v16  ;;  %v8983_v26 = vmax.f32 %v8790_v8, %v12123_v38  ;;  %v8748_v52 = vpop.f32.mrb[63].mxu0  ;;  %9454 = vmax.xlane.f32.xlu1 %v8978_v6  ;;  %v8941_v29 = vpop.f32.mrb[63].mxu1 }
 0x6ff   : > { %v8789_v42 = vmax.f32 %v20390_v24, %v8748_v52  ;;  %v8981_v14 = vmax.f32 %v8788_v5, %v8938_v1 }
 0x700   : > { %v8984_v13 = vmax.f32 %v8791_v58, %v12124_v57 }
 0x701   : > { %v8982_v41 = vmax.f32 %v8789_v42, %v8941_v29  ;;  %9460 = vmax.xlane.f32.xlu0 %v8981_v14 }
 0x703   : > { %9462 = vmax.xlane.f32.xlu1 %v8982_v41 }
 0x705   : > { %9464 = vmax.xlane.f32.xlu0 %v8983_v26 }
 0x707   : > { %9466 = vmax.xlane.f32.xlu1 %v8984_v13 }
 0x755   : > { %v9409_v44 = vpop.xlane.xlu0 %9408 }
 0x756   : > { %9567 = vst.msk [vmem:[%s15516_s30 + $0x310] sm:$0xff] %vm9468_vm1, %v9409_v44 }
 0x757   : > { %v9411_v25 = vpop.xlane.xlu1 %9410 }
 0x758   : > { %9568 = vst.msk [vmem:[%s15516_s30 + $0x318] sm:$0xff] %vm9468_vm1, %v9411_v25 }
 0x759   : > { %v9405_v31 = vpop.xlane.xlu0 %9404 }
 0x75a   : > { %9565 = vst.msk [vmem:[%s15516_s30 + $0x300] sm:$0xff] %vm9468_vm1, %v9405_v31 }
 0x75b   : > { %v9407_v48 = vpop.xlane.xlu1 %9406 }
 0x75c   : > { %9566 = vst.msk [vmem:[%s15516_s30 + $0x308] sm:$0xff] %vm9468_vm1, %v9407_v48 }
 0x75d   : > { %v9417_v2 = vpop.xlane.xlu0 %9416 }
 0x75e   : > { %9571 = vst.msk [vmem:[%s15516_s30 + $0x330] sm:$0xff] %vm9468_vm1, %v9417_v2 }
 0x75f   : > { %v9419_v17 = vpop.xlane.xlu1 %9418 }
 0x760   : > { %9572 = vst.msk [vmem:[%s15516_s30 + $0x338] sm:$0xff] %vm9468_vm1, %v9419_v17 }
 0x761   : > { %v9413_v34 = vpop.xlane.xlu0 %9412 }
 0x762   : > { %9569 = vst.msk [vmem:[%s15516_s30 + $0x320] sm:$0xff] %vm9468_vm1, %v9413_v34 }
 0x763   : > { %v9415_v20 = vpop.xlane.xlu1 %9414 }
 0x764   : > { %9570 = vst.msk [vmem:[%s15516_s30 + $0x328] sm:$0xff] %vm9468_vm1, %v9415_v20 }
 0x765   : > { %v9425_v59 = vpop.xlane.xlu0 %9424 }
 0x766   : > { %9575 = vst.msk [vmem:[%s15516_s30 + $0x350] sm:$0xff] %vm9468_vm1, %v9425_v59 }
 0x767   : > { %v9427_v3 = vpop.xlane.xlu1 %9426 }
 0x768   : > { %9576 = vst.msk [vmem:[%s15516_s30 + $0x358] sm:$0xff] %vm9468_vm1, %v9427_v3 }
 0x769   : > { %v9421_v35 = vpop.xlane.xlu0 %9420 }
 0x76a   : > { %9573 = vst.msk [vmem:[%s15516_s30 + $0x340] sm:$0xff] %vm9468_vm1, %v9421_v35 }
 0x76b   : > { %v9423_v60 = vpop.xlane.xlu1 %9422 }
 0x76c   : > { %9574 = vst.msk [vmem:[%s15516_s30 + $0x348] sm:$0xff] %vm9468_vm1, %v9423_v60 }
 0x76d   : > { %v9433_v54 = vpop.xlane.xlu0 %9432 }
 0x76e   : > { %9579 = vst.msk [vmem:[%s15516_s30 + $0x370] sm:$0xff] %vm9468_vm1, %v9433_v54 }
 0x76f   : > { %v9435_v56 = vpop.xlane.xlu1 %9434 }
 0x770   : > { %9580 = vst.msk [vmem:[%s15516_s30 + $0x378] sm:$0xff] %vm9468_vm1, %v9435_v56 }
 0x771   : > { %v9429_v51 = vpop.xlane.xlu0 %9428 }
 0x772   : > { %9577 = vst.msk [vmem:[%s15516_s30 + $0x360] sm:$0xff] %vm9468_vm1, %v9429_v51 }
 0x773   : > { %v9431_v30 = vpop.xlane.xlu1 %9430 }
 0x774   : > { %9578 = vst.msk [vmem:[%s15516_s30 + $0x368] sm:$0xff] %vm9468_vm1, %v9431_v30 }
 0x775   : > { %v9441_v43 = vpop.xlane.xlu0 %9440 }
 0x776   : > { %9583 = vst.msk [vmem:[%s15516_s30 + $0x390] sm:$0xff] %vm9468_vm1, %v9441_v43 }
 0x777   : > { %v9443_v10 = vpop.xlane.xlu1 %9442 }
 0x778   : > { %9584 = vst.msk [vmem:[%s15516_s30 + $0x398] sm:$0xff] %vm9468_vm1, %v9443_v10 }
 0x779   : > { %v9437_v39 = vpop.xlane.xlu0 %9436 }
 0x77a   : > { %9581 = vst.msk [vmem:[%s15516_s30 + $0x380] sm:$0xff] %vm9468_vm1, %v9437_v39 }
 0x77b   : > { %v9439_v36 = vpop.xlane.xlu1 %9438 }
 0x77c   : > { %9582 = vst.msk [vmem:[%s15516_s30 + $0x388] sm:$0xff] %vm9468_vm1, %v9439_v36 }
 0x77d   : > { %v9449_v27 = vpop.xlane.xlu0 %9448 }
 0x77e   : > { %9587 = vst.msk [vmem:[%s15516_s30 + $0x3b0] sm:$0xff] %vm9468_vm1, %v9449_v27 }
 0x77f   : > { %v9451_v7 = vpop.xlane.xlu1 %9450 }
 0x780   : > { %9588 = vst.msk [vmem:[%s15516_s30 + $0x3b8] sm:$0xff] %vm9468_vm1, %v9451_v7 }
 0x781   : > { %v9445_v19 = vpop.xlane.xlu0 %9444 }
 0x782   : > { %9585 = vst.msk [vmem:[%s15516_s30 + $0x3a0] sm:$0xff] %vm9468_vm1, %v9445_v19 }
 0x783   : > { %v9447_v9 = vpop.xlane.xlu1 %9446 }
 0x784   : > { %9586 = vst.msk [vmem:[%s15516_s30 + $0x3a8] sm:$0xff] %vm9468_vm1, %v9447_v9 }
 0x785   : > { %v9457_v4 = vpop.xlane.xlu0 %9456 }
 0x786   : > { %9591 = vst.msk [vmem:[%s15516_s30 + $0x3d0] sm:$0xff] %vm9468_vm1, %v9457_v4 }
 0x787   : > { %v9459_v47 = vpop.xlane.xlu1 %9458 }
 0x788   : > { %9592 = vst.msk [vmem:[%s15516_s30 + $0x3d8] sm:$0xff] %vm9468_vm1, %v9459_v47 }
 0x789   : > { %v9453_v45 = vpop.xlane.xlu0 %9452 }
 0x78a   : > { %9589 = vst.msk [vmem:[%s15516_s30 + $0x3c0] sm:$0xff] %vm9468_vm1, %v9453_v45 }
 0x78b   : > { %v9455_v63 = vpop.xlane.xlu1 %9454 }
 0x78c   : > { %9590 = vst.msk [vmem:[%s15516_s30 + $0x3c8] sm:$0xff] %vm9468_vm1, %v9455_v63 }
 0x78e   : > { %v9461_v49 = vpop.xlane.xlu0 %9460 }
 0x78f   : > { %9593 = vst.msk [vmem:[%s15516_s30 + $0x3e0] sm:$0xff] %vm9468_vm1, %v9461_v49 }
 0x790   : > { %v9463_v53 = vpop.xlane.xlu1 %9462 }
 0x791   : > { %9594 = vst.msk [vmem:[%s15516_s30 + $0x3e8] sm:$0xff] %vm9468_vm1, %v9463_v53 }
 0x792   : > { %v9465_v18 = vpop.xlane.xlu0 %9464 }
 0x793   : > { %9595 = vst.msk [vmem:[%s15516_s30 + $0x3f0] sm:$0xff] %vm9468_vm1, %v9465_v18 }
 0x794   : > { %v9467_v0 = vpop.xlane.xlu1 %9466 }
 0x795   : > { %9596 = vst.msk [vmem:[%s15516_s30 + $0x3f8] sm:$0xff] %vm9468_vm1, %v9467_v0 }
 0x796 PF: > { %s17_s23 = sadd.s32 1, %s12355_s23   ;;  %s20391_s21 = smov %s12351_s22 }
 0x797   : > { %p14_p4 = scmp.ge.s32.totalorder %s17_s23, 4   ;;  %s20392_s22 = smov %s20394_s25 }
 0x799   :  { %16 = sbr.rel (!%p14_p4) target bundleno = 2 (0x2), region = 87 }
 0x7a0   :  { %9626 = vsyncpa [#allocation4], 1 }
 0x7a1   :  { %9628 = vsyncpa [#allocation4 + $0x1], 1 }

</bundles_post_ra>
